<compile_context>
chip_gen: v6e
topology: v6e:2x2x1
jax: 0.10.0
libtpu: 0.0.40
codegen_flags: <defaults>
</compile_context>

<pallas_src>
import functools

import numpy as np
import jax
import jax.numpy as jnp
from jax.experimental import pallas as pl
from jax.experimental.pallas import tpu as pltpu

CARDINALITY = 32   # BottleneckX.cardinality
BN_EPS = 1e-5


# ----------------------------------------------------------------------------
# Pallas kernel
# ----------------------------------------------------------------------------
def bottleneckx_kernel(x_ref, w1_ref, w2_ref, w3_ref, b1_ref, b2_ref, b3_ref,
                       out_ref, pad_ref, col_ref,
                       *, H, W, Cb, dilation, chunk, interior, pad_rows):
    d = dilation
    HW = H * W
    n_chunks = Cb // chunk

    # ---- re-zero only the scratch halo (interior is fully overwritten, so
    #      every grid step is self-contained -> megacore "parallel"-safe) -----
    pad_ref[pl.ds(0, interior), :] = jnp.zeros((interior, Cb), jnp.bfloat16)
    trail = pad_rows - (interior + HW)
    pad_ref[pl.ds(interior + HW, trail), :] = jnp.zeros((trail, Cb), jnp.bfloat16)

    # ---- conv1 (1x1, bn1 scale pre-folded into w1) + bias + relu ------------
    h1 = jnp.dot(x_ref[0], w1_ref[...], preferred_element_type=jnp.float32)
    h1 = jnp.maximum(h1 + b1_ref[...], 0.0)                      # [HW, Cb] f32
    # single contiguous, 16-row aligned bf16 store into the padded scratch
    pad_ref[pl.ds(interior, HW), :] = h1.astype(jnp.bfloat16)

    # column-validity masks emulate the left/right zero padding; built once,
    # kept bf16 so the per-window multiplies stay on the bf16 input path
    col = jax.lax.broadcasted_iota(jnp.int32, (HW, 1), 0) % W
    mask_l = (col >= d).astype(jnp.bfloat16)          # taps reading x-d (dx=0)
    mask_r = (col < W - d).astype(jnp.bfloat16)       # taps reading x+d (dx=2)

    # ---- conv2 (grouped 3x3, dilation d, bn2 folded): the 9 taps are folded
    #      into the contraction dim via a [HW, 9*chunk] bf16 im2col scratch ->
    #      ONE matmul per channel chunk; tap accumulation stays inside the MXU
    #      (no per-tap f32 VPU adds, no 9x matmul issue overhead).
    #      conv3 (1x1, bn3 folded) is fused per chunk, so no [HW, Cb] lane
    #      concat is materialised and conv2/conv3 MXU work interleaves. -------
    h3 = None
    for ci in range(n_chunks):
        for dy in range(3):
            for dx in range(3):
                off = interior + (dy - 1) * d * W + (dx - 1) * d   # static
                win = pad_ref[pl.ds(off, HW), pl.ds(ci * chunk, chunk)]
                if dx == 0:
                    win = win * mask_l
                elif dx == 2:
                    win = win * mask_r
                col_ref[:, pl.ds((dy * 3 + dx) * chunk, chunk)] = win
        h2c = jnp.dot(col_ref[...], w2_ref[ci],
                      preferred_element_type=jnp.float32)          # [HW, chunk]
        h2c = jnp.maximum(h2c + b2_ref[:, pl.ds(ci * chunk, chunk)], 0.0)
        part = jnp.dot(h2c.astype(jnp.bfloat16),
                       w3_ref[pl.ds(ci * chunk, chunk), :],
                       preferred_element_type=jnp.float32)          # [HW, Cout]
        h3 = part if h3 is None else h3 + part

    # ---- bias + residual + relu (f32); residual re-reads x instead of
    #      holding it live across the whole body ------------------------------
    out = jnp.maximum(h3 + b3_ref[...] + x_ref[0].astype(jnp.float32), 0.0)
    out_ref[0] = out.astype(out_ref.dtype)


# ----------------------------------------------------------------------------
# Wrappers
# ----------------------------------------------------------------------------
def bottleneckx_forward(x_rows, params, *, H, W, stride=1, dilation=1):
    """x_rows: [B, H*W, Cin] (channel-last rows). Returns [B, H*W, Cout] f32."""
    assert stride == 1, "only stride=1 is implemented"  # TODO(synk): strided conv2
    w1, w2, w3, b1, b2, b3 = params

    B, HW, Cin = x_rows.shape
    assert HW == H * W
    Cb = w1.shape[1]
    Cout = w3.shape[1]
    n_chunks, chunk = w2.shape[0], w2.shape[2]
    assert Cout == Cin, "residual add requires inplanes == planes"
    assert dilation < W

    d = dilation
    halo = d * W + d
    interior = -(-halo // 16) * 16                       # 16-row aligned (bf16)
    pad_rows = -(-(interior + HW + halo) // 16) * 16

    x_rows = x_rows.astype(jnp.bfloat16)                 # halve the x DMA

    kern = functools.partial(bottleneckx_kernel, H=H, W=W, Cb=Cb, dilation=d,
                             chunk=chunk, interior=interior, pad_rows=pad_rows)

    return pl.pallas_call(
        kern,
        out_shape=jax.ShapeDtypeStruct((B, HW, Cout), jnp.float32),
        grid_spec=pltpu.PrefetchScalarGridSpec(
            num_scalar_prefetch=0,
            grid=(B,),
            in_specs=[
                pl.BlockSpec((1, HW, Cin), lambda b: (b, 0, 0)),        # x rows
                pl.BlockSpec((Cin, Cb), lambda b: (0, 0)),              # w1 bf16
                pl.BlockSpec((n_chunks, 9 * chunk, chunk),
                             lambda b: (0, 0, 0)),                      # w2 taps
                pl.BlockSpec((Cb, Cout), lambda b: (0, 0)),             # w3 bf16
                pl.BlockSpec((1, Cb), lambda b: (0, 0)),                # b1
                pl.BlockSpec((1, Cb), lambda b: (0, 0)),                # b2
                pl.BlockSpec((1, Cout), lambda b: (0, 0)),              # b3
            ],
            out_specs=pl.BlockSpec((1, HW, Cout), lambda b: (b, 0, 0)),
            scratch_shapes=[
                pltpu.VMEM((pad_rows, Cb), jnp.bfloat16),       # padded h1
                pltpu.VMEM((HW, 9 * chunk), jnp.bfloat16),      # im2col operand
            ],
        ),
        compiler_params=pltpu.CompilerParams(
            dimension_semantics=("parallel",),
            # demo usage is < 2 MiB; 32 MiB stays safe on v7x's 64 MiB VMEM
            vmem_limit_bytes=32 * 1024 * 1024),
    )(x_rows, w1, w2, w3, b1, b2, b3)


def bottleneckx_forward_nchw(x_nchw, params, *, stride=1, dilation=1):
    """Test-harness convenience: NCHW in/out.  A real pipeline should stay in
    channel-last rows between blocks — these transposes are NOT free."""
    B, C, H, W = x_nchw.shape
    x_rows = jnp.transpose(x_nchw, (0, 2, 3, 1)).reshape(B, H * W, C)
    out = bottleneckx_forward(x_rows, params, H=H, W=W,
                              stride=stride, dilation=dilation)
    return jnp.transpose(out.reshape(B, H, W, -1), (0, 3, 1, 2))


# ----------------------------------------------------------------------------
# Deterministic parameter construction (matches nn.Module __init__ shapes)
# ----------------------------------------------------------------------------
def init_params(key, inplanes, planes):
    cardinality = CARDINALITY
    bottle_planes = planes * cardinality // 32
    assert bottle_planes % cardinality == 0
    g = bottle_planes // cardinality                 # in-channels per group
    Cb = bottle_planes

    ks = jax.random.split(key, 6)
    # PyTorch-layout conv weights (OIHW)
    w1_t = jax.random.normal(ks[0], (Cb, inplanes, 1, 1), jnp.float32) * 0.1
    w2_t = jax.random.normal(ks[1], (Cb, g, 3, 3), jnp.float32) * 0.1
    w3_t = jax.random.normal(ks[2], (planes, Cb, 1, 1), jnp.float32) * 0.1

    def folded_bn(k, c):
        ka, kb, kc, kd = jax.random.split(k, 4)
        gamma = jax.random.uniform(ka, (c,), jnp.float32, 0.5, 1.5)
        beta = jax.random.normal(kb, (c,), jnp.float32) * 0.1
        mean = jax.random.normal(kc, (c,), jnp.float32) * 0.1
        var = jax.random.uniform(kd, (c,), jnp.float32, 0.5, 1.5)
        scale = gamma / jnp.sqrt(var + BN_EPS)
        bias = beta - mean * scale
        return scale, bias

    s1, b1 = folded_bn(ks[3], Cb)
    s2, b2 = folded_bn(ks[4], Cb)
    s3, b3 = folded_bn(ks[5], planes)

    # ---- kernel-layout weights: BN scale folded in, bf16 MXU operands -------
    w1 = (jnp.transpose(w1_t[:, :, 0, 0], (1, 0)) * s1[None, :]).astype(jnp.bfloat16)
    w3 = (jnp.transpose(w3_t[:, :, 0, 0], (1, 0)) * s3[None, :]).astype(jnp.bfloat16)

    # conv2 -> per-chunk [9*chunk, chunk] with the 9 taps stacked along the
    # contraction dim (tap-major, t = dy*3+dx), block-diagonal per group
    if Cb % 128 == 0 and 128 % g == 0:
        chunk = 128
    else:
        chunk = Cb
    n_chunks = Cb // chunk
    w2_np = np.asarray(w2_t)
    s2_np = np.asarray(s2)
    taps = np.zeros((n_chunks, 9 * chunk, chunk), np.float32)
    for oc in range(Cb):
        grp = oc // g
        ci = oc // chunk
        ol = oc % chunk
        il0 = grp * g - ci * chunk            # group lies fully inside its chunk
        for dy in range(3):
            for dx in range(3):
                t = dy * 3 + dx
                taps[ci, t * chunk + il0:t * chunk + il0 + g, ol] = \
                    w2_np[oc, :, dy, dx] * s2_np[oc]
    w2 = jnp.asarray(taps).astype(jnp.bfloat16)

    kernel_params = (w1, w2, w3, b1[None, :], b2[None, :], b3[None, :])
    torch_params = (w1_t, w2_t, w3_t, s1, b1, s2, b2, s3, b3)
    return kernel_params, torch_params


# ----------------------------------------------------------------------------
# Pure-JAX reference (mirrors the PyTorch forward, folded-BN inference mode)
# ----------------------------------------------------------------------------
def reference_forward(x, torch_params, dilation=1):
    w1_t, w2_t, w3_t, s1, b1, s2, b2, s3, b3 = torch_params
    dn = ("NCHW", "OIHW", "NCHW")

    def affine(y, s, b):
        return y * s[None, :, None, None] + b[None, :, None, None]

    out = jax.lax.conv_general_dilated(x, w1_t, (1, 1), "VALID",
                                       dimension_numbers=dn)
    out = jnp.maximum(affine(out, s1, b1), 0.0)
    out = jax.lax.conv_general_dilated(
        out, w2_t, (1, 1), [(dilation, dilation), (dilation, dilation)],
        rhs_dilation=(dilation, dilation),
        feature_group_count=CARDINALITY, dimension_numbers=dn)
    out = jnp.maximum(affine(out, s2, b2), 0.0)
    out = jax.lax.conv_general_dilated(out, w3_t, (1, 1), "VALID",
                                       dimension_numbers=dn)
    out = affine(out, s3, b3)
    return jnp.maximum(out + x, 0.0)


# ----------------------------------------------------------------------------
if __name__ == "__main__":
    B, H, W = 2, 16, 16
    inplanes = planes = 128       # residual add requires inplanes == planes;
                                  # multiple of 128 keeps all tiles lane-dense

    key = jax.random.PRNGKey(0)
    kx, kp = jax.random.split(key)
    x = jax.random.normal(kx, (B, inplanes, H, W), jnp.float32)

    kernel_params, torch_params = init_params(kp, inplanes, planes)
    for dilation in (1, 2):
        out = jax.block_until_ready(
            bottleneckx_forward_nchw(x, kernel_params, stride=1, dilation=dilation))
        ref = jax.block_until_ready(
            reference_forward(x, torch_params, dilation=dilation))
        # bf16 MXU operands / bf16 residual (kernel) vs f32 reference.
        np.testing.assert_allclose(np.asarray(out), np.asarray(ref),
                                   rtol=5e-2, atol=5e-2)

    print("KERNEL_OK")
</pallas_src>

<mosaic_0001>
module attributes {stable_mosaic.version = 11 : i64} {
  func.func @bottleneckx_kernel(%arg0: i32, %arg1: memref<1x256x128xbf16, #tpu.memory_space<vmem>>, %arg2: memref<128x128xbf16, #tpu.memory_space<vmem>>, %arg3: memref<1x1152x128xbf16, #tpu.memory_space<vmem>>, %arg4: memref<128x128xbf16, #tpu.memory_space<vmem>>, %arg5: memref<1x128xf32, #tpu.memory_space<vmem>>, %arg6: memref<1x128xf32, #tpu.memory_space<vmem>>, %arg7: memref<1x128xf32, #tpu.memory_space<vmem>>, %arg8: memref<1x256x128xf32, #tpu.memory_space<vmem>>, %arg9: memref<320x128xbf16, #tpu.memory_space<vmem>>, %arg10: memref<256x1152xbf16, #tpu.memory_space<vmem>>) attributes {dimension_semantics = [#tpu.dimension_semantics<parallel>], iteration_bounds = array<i64: 2>, scalar_prefetch = 0 : i64, scratch_operands = 2 : i64, tpu.core_type = #tpu.core_type<tc>, window_params = [{transform_indices = @transform_0, window_bounds = array<i64: 1, 256, 128>}, {pipeline_mode = #tpu.pipeline_mode<synchronous>, transform_indices = @transform_1, window_bounds = array<i64: 128, 128>}, {pipeline_mode = #tpu.pipeline_mode<synchronous>, transform_indices = @transform_2, window_bounds = array<i64: 1, 1152, 128>}, {pipeline_mode = #tpu.pipeline_mode<synchronous>, transform_indices = @transform_3, window_bounds = array<i64: 128, 128>}, {pipeline_mode = #tpu.pipeline_mode<synchronous>, transform_indices = @transform_4, window_bounds = array<i64: 1, 128>}, {pipeline_mode = #tpu.pipeline_mode<synchronous>, transform_indices = @transform_5, window_bounds = array<i64: 1, 128>}, {pipeline_mode = #tpu.pipeline_mode<synchronous>, transform_indices = @transform_6, window_bounds = array<i64: 1, 128>}, {transform_indices = @transform_7, window_bounds = array<i64: 1, 256, 128>}]} {
    %cst = arith.constant 0.000000e+00 : bf16
    %0 = vector.broadcast %cst : bf16 to vector<32x128xbf16>
    %c0 = arith.constant 0 : index
    %c0_0 = arith.constant 0 : index
    %1 = vector.load %arg9[%c0, %c0_0] : memref<320x128xbf16, #tpu.memory_space<vmem>>, vector<32x128xbf16>
    tpu.vector_store %arg9[%c0, %c0_0], %0 {strides = array<i32>} : memref<320x128xbf16, #tpu.memory_space<vmem>>, vector<32x128xbf16>,
    %cst_1 = arith.constant 0.000000e+00 : bf16
    %2 = vector.broadcast %cst_1 : bf16 to vector<32x128xbf16>
    %c288 = arith.constant 288 : index
    %c0_2 = arith.constant 0 : index
    %3 = vector.load %arg9[%c288, %c0_2] : memref<320x128xbf16, #tpu.memory_space<vmem>>, vector<32x128xbf16>
    tpu.vector_store %arg9[%c288, %c0_2], %2 {strides = array<i32>} : memref<320x128xbf16, #tpu.memory_space<vmem>>, vector<32x128xbf16>,
    %c0_3 = arith.constant 0 : index
    %c0_4 = arith.constant 0 : index
    %c0_5 = arith.constant 0 : index
    %4 = vector.load %arg1[%c0_3, %c0_4, %c0_5] : memref<1x256x128xbf16, #tpu.memory_space<vmem>>, vector<1x256x128xbf16>
    %5 = vector.shape_cast %4 : vector<1x256x128xbf16> to vector<256x128xbf16>
    %c0_6 = arith.constant 0 : index
    %c0_7 = arith.constant 0 : index
    %6 = vector.load %arg2[%c0_6, %c0_7] : memref<128x128xbf16, #tpu.memory_space<vmem>>, vector<128x128xbf16>
    %cst_8 = arith.constant dense<0.000000e+00> : vector<256x128xf32>
    %7 = tpu.matmul %5, %6, %cst_8 {dimension_numbers = #tpu.dot_dimension_numbers<[1], [0], [0], [1], [0, 0, 1, 1], [], []>} : vector<256x128xbf16>, vector<128x128xbf16>, vector<256x128xf32> -> vector<256x128xf32>
    %c0_9 = arith.constant 0 : index
    %c0_10 = arith.constant 0 : index
    %8 = vector.load %arg5[%c0_9, %c0_10] : memref<1x128xf32, #tpu.memory_space<vmem>>, vector<1x128xf32>
    %9 = vector.broadcast %8 : vector<1x128xf32> to vector<256x128xf32>
    %10 = arith.addf %7, %9 : vector<256x128xf32>
    %cst_11 = arith.constant 0.000000e+00 : f32
    %11 = vector.broadcast %cst_11 : f32 to vector<256x128xf32>
    %12 = arith.maximumf %10, %11 : vector<256x128xf32>
    %13 = arith.truncf %12 : vector<256x128xf32> to vector<256x128xbf16>
    %c32 = arith.constant 32 : index
    %c0_12 = arith.constant 0 : index
    %14 = vector.load %arg9[%c32, %c0_12] : memref<320x128xbf16, #tpu.memory_space<vmem>>, vector<256x128xbf16>
    tpu.vector_store %arg9[%c32, %c0_12], %13 {strides = array<i32>} : memref<320x128xbf16, #tpu.memory_space<vmem>>, vector<256x128xbf16>,
    %15 = tpu.iota {dimensions = array<i32: 0>} : vector<256x1xi32>
    %c16_i32 = arith.constant 16 : i32
    %c0_i32 = arith.constant 0 : i32
    %16 = arith.cmpi eq, %c16_i32, %c0_i32 : i32
    %c1_i32 = arith.constant 1 : i32
    %17 = arith.select %16, %c1_i32, %c16_i32 : i32
    %18 = vector.broadcast %17 : i32 to vector<256x1xi32>
    %19 = arith.remsi %15, %18 : vector<256x1xi32>
    %c0_i32_13 = arith.constant 0 : i32
    %20 = vector.broadcast %c0_i32_13 : i32 to vector<256x1xi32>
    %21 = arith.cmpi ne, %19, %20 : vector<256x1xi32>
    %c0_i32_14 = arith.constant 0 : i32
    %22 = vector.broadcast %c0_i32_14 : i32 to vector<256x1xi32>
    %23 = arith.cmpi slt, %19, %22 : vector<256x1xi32>
    %c0_i32_15 = arith.constant 0 : i32
    %24 = arith.cmpi slt, %17, %c0_i32_15 : i32
    %25 = vector.broadcast %24 : i1 to vector<256x1xi1>
    %26 = vector.broadcast %25 : vector<256x1xi1> to vector<256x1xi1>
    %27 = arith.xori %23, %26 : vector<256x1xi1>
    %28 = arith.andi %27, %21 : vector<256x1xi1>
    %29 = vector.broadcast %17 : i32 to vector<256x1xi32>
    %30 = arith.addi %19, %29 : vector<256x1xi32>
    %31 = arith.select %28, %30, %19 : vector<256x1xi1>, vector<256x1xi32>
    %c1_i32_16 = arith.constant 1 : i32
    %32 = vector.broadcast %c1_i32_16 : i32 to vector<256x1xi32>
    %33 = arith.cmpi sge, %31, %32 : vector<256x1xi32>
    %34 = arith.extui %33 : vector<256x1xi1> to vector<256x1xi32>
    %35 = arith.sitofp %34 : vector<256x1xi32> to vector<256x1xf32>
    %36 = arith.truncf %35 : vector<256x1xf32> to vector<256x1xbf16>
    %c15_i32 = arith.constant 15 : i32
    %37 = vector.broadcast %c15_i32 : i32 to vector<256x1xi32>
    %38 = arith.cmpi slt, %31, %37 : vector<256x1xi32>
    %39 = arith.extui %38 : vector<256x1xi1> to vector<256x1xi32>
    %40 = arith.sitofp %39 : vector<256x1xi32> to vector<256x1xf32>
    %41 = arith.truncf %40 : vector<256x1xf32> to vector<256x1xbf16>
    %c15 = arith.constant 15 : index
    %c0_17 = arith.constant 0 : index
    %42 = vector.load %arg9[%c15, %c0_17] : memref<320x128xbf16, #tpu.memory_space<vmem>>, vector<256x128xbf16>
    %43 = vector.broadcast %36 : vector<256x1xbf16> to vector<256x128xbf16>
    %44 = arith.mulf %42, %43 : vector<256x128xbf16>
    %c0_18 = arith.constant 0 : index
    %c0_19 = arith.constant 0 : index
    %45 = vector.load %arg10[%c0_18, %c0_19] : memref<256x1152xbf16, #tpu.memory_space<vmem>>, vector<256x128xbf16>
    tpu.vector_store %arg10[%c0_18, %c0_19], %44 {strides = array<i32>} : memref<256x1152xbf16, #tpu.memory_space<vmem>>, vector<256x128xbf16>,
    %c16 = arith.constant 16 : index
    %c0_20 = arith.constant 0 : index
    %46 = vector.load %arg9[%c16, %c0_20] : memref<320x128xbf16, #tpu.memory_space<vmem>>, vector<256x128xbf16>
    %c0_21 = arith.constant 0 : index
    %c128 = arith.constant 128 : index
    %47 = vector.load %arg10[%c0_21, %c128] : memref<256x1152xbf16, #tpu.memory_space<vmem>>, vector<256x128xbf16>
    tpu.vector_store %arg10[%c0_21, %c128], %46 {strides = array<i32>} : memref<256x1152xbf16, #tpu.memory_space<vmem>>, vector<256x128xbf16>,
    %c17 = arith.constant 17 : index
    %c0_22 = arith.constant 0 : index
    %48 = vector.load %arg9[%c17, %c0_22] : memref<320x128xbf16, #tpu.memory_space<vmem>>, vector<256x128xbf16>
    %49 = vector.broadcast %41 : vector<256x1xbf16> to vector<256x128xbf16>
    %50 = arith.mulf %48, %49 : vector<256x128xbf16>
    %c0_23 = arith.constant 0 : index
    %c256 = arith.constant 256 : index
    %51 = vector.load %arg10[%c0_23, %c256] : memref<256x1152xbf16, #tpu.memory_space<vmem>>, vector<256x128xbf16>
    tpu.vector_store %arg10[%c0_23, %c256], %50 {strides = array<i32>} : memref<256x1152xbf16, #tpu.memory_space<vmem>>, vector<256x128xbf16>,
    %c31 = arith.constant 31 : index
    %c0_24 = arith.constant 0 : index
    %52 = vector.load %arg9[%c31, %c0_24] : memref<320x128xbf16, #tpu.memory_space<vmem>>, vector<256x128xbf16>
    %53 = vector.broadcast %36 : vector<256x1xbf16> to vector<256x128xbf16>
    %54 = arith.mulf %52, %53 : vector<256x128xbf16>
    %c0_25 = arith.constant 0 : index
    %c384 = arith.constant 384 : index
    %55 = vector.load %arg10[%c0_25, %c384] : memref<256x1152xbf16, #tpu.memory_space<vmem>>, vector<256x128xbf16>
    tpu.vector_store %arg10[%c0_25, %c384], %54 {strides = array<i32>} : memref<256x1152xbf16, #tpu.memory_space<vmem>>, vector<256x128xbf16>,
    %c32_26 = arith.constant 32 : index
    %c0_27 = arith.constant 0 : index
    %56 = vector.load %arg9[%c32_26, %c0_27] : memref<320x128xbf16, #tpu.memory_space<vmem>>, vector<256x128xbf16>
    %c0_28 = arith.constant 0 : index
    %c512 = arith.constant 512 : index
    %57 = vector.load %arg10[%c0_28, %c512] : memref<256x1152xbf16, #tpu.memory_space<vmem>>, vector<256x128xbf16>
    tpu.vector_store %arg10[%c0_28, %c512], %56 {strides = array<i32>} : memref<256x1152xbf16, #tpu.memory_space<vmem>>, vector<256x128xbf16>,
    %c33 = arith.constant 33 : index
    %c0_29 = arith.constant 0 : index
    %58 = vector.load %arg9[%c33, %c0_29] : memref<320x128xbf16, #tpu.memory_space<vmem>>, vector<256x128xbf16>
    %59 = vector.broadcast %41 : vector<256x1xbf16> to vector<256x128xbf16>
    %60 = arith.mulf %58, %59 : vector<256x128xbf16>
    %c0_30 = arith.constant 0 : index
    %c640 = arith.constant 640 : index
    %61 = vector.load %arg10[%c0_30, %c640] : memref<256x1152xbf16, #tpu.memory_space<vmem>>, vector<256x128xbf16>
    tpu.vector_store %arg10[%c0_30, %c640], %60 {strides = array<i32>} : memref<256x1152xbf16, #tpu.memory_space<vmem>>, vector<256x128xbf16>,
    %c47 = arith.constant 47 : index
    %c0_31 = arith.constant 0 : index
    %62 = vector.load %arg9[%c47, %c0_31] : memref<320x128xbf16, #tpu.memory_space<vmem>>, vector<256x128xbf16>
    %63 = vector.broadcast %36 : vector<256x1xbf16> to vector<256x128xbf16>
    %64 = arith.mulf %62, %63 : vector<256x128xbf16>
    %c0_32 = arith.constant 0 : index
    %c768 = arith.constant 768 : index
    %65 = vector.load %arg10[%c0_32, %c768] : memref<256x1152xbf16, #tpu.memory_space<vmem>>, vector<256x128xbf16>
    tpu.vector_store %arg10[%c0_32, %c768], %64 {strides = array<i32>} : memref<256x1152xbf16, #tpu.memory_space<vmem>>, vector<256x128xbf16>,
    %c48 = arith.constant 48 : index
    %c0_33 = arith.constant 0 : index
    %66 = vector.load %arg9[%c48, %c0_33] : memref<320x128xbf16, #tpu.memory_space<vmem>>, vector<256x128xbf16>
    %c0_34 = arith.constant 0 : index
    %c896 = arith.constant 896 : index
    %67 = vector.load %arg10[%c0_34, %c896] : memref<256x1152xbf16, #tpu.memory_space<vmem>>, vector<256x128xbf16>
    tpu.vector_store %arg10[%c0_34, %c896], %66 {strides = array<i32>} : memref<256x1152xbf16, #tpu.memory_space<vmem>>, vector<256x128xbf16>,
    %c49 = arith.constant 49 : index
    %c0_35 = arith.constant 0 : index
    %68 = vector.load %arg9[%c49, %c0_35] : memref<320x128xbf16, #tpu.memory_space<vmem>>, vector<256x128xbf16>
    %69 = vector.broadcast %41 : vector<256x1xbf16> to vector<256x128xbf16>
    %70 = arith.mulf %68, %69 : vector<256x128xbf16>
    %c0_36 = arith.constant 0 : index
    %c1024 = arith.constant 1024 : index
    %71 = vector.load %arg10[%c0_36, %c1024] : memref<256x1152xbf16, #tpu.memory_space<vmem>>, vector<256x128xbf16>
    tpu.vector_store %arg10[%c0_36, %c1024], %70 {strides = array<i32>} : memref<256x1152xbf16, #tpu.memory_space<vmem>>, vector<256x128xbf16>,
    %c0_37 = arith.constant 0 : index
    %c0_38 = arith.constant 0 : index
    %72 = vector.load %arg10[%c0_37, %c0_38] : memref<256x1152xbf16, #tpu.memory_space<vmem>>, vector<256x1152xbf16>
    %c0_39 = arith.constant 0 : index
    %c0_40 = arith.constant 0 : index
    %c0_41 = arith.constant 0 : index
    %73 = vector.load %arg3[%c0_39, %c0_40, %c0_41] : memref<1x1152x128xbf16, #tpu.memory_space<vmem>>, vector<1x1152x128xbf16>
    %74 = vector.shape_cast %73 : vector<1x1152x128xbf16> to vector<1152x128xbf16>
    %cst_42 = arith.constant dense<0.000000e+00> : vector<256x128xf32>
    %75 = tpu.matmul %72, %74, %cst_42 {dimension_numbers = #tpu.dot_dimension_numbers<[1], [0], [0], [1], [0, 0, 1, 1], [], []>} : vector<256x1152xbf16>, vector<1152x128xbf16>, vector<256x128xf32> -> vector<256x128xf32>
    %c0_43 = arith.constant 0 : index
    %c0_44 = arith.constant 0 : index
    %76 = vector.load %arg6[%c0_43, %c0_44] : memref<1x128xf32, #tpu.memory_space<vmem>>, vector<1x128xf32>
    %77 = vector.broadcast %76 : vector<1x128xf32> to vector<256x128xf32>
    %78 = arith.addf %75, %77 : vector<256x128xf32>
    %cst_45 = arith.constant 0.000000e+00 : f32
    %79 = vector.broadcast %cst_45 : f32 to vector<256x128xf32>
    %80 = arith.maximumf %78, %79 : vector<256x128xf32>
    %81 = arith.truncf %80 : vector<256x128xf32> to vector<256x128xbf16>
    %c0_46 = arith.constant 0 : index
    %c0_47 = arith.constant 0 : index
    %82 = vector.load %arg4[%c0_46, %c0_47] : memref<128x128xbf16, #tpu.memory_space<vmem>>, vector<128x128xbf16>
    %cst_48 = arith.constant dense<0.000000e+00> : vector<256x128xf32>
    %83 = tpu.matmul %81, %82, %cst_48 {dimension_numbers = #tpu.dot_dimension_numbers<[1], [0], [0], [1], [0, 0, 1, 1], [], []>} : vector<256x128xbf16>, vector<128x128xbf16>, vector<256x128xf32> -> vector<256x128xf32>
    %c0_49 = arith.constant 0 : index
    %c0_50 = arith.constant 0 : index
    %84 = vector.load %arg7[%c0_49, %c0_50] : memref<1x128xf32, #tpu.memory_space<vmem>>, vector<1x128xf32>
    %85 = vector.broadcast %84 : vector<1x128xf32> to vector<256x128xf32>
    %86 = arith.addf %83, %85 : vector<256x128xf32>
    %c0_51 = arith.constant 0 : index
    %c0_52 = arith.constant 0 : index
    %c0_53 = arith.constant 0 : index
    %87 = vector.load %arg1[%c0_51, %c0_52, %c0_53] : memref<1x256x128xbf16, #tpu.memory_space<vmem>>, vector<1x256x128xbf16>
    %88 = vector.shape_cast %87 : vector<1x256x128xbf16> to vector<256x128xbf16>
    %89 = arith.extf %88 : vector<256x128xbf16> to vector<256x128xf32>
    %90 = arith.addf %86, %89 : vector<256x128xf32>
    %cst_54 = arith.constant 0.000000e+00 : f32
    %91 = vector.broadcast %cst_54 : f32 to vector<256x128xf32>
    %92 = arith.maximumf %90, %91 : vector<256x128xf32>
    %c0_55 = arith.constant 0 : index
    %c0_56 = arith.constant 0 : index
    %c0_57 = arith.constant 0 : index
    %93 = vector.load %arg8[%c0_55, %c0_56, %c0_57] : memref<1x256x128xf32, #tpu.memory_space<vmem>>, vector<1x256x128xf32>
    %94 = vector.shape_cast %93 : vector<1x256x128xf32> to vector<256x128xf32>
    %95 = vector.shape_cast %92 : vector<256x128xf32> to vector<1x256x128xf32>
    tpu.vector_store %arg8[%c0_55, %c0_56, %c0_57], %95 {strides = array<i32>} : memref<1x256x128xf32, #tpu.memory_space<vmem>>, vector<1x256x128xf32>,
    return
  }
  func.func @transform_0(%arg0: i32) -> (i32, i32, i32) {
    %c0_i32 = arith.constant 0 : i32
    %c0_i32_0 = arith.constant 0 : i32
    %c0_i32_1 = arith.constant 0 : i32
    return %arg0, %c0_i32, %c0_i32_0 : i32, i32, i32
  }
  func.func @transform_1(%arg0: i32) -> (i32, i32) {
    %c0_i32 = arith.constant 0 : i32
    %c0_i32_0 = arith.constant 0 : i32
    %c0_i32_1 = arith.constant 0 : i32
    return %c0_i32, %c0_i32_0 : i32, i32
  }
  func.func @transform_2(%arg0: i32) -> (i32, i32, i32) {
    %c0_i32 = arith.constant 0 : i32
    %c0_i32_0 = arith.constant 0 : i32
    %c0_i32_1 = arith.constant 0 : i32
    %c0_i32_2 = arith.constant 0 : i32
    return %c0_i32, %c0_i32_0, %c0_i32_1 : i32, i32, i32
  }
  func.func @transform_3(%arg0: i32) -> (i32, i32) {
    %c0_i32 = arith.constant 0 : i32
    %c0_i32_0 = arith.constant 0 : i32
    %c0_i32_1 = arith.constant 0 : i32
    return %c0_i32, %c0_i32_0 : i32, i32
  }
  func.func @transform_4(%arg0: i32) -> (i32, i32) {
    %c0_i32 = arith.constant 0 : i32
    %c0_i32_0 = arith.constant 0 : i32
    %c0_i32_1 = arith.constant 0 : i32
    return %c0_i32, %c0_i32_0 : i32, i32
  }
  func.func @transform_5(%arg0: i32) -> (i32, i32) {
    %c0_i32 = arith.constant 0 : i32
    %c0_i32_0 = arith.constant 0 : i32
    %c0_i32_1 = arith.constant 0 : i32
    return %c0_i32, %c0_i32_0 : i32, i32
  }
  func.func @transform_6(%arg0: i32) -> (i32, i32) {
    %c0_i32 = arith.constant 0 : i32
    %c0_i32_0 = arith.constant 0 : i32
    %c0_i32_1 = arith.constant 0 : i32
    return %c0_i32, %c0_i32_0 : i32, i32
  }
  func.func @transform_7(%arg0: i32) -> (i32, i32, i32) {
    %c0_i32 = arith.constant 0 : i32
    %c0_i32_0 = arith.constant 0 : i32
    %c0_i32_1 = arith.constant 0 : i32
    return %arg0, %c0_i32, %c0_i32_0 : i32, i32, i32
  }
}

</mosaic_0001>

<bundles_post_ra>
// kernel: tpu_custom_call.1
= control target key start
LH: loop header
LB: loop body
LE: loop exit
PB: predicated region body
PF: predicated region fallthrough
CT: control target
= control target key end

     0   :  { %s14492_s0 = inlined_call_operand.hbm [shape: bf16[2,256,128], index: 0, kind: input, shape index: {}]   ;;  %s14493_s1 = inlined_call_operand.hbm [shape: bf16[128,128], index: 1, kind: input, shape index: {}]   ;;  %s14494_s2 = inlined_call_operand.hbm [shape: bf16[1,1152,128], index: 2, kind: input, shape index: {}]   ;;  %s14495_s3 = inlined_call_operand.hbm [shape: bf16[128,128], index: 3, kind: input, shape index: {}]   ;;  %s14496_s4 = inlined_call_operand.vmem [shape: f32[1,128], index: 4, kind: input, shape index: {}]   ;;  %s14497_s5 = inlined_call_operand.vmem [shape: f32[1,128], index: 5, kind: input, shape index: {}]   ;;  %s14498_s6 = inlined_call_operand.vmem [shape: f32[1,128], index: 6, kind: input, shape index: {}]   ;;  %s14499_s7 = inlined_call_operand.hbm [shape: f32[2,256,128], index: 7, kind: output, shape index: {}]  }
   0x1   :  { %14906 = sst [smem:[#allocation259_spill]] %s14493_s1 }
   0x2   :  { %12 = vsyncpa [#allocation5], 0 }
   0x3   :  { %14 = vsyncpa [#allocation5 + $0x1], 0 }
   0x4   :  { %15 = vsyncpa [#allocation8], 0 }
   0x5   :  { %16 = vsyncpa [#allocation11], 0 }
   0x6   :  { %17 = vsyncpa [#allocation6], 0 }
   0x7   :  { %19 = vsyncpa [#allocation6 + $0x1], 0  ;;  %s10224_s24 = smov 0   ;;  %s10226_s25 = smov 0  }
   0x8   :  { %s10228_s26 = smov 0   ;;  %s10230_s27 = smov 0  }
   0x9 LB: > { %s10245_s28 = sadd.s32 4294967295, %s10168_s27   ;;  %s8361_s29 = sadd.s32 4294967294, %s10168_s27   ;;  %s10168_s27 = sphi %s10230_s27, %s15975_s27   ;;  %s10164_s26 = sphi %s10228_s26, %s15974_s26   ;;  %s10160_s25 = sphi %s10226_s25, %s15973_s25   ;;  %s10156_s24 = sphi %s10224_s24, %s15972_s24  }
   0xa   : > { %p45_p0 = scmp.ne.s32.totalorder %s10160_s25, %s10156_s24  ;;  %p14500_p1 = scmp.eq.s32.totalorder %s10245_s28, 0 }
   0xb   : > { %p195_p2 = scmp.eq.s32.totalorder %s10245_s28, 1  ;;  %p201_p3 = scmp.eq.s32.totalorder %s8361_s29, 1 }
   0xc   : > { %p10254_p4 = por %p14500_p1, %p45_p0  ;;  %p8362_p5 = scmp.ge.s32.totalorder %s10168_s27, 1 }
   0xd   : > { %p10259_p6 = por %p201_p3, %p45_p0  ;;  %p208_p7 = scmp.lt.s32.totalorder %s10168_s27, 3 }
   0xe   : > { %s14907_s30 = scalar_select %p10254_p4, 1, 0 }
   0xf   : > { %s14908_s8 = scalar_select %p10259_p6, 1, 0 }
  0x10   : > { %p10264_p8 = pnand %p8362_p5, %p208_p7  ;;  %s10170_s10 = smov [#allocation7]  }
  0x11   : > { %s220_s11 = sshll.u32 %s10170_s10, 4  ;;  %s10171_s13 = smov [#allocation9]   ;;  %s221_s11 = int_to_ptr.vmem [resolvable:$true] %s220_s11 }
  0x12   : > { %s14909_s9 = scalar_select %p10264_p8, 1, 0 }
  0x13   : > { %p9604_p9 = pneg %p10264_p8  ;;  %s233_s14 = sshll.u32 %s10171_s13, 4  ;;  %s234_s14 = int_to_ptr.vmem [resolvable:$true] %s233_s14 }
  0x14   : > { %s10172_s15 = smov [#allocation10]   ;;  %s10001_s17 = scalar_lea.vmem %s221_s11, 1024 }
  0x15   : > { %p10273_p11 = pnand %p9604_p9, %p14500_p1  ;;  %s246_s16 = sshll.u32 %s10172_s15, 4  ;;  %s247_s16 = int_to_ptr.vmem [resolvable:$true] %s246_s16 }
  0x16   : > { %p10002_p13 = scmp.ne.s32.totalorder %s221_s11, %s10001_s17  ;;  %p10009_p5 = scmp.lt.s32.totalorder %s221_s11, %s221_s11 }
  0x17   : > { %p9992_p12 = pneg %p10273_p11  ;;  %p10010_p7 = scmp.lt.s32.totalorder %s10001_s17, %s10001_s17 }
  0x19   : > { %p10004_p0 = pnand %p10002_p13, %p9992_p12  ;;  %p10011_p9 = por %p10010_p7, %p10009_p5 }
  0x1b   : > { %p10005_p3 = pneg %p10004_p0 }
  0x1d   : > { %p10012_p10 = pnand %p10011_p9, %p10005_p3 }
  0x1f   : > { %10015 = shalt.err (!%p10012_p10)
}
  0x20   : > { %s14501_s18 = smov 64   ;;  %s14502_s19 = smov 4  }
  0x21   : > { %s14911_s1 = sld [smem:[#allocation259_spill]]  ;;  %s10027_s22 = scalar_lea.vmem %s234_s14, 9216 }
  0x22   : > { %p10028_p13 = scmp.ne.s32.totalorder %s234_s14, %s10027_s22  ;;  %p10035_p3 = scmp.lt.s32.totalorder %s234_s14, %s234_s14 }
  0x23   : > { %p10036_p10 = scmp.lt.s32.totalorder %s10027_s22, %s10027_s22 }
  0x24   : > { %p10030_p0 = pnand %p10028_p13, %p9992_p12 }
  0x25   : > { %p10037_p7 = por %p10036_p10, %p10035_p3 }
  0x26   : > { %p10031_p5 = pneg %p10030_p0 }
  0x27   : > { %9607 = dma.hbm_to_vmem [thread:$0]  (!%p10273_p11), %s14911_s1, 1024, %s221_s11, [#allocation8], %s14501_s18, %s14501_s18, %s14502_s19  }
  0x28   : > { %p10038_p9 = pnand %p10037_p7, %p10031_p5 }
  0x2a   : > { %10041 = shalt.err (!%p10038_p9)
}
  0x2b   : > { %9610 = dma.hbm_to_vmem [thread:$0]  (!%p10273_p11), %s14494_s2, 9216, %s234_s14, [#allocation8], %s14501_s18, %s14501_s18, %s14502_s19  }
  0x2c   : > { %s10053_s10 = scalar_lea.vmem %s247_s16, 1024  ;;  %p10061_p3 = scmp.lt.s32.totalorder %s247_s16, %s247_s16 }
  0x2d   : > { %p10054_p1 = scmp.ne.s32.totalorder %s247_s16, %s10053_s10  ;;  %p10062_p5 = scmp.lt.s32.totalorder %s10053_s10, %s10053_s10 }
  0x2f   : > { %p10056_p13 = pnand %p10054_p1, %p9992_p12  ;;  %p10063_p10 = por %p10062_p5, %p10061_p3 }
  0x31   : > { %p10057_p0 = pneg %p10056_p13 }
  0x33   : > { %p10064_p7 = pnand %p10063_p10, %p10057_p0 }
  0x35   : > { %10067 = shalt.err (!%p10064_p7)
}
  0x36   : > { %9613 = dma.hbm_to_vmem [thread:$0]  (!%p10273_p11), %s14495_s3, 1024, %s247_s16, [#allocation11], %s14501_s18, %s14501_s18, %s14502_s19  }
  0x37   : > { %s10313_s14 = sadd.s32 1, %s10168_s27   ;;  %s32_s15 = sadd.s32 1, %s10164_s26 }
  0x38   : > { %s29_s12 = ssub.s32 %s10168_s27, %s10313_s14  ;;  %p39_p12 = scmp.ne.s32.totalorder %s10164_s26, %s10160_s25 }
  0x39   : > { %p30_p1 = scmp.eq.s32.totalorder %s29_s12, 0  ;;  %p40_p9 = scmp.eq.s32.totalorder %s10168_s27, 0 }
  0x3a   : > { %p9625_p13 = scmp.lt.s32.totalorder %s10168_s27, 2  ;;  %p10327_p3 = por %p195_p2, %p39_p12 }
  0x3b   : > { %s10323_s17 = scalar_select %p30_p1, %s10164_s26, %s32_s15  }
  0x3c   : > { %p41_p0 = por %p40_p9, %p39_p12  ;;  %s269_s21 = sand.u32 1, %s10164_s26  }
  0x3d   : > { %s14912_s20 = scalar_select %p10327_p3, 1, 0 }
  0x3e   : > { %s8699_s22 = sshll.u32 %s10168_s27, 11  ;;  %s8367_s16 = sshll.u32 %s269_s21, 7 }
  0x3f   : > { %s10336_s10 = scalar_lea.hbm %s14492_s0, %s8699_s22  ;;  %s273_s11 = scalar_lea.vmem [#allocation4], %s8367_s16 }
  0x40   : > { %s280_s13 = sshll.u32 %s273_s11, 4  ;;  %p10338_p11 = pnand %p9625_p13, %p41_p0  ;;  %s10342_s13 = int_to_ptr.vmem [resolvable:$true] %s280_s13 }
  0x41   : > { %s10344_s15 = scalar_lea.sflag [#allocation5], %s269_s21  ;;  %s10068_s18 = scalar_lea.hbm %s10336_s10, 2048 }
  0x42   : > { %p10069_p2 = scmp.ne.s32.totalorder %s10336_s10, %s10068_s18  ;;  %p10070_p5 = pneg %p10338_p11 }
  0x43   : > { %s10073_s16 = scalar_lea.hbm %s14492_s0, 4096  ;;  %p10074_p1 = scmp.lt.s32.totalorder %s10336_s10, %s14492_s0 }
  0x44   : > { %p10071_p10 = pnand %p10070_p5, %p10069_p2  ;;  %p10075_p12 = scmp.lt.s32.totalorder %s10073_s16, %s10068_s18 }
  0x46   : > { %p10072_p7 = pneg %p10071_p10  ;;  %p10076_p9 = por %p10075_p12, %p10074_p1 }
  0x48   : > { %p10077_p13 = pnand %p10076_p9, %p10072_p7 }
  0x4a   : > { %10080 = shalt.err (!%p10077_p13)
}
  0x4b   : > { %s10081_s21 = scalar_lea.vmem %s10342_s13, 2048  ;;  %s10175_s19 = smov [#allocation4]  }
  0x4c   : > { %p10082_p0 = scmp.ne.s32.totalorder %s10342_s13, %s10081_s21  ;;  %s10086_s1 = sshll.u32 %s10175_s19, 4  ;;  %s10087_s1 = int_to_ptr.vmem [resolvable:$false] %s10086_s1 }
  0x4d   : > { %s10088_s22 = scalar_lea.vmem %s10087_s1, 4096  ;;  %p10089_p10 = scmp.lt.s32.totalorder %s10342_s13, %s10087_s1 }
  0x4e   : > { %p10084_p6 = pnand %p10082_p0, %p10070_p5  ;;  %p10090_p3 = scmp.lt.s32.totalorder %s10088_s22, %s10081_s21 }
  0x50   : > { %p10085_p2 = pneg %p10084_p6  ;;  %p10091_p4 = por %p10090_p3, %p10089_p10 }
  0x52   : > { %p10092_p8 = pnand %p10091_p4, %p10085_p2 }
  0x54   : > { %10095 = shalt.err (!%p10092_p8)
}
  0x55   : > { %s14914_s18 = smov 4   ;;  %s14915_s23 = smov 64  }
  0x56   : > { %9617 = dma.hbm_to_vmem [thread:$0]  (!%p10338_p11), %s10336_s10, 2048, %s10342_s13, %s10344_s15, %s14915_s23, %s14915_s23, %s14914_s18  }
  0x57   : > { %p14916_p6 = scmp.ne.s32.totalorder %s14909_s9, 0 }
  0x59   : > { %292 = sbr.rel (%p14916_p6) target bundleno = 1489 (0x5d1), region = 48 }
  0x5e   : > { %s10371_s19 = sand.u32 1, %s10160_s25   ;;  %p14917_p4 = scmp.ne.s32.totalorder %s14907_s30, 0 }
  0x5f   : > { %s8371_s1 = sshll.u32 %s10371_s19, 7  ;;  %s295_s16 = scalar_lea.sflag [#allocation5], %s10371_s19 }
  0x60   : > { %s10375_s29 = scalar_lea.vmem [#allocation4], %s8371_s1 }
  0x61   : > { %10139 = dma.done.wait (%p14917_p4), %s295_s16, 2048  }
  0x62   : > { %10141 = vsyncadd (%p14917_p4), %s295_s16, 4294965248  ;;  %p14918_p8 = scmp.eq.s32.totalorder %s10245_s28, 0 }
  0x64   : > { %10143 = dma.done.wait (%p14918_p8), [#allocation8], 10240   ;;  %p14919_p3 = pmov %p14918_p8 }
  0x66   : > { %10145 = vsyncadd (%p14919_p3), [#allocation8], 4294957056  ;;  %p14920_p11 = pmov %p14919_p3 }
  0x67   : > { %p14921_p5 = pmov %p14919_p3 }
  0x68   : > { %10147 = dma.done.wait (%p14920_p11), [#allocation11], 1024  }
  0x69   : > { %10149 = vsyncadd (%p14921_p5), [#allocation11], 4294966272  ;;  %v9674_v0 = vld [vmem:[#allocation7 + $0x38] sm:$0xff]   ;;  %v9675_v1 = vld [vmem:[#allocation7 + $0x30] sm:$0xff]   ;;  %v902_v27 = vlaneseq  ;;  %v10176_v31 = vmov 839922192  }
  0x6a   : > { %9428 = vmatprep.subr.bf16.mxu0 %v9674_v0  ;;  %9572 = vmatprep.subr.bf16.mxu1 %v9674_v0  ;;  %v9676_v2 = vld [vmem:[#allocation7 + $0x28] sm:$0xff]   ;;  %v9677_v3 = vld [vmem:[#allocation7 + $0x20] sm:$0xff]   ;;  %v9678_v5 = vld [vmem:[#allocation7 + $0x18] sm:$0xff]   ;;  %v1593_v32 = vunpack.c.l.s4 %v10176_v31  ;;  %v14506_v34 = vmov 0.0   ;;  %v10178_v36 = vmov 0   ;;  %v14513_v42 = vmov 1.0  }
  0x6b   : > { %9429 = vmatpush3.bf16.msra.mxu0 %v9674_v0  ;;  %9580 = vmatpush3.bf16.msra.mxu1 %v9674_v0  ;;  %v9682_v4 = vld [vmem:[%s10375_s29] sm:$0xff]   ;;  %v9679_v6 = vld [vmem:[#allocation7 + $0x10] sm:$0xff]   ;;  %v9680_v8 = vld [vmem:[#allocation7 + $0x8] sm:$0xff]   ;;  %v10405_v28 = vshrl.u32 %v902_v27, 7  ;;  %344 = vst [vmem:[#allocation2 + $0x8] sm:$0xf] %v10178_v36 }
  0x6c   : > { %9430 = vmatprep.subr.bf16.mxu0 %v9675_v1  ;;  %9573 = vmatprep.subr.bf16.mxu1 %v9675_v1  ;;  %v9690_v7 = vld [vmem:[%s10375_s29 + $0x40] sm:$0xff]   ;;  %v9698_v10 = vld [vmem:[#allocation9 + $0x78] sm:$0xff]   ;;  %v9683_v11 = vld [vmem:[%s10375_s29 + $0x8] sm:$0xff]   ;;  %345 = vst [vmem:[#allocation2 + $0xc] sm:$0xf] %v10178_v36  ;;  %v1594_v37 = vunpack.c.0.s8 %v1593_v32  ;;  %s8375_s16 = sshll.u32 %s10371_s19, 8 }
  0x6d   : > { %9444 = vmatprep.mubr.bf16.mxu0 %v9682_v4  ;;  %9460 = vmatprep.mubr.bf16.mxu1 %v9690_v7  ;;  %v9681_v9 = vld [vmem:[#allocation7] sm:$0xff]   ;;  %v9691_v12 = vld [vmem:[%s10375_s29 + $0x48] sm:$0xff]   ;;  %v9684_v13 = vld [vmem:[%s10375_s29 + $0x10] sm:$0xff]   ;;  %14922 = vst [vmem:[#allocation17_spill] sm:$0xff] %v10405_v28  ;;  %v905_v29 = vadd.s32 16, %v10405_v28  ;;  %v904_v41 = vadd.s32 8, %v10405_v28 }
  0x6e   : > { %v9692_v14 = vld [vmem:[%s10375_s29 + $0x50] sm:$0xff]   ;;  %v9699_v15 = vld [vmem:[#allocation9 + $0x38] sm:$0xff]   ;;  %v9686_v19 = vld [vmem:[%s10375_s29 + $0x20] sm:$0xff]   ;;  %v10179_v38 = vmov 1985246804   ;;  %v908_v44 = vadd.s32 40, %v10405_v28  ;;  %v10413_v45 = vsub.s32 %v1594_v37, %v10405_v28 }
  0x6f   : > { %9431 = vmatpush3.bf16.msra.mxu0 %v9675_v1  ;;  %9581 = vmatpush3.bf16.msra.mxu1 %v9675_v1  ;;  %v9700_v16 = vld [vmem:[#allocation9 + $0x70] sm:$0xff]   ;;  %v9685_v17 = vld [vmem:[%s10375_s29 + $0x18] sm:$0xff]   ;;  %v9694_v20 = vld [vmem:[%s10375_s29 + $0x60] sm:$0xff]   ;;  %v953_v30 = vand.u32 15, %v905_v29  ;;  %v1600_v39 = vunpack.c.l.s4 %v10179_v38  ;;  %343 = vst [vmem:[#allocation2 + $0x4] sm:$0xf] %v10178_v36 }
  0x70   : > { %9432 = vmatprep.subr.bf16.mxu0 %v9676_v2  ;;  %9574 = vmatprep.subr.bf16.mxu1 %v9676_v2  ;;  %v9693_v18 = vld [vmem:[%s10375_s29 + $0x58] sm:$0xff]   ;;  %v9687_v21 = vld [vmem:[%s10375_s29 + $0x28] sm:$0xff]   ;;  %v9688_v23 = vld [vmem:[%s10375_s29 + $0x30] sm:$0xff]   ;;  %346 = vst [vmem:[#allocation2 + $0x90] sm:$0xf] %v10178_v36  ;;  %v946_v47 = vand.u32 15, %v904_v41 }
  0x71   : > { %v9695_v22 = vld [vmem:[%s10375_s29 + $0x68] sm:$0xff]   ;;  %v9696_v24 = vld [vmem:[%s10375_s29 + $0x70] sm:$0xff]   ;;  %v9689_v25 = vld [vmem:[%s10375_s29 + $0x38] sm:$0xff]   ;;  %vm1321_vm0 = vcmp.ge.s32.totalorder %v953_v30, 1  ;;  %347 = vst [vmem:[#allocation2 + $0x94] sm:$0xf] %v10178_v36  ;;  %v1601_v46 = vunpack.c.0.s8 %v1600_v39 }
  0x72   : > { %v9697_v26 = vld [vmem:[%s10375_s29 + $0x78] sm:$0xff]   ;;  %v9701_v33 = vld [vmem:[#allocation9 + $0x30] sm:$0xff]   ;;  %v8434_v35 = vsel %vm1321_vm0, 1.0, %v14506_v34  ;;  %348 = vst [vmem:[#allocation2 + $0x98] sm:$0xf] %v10178_v36  ;;  %v9702_v40 = vld [vmem:[#allocation9 + $0x68] sm:$0xff]  }
  0x73   : > { %9433 = vmatpush3.bf16.msra.mxu0 %v9676_v2  ;;  %9582 = vmatpush3.bf16.msra.mxu1 %v9676_v2  ;;  %v1416_v43 = vpack.c.bf16 %v14513_v42, %v8434_v35  ;;  %14923 = vst [vmem:[#allocation18_spill] sm:$0xff] %v10413_v45  ;;  %v974_v49 = vand.u32 15, %v908_v44  ;;  %v10417_v50 = vsub.s32 %v1601_v46, %v10405_v28  ;;  %vm1432_vm1 = vcmp.lt.s32.totalorder %v946_v47, 15  ;;  %v9703_v60 = vld [vmem:[#allocation9 + $0x28] sm:$0xff]   ;;  %v9708_v27 = vld [vmem:[#allocation9 + $0x58] sm:$0xff]   ;;  %v9710_v31 = vld [vmem:[#allocation9 + $0xf0] sm:$0xff]  }
  0x74   : > { %9434 = vmatprep.subr.bf16.mxu0 %v9677_v3  ;;  %9575 = vmatprep.subr.bf16.mxu1 %v9677_v3  ;;  %v8449_v53 = vsel %vm1432_vm1, 1.0, %v14506_v34  ;;  %vm1816_vm3 = vsmask.f32 3328  ;;  %vm1817_vm4 = vsmask.f32 7440  ;;  %v9709_v30 = vld [vmem:[#allocation9 + $0x18] sm:$0xff]  }
  0x75   : > { %v1612_v48 = vrot.slane %v1416_v43, %v10413_v45  ;;  %14924 = vst [vmem:[#allocation19_spill] sm:$0xff] %v10417_v50  ;;  %v10420_v51 = vrot.slane %v1416_v43, %v10417_v50  ;;  %vm1436_vm2 = vcmp.lt.s32.totalorder %v974_v49, 15  ;;  %v1527_v59 = vpack.c.bf16 %v8449_v53, %v14513_v42  ;;  %vm10432_vm5 = vmor %vm1816_vm3, %vm1817_vm4  ;;  %v9712_v44 = vld [vmem:[#allocation9 + $0x50] sm:$0xff]   ;;  %s14367_s30 = scalar_lea.vmem [#allocation12], %s8375_s16  ;;  %s8246_s15 = scalar_lea.sflag [#allocation6], %s10371_s19 }
  0x76   : > { %v8451_v55 = vsel %vm1436_vm2, 1.0, %v14506_v34  ;;  %vm2204_vm6 = vsmask.f32 256  ;;  %vm2205_vm7 = vsmask.f32 4368  ;;  %v939_v32 = vand.u32 15, %v10405_v28 }
  0x77   : > { %9435 = vmatpush3.bf16.msra.mxu0 %v9677_v3  ;;  %9583 = vmatpush3.bf16.msra.mxu1 %v9677_v3  ;;  %v1839_v52 = vshll.u32 %v1612_v48, 16  ;;  %v1843_v54 = vshrl.u32 %v1612_v48, 16  ;;  %v1849_v58 = vshll.u32 %v10420_v51, 16  ;;  %v1529_v62 = vpack.c.bf16 %v8451_v55, %v14513_v42  ;;  %vm10454_vm8 = vmor %vm2204_vm6, %vm2205_vm7  ;;  %s8259_s9 = sshll.u32 %s14367_s30, 4  ;;  %p15969_p1 = scmp.ne.s32.totalorder %s14912_s20, 0  ;;  %s14447_s9 = int_to_ptr.vmem [resolvable:$true] %s8259_s9 }
  0x78   : > { %9436 = vmatprep.subr.bf16.mxu0 %v9678_v5  ;;  %9576 = vmatprep.subr.bf16.mxu1 %v9678_v5  ;;  %v10437_v2 = vrot.slane %v1527_v59, %v10413_v45  ;;  %v2689_v4 = vrot.slane %v1527_v59, %v10417_v50  ;;  %vm1319_vm9 = vcmp.ge.s32.totalorder %v939_v32, 1  ;;  %v909_v38 = vadd.s32 48, %v10405_v28  ;;  %s10096_s11 = scalar_lea.vmem %s14447_s9, 4096 }
  0x79   : > { %v10424_v56 = vrot.slane %v1839_v52, 5  ;;  %v1845_v57 = vrot.slane %v1843_v54, 4  ;;  %v10430_v0 = vrot.slane %v1849_v58, 5  ;;  %v8433_v35 = vsel %vm1319_vm9, 1.0, %v14506_v34  ;;  %p10097_p7 = scmp.ne.s32.totalorder %s14447_s9, %s10096_s11 }
  0x7a   : > { %v2901_v7 = vshrl.u32 %v10437_v2, 16  ;;  %v1415_v37 = vpack.c.bf16 %v14513_v42, %v8433_v35  ;;  %v906_v41 = vadd.s32 24, %v10405_v28  ;;  %v981_v47 = vand.u32 15, %v909_v38 }
  0x7b   : > { %9437 = vmatpush3.bf16.msra.mxu0 %v9678_v5  ;;  %9584 = vmatpush3.bf16.msra.mxu1 %v9678_v5  ;;  %v1846_v61 = vor.u32 %v1845_v57, %v10424_v56  ;;  %v10446_v5 = vrot.slane %v1529_v62, %v10413_v45  ;;  %p10098_p12 = pnand %p10097_p7, %p15969_p1 }
  0x7c   : > { %9438 = vmatprep.subr.bf16.mxu0 %v9679_v6  ;;  %9577 = vmatprep.subr.bf16.mxu1 %v9679_v6  ;;  %v1598_v39 = vrot.slane %v1415_v37, %v10413_v45  ;;  %v1605_v43 = vrot.slane %v1415_v37, %v10417_v50  ;;  %v960_v52 = vand.u32 15, %v906_v41  ;;  %vm1325_vm11 = vcmp.ge.s32.totalorder %v981_v47, 1 }
  0x7d   : > { %v1847_v63 = vrot.slane %v1846_v61, 4  ;;  %v913_v37 = vadd.s32 80, %v10405_v28  ;;  %v910_v41 = vadd.s32 56, %v10405_v28  ;;  %p10099_p9 = pneg %p10098_p12 }
  0x7e   : > { %v1820_v48 = vshll.u32 %v1598_v39, 16  ;;  %v1823_v49 = vshrl.u32 %v1598_v39, 16  ;;  %v1829_v54 = vshll.u32 %v1605_v43, 16  ;;  %v1833_v55 = vshrl.u32 %v1605_v43, 16  ;;  %v1544_v43 = vld [vmem:[#allocation2 + $0x8] sm:$0xf] }
  0x7f   : > { %9439 = vmatpush3.bf16.msra.mxu0 %v9679_v6  ;;  %9585 = vmatpush3.bf16.msra.mxu1 %v9679_v6  ;;  %v10442_v3 = vsel %vm10432_vm5, %v1847_v63, %v10430_v0  ;;  %v2717_v6 = vrot.slane %v1529_v62, %v10417_v50  ;;  %vm1434_vm12 = vcmp.lt.s32.totalorder %v960_v52, 15  ;;  %v9713_v62 = vld [vmem:[#allocation9 + $0x10] sm:$0xff]   ;;  %v8436_v63 = vsel %vm1325_vm11, 1.0, %v14506_v34 }
  0x80   : > { %9440 = vmatprep.subr.bf16.mxu0 %v9680_v8  ;;  %9578 = vmatprep.subr.bf16.mxu1 %v9680_v8  ;;  %v10485_v57 = vrot.slane %v1820_v48, 5  ;;  %v1825_v58 = vrot.slane %v1823_v49, 4  ;;  %v1835_v61 = vrot.slane %v1833_v55, 4  ;;  %v912_v49 = vadd.s32 72, %v10405_v28 }
  0x82   : > { %14930 = vst [vmem:[#allocation21_spill] sm:$0xff] %v10485_v57 }
  0x83   : > { %9441 = vmatpush3.bf16.msra.mxu0 %v9680_v8  ;;  %9586 = vmatpush3.bf16.msra.mxu1 %v9680_v8  ;;  %v2909_v8 = vshrl.u32 %v2689_v4, 16 }
  0x84   : > { %9442 = vmatprep.subr.bf16.mxu0 %v9681_v9  ;;  %9579 = vmatprep.subr.bf16.mxu1 %v9681_v9 }
  0x87   : > { %9443 = vmatpush3.bf16.msra.mxu0 %v9681_v9  ;;  %9587 = vmatpush3.bf16.msra.mxu1 %v9681_v9  ;;  %v2912_v9 = vshll.u32 %v2689_v4, 16 }
  0x88   : > { %8932 = vmatprep.subr.bf16.mxu1 %v9698_v10  ;;  %v10450_v10 = vrot.slane %v2901_v7, 7  ;;  %v911_v7 = vadd.s32 64, %v10405_v28 }
  0x8a   : > { %9445 = vmatmul.mubr.bf16.vlgmr.msra.gmra.mxu0 %v9683_v11  ;;  %9461 = vmatmul.mubr.bf16.vlgmr.msra.gmra.mxu1 %v9691_v12  ;;  %v10452_v11 = vrot.slane %v2909_v8, 7  ;;  %v14927_v12 = vmov 0  ;;  %v9715_v8 = vld [vmem:[#allocation9 + $0xa8] sm:$0xff]  }
  0x8b   : > { %9448 = vmatprep.mubr.bf16.mxu0 %v9684_v13  ;;  %9464 = vmatprep.mubr.bf16.mxu1 %v9692_v14  ;;  %v14928_v12 = vsel %vm10454_vm8, 4294967295, %v14927_v12  ;;  %v2936_v13 = vshrl.u32 %v10446_v5, 16  ;;  %v2945_v14 = vshrl.u32 %v2717_v6, 16 }
  0x8c   : > { %8933 = vmatpush3.bf16.msra.mxu1 %v9699_v15  ;;  %14929 = vst [vmem:[#allocation20_spill] sm:$0xff] %v14928_v12  ;;  %v2907_v15 = vrot.slane %v10450_v10, 4 }
  0x8d   : > { %8934 = vmatprep.subr.bf16.mxu1 %v9700_v16  ;;  %v2914_v16 = vor.u32 %v2912_v9, %v10452_v11  ;;  %v8450_v9 = vsel %vm1434_vm12, 1.0, %v14506_v34 }
  0x90   : > { %8935 = vmatpush3.bf16.msra.mxu1 %v9701_v33  ;;  %v907_v33 = vadd.s32 32, %v10405_v28 }
  0x91   : > { %8936 = vmatprep.subr.bf16.mxu1 %v9702_v40  ;;  %v9711_v40 = vld [vmem:[#allocation9 + $0xb0] sm:$0xff]  }
  0x92   : > { %9449 = vmatmul.mubr.bf16.gmra.mxu0 %v9685_v17  ;;  %9465 = vmatmul.mubr.bf16.gmra.mxu1 %v9693_v18  ;;  %v10461_v17 = vrot.slane %v2936_v13, 7  ;;  %v9704_v18 = vld [vmem:[#allocation9 + $0x60] sm:$0xff]   ;;  %v967_v36 = vand.u32 15, %v907_v33  ;;  %v1853_v13 = vshrl.u32 %v10420_v51, 16 }
  0x93   : > { %9452 = vmatprep.mubr.bf16.mxu0 %v9686_v19  ;;  %9468 = vmatprep.mubr.bf16.mxu1 %v9694_v20  ;;  %v10465_v19 = vsel %vm10454_vm8, %v2907_v15, %v2914_v16  ;;  %v10467_v20 = vrot.slane %v2945_v14, 7  ;;  %v9716_v14 = vld [vmem:[#allocation9 + $0x48] sm:$0xff]   ;;  %v10494_v15 = vpack.c.bf16 %v14513_v42, %v8436_v63  ;;  %v1826_v16 = vor.u32 %v1825_v58, %v10485_v57 }
  0x94   : > { %8937 = vmatpush3.bf16.msra.mxu1 %v9703_v60  ;;  %vm1323_vm10 = vcmp.ge.s32.totalorder %v967_v36, 1  ;;  %v1831_v60 = vrot.slane %v1829_v54, 5 }
  0x95   : > { %8938 = vmatprep.subr.bf16.mxu1 %v9704_v18  ;;  %v8435_v46 = vsel %vm1323_vm10, 1.0, %v14506_v34  ;;  %v10500_v51 = vrot.slane %v10494_v15, %v10413_v45 }
  0x96   : > { %v1417_v53 = vpack.c.bf16 %v14513_v42, %v8435_v46  ;;  %v1836_v18 = vor.u32 %v1835_v61, %v1831_v60 }
  0x97   : > { %v1879_v48 = vshll.u32 %v10500_v51, 16 }
  0x98   : > { %v1626_v59 = vrot.slane %v1417_v53, %v10413_v45  ;;  %v1633_v4 = vrot.slane %v1417_v53, %v10417_v50 }
  0x99   : > { %v10525_v63 = vrot.slane %v1879_v48, 5 }
  0x9a   : > { %9453 = vmatmul.mubr.bf16.gmra.mxu0 %v9687_v21  ;;  %9469 = vmatmul.mubr.bf16.gmra.mxu1 %v9695_v22  ;;  %v2948_v21 = vshll.u32 %v2717_v6, 16  ;;  %v9705_v22 = vld [vmem:[#allocation9 + $0x20] sm:$0xff]   ;;  %v9714_v6 = vld [vmem:[#allocation9 + $0xe8] sm:$0xff]  }
  0x9b   : > { %9456 = vmatprep.mubr.bf16.mxu0 %v9688_v23  ;;  %9472 = vmatprep.mubr.bf16.mxu1 %v9696_v24  ;;  %v9706_v23 = vld [vmem:[#allocation9 + $0xf8] sm:$0xff]   ;;  %v2943_v24 = vrot.slane %v10461_v17, 4 }
  0x9c   : > { %8939 = vmatpush3.bf16.msra.mxu1 %v9705_v22  ;;  %9044 = vmatprep.subr.bf16.mxu0 %v9706_v23  ;;  %v1863_v22 = vshrl.u32 %v1626_v59, 16  ;;  %v1869_v23 = vshll.u32 %v1633_v4, 16 }
  0x9d   : > { %8940 = vmatprep.subr.bf16.mxu1 %v9708_v27  ;;  %v1855_v27 = vrot.slane %v1853_v13, 4  ;;  %v2904_v13 = vshll.u32 %v10437_v2, 16 }
  0x9e   : > { %v1865_v33 = vrot.slane %v1863_v22, 4  ;;  %v1871_v35 = vrot.slane %v1869_v23, 5 }
  0xa0   : > { %8941 = vmatpush3.bf16.msra.mxu1 %v9709_v30  ;;  %v1827_v30 = vrot.slane %v1826_v16, 4 }
  0xa1   : > { %8942 = vmatprep.subr.bf16.mxu1 %v9712_v44  ;;  %v1545_v44 = vld [vmem:[#allocation2 + $0xc] sm:$0xf] }
  0xa2   : > { %9457 = vmatmul.mubr.bf16.gmra.mxu0 %v9689_v25  ;;  %9473 = vmatmul.mubr.bf16.gmra.mxu1 %v9697_v26  ;;  %v2950_v25 = vor.u32 %v2948_v21, %v10467_v20  ;;  %v9707_v26 = vld [vmem:[#allocation9 + $0xb8] sm:$0xff]   ;;  %v1859_v21 = vshll.u32 %v1626_v59, 16  ;;  %v10509_v46 = vsel %vm10432_vm5, %v1827_v30, %v1831_v60 }
  0xa3   : > { %9045 = vmatpush3.bf16.msra.mxu0 %v9707_v26  ;;  %v995_v26 = vand.u32 15, %v911_v7  ;;  %v10520_v60 = vmul.bf16 %v10509_v46, %v1544_v43  ;;  %v9718_v7 = vld [vmem:[#allocation9 + $0xe0] sm:$0xff]  }
  0xa4   : > { %v10473_v29 = vsel %vm10454_vm8, %v2943_v24, %v2950_v25  ;;  %9046 = vmatprep.subr.bf16.mxu0 %v9710_v31  ;;  %8943 = vmatpush3.bf16.msra.mxu1 %v9713_v62  ;;  %v1873_v24 = vshrl.u32 %v1633_v4, 16  ;;  %v1528_v25 = vpack.c.bf16 %v8450_v9, %v14513_v42  ;;  %v1837_v31 = vrot.slane %v1836_v18, 4  ;;  %v9717_v62 = vld [vmem:[#allocation9 + $0x8] sm:$0xff]  }
  0xa5   : > { %8944 = vmatprep.subr.bf16.mxu1 %v9716_v14  ;;  %v1861_v32 = vrot.slane %v1859_v21, 5  ;;  %vm1327_vm13 = vcmp.ge.s32.totalorder %v995_v26, 1  ;;  %v1002_v4 = vand.u32 15, %v912_v49  ;;  %v2213_v23 = vshrl.u32 %v10520_v60, 16 }
  0xa6   : > { %v1875_v36 = vrot.slane %v1873_v24, 4  ;;  %v2696_v38 = vrot.slane %v1528_v25, %v10413_v45  ;;  %v2703_v39 = vrot.slane %v1528_v25, %v10417_v50  ;;  %v10514_v47 = vsel %vm10432_vm5, %v1837_v31, %v10424_v56 }
  0xa7   : > { %9047 = vmatpush3.bf16.msra.mxu0 %v9711_v40  ;;  %v1856_v40 = vor.u32 %v1855_v27, %v10430_v0  ;;  %v1866_v52 = vor.u32 %v1865_v33, %v1861_v32  ;;  %v1009_v0 = vand.u32 15, %v913_v37  ;;  %v8437_v54 = vsel %vm1327_vm13, 1.0, %v14506_v34 }
  0xa8   : > { %9048 = vmatprep.subr.bf16.mxu0 %v9714_v6  ;;  %v1876_v53 = vor.u32 %v1875_v36, %v1871_v35  ;;  %v2918_v55 = vshrl.u32 %v2696_v38, 16  ;;  %v2927_v58 = vshrl.u32 %v2703_v39, 16  ;;  %v10523_v61 = vmul.bf16 %v10514_v47, %v1545_v44  ;;  %8945 = vmatpush3.bf16.msra.mxu1 %v9717_v62  ;;  %v2628_v36 = vld [vmem:[#allocation2 + $0xc] sm:$0xf] }
  0xa9   : > { %v1857_v59 = vrot.slane %v1856_v40, 4  ;;  %v988_v56 = vand.u32 15, %v910_v41  ;;  %v1419_v6 = vpack.c.bf16 %v14513_v42, %v8437_v54  ;;  %vm1329_vm14 = vcmp.ge.s32.totalorder %v1009_v0, 1  ;;  %v2627_v41 = vld [vmem:[#allocation2 + $0x8] sm:$0xf] }
  0xaa   : > { %v1877_v9 = vrot.slane %v1876_v53, 4  ;;  %v2920_v14 = vrot.slane %v2918_v55, 7  ;;  %v2921_v16 = vshll.u32 %v2696_v38, 16  ;;  %v2929_v18 = vrot.slane %v2927_v58, 7 }
  0xab   : > { %9049 = vmatpush3.bf16.msra.mxu0 %v9715_v8  ;;  %v1867_v8 = vrot.slane %v1866_v52, 4  ;;  %v2930_v21 = vshll.u32 %v2703_v39, 16  ;;  %v10531_v22 = vsel %vm10432_vm5, %v1857_v59, %v1861_v32  ;;  %v2222_v24 = vshrl.u32 %v10523_v61, 16 }
  0xac   : > { %9050 = vmatprep.subr.bf16.mxu0 %v9718_v7  ;;  %vm10535_vm15 = vcmp.lt.s32.totalorder %v988_v56, 15  ;;  %v8438_v2 = vsel %vm1329_vm14, 1.0, %v14506_v34  ;;  %vm1440_vm0 = vcmp.lt.s32.totalorder %v1002_v4, 15  ;;  %v1654_v26 = vrot.slane %v1419_v6, %v10413_v45 }
  0xad   : > { %v1661_v27 = vrot.slane %v1419_v6, %v10417_v50  ;;  %v10544_v30 = vsel %vm10432_vm5, %v1867_v8, %v1871_v35  ;;  %v10549_v31 = vsel %vm10432_vm5, %v1877_v9, %v10525_v63  ;;  %v10552_v32 = vor.u32 %v2904_v13, %v10450_v10  ;;  %v1543_v6 = vld [vmem:[#allocation2 + $0x4] sm:$0x8] }
  0xae   : > { %v2939_v33 = vshll.u32 %v10446_v5, 16  ;;  %v2916_v37 = vrot.slane %v10452_v11, 4  ;;  %v2923_v38 = vor.u32 %v2921_v16, %v2920_v14  ;;  %v2925_v39 = vrot.slane %v2920_v14, 4 }
  0xaf   : > { %v2932_v40 = vor.u32 %v2930_v21, %v2929_v18  ;;  %v10557_v35 = vpack.c.bf16 %v14513_v42, %v8438_v2  ;;  %v8452_v43 = vsel %vm10535_vm15, 1.0, %v14506_v34  ;;  %v8453_v44 = vsel %vm1440_vm0, 1.0, %v14506_v34 }
  0xb0   : > { %v1647_v10 = vrot.slane %v10494_v15, %v10417_v50  ;;  %v1899_v5 = vshll.u32 %v1654_v26, 16  ;;  %v1903_v48 = vshrl.u32 %v1654_v26, 16  ;;  %v1909_v49 = vshll.u32 %v1661_v27, 16 }
  0xb1   : > { %v1913_v11 = vshrl.u32 %v1661_v27, 16  ;;  %v2934_v52 = vrot.slane %v2929_v18, 4  ;;  %v2941_v53 = vor.u32 %v2939_v33, %v10461_v17  ;;  %v10567_v0 = vmul.bf16 %v10465_v19, %v2628_v36  ;;  %v2563_v27 = vld [vmem:[#allocation2 + $0x8] sm:$0xf]  ;;  %v2564_v33 = vld [vmem:[#allocation2 + $0xc] sm:$0xf] }
  0xb2   : > { %v915_v54 = vadd.s32 96, %v10405_v28  ;;  %v10572_v55 = vsel %vm10454_vm8, %v2916_v37, %v2923_v38  ;;  %v10575_v58 = vmul.bf16 %v10552_v32, %v2627_v41  ;;  %v1530_v15 = vpack.c.bf16 %v8452_v43, %v14513_v42  ;;  %2595 = vst [vmem:[#allocation3 + $0x4] sm:$0xf] %v2563_v27  ;;  %2596 = vst [vmem:[#allocation3 + $0x28] sm:$0xf] %v2564_v33 }
  0xb3   : > { %14933 = vst [vmem:[#allocation22_spill] sm:$0xff] %v10567_v0  ;;  %v1883_v59 = vshrl.u32 %v10500_v51, 16  ;;  %v1531_v56 = vpack.c.bf16 %v8453_v44, %v14513_v42  ;;  %v10582_v17 = vrot.slane %v10557_v35, %v10413_v45  ;;  %v1889_v62 = vshll.u32 %v1647_v10, 16 }
  0xb4   : > { %14934 = vst [vmem:[#allocation23_spill] sm:$0xff] %v10575_v58  ;;  %v1893_v4 = vshrl.u32 %v1647_v10, 16  ;;  %v10584_v7 = vrot.slane %v1899_v5, 5  ;;  %v1905_v8 = vrot.slane %v1903_v48, 4  ;;  %v1911_v9 = vrot.slane %v1909_v49, 5 }
  0xb5   : > { %v1915_v13 = vrot.slane %v1913_v11, 4  ;;  %v10588_v14 = vsel %vm10454_vm8, %v2925_v39, %v2932_v40  ;;  %v10592_v51 = vsel %vm10454_vm8, %v2934_v52, %v2941_v53  ;;  %v1023_v18 = vand.u32 15, %v915_v54  ;;  %v9719_v11 = vld [vmem:[#allocation9 + $0xa0] sm:$0xff]  }
  0xb6   : > { %v1885_v21 = vrot.slane %v1883_v59, 4  ;;  %v10596_v25 = vrot.slane %v1530_v15, %v10413_v45  ;;  %v10599_v2 = vrot.slane %v1530_v15, %v10417_v50  ;;  %v2171_v26 = vmul.bf16 %v10485_v57, %v1543_v6  ;;  %9051 = vmatpush3.bf16.msra.mxu0 %v9719_v11 }
  0xb7   : > { %v1891_v36 = vrot.slane %v1889_v62, 5  ;;  %v1895_v37 = vrot.slane %v1893_v4, 4  ;;  %v1919_v38 = vshll.u32 %v10582_v17, 16  ;;  %v917_v39 = vadd.s32 112, %v10405_v28  ;;  %v9720_v62 = vld [vmem:[#allocation9 + $0x40] sm:$0xff]  }
  0xb8   : > { %v1906_v40 = vor.u32 %v1905_v8, %v10584_v7  ;;  %v1916_v41 = vor.u32 %v1915_v13, %v1911_v9  ;;  %v10606_v43 = vrot.slane %v1531_v56, %v10413_v45  ;;  %v2208_v44 = vshrl.u32 %v2171_v26, 16  ;;  %8946 = vmatprep.subr.bf16.mxu1 %v9720_v62 }
  0xb9   : > { %v914_v10 = vadd.s32 88, %v10405_v28  ;;  %vm1331_vm1 = vcmp.ge.s32.totalorder %v1023_v18, 1  ;;  %v2215_v5 = vrot.slane %v2213_v23, 7  ;;  %v2216_v48 = vshll.u32 %v10520_v60, 16 }
  0xba   : > { %v1886_v49 = vor.u32 %v1885_v21, %v10525_v63  ;;  %v8465_v52 = vrot.slane %v2208_v44, 11  ;;  %v10615_v53 = vrot.slane %v2222_v24, 7  ;;  %v2225_v54 = vshll.u32 %v10523_v61, 16  ;;  %v9721_v63 = vld [vmem:[#allocation9] sm:$0xff]   ;;  %v9722_v61 = vld [vmem:[#allocation9 + $0xd8] sm:$0xff]  }
  0xbb   : > { %v1896_v15 = vor.u32 %v1895_v37, %v1891_v36  ;;  %v1037_v59 = vand.u32 15, %v917_v39  ;;  %v2218_v4 = vor.u32 %v2216_v48, %v2215_v5  ;;  %v2220_v6 = vrot.slane %v2215_v5, 4  ;;  %8947 = vmatpush3.bf16.msra.mxu1 %v9721_v63  ;;  %v9726_v39 = vld [vmem:[#allocation9 + $0x98] sm:$0xff]   ;;  %9052 = vmatprep.subr.bf16.mxu0 %v9722_v61 }
  0xbc   : > { %14935 = vst [vmem:[#allocation24_spill] sm:$0xff] %v10615_v53  ;;  %v1907_v8 = vrot.slane %v1906_v40, 4  ;;  %v10618_v13 = vrot.slane %v1919_v38, 5  ;;  %v8439_v60 = vsel %vm1331_vm1, 1.0, %v14506_v34  ;;  %v2227_v23 = vor.u32 %v2225_v54, %v10615_v53  ;;  %9053 = vmatpush3.bf16.msra.mxu0 %v9726_v39  ;;  %v9729_v53 = vld [vmem:[#allocation9 + $0x178] sm:$0xff]  }
  0xbd   : > { %v1917_v18 = vrot.slane %v1916_v41, 4  ;;  %v916_v24 = vadd.s32 104, %v10405_v28  ;;  %v1016_v21 = vand.u32 15, %v914_v10  ;;  %v2219_v26 = vsel %vm10454_vm8, %v8465_v52, %v2218_v4  ;;  %9156 = vmatprep.subr.bf16.mxu1 %v9729_v53 }
  0xbe   : > { %v1887_v27 = vrot.slane %v1886_v49, 4  ;;  %v10626_v33 = vrot.slane %v1531_v56, %v10417_v50  ;;  %v2954_v37 = vshrl.u32 %v10596_v25, 16  ;;  %v2228_v38 = vsel %vm10454_vm8, %v2220_v6, %v2227_v23  ;;  %2531 = vst [vmem:[#allocation3] sm:$0xf] %v2219_v26  ;;  %v9725_v26 = vld [vmem:[#allocation3 + $0x4] ss:$36 sps:$4 sm:$0xff]  }
  0xbf   : > { %v1897_v40 = vrot.slane %v1896_v15, 4  ;;  %v2963_v41 = vshrl.u32 %v10599_v2, 16  ;;  %vm10632_vm2 = vcmp.ge.s32.totalorder %v1037_v59, 1  ;;  %v1421_v10 = vpack.c.bf16 %v14513_v42, %v8439_v60  ;;  %2532 = vst [vmem:[#allocation3 + $0x24] sm:$0xf] %v2228_v38  ;;  %v9727_v15 = vld [vmem:[#allocation9 + $0xd0] sm:$0xff]   ;;  %7032 = vmatprep.mubr.bf16.mxu1 %v9725_v26 }
  0xc0   : > { %v10639_v56 = vsel %vm10432_vm5, %v1907_v8, %v1911_v9  ;;  %v2952_v5 = vrot.slane %v10467_v20, 4  ;;  %v2957_v48 = vshll.u32 %v10596_v25, 16  ;;  %v2966_v49 = vshll.u32 %v10599_v2, 16  ;;  %9054 = vmatprep.subr.bf16.mxu0 %v9727_v15 }
  0xc1   : > { %14938 = vst [vmem:[#allocation25_spill] sm:$0xff] %v10639_v56  ;;  %v10647_v11 = vsel %vm10432_vm5, %v1917_v18, %v10618_v13  ;;  %v1030_v52 = vand.u32 15, %v916_v24  ;;  %vm1442_vm3 = vcmp.lt.s32.totalorder %v1016_v21, 15  ;;  %v1675_v54 = vrot.slane %v10557_v35, %v10417_v50 }
  0xc2   : > { %14939 = vst [vmem:[#allocation26_spill] sm:$0xff] %v10647_v11  ;;  %v10653_v9 = vsel %vm10432_vm5, %v1887_v27, %v1891_v36  ;;  %v2956_v20 = vrot.slane %v2954_v37, 7  ;;  %v2972_v25 = vshrl.u32 %v10606_v43, 16  ;;  %v8440_v2 = vsel %vm10632_vm2, 1.0, %v14506_v34 }
  0xc3   : > { %14940 = vst [vmem:[#allocation27_spill] sm:$0xff] %v10653_v9  ;;  %v10662_v59 = vsel %vm10432_vm5, %v1897_v40, %v10584_v7  ;;  %v2965_v62 = vrot.slane %v2963_v41, 7  ;;  %v2975_v35 = vshll.u32 %v10606_v43, 16  ;;  %v1682_v4 = vrot.slane %v1421_v10, %v10413_v45 }
  0xc4   : > { %14941 = vst [vmem:[#allocation28_spill] sm:$0xff] %v10662_v59  ;;  %v2961_v36 = vrot.slane %v2956_v20, 4  ;;  %v2981_v6 = vshrl.u32 %v10626_v33, 16  ;;  %v8454_v8 = vsel %vm1442_vm3, 1.0, %v14506_v34  ;;  %v1923_v60 = vshrl.u32 %v10582_v17, 16 }
  0xc5   : > { %v10670_v63 = vpack.c.bf16 %v14513_v42, %v8440_v2  ;;  %vm1444_vm4 = vcmp.lt.s32.totalorder %v1030_v52, 15  ;;  %v1929_v23 = vshll.u32 %v1675_v54, 16  ;;  %v1933_v7 = vshrl.u32 %v1675_v54, 16 }
  0xc6   : > { %v2959_v18 = vor.u32 %v2957_v48, %v2956_v20  ;;  %v2968_v24 = vor.u32 %v2966_v49, %v2965_v62  ;;  %v2974_v21 = vrot.slane %v2972_v25, 7  ;;  %v1689_v43 = vrot.slane %v1421_v10, %v10417_v50  ;;  %v9723_v61 = vld [vmem:[#allocation3] ss:$36 sps:$4 sm:$0xff]  }
  0xc7   : > { %v2970_v27 = vrot.slane %v2965_v62, 4  ;;  %v2984_v37 = vshll.u32 %v10626_v33, 16  ;;  %v1939_v38 = vshll.u32 %v1682_v4, 16  ;;  %v1943_v39 = vshrl.u32 %v1682_v4, 16  ;;  %7033 = vmatmul.mubr.bf16.vlgmr.msra.gmra.mxu1 %v9723_v61 }
  0xc8   : > { %v8455_v17 = vsel %vm1444_vm4, 1.0, %v14506_v34  ;;  %v1532_v40 = vpack.c.bf16 %v8454_v8, %v14513_v42  ;;  %v1925_v41 = vrot.slane %v1923_v60, 4  ;;  %v919_v44 = vadd.s32 128, %v10405_v28 }
  0xc9   : > { %v10677_v48 = vrot.slane %v2981_v6, 7  ;;  %v10681_v10 = vrot.slane %v10670_v63, %v10413_v45  ;;  %v1931_v49 = vrot.slane %v1929_v23, 5  ;;  %v1935_v52 = vrot.slane %v1933_v7, 4 }
  0xca   : > { %v10685_v33 = vsel %vm10454_vm8, %v2952_v5, %v2959_v18  ;;  %v2977_v54 = vor.u32 %v2975_v35, %v2974_v21  ;;  %v1949_v15 = vshll.u32 %v1689_v43, 16  ;;  %v918_v20 = vadd.s32 120, %v10405_v28 }
  0xcb   : > { %14942 = vst [vmem:[#allocation29_spill] sm:$0xff] %v10685_v33  ;;  %v1533_v25 = vpack.c.bf16 %v8455_v17, %v14513_v42  ;;  %v1941_v2 = vrot.slane %v1939_v38, 5  ;;  %v1945_v62 = vrot.slane %v1943_v39, 4  ;;  %v1953_v4 = vshrl.u32 %v1689_v43, 16 }
  0xcc   : > { %v2979_v6 = vrot.slane %v2974_v21, 4  ;;  %v1926_v8 = vor.u32 %v1925_v41, %v10618_v13  ;;  %v2752_v60 = vrot.slane %v1532_v40, %v10413_v45  ;;  %v1051_v23 = vand.u32 15, %v919_v44 }
  0xcd   : > { %v2986_v7 = vor.u32 %v2984_v37, %v10677_v48  ;;  %v1936_v61 = vor.u32 %v1935_v52, %v1931_v49  ;;  %v1959_v5 = vshll.u32 %v10681_v10, 16  ;;  %v2759_v35 = vrot.slane %v1532_v40, %v10417_v50 }
  0xce   : > { %v10696_v18 = vsel %vm10454_vm8, %v2961_v36, %v2968_v24  ;;  %v10700_v43 = vsel %vm10454_vm8, %v2970_v27, %v2977_v54  ;;  %v920_v13 = vadd.s32 136, %v10405_v28  ;;  %v1044_v21 = vand.u32 15, %v918_v20 }
  0xcf   : > { %14943 = vst [vmem:[#allocation30_spill] sm:$0xff] %v10696_v18  ;;  %14944 = vst [vmem:[#allocation31_spill] sm:$0xff] %v10700_v43  ;;  %v1946_v26 = vor.u32 %v1945_v62, %v1941_v2  ;;  %v1951_v38 = vrot.slane %v1949_v15, 5  ;;  %v1955_v39 = vrot.slane %v1953_v4, 4  ;;  %v2766_v37 = vrot.slane %v1533_v25, %v10413_v45  ;;  %v9734_v18 = vld [vmem:[#allocation9 + $0x80] sm:$0xff]  }
  0xd0   : > { %v1927_v17 = vrot.slane %v1926_v8, 4  ;;  %v2773_v41 = vrot.slane %v1533_v25, %v10417_v50  ;;  %v2990_v40 = vshrl.u32 %v2752_v60, 16  ;;  %vm1335_vm6 = vcmp.ge.s32.totalorder %v1051_v23, 1 }
  0xd1   : > { %v10707_v36 = vsel %vm10454_vm8, %v2979_v6, %v2986_v7  ;;  %v1937_v24 = vrot.slane %v1936_v61, 4  ;;  %v10709_v27 = vrot.slane %v1959_v5, 5  ;;  %v2999_v44 = vshrl.u32 %v2759_v35, 16 }
  0xd2   : > { %14945 = vst [vmem:[#allocation32_spill] sm:$0xff] %v10707_v36  ;;  %v921_v54 = vadd.s32 144, %v10405_v28  ;;  %v1058_v15 = vand.u32 15, %v920_v13  ;;  %vm1446_vm7 = vcmp.lt.s32.totalorder %v1044_v21, 15  ;;  %v1947_v20 = vrot.slane %v1946_v26, 4 }
  0xd3   : > { %v1956_v62 = vor.u32 %v1955_v39, %v1951_v38  ;;  %v3008_v4 = vshrl.u32 %v2766_v37, 16  ;;  %v8441_v25 = vsel %vm1335_vm6, 1.0, %v14506_v34  ;;  %v10716_v8 = vsel %vm10432_vm5, %v1927_v17, %v1931_v49 }
  0xd4   : > { %14946 = vst [vmem:[#allocation33_spill] sm:$0xff] %v10716_v8  ;;  %v10718_v6 = vrot.slane %v2990_v40, 7  ;;  %v2993_v23 = vshll.u32 %v2752_v60, 16  ;;  %v3017_v7 = vshrl.u32 %v2773_v41, 16  ;;  %v10722_v61 = vsel %vm10432_vm5, %v1937_v24, %v1941_v2  ;;  %v9728_v24 = vld [vmem:[#allocation9 + $0x90] sm:$0xff]  }
  0xd5   : > { %14947 = vst [vmem:[#allocation34_spill] sm:$0xff] %v10722_v61  ;;  %v10724_v5 = vrot.slane %v2999_v44, 7  ;;  %v3002_v13 = vshll.u32 %v2759_v35, 16  ;;  %v8456_v21 = vsel %vm1446_vm7, 1.0, %v14506_v34  ;;  %v1065_v26 = vand.u32 15, %v921_v54  ;;  %9055 = vmatpush3.bf16.msra.mxu0 %v9728_v24  ;;  %v9732_v24 = vld [vmem:[#allocation9 + $0x88] sm:$0xff]  }
  0xd6   : > { %v1423_v39 = vpack.c.bf16 %v14513_v42, %v8441_v25  ;;  %vm1448_vm9 = vcmp.lt.s32.totalorder %v1058_v15, 15  ;;  %v1703_v49 = vrot.slane %v10670_v63, %v10417_v50  ;;  %v10732_v60 = vsel %vm10432_vm5, %v1947_v20, %v1951_v38  ;;  %v10741_v44 = vld [vmem:[%s14496_s4] ss:$0 sm:$0xff] }
  0xd7   : > { %14948 = vst [vmem:[#allocation35_spill] sm:$0xff] %v10732_v60  ;;  %v10734_v17 = vrot.slane %v1956_v62, 4  ;;  %v10736_v2 = vrot.slane %v3008_v4, 7  ;;  %v3011_v40 = vshll.u32 %v2766_v37, 16  ;;  %v10744_v54 = vor.u32 %v2993_v23, %v10718_v6  ;;  %v9733_v60 = vld [vmem:[#allocation9 + $0xc0] sm:$0xff]  }
  0xd8   : > { %v10746_v63 = vrot.slane %v3017_v7, 7  ;;  %v3020_v15 = vshll.u32 %v2773_v41, 16  ;;  %v1534_v38 = vpack.c.bf16 %v8456_v21, %v14513_v42  ;;  %v10751_v62 = vor.u32 %v3002_v13, %v10724_v5  ;;  %v9730_v21 = vld [vmem:[#allocation9 + $0xc8] sm:$0xff]  }
  0xd9   : > { %v8457_v37 = vsel %vm1448_vm9, 1.0, %v14506_v34  ;;  %v1963_v4 = vshrl.u32 %v10681_v10, 16  ;;  %vm10755_vm10 = vcmp.ge.s32.totalorder %v1065_v26, 1  ;;  %v1710_v23 = vrot.slane %v1423_v39, %v10413_v45  ;;  %9056 = vmatprep.subr.bf16.mxu0 %v9730_v21 }
  0xda   : > { %v1969_v41 = vshll.u32 %v1703_v49, 16  ;;  %v1973_v7 = vshrl.u32 %v1703_v49, 16  ;;  %v10763_v52 = vor.u32 %v3011_v40, %v10736_v2  ;;  %v10767_v26 = vor.u32 %v3020_v15, %v10746_v63  ;;  %9057 = vmatpush3.bf16.msra.mxu0 %v9732_v24 }
  0xdb   : > { %v1535_v0 = vpack.c.bf16 %v8457_v37, %v14513_v42  ;;  %v1717_v58 = vrot.slane %v1423_v39, %v10417_v50  ;;  %v10772_v49 = vrot.slane %v1534_v38, %v10413_v45  ;;  %v14951_v13 = vmov 0.0   ;;  %9058 = vmatprep.subr.bf16.mxu0 %v9733_v60 }
  0xdc   : > { %v8442_v10 = vsel %vm10755_vm10, 1.0, %v14951_v13  ;;  %v1965_v61 = vrot.slane %v1963_v4, 4  ;;  %v10779_v8 = vrot.slane %v1969_v41, 5  ;;  %v1975_v37 = vrot.slane %v1973_v7, 4 }
  0xdd   : > { %v1979_v42 = vshll.u32 %v1710_v23, 16  ;;  %v10782_v39 = vrot.slane %v1534_v38, %v10417_v50  ;;  %v14952_v16 = vmov 1.0   ;;  %v1989_v4 = vshll.u32 %v1717_v58, 16 }
  0xde   : > { %v10786_v13 = vpack.c.bf16 %v14952_v16, %v8442_v10  ;;  %v1993_v24 = vshrl.u32 %v1717_v58, 16  ;;  %v10789_v41 = vrot.slane %v1535_v0, %v10413_v45  ;;  %9059 = vmatpush3.bf16.msra.mxu0 %v9734_v18  ;;  %v10795_v10 = vrot.slane %v1535_v0, %v10417_v50 }
  0xdf   : > { %v3026_v58 = vshrl.u32 %v10772_v49, 16  ;;  %v10804_v18 = vrot.slane %v1989_v4, 5  ;;  %v3035_v0 = vshrl.u32 %v10782_v39, 16  ;;  %v3038_v50 = vshll.u32 %v10782_v39, 16 }
  0xe0   : > { %14953 = vst [vmem:[#allocation36_spill] sm:$0xff] %v10786_v13  ;;  %v3047_v9 = vshll.u32 %v10789_v41, 16 }
 0x14a   : > { %v9446_v35 = vpop.f32.mrf.mxu0 }
 0x14b   : > { %v592_v20 = vadd.f32 %v9446_v35, %v10741_v44 }
 0x14c   : > { %v583_v25 = vpop.f32.mrf.mxu0 }
 0x14d   : > { %v584_v35 = vadd.f32 %v10741_v44, %v583_v25  ;;  %v712_v21 = vmax.f32 %v592_v20, 0.0 }
 0x14e   : > { %v9447_v34 = vpop.f32.mrf.mxu0 }
 0x14f   : > { %v595_v40 = vadd.f32 %v9447_v34, %v10741_v44  ;;  %v1983_v34 = vshrl.u32 %v1710_v23, 16  ;;  %v710_v7 = vmax.f32 %v584_v35, 0.0  ;;  %v1966_v23 = vor.u32 %v1965_v61, %v10709_v27 }
 0x150   : > { %v586_v15 = vpop.f32.mrf.mxu0  ;;  %v1995_v61 = vrot.slane %v1993_v24, 4 }
 0x151   : > { %v713_v28 = vmax.f32 %v595_v40, 0.0  ;;  %v587_v25 = vadd.f32 %v10741_v44, %v586_v15  ;;  %v1976_v15 = vor.u32 %v1975_v37, %v10779_v8  ;;  %v1985_v35 = vrot.slane %v1983_v34, 4 }
 0x152   : > { %v9450_v33 = vpop.f32.mrf.mxu0  ;;  %v3044_v34 = vshrl.u32 %v10789_v41, 16 }
 0x153   : > { %v8741_v38 = vpack.c.bf16 %v713_v28, %v712_v21  ;;  %v711_v59 = vmax.f32 %v587_v25, 0.0  ;;  %v608_v20 = vadd.f32 %v9450_v33, %v10741_v44  ;;  %v3029_v28 = vshll.u32 %v10772_v49, 16 }
 0x154   : > { %v599_v40 = vpop.f32.mrf.mxu0  ;;  %v10802_v33 = vrot.slane %v10786_v13, %v10413_v45  ;;  %v1967_v49 = vrot.slane %v1966_v23, 4  ;;  %v3053_v45 = vshrl.u32 %v10795_v10, 16 }
 0x155   : > { %8878 = vst [vmem:[#allocation2 + $0x18] sm:$0xff] %v8741_v38   ;;  %v8736_v16 = vpack.c.bf16 %v711_v59, %v710_v7  ;;  %v600_v60 = vadd.f32 %v10741_v44, %v599_v40  ;;  %v716_v37 = vmax.f32 %v608_v20, 0.0  ;;  %v10808_v59 = vrot.slane %v1979_v42, 5 }
 0x156   : > { %v9451_v21 = vpop.f32.mrf.mxu0  ;;  %v1977_v38 = vrot.slane %v1976_v15, 4  ;;  %v10811_v40 = vrot.slane %v3026_v58, 7  ;;  %v1996_v20 = vor.u32 %v1995_v61, %v10804_v18  ;;  %v1999_v42 = vshll.u32 %v10802_v33, 16 }
 0x157   : > { %8877 = vst [vmem:[#allocation2 + $0x10] sm:$0xff] %v8736_v16   ;;  %v611_v25 = vadd.f32 %v9451_v21, %v10741_v44  ;;  %v714_v4 = vmax.f32 %v600_v60, 0.0  ;;  %v1986_v16 = vor.u32 %v1985_v35, %v10808_v59  ;;  %v10818_v21 = vrot.slane %v3035_v0, 7 }
 0x158   : > { %v602_v7 = vpop.f32.mrf.mxu0  ;;  %v10821_v58 = vrot.slane %v3044_v34, 7  ;;  %v10828_v35 = vsel %vm10432_vm5, %v10734_v17, %v10709_v27  ;;  %v14954_v61 = vrot.slane %v10677_v48, 4  ;;  %v3056_v0 = vshll.u32 %v10795_v10, 16 }
 0x159   : > { %v717_v13 = vmax.f32 %v611_v25, 0.0  ;;  %v603_v24 = vadd.f32 %v10741_v44, %v602_v7  ;;  %v14956_v27 = vrot.slane %v10718_v6, 4  ;;  %v14958_v17 = vrot.slane %v10724_v5, 4 }
 0x15a   : > { %v10835_v39 = vsel %vm10454_vm8, %v14954_v61, %v10744_v54  ;;  %v14959_v54 = vrot.slane %v10736_v2, 4  ;;  %v3024_v5 = vrot.slane %v10746_v63, 4  ;;  %v1987_v2 = vrot.slane %v1986_v16, 4 }
 0x15b   : > { %v8751_v23 = vpack.c.bf16 %v717_v13, %v716_v37  ;;  %v715_v15 = vmax.f32 %v603_v24, 0.0  ;;  %14955 = vst [vmem:[#allocation37_spill] sm:$0xff] %v10835_v39  ;;  %v10837_v13 = vrot.slane %v3053_v45, 7  ;;  %v10845_v48 = vsel %vm10454_vm8, %v14956_v27, %v10751_v62 }
 0x15c   : > { %v1548_v60 = vld [vmem:[#allocation2 + $0x18] sm:$0xf]  ;;  %v1549_v41 = vld [vmem:[#allocation2 + $0x1c] sm:$0xf]  ;;  %14957 = vst [vmem:[#allocation38_spill] sm:$0xff] %v10845_v48  ;;  %v10852_v45 = vsel %vm10454_vm8, %v14958_v17, %v10763_v52  ;;  %v10859_v10 = vsel %vm10454_vm8, %v14959_v54, %v10767_v26  ;;  %v3031_v52 = vor.u32 %v3029_v28, %v10811_v40  ;;  %v1997_v26 = vrot.slane %v1996_v20, 4 }
 0x15d   : > { %v2567_v25 = vld [vmem:[#allocation2 + $0x18] sm:$0xf]  ;;  %v2568_v37 = vld [vmem:[#allocation2 + $0x1c] sm:$0xf]  ;;  %8880 = vst [vmem:[#allocation2 + $0x28] sm:$0xff] %v8751_v23   ;;  %v8746_v7 = vpack.c.bf16 %v715_v15, %v714_v4  ;;  %v10861_v4 = vpop.f32.mrf.mxu1  ;;  %v10864_v6 = vmul.bf16 %v10544_v30, %v1548_v60  ;;  %v3033_v23 = vrot.slane %v10811_v40, 4  ;;  %v3040_v61 = vor.u32 %v3038_v50, %v10818_v21 }
 0x15e   : > { %v2631_v34 = vld [vmem:[#allocation2 + $0x18] sm:$0xf]  ;;  %2599 = vst [vmem:[#allocation3 + $0x94] sm:$0xf] %v2567_v25  ;;  %v2632_v62 = vld [vmem:[#allocation2 + $0x1c] sm:$0xf]  ;;  %v10873_v60 = vmul.bf16 %v10549_v31, %v1549_v41  ;;  %v3049_v28 = vor.u32 %v3047_v9, %v10821_v58  ;;  %v10882_v16 = vsel %vm10432_vm5, %v1967_v49, %v10779_v8  ;;  %v3058_v20 = vor.u32 %v3056_v0, %v10837_v13 }
 0x15f   : > { %v4065_v24 = vld [vmem:[#allocation2 + $0x18] sm:$0xf]  ;;  %2600 = vst [vmem:[#allocation3 + $0xb8] sm:$0xf] %v2568_v37  ;;  %v4066_v15 = vld [vmem:[#allocation2 + $0x1c] sm:$0xf]  ;;  %v3224_v37 = vmul.bf16 %v10592_v51, %v2631_v34  ;;  %v3225_v40 = vmul.bf16 %v10473_v29, %v2632_v62  ;;  %v10890_v9 = vsel %vm10432_vm5, %v1977_v38, %v10808_v59  ;;  %v10899_v0 = vsel %vm10432_vm5, %v1987_v2, %v10804_v18 }
 0x160   : > { %4097 = vst [vmem:[#allocation3 + $0x58] sm:$0xf] %v4065_v24  ;;  %8879 = vst [vmem:[#allocation2 + $0x20] sm:$0xff] %v8746_v7   ;;  %v10869_v25 = vrot.slane %v1999_v42, 5  ;;  %v3042_v63 = vrot.slane %v10818_v21, 4  ;;  %v3051_v50 = vrot.slane %v10821_v58, 4  ;;  %v647_v42 = vpop.f32.mrf.mxu1  ;;  %v9454_v7 = vpop.f32.mrf.mxu0  ;;  %v10908_v59 = vsel %vm10454_vm8, %v3024_v5, %v3031_v52 }
 0x161   : > { %4098 = vst [vmem:[#allocation3 + $0x7c] sm:$0xf] %v4066_v15  ;;  %v3644_v27 = vld [vmem:[#allocation2 + $0x18] sm:$0xf]  ;;  %14960 = vst [vmem:[#allocation39_spill] sm:$0xff] %v10882_v16  ;;  %v2249_v41 = vshrl.u32 %v10864_v6, 16  ;;  %v10893_v21 = vadd.f32 %v10741_v44, %v647_v42  ;;  %v10912_v38 = vsel %vm10454_vm8, %v3033_v23, %v3040_v61 }
 0x162   : > { %v3645_v34 = vld [vmem:[#allocation2 + $0x1c] sm:$0xf]  ;;  %14961 = vst [vmem:[#allocation40_spill] sm:$0xff] %v10890_v9  ;;  %v4129_v49 = vld [vmem:[#allocation2 + $0x18] sm:$0xf]  ;;  %14963 = vst [vmem:[#allocation42_spill] sm:$0xff] %v10899_v0  ;;  %v10904_v54 = vsel %vm10432_vm5, %v1997_v26, %v10869_v25  ;;  %v10916_v15 = vmul.bf16 %v3644_v27, %v10442_v3  ;;  %v10920_v26 = vsel %vm10454_vm8, %v3042_v63, %v3049_v28  ;;  %v9463_v39 = vpop.f32.mrf.mxu1 }
 0x163   : > { %14962 = vst [vmem:[#allocation41_spill] sm:$0xff] %v10893_v21  ;;  %v5003_v17 = vld [vmem:[#allocation2 + $0x18] sm:$0xf]  ;;  %v5004_v58 = vld [vmem:[#allocation2 + $0x1c] sm:$0xf]  ;;  %14964 = vst [vmem:[#allocation43_spill] sm:$0xff] %v10904_v54  ;;  %v10924_v23 = vsel %vm10454_vm8, %v3051_v50, %v3058_v20  ;;  %v10927_v61 = vmul.bf16 %v3645_v34, %v10531_v22  ;;  %v4162_v27 = vmul.bf16 %v4129_v49, %v10572_v55 }
 0x164   : > { %14965 = vst [vmem:[#allocation44_spill] sm:$0xff] %v10908_v59  ;;  %14966 = vst [vmem:[#allocation45_spill] sm:$0xff] %v10912_v38  ;;  %v2258_v62 = vshrl.u32 %v10873_v60, 16  ;;  %v3293_v24 = vshll.u32 %v3224_v37, 16  ;;  %v4130_v18 = vld [vmem:[#allocation2 + $0x1c] sm:$0xf] }
 0x165   : > { %v4582_v2 = vld [vmem:[#allocation2 + $0x18] sm:$0xf]  ;;  %5035 = vst [vmem:[#allocation3 + $0x1c] sm:$0xf] %v5003_v17  ;;  %5036 = vst [vmem:[#allocation3 + $0x40] sm:$0xf] %v5004_v58  ;;  %v10931_v17 = vadd.f32 %v9454_v7, %v10741_v44  ;;  %v615_v58 = vpop.f32.mrf.mxu0  ;;  %v4163_v28 = vmul.bf16 %v4130_v18, %v10588_v14 }
 0x166   : > { %14967 = vst [vmem:[#allocation46_spill] sm:$0xff] %v10920_v26  ;;  %v3297_v5 = vshrl.u32 %v3224_v37, 16  ;;  %v3303_v52 = vshll.u32 %v3225_v40, 16  ;;  %v3307_v42 = vshrl.u32 %v3225_v40, 16  ;;  %14968 = vst [vmem:[#allocation47_spill] sm:$0xff] %v10924_v23  ;;  %v2252_v37 = vshll.u32 %v10864_v6, 16 }
 0x167   : > { %v4583_v8 = vld [vmem:[#allocation2 + $0x1c] sm:$0xf]  ;;  %v10937_v40 = vmul.bf16 %v4582_v2, %v10509_v46  ;;  %v10940_v50 = vadd.f32 %v10741_v44, %v615_v58  ;;  %v10942_v34 = vrot.slane %v2249_v41, 7  ;;  %v10944_v49 = vrot.slane %v2258_v62, 7  ;;  %v5067_v63 = vld [vmem:[#allocation2 + $0x18] sm:$0xf] }
 0x168   : > { %v9731_v20 = vld [vmem:[#allocation9 + $0x138] sm:$0xff]   ;;  %v10946_v7 = vrot.slane %v3293_v24, 5  ;;  %v3731_v12 = vshrl.u32 %v10916_v15, 16  ;;  %v10949_v6 = vrot.slane %v3297_v5, 4  ;;  %v10951_v18 = vrot.slane %v3303_v52, 5  ;;  %v15015_v23 = vld [vmem:[#allocation29_spill] sm:$0xff] }
 0x169   : > { %14969 = vst [vmem:[#allocation48_spill] sm:$0xff] %v10942_v34  ;;  %14970 = vst [vmem:[#allocation49_spill] sm:$0xff] %v10944_v49  ;;  %v10953_v2 = vrot.slane %v3307_v42, 4  ;;  %v10956_v58 = vmul.bf16 %v4583_v8, %v10514_v47  ;;  %v5068_v21 = vld [vmem:[#allocation2 + $0x1c] sm:$0xf]  ;;  %9157 = vmatpush3.bf16.msra.mxu1 %v9731_v20  ;;  %v2261_v41 = vshll.u32 %v10873_v60, 16  ;;  %v5100_v5 = vmul.bf16 %v5067_v63, %v10552_v32 }
 0x16a   : > { %14971 = vst [vmem:[#allocation50_spill] sm:$0xff] %v10946_v7  ;;  %14972 = vst [vmem:[#allocation51_spill] sm:$0xff] %v10949_v6  ;;  %v3740_v62 = vshrl.u32 %v10927_v61, 16  ;;  %v4213_v24 = vshll.u32 %v4162_v27, 16  ;;  %v4217_v38 = vshrl.u32 %v4162_v27, 16  ;;  %v4223_v59 = vshll.u32 %v4163_v28, 16 }
 0x16b   : > { %14973 = vst [vmem:[#allocation52_spill] sm:$0xff] %v10951_v18  ;;  %14974 = vst [vmem:[#allocation53_spill] sm:$0xff] %v10953_v2  ;;  %v4227_v9 = vshrl.u32 %v4163_v28, 16  ;;  %v4653_v53 = vshrl.u32 %v10937_v40, 16  ;;  %v10963_v52 = vor.u32 %v2252_v37, %v10942_v34  ;;  %v10966_v8 = vor.u32 %v2261_v41, %v10944_v49  ;;  %v1546_v20 = vld [vmem:[#allocation2 + $0x10] sm:$0xf] }
 0x16c   : > { %v10968_v42 = vrot.slane %v3731_v12, 7  ;;  %v10971_v60 = vmul.bf16 %v5068_v21, %v10465_v19  ;;  %v1547_v16 = vld [vmem:[#allocation2 + $0x14] sm:$0xf]  ;;  %v3734_v63 = vshll.u32 %v10916_v15, 16  ;;  %v4662_v37 = vshrl.u32 %v10956_v58, 16 }
 0x16d   : > { %14975 = vst [vmem:[#allocation54_spill] sm:$0xff] %v10963_v52  ;;  %14976 = vst [vmem:[#allocation55_spill] sm:$0xff] %v10966_v8  ;;  %v2571_v52 = vld [vmem:[#allocation2 + $0x28] sm:$0xf]  ;;  %v2572_v41 = vld [vmem:[#allocation2 + $0x2c] sm:$0xf] }
 0x16e   : > { %14977 = vst [vmem:[#allocation56_spill] sm:$0xff] %v10968_v42  ;;  %v10979_v49 = vrot.slane %v3740_v62, 7  ;;  %v3743_v12 = vshll.u32 %v10927_v61, 16  ;;  %v10982_v21 = vrot.slane %v4213_v24, 5  ;;  %v10984_v8 = vrot.slane %v4217_v38, 4 }
 0x16f   : > { %v2629_v34 = vld [vmem:[#allocation2 + $0x10] sm:$0xf]  ;;  %2603 = vst [vmem:[#allocation3 + $0x124] sm:$0xf] %v2571_v52  ;;  %2604 = vst [vmem:[#allocation3 + $0x148] sm:$0xf] %v2572_v41  ;;  %v10993_v62 = vor.u32 %v3734_v63, %v10968_v42  ;;  %v10997_v38 = vmul.bf16 %v10442_v3, %v1546_v20 }
 0x170   : > { %14978 = vst [vmem:[#allocation57_spill] sm:$0xff] %v10979_v49  ;;  %14979 = vst [vmem:[#allocation58_spill] sm:$0xff] %v10982_v21  ;;  %v10986_v27 = vrot.slane %v4223_v59, 5  ;;  %v10988_v28 = vrot.slane %v4227_v9, 4  ;;  %v10990_v15 = vrot.slane %v4653_v53, 7  ;;  %v5134_v18 = vshrl.u32 %v5100_v5, 16 }
 0x171   : > { %14980 = vst [vmem:[#allocation59_spill] sm:$0xff] %v10984_v8  ;;  %v2630_v2 = vld [vmem:[#allocation2 + $0x14] sm:$0xf]  ;;  %14984 = vst [vmem:[#allocation63_spill] sm:$0xff] %v10993_v62  ;;  %v5137_v6 = vshll.u32 %v5100_v5, 16  ;;  %v5143_v61 = vshll.u32 %v10971_v60, 16  ;;  %v11003_v9 = vmul.bf16 %v10531_v22, %v1547_v16  ;;  %v3222_v53 = vmul.bf16 %v10572_v55, %v2629_v34 }
 0x172   : > { %14981 = vst [vmem:[#allocation60_spill] sm:$0xff] %v10986_v27  ;;  %14982 = vst [vmem:[#allocation61_spill] sm:$0xff] %v10988_v28  ;;  %v4069_v24 = vld [vmem:[#allocation2 + $0x28] sm:$0xf]  ;;  %v4656_v52 = vshll.u32 %v10937_v40, 16  ;;  %v11000_v59 = vrot.slane %v4662_v37, 7  ;;  %v11007_v5 = vor.u32 %v3743_v12, %v10979_v49  ;;  %v3223_v40 = vmul.bf16 %v10588_v14, %v2630_v2 }
 0x173   : > { %14983 = vst [vmem:[#allocation62_spill] sm:$0xff] %v10990_v15  ;;  %14986 = vst [vmem:[#allocation65_spill] sm:$0xff] %v11003_v9  ;;  %v3642_v41 = vld [vmem:[#allocation2 + $0x10] sm:$0xf]  ;;  %v4070_v7 = vld [vmem:[#allocation2 + $0x2c] sm:$0xf] }
 0x174   : > { %14985 = vst [vmem:[#allocation64_spill] sm:$0xff] %v11000_v59  ;;  %4101 = vst [vmem:[#allocation3 + $0xe8] sm:$0xf] %v4069_v24  ;;  %v4665_v63 = vshll.u32 %v10956_v58, 16  ;;  %v3643_v37 = vld [vmem:[#allocation2 + $0x14] sm:$0xf]  ;;  %v11016_v34 = vor.u32 %v4656_v52, %v10990_v15 }
 0x175   : > { %14987 = vst [vmem:[#allocation66_spill] sm:$0xff] %v11007_v5  ;;  %v4127_v42 = vld [vmem:[#allocation2 + $0x10] sm:$0xf]  ;;  %4102 = vst [vmem:[#allocation3 + $0x10c] sm:$0xf] %v4070_v7  ;;  %v11018_v24 = vrot.slane %v5134_v18, 4  ;;  %v11027_v7 = vmul.bf16 %v3642_v41, %v10509_v46 }
 0x176   : > { %14988 = vst [vmem:[#allocation67_spill] sm:$0xff] %v11016_v34  ;;  %v5147_v12 = vshrl.u32 %v10971_v60, 16  ;;  %v4128_v49 = vld [vmem:[#allocation2 + $0x14] sm:$0xf]  ;;  %v1553_v5 = vld [vmem:[#allocation2 + $0x2c] sm:$0xf]  ;;  %v11030_v16 = vor.u32 %v4665_v63, %v11000_v59  ;;  %v11034_v60 = vmul.bf16 %v3643_v37, %v10514_v47  ;;  %v4160_v28 = vmul.bf16 %v4127_v42, %v10552_v32 }
 0x177   : > { %14989 = vst [vmem:[#allocation68_spill] sm:$0xff] %v11018_v24  ;;  %v11021_v20 = vrot.slane %v5137_v6, 5  ;;  %v11023_v58 = vrot.slane %v5143_v61, 5  ;;  %v2231_v2 = vshrl.u32 %v10997_v38, 16  ;;  %14992 = vst [vmem:[#allocation71_spill] sm:$0xff] %v11027_v7  ;;  %v2240_v18 = vshrl.u32 %v11003_v9, 16 }
 0x178   : > { %v1552_v21 = vld [vmem:[#allocation2 + $0x28] sm:$0xf]  ;;  %14993 = vst [vmem:[#allocation72_spill] sm:$0xff] %v11030_v16  ;;  %v3273_v52 = vshll.u32 %v3222_v53, 16  ;;  %14994 = vst [vmem:[#allocation73_spill] sm:$0xff] %v11034_v60  ;;  %v3277_v27 = vshrl.u32 %v3222_v53, 16  ;;  %v2181_v46 = vmul.bf16 %v10647_v11, %v1553_v5  ;;  %v4161_v16 = vmul.bf16 %v4128_v49, %v10465_v19 }
 0x179   : > { %14990 = vst [vmem:[#allocation69_spill] sm:$0xff] %v11021_v20  ;;  %14991 = vst [vmem:[#allocation70_spill] sm:$0xff] %v11023_v58  ;;  %v5007_v15 = vld [vmem:[#allocation2 + $0x28] sm:$0xf]  ;;  %v5008_v6 = vld [vmem:[#allocation2 + $0x2c] sm:$0xf]  ;;  %v2180_v32 = vmul.bf16 %v10639_v56, %v1552_v21 }
 0x17a   : > { %v3283_v61 = vshll.u32 %v3223_v40, 16  ;;  %v4581_v8 = vld [vmem:[#allocation2 + $0x14] sm:$0x8]  ;;  %5039 = vst [vmem:[#allocation3 + $0xac] sm:$0xf] %v5007_v15  ;;  %v11038_v41 = vrot.slane %v5147_v12, 4 }
 0x17b   : > { %5040 = vst [vmem:[#allocation3 + $0xd0] sm:$0xf] %v5008_v6  ;;  %v3287_v59 = vshrl.u32 %v3223_v40, 16  ;;  %v11042_v47 = vrot.slane %v2231_v2, 7  ;;  %v3713_v53 = vshrl.u32 %v11027_v7, 16  ;;  %v11047_v34 = vrot.slane %v2240_v18, 7 }
 0x17c   : > { %14995 = vst [vmem:[#allocation74_spill] sm:$0xff] %v11038_v41  ;;  %v2635_v42 = vld [vmem:[#allocation2 + $0x28] sm:$0xf]  ;;  %v11049_v15 = vrot.slane %v3273_v52, 5  ;;  %v3722_v5 = vshrl.u32 %v11034_v60, 16  ;;  %v4614_v12 = vmul.bf16 %v4581_v8, %v10485_v57  ;;  %v11053_v6 = vrot.slane %v3277_v27, 4 }
 0x17d   : > { %14996 = vst [vmem:[#allocation75_spill] sm:$0xff] %v11042_v47  ;;  %14997 = vst [vmem:[#allocation76_spill] sm:$0xff] %v11047_v34  ;;  %v2636_v40 = vld [vmem:[#allocation2 + $0x2c] sm:$0xf]  ;;  %v11055_v19 = vrot.slane %v3283_v61, 5  ;;  %v4194_v49 = vshrl.u32 %v4160_v28, 16  ;;  %v3228_v18 = vmul.bf16 %v10700_v43, %v2635_v42 }
 0x17e   : > { %14998 = vst [vmem:[#allocation77_spill] sm:$0xff] %v11049_v15  ;;  %14999 = vst [vmem:[#allocation78_spill] sm:$0xff] %v11053_v6  ;;  %v2294_v2 = vshrl.u32 %v2181_v46, 16  ;;  %v11057_v37 = vrot.slane %v3287_v59, 4  ;;  %v4197_v63 = vshll.u32 %v4160_v28, 16  ;;  %v4203_v21 = vshll.u32 %v4161_v16, 16 }
 0x17f   : > { %15000 = vst [vmem:[#allocation79_spill] sm:$0xff] %v11055_v19  ;;  %v11060_v62 = vrot.slane %v3713_v53, 7  ;;  %v2285_v15 = vshrl.u32 %v2180_v32, 16  ;;  %v3229_v8 = vmul.bf16 %v10707_v36, %v2636_v40  ;;  %v3648_v57 = vld [vmem:[#allocation2 + $0x28] sm:$0xf]  ;;  %v11064_v27 = vrot.slane %v3722_v5, 7 }
 0x180   : > { %15001 = vst [vmem:[#allocation80_spill] sm:$0xff] %v11057_v37  ;;  %v4207_v19 = vshrl.u32 %v4161_v16, 16  ;;  %v11067_v6 = vshrl.u32 %v4614_v12, 16  ;;  %v3649_v59 = vld [vmem:[#allocation2 + $0x2c] sm:$0xf]  ;;  %v11069_v28 = vrot.slane %v4194_v49, 4 }
 0x181   : > { %15002 = vst [vmem:[#allocation81_spill] sm:$0xff] %v11060_v62  ;;  %15003 = vst [vmem:[#allocation82_spill] sm:$0xff] %v11064_v27  ;;  %v2288_v37 = vshll.u32 %v2180_v32, 16  ;;  %v11071_v42 = vrot.slane %v2294_v2, 7  ;;  %v2297_v53 = vshll.u32 %v2181_v46, 16  ;;  %v11073_v62 = vrot.slane %v4197_v63, 5 }
 0x182   : > { %15004 = vst [vmem:[#allocation83_spill] sm:$0xff] %v11067_v6  ;;  %15005 = vst [vmem:[#allocation84_spill] sm:$0xff] %v11069_v28  ;;  %v11075_v52 = vrot.slane %v4203_v21, 5  ;;  %v3333_v40 = vshll.u32 %v3228_v18, 16  ;;  %v3337_v7 = vshrl.u32 %v3228_v18, 16  ;;  %v11077_v27 = vrot.slane %v2285_v15, 7  ;;  %v11091_v15 = vpop.f32.mrf.mxu0 }
 0x183   : > { %15006 = vst [vmem:[#allocation85_spill] sm:$0xff] %v11071_v42  ;;  %15007 = vst [vmem:[#allocation86_spill] sm:$0xff] %v11073_v62  ;;  %v4133_v5 = vld [vmem:[#allocation2 + $0x28] sm:$0xf]  ;;  %v3343_v61 = vshll.u32 %v3229_v8, 16  ;;  %v15010_v16 = vld [vmem:[#allocation27_spill] sm:$0xff]  ;;  %v11098_v28 = vor.u32 %v2297_v53, %v11071_v42 }
 0x184   : > { %15008 = vst [vmem:[#allocation87_spill] sm:$0xff] %v11075_v52  ;;  %15009 = vst [vmem:[#allocation88_spill] sm:$0xff] %v11077_v27  ;;  %v11080_v12 = vmul.bf16 %v3648_v57, %v15010_v16  ;;  %v15011_v60 = vld [vmem:[#allocation28_spill] sm:$0xff]  ;;  %v4134_v32 = vld [vmem:[#allocation2 + $0x2c] sm:$0xf]  ;;  %v11089_v21 = vrot.slane %v4207_v19, 4  ;;  %v4166_v46 = vmul.bf16 %v4133_v5, %v15015_v23  ;;  %v11117_v42 = vpop.f32.mrf.mxu0 }
 0x185   : > { %v11083_v49 = vmul.bf16 %v3649_v59, %v15011_v60  ;;  %v5071_v2 = vld [vmem:[#allocation2 + $0x28] sm:$0xf]  ;;  %v3347_v18 = vshrl.u32 %v3229_v8, 16  ;;  %v2565_v52 = vld [vmem:[#allocation2 + $0x10] sm:$0xf]  ;;  %v11095_v59 = vor.u32 %v2288_v37, %v11077_v27  ;;  %15014 = vst [vmem:[#allocation91_spill] sm:$0xff] %v11098_v28 }
 0x186   : > { %15012 = vst [vmem:[#allocation89_spill] sm:$0xff] %v11089_v21  ;;  %v2566_v62 = vld [vmem:[#allocation2 + $0x14] sm:$0xf]  ;;  %v4586_v24 = vld [vmem:[#allocation2 + $0x28] sm:$0xf]  ;;  %v11101_v19 = vrot.slane %v3333_v40, 5  ;;  %v5104_v57 = vmul.bf16 %v5071_v2, %v10592_v51 }
 0x187   : > { %15013 = vst [vmem:[#allocation90_spill] sm:$0xff] %v11095_v59  ;;  %2597 = vst [vmem:[#allocation3 + $0x4c] sm:$0xf] %v2565_v52  ;;  %v11103_v8 = vrot.slane %v3337_v7, 4  ;;  %v15018_v63 = vld [vmem:[#allocation30_spill] sm:$0xff]  ;;  %v11107_v37 = vrot.slane %v3343_v61, 5  ;;  %v11115_v7 = vmul.bf16 %v4586_v24, %v10544_v30 }
 0x188   : > { %2598 = vst [vmem:[#allocation3 + $0x70] sm:$0xf] %v2566_v62  ;;  %15016 = vst [vmem:[#allocation92_spill] sm:$0xff] %v11101_v19  ;;  %v4167_v41 = vmul.bf16 %v4134_v32, %v15018_v63  ;;  %v4587_v58 = vld [vmem:[#allocation2 + $0x2c] sm:$0xf]  ;;  %v3767_v53 = vshrl.u32 %v11080_v12, 16 }
 0x189   : > { %15017 = vst [vmem:[#allocation93_spill] sm:$0xff] %v11103_v8  ;;  %v5072_v20 = vld [vmem:[#allocation2 + $0x2c] sm:$0xf]  ;;  %15019 = vst [vmem:[#allocation94_spill] sm:$0xff] %v11107_v37  ;;  %v3776_v5 = vshrl.u32 %v11083_v49, 16  ;;  %v11112_v62 = vrot.slane %v3347_v18, 4  ;;  %v11121_v27 = vmul.bf16 %v4587_v58, %v10549_v31 }
 0x18a   : > { %v1550_v52 = vld [vmem:[#allocation2 + $0x20] sm:$0xf]  ;;  %v5173_v40 = vshll.u32 %v5104_v57, 16  ;;  %v5177_v32 = vshrl.u32 %v5104_v57, 16  ;;  %v1551_v21 = vld [vmem:[#allocation2 + $0x24] sm:$0xf]  ;;  %v5105_v59 = vmul.bf16 %v5072_v20, %v10473_v29 }
 0x18b   : > { %15020 = vst [vmem:[#allocation95_spill] sm:$0xff] %v11112_v62  ;;  %v4253_v2 = vshll.u32 %v4166_v46, 16  ;;  %v4257_v28 = vshrl.u32 %v4166_v46, 16  ;;  %v4263_v6 = vshll.u32 %v4167_v41, 16  ;;  %v2633_v24 = vld [vmem:[#allocation2 + $0x20] sm:$0xf]  ;;  %v11131_v0 = vmul.bf16 %v15010_v16, %v1550_v52 }
 0x18c   : > { %v11124_v18 = vrot.slane %v5173_v40, 5  ;;  %v11126_v26 = vrot.slane %v5177_v32, 4  ;;  %v4267_v54 = vshrl.u32 %v4167_v41, 16  ;;  %v11134_v46 = vmul.bf16 %v15011_v60, %v1551_v21  ;;  %v11143_v32 = vpop.f32.mrf.mxu0  ;;  %v2634_v21 = vld [vmem:[#allocation2 + $0x24] sm:$0xf] }
 0x18d   : > { %15023 = vst [vmem:[#allocation98_spill] sm:$0xff] %v11131_v0  ;;  %v11136_v58 = vrot.slane %v3767_v53, 7  ;;  %v11138_v61 = vrot.slane %v3776_v5, 7  ;;  %v4689_v20 = vshrl.u32 %v11115_v7, 16  ;;  %v11147_v57 = vrot.slane %v4253_v2, 5 }
 0x18e   : > { %15021 = vst [vmem:[#allocation96_spill] sm:$0xff] %v11124_v18  ;;  %15022 = vst [vmem:[#allocation97_spill] sm:$0xff] %v11126_v26  ;;  %v4698_v52 = vshrl.u32 %v11121_v27, 16  ;;  %v3226_v53 = vmul.bf16 %v15015_v23, %v2633_v24  ;;  %v3646_v8 = vld [vmem:[#allocation2 + $0x20] sm:$0xf]  ;;  %v11151_v5 = vrot.slane %v4257_v28, 4  ;;  %v11164_v28 = vmul.bf16 %v15018_v63, %v2634_v21 }
 0x18f   : > { %15024 = vst [vmem:[#allocation99_spill] sm:$0xff] %v11134_v46  ;;  %15025 = vst [vmem:[#allocation100_spill] sm:$0xff] %v11136_v58  ;;  %v11153_v19 = vrot.slane %v4263_v6, 5  ;;  %v5183_v60 = vshll.u32 %v5105_v59, 16  ;;  %v5187_v16 = vshrl.u32 %v5105_v59, 16  ;;  %v11155_v26 = vrot.slane %v4267_v54, 4  ;;  %v631_v54 = vpop.f32.mrf.mxu0 }
 0x190   : > { %15026 = vst [vmem:[#allocation101_spill] sm:$0xff] %v11138_v61  ;;  %15027 = vst [vmem:[#allocation102_spill] sm:$0xff] %v11147_v57  ;;  %v3647_v40 = vld [vmem:[#allocation2 + $0x24] sm:$0xf]  ;;  %v2267_v2 = vshrl.u32 %v11131_v0, 16  ;;  %v2276_v41 = vshrl.u32 %v11134_v46, 16  ;;  %v11167_v6 = vmul.bf16 %v3646_v8, %v10544_v30 }
 0x191   : > { %15028 = vst [vmem:[#allocation103_spill] sm:$0xff] %v11151_v5  ;;  %15029 = vst [vmem:[#allocation104_spill] sm:$0xff] %v11153_v19  ;;  %v4131_v37 = vld [vmem:[#allocation2 + $0x20] sm:$0xf]  ;;  %v11160_v62 = vrot.slane %v4689_v20, 7  ;;  %v11169_v23 = vrot.slane %v4698_v52, 7  ;;  %v11173_v11 = vmul.bf16 %v3647_v40, %v10549_v31  ;;  %v9459_v48 = vpop.f32.mrf.mxu0 }
 0x192   : > { %15030 = vst [vmem:[#allocation105_spill] sm:$0xff] %v11155_v26  ;;  %15032 = vst [vmem:[#allocation107_spill] sm:$0xff] %v11167_v6  ;;  %v5069_v59 = vld [vmem:[#allocation2 + $0x20] sm:$0xf]  ;;  %v3313_v43 = vshll.u32 %v3226_v53, 16  ;;  %v11175_v56 = vrot.slane %v5183_v60, 5  ;;  %v11180_v30 = vmul.bf16 %v4131_v37, %v10592_v51 }
 0x193   : > { %15031 = vst [vmem:[#allocation106_spill] sm:$0xff] %v11160_v62  ;;  %15033 = vst [vmem:[#allocation108_spill] sm:$0xff] %v11169_v23  ;;  %v5070_v20 = vld [vmem:[#allocation2 + $0x24] sm:$0xf]  ;;  %v11177_v24 = vrot.slane %v5187_v16, 4  ;;  %v3317_v21 = vshrl.u32 %v3226_v53, 16  ;;  %v5102_v31 = vmul.bf16 %v5069_v59, %v10572_v55 }
 0x194   : > { %15034 = vst [vmem:[#allocation109_spill] sm:$0xff] %v11173_v11  ;;  %15035 = vst [vmem:[#allocation110_spill] sm:$0xff] %v11175_v56  ;;  %v4132_v63 = vld [vmem:[#allocation2 + $0x24] sm:$0xf]  ;;  %v11182_v8 = vrot.slane %v2267_v2, 7  ;;  %v11184_v52 = vrot.slane %v2276_v41, 7  ;;  %v5103_v53 = vmul.bf16 %v5070_v20, %v10588_v14 }
 0x195   : > { %15036 = vst [vmem:[#allocation111_spill] sm:$0xff] %v11177_v24  ;;  %v4584_v0 = vld [vmem:[#allocation2 + $0x20] sm:$0xf]  ;;  %v11192_v37 = vrot.slane %v3313_v43, 5  ;;  %v2570_v46 = vld [vmem:[#allocation2 + $0x24] sm:$0xf]  ;;  %v11200_v59 = vmul.bf16 %v4132_v63, %v10473_v29  ;;  %v634_v29 = vpop.f32.mrf.mxu0 }
 0x196   : > { %15037 = vst [vmem:[#allocation112_spill] sm:$0xff] %v11182_v8  ;;  %15038 = vst [vmem:[#allocation113_spill] sm:$0xff] %v11184_v52  ;;  %v2569_v51 = vld [vmem:[#allocation2 + $0x20] sm:$0xf]  ;;  %v11197_v55 = vrot.slane %v3317_v21, 4  ;;  %v4233_v16 = vshll.u32 %v11180_v30, 16  ;;  %v11205_v20 = vmul.bf16 %v4584_v0, %v10442_v3  ;;  %v640_v0 = vadd.f32 %v11143_v32, %v10741_v44 }
 0x197   : > { %15039 = vst [vmem:[#allocation114_spill] sm:$0xff] %v11192_v37  ;;  %2601 = vst [vmem:[#allocation3 + $0xdc] sm:$0xf] %v2569_v51  ;;  %v5153_v14 = vshll.u32 %v5102_v31, 16  ;;  %v4237_v43 = vshrl.u32 %v11180_v30, 16  ;;  %v5157_v41 = vshrl.u32 %v5102_v31, 16  ;;  %v619_v30 = vadd.f32 %v10741_v44, %v11117_v42 }
 0x198   : > { %15040 = vst [vmem:[#allocation115_spill] sm:$0xff] %v11197_v55  ;;  %2602 = vst [vmem:[#allocation3 + $0x100] sm:$0xf] %v2570_v46  ;;  %v5163_v2 = vshll.u32 %v5103_v53, 16  ;;  %v5167_v36 = vshrl.u32 %v5103_v53, 16  ;;  %v720_v21 = vmax.f32 %v10931_v17, 0.0  ;;  %v627_v46 = vadd.f32 %v11091_v15, %v10741_v44 }
 0x199   : > { %15041 = vst [vmem:[#allocation116_spill] sm:$0xff] %v11205_v20  ;;  %v11207_v60 = vrot.slane %v5153_v14, 5  ;;  %v718_v51 = vmax.f32 %v10940_v50, 0.0  ;;  %v5159_v63 = vrot.slane %v5157_v41, 4  ;;  %v632_v31 = vadd.f32 %v10741_v44, %v631_v54  ;;  %v4585_v32 = vld [vmem:[#allocation2 + $0x24] sm:$0xf] }
 0x19a   : > { %v5165_v40 = vrot.slane %v5163_v2, 5  ;;  %v5169_v3 = vrot.slane %v5167_v36, 4  ;;  %v643_v53 = vadd.f32 %v9459_v48, %v10741_v44  ;;  %v721_v50 = vmax.f32 %v627_v46, 0.0  ;;  %v15077_v56 = vld [vmem:[#allocation65_spill] sm:$0xff]  ;;  %v15082_v26 = vld [vmem:[#allocation34_spill] sm:$0xff] }
 0x19b   : > { %15042 = vst [vmem:[#allocation117_spill] sm:$0xff] %v11207_v60  ;;  %v5160_v17 = vor.u32 %v5159_v63, %v11207_v60  ;;  %v719_v14 = vmax.f32 %v619_v30, 0.0  ;;  %v635_v41 = vadd.f32 %v10741_v44, %v634_v29  ;;  %v724_v55 = vmax.f32 %v640_v0, 0.0  ;;  %v15043_v30 = vld [vmem:[#allocation17_spill] sm:$0xff] }
 0x19c   : > { %v5170_v2 = vor.u32 %v5169_v3, %v5165_v40  ;;  %v722_v15 = vmax.f32 %v632_v31, 0.0  ;;  %v725_v37 = vmax.f32 %v643_v53, 0.0  ;;  %v8761_v42 = vpack.c.bf16 %v721_v50, %v720_v21 }
 0x19d   : > { %v5161_v52 = vrot.slane %v5160_v17, 4  ;;  %v8756_v36 = vpack.c.bf16 %v719_v14, %v718_v51  ;;  %v723_v8 = vmax.f32 %v635_v41, 0.0  ;;  %v656_v48 = vadd.f32 %v10861_v4, %v10741_v44 }
 0x19e   : > { %v5171_v9 = vrot.slane %v5170_v2, 4  ;;  %v8771_v54 = vpack.c.bf16 %v725_v37, %v724_v55  ;;  %v659_v63 = vadd.f32 %v9463_v39, %v10741_v44  ;;  %8882 = vst [vmem:[#allocation2 + $0x38] sm:$0xff] %v8761_v42   ;;  %v922_v3 = vadd.s32 152, %v15043_v30 }
 0x19f   : > { %v5166_v29 = vsel %vm10432_vm5, %v5161_v52, %v5165_v40  ;;  %8881 = vst [vmem:[#allocation2 + $0x30] sm:$0xff] %v8756_v36   ;;  %v8766_v46 = vpack.c.bf16 %v723_v8, %v722_v15  ;;  %v923_v21 = vadd.s32 160, %v15043_v30  ;;  %v728_v37 = vmax.f32 %v656_v48, 0.0 }
 0x1a0   : > { %v5176_v51 = vsel %vm10432_vm5, %v5171_v9, %v11124_v18  ;;  %5491 = vst [vmem:[#allocation3 + $0x68] sm:$0xf] %v5166_v29  ;;  %8884 = vst [vmem:[#allocation2 + $0x48] sm:$0xff] %v8771_v54   ;;  %v729_v4 = vmax.f32 %v659_v63, 0.0  ;;  %v924_v44 = vadd.s32 168, %v15043_v30  ;;  %v15044_v39 = vshll.u32 %v11164_v28, 16 }
 0x1a1   : > { %v11237_v8 = vmul.bf16 %v4585_v32, %v10531_v22  ;;  %5492 = vst [vmem:[#allocation3 + $0x8c] sm:$0xf] %v5176_v51  ;;  %8883 = vst [vmem:[#allocation2 + $0x40] sm:$0xff] %v8766_v46   ;;  %v1072_v40 = vand.u32 15, %v922_v3  ;;  %v1079_v55 = vand.u32 15, %v923_v21  ;;  %v15047_v0 = vshrl.u32 %v11164_v28, 16 }
 0x1a2   : > { %v11234_v52 = vrot.slane %v15044_v39, 5  ;;  %v15049_v31 = vshrl.u32 %v11167_v6, 16  ;;  %v8781_v17 = vpack.c.bf16 %v729_v4, %v728_v37  ;;  %v1086_v50 = vand.u32 15, %v924_v44 }
 0x1a3   : > { %15046 = vst [vmem:[#allocation119_spill] sm:$0xff] %v11237_v8  ;;  %v11241_v9 = vrot.slane %v15047_v0, 4  ;;  %v15051_v14 = vshrl.u32 %v11173_v11, 16  ;;  %v11251_v22 = vrot.slane %v4233_v16, 5  ;;  %v4243_v2 = vshll.u32 %v11200_v59, 16 }
 0x1a4   : > { %15045 = vst [vmem:[#allocation118_spill] sm:$0xff] %v11234_v52  ;;  %v11245_v53 = vrot.slane %v15049_v31, 7  ;;  %vm1339_vm11 = vcmp.ge.s32.totalorder %v1079_v55, 1  ;;  %v11254_v15 = vrot.slane %v4237_v43, 4  ;;  %v4247_v28 = vshrl.u32 %v11200_v59, 16  ;;  %8886 = vst [vmem:[#allocation2 + $0x58] sm:$0xff] %v8781_v17  }
 0x1a5   : > { %15048 = vst [vmem:[#allocation120_spill] sm:$0xff] %v11241_v9  ;;  %v11249_v41 = vrot.slane %v15051_v14, 7  ;;  %15053 = vst [vmem:[#allocation123_spill] sm:$0xff] %v11251_v22  ;;  %v4671_v42 = vshrl.u32 %v11205_v20, 16  ;;  %v4680_v32 = vshrl.u32 %v11237_v8, 16  ;;  %v11261_v54 = vadd.s32 176, %v15043_v30 }
 0x1a6   : > { %15050 = vst [vmem:[#allocation121_spill] sm:$0xff] %v11245_v53  ;;  %15054 = vst [vmem:[#allocation124_spill] sm:$0xff] %v11254_v15  ;;  %vm11263_vm12 = vcmp.lt.s32.totalorder %v1072_v40, 15  ;;  %v2003_v48 = vshrl.u32 %v10802_v33, 16  ;;  %v15057_v43 = vshll.u32 %v11080_v12, 16  ;;  %v15059_v63 = vshll.u32 %v11083_v49, 16 }
 0x1a7   : > { %15052 = vst [vmem:[#allocation122_spill] sm:$0xff] %v11249_v41  ;;  %v1556_v46 = vld [vmem:[#allocation2 + $0x38] sm:$0xf]  ;;  %v15061_v21 = vmov 0.0   ;;  %vm11279_vm13 = vcmp.lt.s32.totalorder %v1086_v50, 15  ;;  %v15064_v4 = vshll.u32 %v11115_v7, 16 }
 0x1a8   : > { %v11271_v59 = vor.u32 %v15057_v43, %v11136_v58  ;;  %v11276_v29 = vor.u32 %v15059_v63, %v11138_v61  ;;  %v2575_v3 = vld [vmem:[#allocation2 + $0x38] sm:$0xf]  ;;  %v8443_v51 = vsel %vm1339_vm11, 1.0, %v15061_v21  ;;  %v15066_v44 = vshll.u32 %v11121_v27, 16  ;;  %v1557_v40 = vld [vmem:[#allocation2 + $0x3c] sm:$0xf] }
 0x1a9   : > { %v11290_v49 = vor.u32 %v15064_v4, %v11160_v62  ;;  %v2576_v55 = vld [vmem:[#allocation2 + $0x3c] sm:$0xf]  ;;  %v2639_v0 = vld [vmem:[#allocation2 + $0x38] sm:$0xf]  ;;  %2607 = vst [vmem:[#allocation3 + $0x1b4] sm:$0xf] %v2575_v3 }
 0x1aa   : > { %15058 = vst [vmem:[#allocation125_spill] sm:$0xff] %v11271_v59  ;;  %15060 = vst [vmem:[#allocation126_spill] sm:$0xff] %v11276_v29  ;;  %v11295_v39 = vor.u32 %v15066_v44, %v11169_v23  ;;  %v11297_v31 = vrot.slane %v4243_v2, 5  ;;  %v11299_v17 = vrot.slane %v4247_v28, 4  ;;  %v15070_v50 = vld [vmem:[#allocation35_spill] sm:$0xff]  ;;  %v15072_v4 = vld [vmem:[#allocation36_spill] sm:$0xff]  ;;  %v3232_v3 = vmul.bf16 %v10852_v45, %v2639_v0 }
 0x1ab   : > { %15065 = vst [vmem:[#allocation127_spill] sm:$0xff] %v11290_v49  ;;  %v11302_v14 = vmul.bf16 %v15070_v50, %v1556_v46  ;;  %v2640_v43 = vld [vmem:[#allocation2 + $0x3c] sm:$0xf]  ;;  %v4073_v7 = vld [vmem:[#allocation2 + $0x38] sm:$0xf]  ;;  %v15071_v63 = vld [vmem:[#allocation19_spill] sm:$0xff]  ;;  %v11317_v46 = vmul.bf16 %v10828_v35, %v1557_v40 }
 0x1ac   : > { %15067 = vst [vmem:[#allocation128_spill] sm:$0xff] %v11295_v39  ;;  %15068 = vst [vmem:[#allocation129_spill] sm:$0xff] %v11297_v31  ;;  %v11306_v12 = vrot.slane %v15072_v4, %v15071_v63  ;;  %v11308_v27 = vrot.slane %v4671_v42, 7  ;;  %v4074_v33 = vld [vmem:[#allocation2 + $0x3c] sm:$0xf]  ;;  %v8458_v2 = vsel %vm11263_vm12, 1.0, %v15061_v21 }
 0x1ad   : > { %15069 = vst [vmem:[#allocation130_spill] sm:$0xff] %v11299_v17  ;;  %2608 = vst [vmem:[#allocation3 + $0x1d8] sm:$0xf] %v2576_v55  ;;  %v11314_v28 = vrot.slane %v2003_v48, 4  ;;  %v15074_v55 = vmov 1.0   ;;  %v8459_v42 = vsel %vm11279_vm13, 1.0, %v15061_v21 }
 0x1ae   : > { %15073 = vst [vmem:[#allocation35_spill] sm:$0xff] %v11308_v27  ;;  %4105 = vst [vmem:[#allocation3 + $0x178] sm:$0xf] %v4073_v7  ;;  %v1425_v4 = vpack.c.bf16 %v15074_v55, %v8443_v51  ;;  %v11324_v44 = vrot.slane %v4680_v32, 7  ;;  %v3233_v7 = vmul.bf16 %v10859_v10, %v2640_v43  ;;  %v2321_v0 = vshrl.u32 %v11302_v14, 16  ;;  %v15084_v8 = vld [vmem:[#allocation37_spill] sm:$0xff] }
 0x1af   : > { %4106 = vst [vmem:[#allocation3 + $0x19c] sm:$0xf] %v4074_v33  ;;  %v3652_v33 = vld [vmem:[#allocation2 + $0x38] sm:$0xf]  ;;  %v3653_v36 = vld [vmem:[#allocation2 + $0x3c] sm:$0xf]  ;;  %v1536_v51 = vpack.c.bf16 %v8458_v2, %v15074_v55  ;;  %v11335_v43 = vpack.c.bf16 %v8459_v42, %v15074_v55 }
 0x1b0   : > { %15075 = vst [vmem:[#allocation36_spill] sm:$0xff] %v11324_v44  ;;  %v4137_v60 = vld [vmem:[#allocation2 + $0x38] sm:$0xf]  ;;  %v5012_v18 = vld [vmem:[#allocation2 + $0x3c] sm:$0xf]  ;;  %v15076_v40 = vshll.u32 %v10997_v38, 16  ;;  %v11357_v57 = vmul.bf16 %v3653_v36, %v15082_v26 }
 0x1b1   : > { %v5011_v32 = vld [vmem:[#allocation2 + $0x38] sm:$0xf]  ;;  %v15078_v24 = vshll.u32 %v15077_v56, 16  ;;  %v2330_v37 = vshrl.u32 %v11317_v46, 16  ;;  %v3373_v23 = vshll.u32 %v3232_v3, 16  ;;  %v3377_v39 = vshrl.u32 %v3232_v3, 16 }
 0x1b2   : > { %v11342_v16 = vor.u32 %v15076_v40, %v11042_v47  ;;  %v4138_v49 = vld [vmem:[#allocation2 + $0x3c] sm:$0xf]  ;;  %5043 = vst [vmem:[#allocation3 + $0x13c] sm:$0xf] %v5011_v32  ;;  %5044 = vst [vmem:[#allocation3 + $0x160] sm:$0xf] %v5012_v18  ;;  %v4170_v32 = vmul.bf16 %v4137_v60, %v15084_v8  ;;  %v11364_v18 = vrot.slane %v1425_v4, %v15071_v63 }
 0x1b3   : > { %v11347_v2 = vor.u32 %v15078_v24, %v11047_v34  ;;  %v15080_v42 = vld [vmem:[#allocation18_spill] sm:$0xff]  ;;  %v3383_v48 = vshll.u32 %v3233_v7, 16  ;;  %v3387_v19 = vshrl.u32 %v3233_v7, 16  ;;  %v15081_v38 = vld [vmem:[#allocation33_spill] sm:$0xff]  ;;  %v4590_v56 = vld [vmem:[#allocation2 + $0x38] sm:$0xf]  ;;  %v11372_v17 = vrot.slane %v1536_v51, %v15071_v63 }
 0x1b4   : > { %v11351_v62 = vrot.slane %v1425_v4, %v15080_v42  ;;  %v11354_v40 = vmul.bf16 %v3652_v33, %v15081_v38  ;;  %v9745_v24 = vld [vmem:[#allocation9 + $0x170] sm:$0xff]   ;;  %v11359_v5 = vrot.slane %v2321_v0, 7  ;;  %v2324_v3 = vshll.u32 %v11302_v14, 16  ;;  %v15085_v20 = vld [vmem:[#allocation38_spill] sm:$0xff]  ;;  %v4591_v27 = vld [vmem:[#allocation2 + $0x3c] sm:$0xf] }
 0x1b5   : > { %15079 = vst [vmem:[#allocation65_spill] sm:$0xff] %v11347_v2  ;;  %v9748_v44 = vld [vmem:[#allocation9 + $0x130] sm:$0xff]   ;;  %v2333_v7 = vshll.u32 %v11317_v46, 16  ;;  %v4171_v33 = vmul.bf16 %v4138_v49, %v15085_v20  ;;  %v11369_v36 = vrot.slane %v1536_v51, %v15080_v42  ;;  %9158 = vmatprep.subr.bf16.mxu1 %v9745_v24  ;;  %v11374_v0 = vrot.slane %v2330_v37, 7  ;;  %v15089_v4 = vld [vmem:[#allocation25_spill] sm:$0xff]  ;;  %v15098_v52 = vld [vmem:[#allocation32_spill] sm:$0xff] }
 0x1b6   : > { %15083 = vst [vmem:[#allocation33_spill] sm:$0xff] %v11359_v5  ;;  %v11376_v14 = vrot.slane %v3373_v23, 5  ;;  %v11378_v60 = vrot.slane %v3377_v39, 4  ;;  %v11381_v31 = vmul.bf16 %v4590_v56, %v15089_v4  ;;  %v5075_v46 = vld [vmem:[#allocation2 + $0x38] sm:$0xf]  ;;  %9159 = vmatpush3.bf16.msra.mxu1 %v9748_v44  ;;  %v11383_v49 = vrot.slane %v3383_v48, 5 }
 0x1b7   : > { %15086 = vst [vmem:[#allocation34_spill] sm:$0xff] %v11374_v0  ;;  %v11385_v15 = vrot.slane %v3387_v19, 4  ;;  %v3803_v22 = vshrl.u32 %v11354_v40, 16  ;;  %v3812_v51 = vshrl.u32 %v11357_v57, 16  ;;  %v11390_v37 = vor.u32 %v2324_v3, %v11359_v5  ;;  %v15093_v39 = vld [vmem:[#allocation26_spill] sm:$0xff]  ;;  %v15094_v19 = vld [vmem:[#allocation31_spill] sm:$0xff] }
 0x1b8   : > { %15087 = vst [vmem:[#allocation37_spill] sm:$0xff] %v11376_v14  ;;  %15088 = vst [vmem:[#allocation38_spill] sm:$0xff] %v11378_v60  ;;  %v4293_v23 = vshll.u32 %v4170_v32, 16  ;;  %v4297_v24 = vshrl.u32 %v4170_v32, 16  ;;  %v11393_v61 = vmul.bf16 %v4591_v27, %v15093_v39  ;;  %v5076_v56 = vld [vmem:[#allocation2 + $0x3c] sm:$0xf]  ;;  %v5108_v59 = vmul.bf16 %v5075_v46, %v15094_v19 }
 0x1b9   : > { %15090 = vst [vmem:[#allocation25_spill] sm:$0xff] %v11383_v49  ;;  %15091 = vst [vmem:[#allocation131_spill] sm:$0xff] %v11385_v15  ;;  %v3806_v29 = vshll.u32 %v11354_v40, 16  ;;  %v3815_v44 = vshll.u32 %v11357_v57, 16  ;;  %v4303_v48 = vshll.u32 %v4171_v33, 16  ;;  %v11399_v58 = vor.u32 %v2333_v7, %v11374_v0 }
 0x1ba   : > { %15092 = vst [vmem:[#allocation132_spill] sm:$0xff] %v11390_v37  ;;  %v4307_v5 = vshrl.u32 %v4171_v33, 16  ;;  %v4725_v32 = vshrl.u32 %v11381_v31, 16  ;;  %v1554_v37 = vld [vmem:[#allocation2 + $0x30] sm:$0xf]  ;;  %v11406_v40 = vrot.slane %v3803_v22, 7  ;;  %v5109_v46 = vmul.bf16 %v5076_v56, %v15098_v52 }
 0x1bb   : > { %15095 = vst [vmem:[#allocation26_spill] sm:$0xff] %v11399_v58  ;;  %v1555_v27 = vld [vmem:[#allocation2 + $0x34] sm:$0xf]  ;;  %v11408_v57 = vrot.slane %v3812_v51, 7  ;;  %v2637_v30 = vld [vmem:[#allocation2 + $0x30] sm:$0xf]  ;;  %v11420_v51 = vmul.bf16 %v15081_v38, %v1554_v37 }
 0x1bc   : > { %15096 = vst [vmem:[#allocation31_spill] sm:$0xff] %v11406_v40  ;;  %v2638_v7 = vld [vmem:[#allocation2 + $0x34] sm:$0xf]  ;;  %v11411_v0 = vrot.slane %v4293_v23, 5  ;;  %v11413_v58 = vrot.slane %v4297_v24, 4  ;;  %v4728_v33 = vshll.u32 %v11381_v31, 16  ;;  %v11427_v24 = vmul.bf16 %v15082_v26, %v1555_v27 }
 0x1bd   : > { %15097 = vst [vmem:[#allocation133_spill] sm:$0xff] %v11408_v57  ;;  %v4734_v3 = vshrl.u32 %v11393_v61, 16  ;;  %v2579_v60 = vld [vmem:[#allocation2 + $0x48] sm:$0xf]  ;;  %v11417_v14 = vrot.slane %v4303_v48, 5  ;;  %v5213_v9 = vshll.u32 %v5108_v59, 16  ;;  %v3230_v31 = vmul.bf16 %v15084_v8, %v2637_v30 }
 0x1be   : > { %15099 = vst [vmem:[#allocation32_spill] sm:$0xff] %v11411_v0  ;;  %15100 = vst [vmem:[#allocation134_spill] sm:$0xff] %v11413_v58  ;;  %v5217_v22 = vshrl.u32 %v5108_v59, 16  ;;  %v2580_v49 = vld [vmem:[#allocation2 + $0x4c] sm:$0xf]  ;;  %v11422_v56 = vrot.slane %v4307_v5, 4  ;;  %v11431_v48 = vor.u32 %v3806_v29, %v11406_v40  ;;  %v11434_v59 = vor.u32 %v3815_v44, %v11408_v57 }
 0x1bf   : > { %15101 = vst [vmem:[#allocation135_spill] sm:$0xff] %v11417_v14  ;;  %15102 = vst [vmem:[#allocation136_spill] sm:$0xff] %v11420_v51  ;;  %v11424_v23 = vrot.slane %v4725_v32, 7  ;;  %v3650_v15 = vld [vmem:[#allocation2 + $0x30] sm:$0xf]  ;;  %v3231_v5 = vmul.bf16 %v15085_v20, %v2638_v7  ;;  %v11440_v27 = vrot.slane %v4734_v3, 7 }
 0x1c0   : > { %2611 = vst [vmem:[#allocation3 + $0x244] sm:$0xf] %v2579_v60  ;;  %15103 = vst [vmem:[#allocation137_spill] sm:$0xff] %v11422_v56  ;;  %v3651_v60 = vld [vmem:[#allocation2 + $0x34] sm:$0xf]  ;;  %v5223_v11 = vshll.u32 %v5109_v46, 16  ;;  %v11448_v57 = vmul.bf16 %v3650_v15, %v15089_v4 }
 0x1c1   : > { %15104 = vst [vmem:[#allocation138_spill] sm:$0xff] %v11424_v23  ;;  %15105 = vst [vmem:[#allocation139_spill] sm:$0xff] %v11427_v24  ;;  %v5227_v30 = vshrl.u32 %v5109_v46, 16  ;;  %v4135_v41 = vld [vmem:[#allocation2 + $0x30] sm:$0xf]  ;;  %v11444_v29 = vrot.slane %v5217_v22, 4  ;;  %v11453_v3 = vor.u32 %v4728_v33, %v11424_v23  ;;  %v11457_v15 = vmul.bf16 %v3651_v60, %v15093_v39 }
 0x1c2   : > { %2612 = vst [vmem:[#allocation3 + $0x268] sm:$0xf] %v2580_v49  ;;  %15106 = vst [vmem:[#allocation140_spill] sm:$0xff] %v11431_v48  ;;  %v11442_v49 = vrot.slane %v5213_v9, 5  ;;  %v2303_v44 = vshrl.u32 %v11420_v51, 16  ;;  %v2312_v46 = vshrl.u32 %v11427_v24, 16 }
 0x1c3   : > { %15107 = vst [vmem:[#allocation141_spill] sm:$0xff] %v11434_v59  ;;  %15108 = vst [vmem:[#allocation142_spill] sm:$0xff] %v11440_v27  ;;  %v4136_v37 = vld [vmem:[#allocation2 + $0x34] sm:$0xf]  ;;  %v4077_v7 = vld [vmem:[#allocation2 + $0x48] sm:$0xf] }
 0x1c4   : > { %15109 = vst [vmem:[#allocation143_spill] sm:$0xff] %v11442_v49  ;;  %15110 = vst [vmem:[#allocation144_spill] sm:$0xff] %v11444_v29  ;;  %v3353_v32 = vshll.u32 %v3230_v31, 16  ;;  %v5074_v9 = vld [vmem:[#allocation2 + $0x34] sm:$0xf]  ;;  %v3357_v22 = vshrl.u32 %v3230_v31, 16 }
 0x1c5   : > { %15111 = vst [vmem:[#allocation145_spill] sm:$0xff] %v11448_v57  ;;  %15112 = vst [vmem:[#allocation146_spill] sm:$0xff] %v11453_v3  ;;  %v4078_v0 = vld [vmem:[#allocation2 + $0x4c] sm:$0xf]  ;;  %v3363_v58 = vshll.u32 %v3231_v5, 16  ;;  %v3367_v48 = vshrl.u32 %v3231_v5, 16  ;;  %v4168_v5 = vmul.bf16 %v4135_v41, %v15094_v19 }
 0x1c6   : > { %4109 = vst [vmem:[#allocation3 + $0x208] sm:$0xf] %v4077_v7  ;;  %15113 = vst [vmem:[#allocation147_spill] sm:$0xff] %v11457_v15  ;;  %v5073_v4 = vld [vmem:[#allocation2 + $0x30] sm:$0xf]  ;;  %v11459_v40 = vrot.slane %v5223_v11, 5 }
 0x1c7   : > { %4110 = vst [vmem:[#allocation3 + $0x22c] sm:$0xf] %v4078_v0  ;;  %v11461_v59 = vrot.slane %v5227_v30, 4  ;;  %v4588_v23 = vld [vmem:[#allocation2 + $0x30] sm:$0xf]  ;;  %v11465_v14 = vrot.slane %v2303_v44, 7  ;;  %v4169_v30 = vmul.bf16 %v4136_v37, %v15098_v52 }
 0x1c8   : > { %15114 = vst [vmem:[#allocation148_spill] sm:$0xff] %v11459_v40  ;;  %v3785_v31 = vshrl.u32 %v11448_v57, 16  ;;  %v4589_v7 = vld [vmem:[#allocation2 + $0x34] sm:$0xf]  ;;  %v15117_v39 = vld [vmem:[#allocation30_spill] sm:$0xff]  ;;  %v11470_v0 = vrot.slane %v2312_v46, 7 }
 0x1c9   : > { %15115 = vst [vmem:[#allocation149_spill] sm:$0xff] %v11461_v59  ;;  %15116 = vst [vmem:[#allocation150_spill] sm:$0xff] %v11465_v14  ;;  %v5107_v60 = vmul.bf16 %v5074_v9, %v15117_v39  ;;  %v5015_v56 = vld [vmem:[#allocation2 + $0x48] sm:$0xf]  ;;  %v11472_v11 = vrot.slane %v3353_v32, 5  ;;  %v15120_v33 = vld [vmem:[#allocation29_spill] sm:$0xff] }
 0x1ca   : > { %15118 = vst [vmem:[#allocation30_spill] sm:$0xff] %v11470_v0  ;;  %v5106_v51 = vmul.bf16 %v5073_v4, %v15120_v33  ;;  %v5016_v3 = vld [vmem:[#allocation2 + $0x4c] sm:$0xf]  ;;  %5047 = vst [vmem:[#allocation3 + $0x1cc] sm:$0xf] %v5015_v56  ;;  %v11476_v44 = vrot.slane %v3357_v22, 4 }
 0x1cb   : > { %15119 = vst [vmem:[#allocation151_spill] sm:$0xff] %v11472_v11  ;;  %v11478_v24 = vrot.slane %v3363_v58, 5  ;;  %v11480_v14 = vrot.slane %v3367_v48, 4  ;;  %v3794_v41 = vshrl.u32 %v11457_v15, 16  ;;  %5048 = vst [vmem:[#allocation3 + $0x1f0] sm:$0xf] %v5016_v3 }
 0x1cc   : > { %15121 = vst [vmem:[#allocation29_spill] sm:$0xff] %v11476_v44  ;;  %v15124_v46 = vld [vmem:[#allocation27_spill] sm:$0xff]  ;;  %v15126_v9 = vld [vmem:[#allocation28_spill] sm:$0xff]  ;;  %v5197_v37 = vshrl.u32 %v5106_v51, 16  ;;  %v1560_v4 = vld [vmem:[#allocation2 + $0x48] sm:$0xf] }
 0x1cd   : > { %15122 = vst [vmem:[#allocation152_spill] sm:$0xff] %v11478_v24  ;;  %15123 = vst [vmem:[#allocation153_spill] sm:$0xff] %v11480_v14  ;;  %v11485_v32 = vmul.bf16 %v4588_v23, %v15124_v46  ;;  %v11488_v52 = vmul.bf16 %v4589_v7, %v15126_v9  ;;  %v1561_v56 = vld [vmem:[#allocation2 + $0x4c] sm:$0xf]  ;;  %v11490_v22 = vrot.slane %v3785_v31, 7  ;;  %v4273_v58 = vshll.u32 %v4168_v5, 16 }
 0x1ce   : > { %v5203_v33 = vshll.u32 %v5107_v60, 16  ;;  %v5207_v48 = vshrl.u32 %v5107_v60, 16  ;;  %v4277_v14 = vshrl.u32 %v4168_v5, 16  ;;  %v4283_v3 = vshll.u32 %v4169_v30, 16  ;;  %v2643_v19 = vld [vmem:[#allocation2 + $0x48] sm:$0xf] }
 0x1cf   : > { %15125 = vst [vmem:[#allocation27_spill] sm:$0xff] %v11485_v32  ;;  %15127 = vst [vmem:[#allocation28_spill] sm:$0xff] %v11488_v52  ;;  %v5193_v24 = vshll.u32 %v5106_v51, 16  ;;  %v11493_v44 = vrot.slane %v3794_v41, 7  ;;  %v4287_v23 = vshrl.u32 %v4169_v30, 16  ;;  %v15130_v46 = vld [vmem:[#allocation42_spill] sm:$0xff] }
 0x1d0   : > { %15128 = vst [vmem:[#allocation154_spill] sm:$0xff] %v11490_v22  ;;  %v11496_v7 = vmul.bf16 %v15130_v46, %v1560_v4  ;;  %v15131_v9 = vld [vmem:[#allocation43_spill] sm:$0xff]  ;;  %v4707_v31 = vshrl.u32 %v11485_v32, 16  ;;  %v4716_v60 = vshrl.u32 %v11488_v52, 16  ;;  %v5199_v39 = vrot.slane %v5197_v37, 4  ;;  %v15134_v30 = vld [vmem:[#allocation46_spill] sm:$0xff] }
 0x1d1   : > { %15129 = vst [vmem:[#allocation155_spill] sm:$0xff] %v11493_v44  ;;  %v11499_v11 = vmul.bf16 %v15131_v9, %v1561_v56  ;;  %v2644_v5 = vld [vmem:[#allocation2 + $0x4c] sm:$0xf]  ;;  %v11504_v15 = vrot.slane %v4273_v58, 5  ;;  %v11506_v51 = vrot.slane %v5203_v33, 5  ;;  %v5209_v41 = vrot.slane %v5207_v48, 4 }
 0x1d2   : > { %v3236_v44 = vmul.bf16 %v15134_v30, %v2643_v19  ;;  %v3656_v4 = vld [vmem:[#allocation2 + $0x48] sm:$0xf]  ;;  %v11509_v22 = vrot.slane %v4277_v14, 4  ;;  %v11511_v56 = vrot.slane %v4283_v3, 5  ;;  %v11514_v6 = vrot.slane %v5193_v24, 5  ;;  %v15139_v33 = vld [vmem:[#allocation47_spill] sm:$0xff] }
 0x1d3   : > { %15132 = vst [vmem:[#allocation42_spill] sm:$0xff] %v11504_v15  ;;  %15133 = vst [vmem:[#allocation43_spill] sm:$0xff] %v11506_v51  ;;  %v3657_v57 = vld [vmem:[#allocation2 + $0x4c] sm:$0xf]  ;;  %v11516_v32 = vrot.slane %v4287_v23, 4  ;;  %v2357_v37 = vshrl.u32 %v11496_v7, 16  ;;  %v3237_v48 = vmul.bf16 %v15139_v33, %v2644_v5 }
 0x1d4   : > { %15135 = vst [vmem:[#allocation46_spill] sm:$0xff] %v11509_v22  ;;  %15136 = vst [vmem:[#allocation156_spill] sm:$0xff] %v11511_v56  ;;  %v2366_v58 = vshrl.u32 %v11499_v11, 16  ;;  %v4141_v15 = vld [vmem:[#allocation2 + $0x48] sm:$0xf]  ;;  %v11521_v19 = vrot.slane %v4707_v31, 7  ;;  %v5200_v3 = vor.u32 %v5199_v39, %v11514_v6  ;;  %v5210_v22 = vor.u32 %v5209_v41, %v11506_v51 }
 0x1d5   : > { %15137 = vst [vmem:[#allocation157_spill] sm:$0xff] %v11514_v6  ;;  %15138 = vst [vmem:[#allocation158_spill] sm:$0xff] %v11516_v32  ;;  %v11523_v14 = vrot.slane %v4716_v60, 7  ;;  %v15142_v56 = vld [vmem:[#allocation39_spill] sm:$0xff]  ;;  %v4142_v24 = vld [vmem:[#allocation2 + $0x4c] sm:$0xf] }
 0x1d6   : > { %15140 = vst [vmem:[#allocation159_spill] sm:$0xff] %v11521_v19  ;;  %v11527_v0 = vmul.bf16 %v3656_v4, %v15142_v56  ;;  %v4594_v52 = vld [vmem:[#allocation2 + $0x48] sm:$0xf]  ;;  %v15143_v23 = vshll.u32 %v11393_v61, 16  ;;  %v3413_v5 = vshll.u32 %v3236_v44, 16  ;;  %v3417_v53 = vshrl.u32 %v3236_v44, 16 }
 0x1d7   : > { %15141 = vst [vmem:[#allocation160_spill] sm:$0xff] %v11523_v14  ;;  %v2583_v31 = vld [vmem:[#allocation2 + $0x58] sm:$0xf]  ;;  %v2584_v19 = vld [vmem:[#allocation2 + $0x5c] sm:$0xf]  ;;  %v2360_v60 = vshll.u32 %v11496_v7, 16 }
 0x1d8   : > { %v11532_v32 = vor.u32 %v15143_v23, %v11440_v27  ;;  %v2369_v39 = vshll.u32 %v11499_v11, 16  ;;  %v15145_v6 = vld [vmem:[#allocation40_spill] sm:$0xff]  ;;  %v4595_v2 = vld [vmem:[#allocation2 + $0x4c] sm:$0xf]  ;;  %2615 = vst [vmem:[#allocation3 + $0x2d4] sm:$0xf] %v2583_v31 }
 0x1d9   : > { %v11538_v4 = vmul.bf16 %v3657_v57, %v15145_v6  ;;  %v15146_v14 = vld [vmem:[#allocation44_spill] sm:$0xff]  ;;  %2616 = vst [vmem:[#allocation3 + $0x2f8] sm:$0xf] %v2584_v19  ;;  %v11541_v61 = vrot.slane %v2357_v37, 7  ;;  %v11543_v23 = vrot.slane %v2366_v58, 7  ;;  %v3423_v41 = vshll.u32 %v3237_v48, 16 }
 0x1da   : > { %15144 = vst [vmem:[#allocation161_spill] sm:$0xff] %v11532_v32  ;;  %v4174_v34 = vmul.bf16 %v4141_v15, %v15146_v14  ;;  %v15149_v44 = vld [vmem:[#allocation45_spill] sm:$0xff]  ;;  %v11546_v27 = vrot.slane %v5200_v3, 4  ;;  %v3427_v7 = vshrl.u32 %v3237_v48, 16  ;;  %v3839_v11 = vshrl.u32 %v11527_v0, 16 }
 0x1db   : > { %15147 = vst [vmem:[#allocation162_spill] sm:$0xff] %v11541_v61  ;;  %15148 = vst [vmem:[#allocation163_spill] sm:$0xff] %v11543_v23  ;;  %v4175_v51 = vmul.bf16 %v4142_v24, %v15149_v44  ;;  %v11550_v57 = vmul.bf16 %v4594_v52, %v15070_v50  ;;  %v11552_v32 = vrot.slane %v5210_v22, 4  ;;  %v11554_v15 = vrot.slane %v3413_v5, 5  ;;  %v5079_v58 = vld [vmem:[#allocation2 + $0x48] sm:$0xf] }
 0x1dc   : > { %15150 = vst [vmem:[#allocation164_spill] sm:$0xff] %v11546_v27  ;;  %v11556_v19 = vrot.slane %v3417_v53, 4  ;;  %v11559_v37 = vmul.bf16 %v4595_v2, %v10828_v35  ;;  %v3848_v24 = vshrl.u32 %v11538_v4, 16  ;;  %v4333_v52 = vshll.u32 %v4174_v34, 16  ;;  %v4081_v31 = vld [vmem:[#allocation2 + $0x58] sm:$0xf] }
 0x1dd   : > { %15151 = vst [vmem:[#allocation165_spill] sm:$0xff] %v11552_v32  ;;  %15152 = vst [vmem:[#allocation166_spill] sm:$0xff] %v11554_v15  ;;  %v4082_v22 = vld [vmem:[#allocation2 + $0x5c] sm:$0xf]  ;;  %v11566_v32 = vrot.slane %v3423_v41, 5  ;;  %v4337_v5 = vshrl.u32 %v4174_v34, 16  ;;  %v11575_v29 = vor.u32 %v2360_v60, %v11541_v61  ;;  %v11578_v34 = vor.u32 %v2369_v39, %v11543_v23 }
 0x1de   : > { %15153 = vst [vmem:[#allocation167_spill] sm:$0xff] %v11556_v19  ;;  %v4343_v53 = vshll.u32 %v4175_v51, 16  ;;  %v4347_v27 = vshrl.u32 %v4175_v51, 16  ;;  %v5080_v33 = vld [vmem:[#allocation2 + $0x4c] sm:$0xf]  ;;  %v11568_v2 = vrot.slane %v3427_v7, 4  ;;  %v5112_v60 = vmul.bf16 %v5079_v58, %v10852_v45 }
 0x1df   : > { %15154 = vst [vmem:[#allocation168_spill] sm:$0xff] %v11566_v32  ;;  %4113 = vst [vmem:[#allocation3 + $0x298] sm:$0xf] %v4081_v31  ;;  %v11570_v47 = vrot.slane %v3839_v11, 7  ;;  %v3842_v3 = vshll.u32 %v11527_v0, 16  ;;  %v4761_v48 = vshrl.u32 %v11550_v57, 16  ;;  %v5113_v19 = vmul.bf16 %v5080_v33, %v10859_v10 }
 0x1e0   : > { %4114 = vst [vmem:[#allocation3 + $0x2bc] sm:$0xf] %v4082_v22  ;;  %15155 = vst [vmem:[#allocation169_spill] sm:$0xff] %v11568_v2  ;;  %v1558_v40 = vld [vmem:[#allocation2 + $0x40] sm:$0xf]  ;;  %v4770_v41 = vshrl.u32 %v11559_v37, 16 }
 0x1e1   : > { %15156 = vst [vmem:[#allocation170_spill] sm:$0xff] %v11570_v47  ;;  %v1559_v59 = vld [vmem:[#allocation2 + $0x44] sm:$0xf]  ;;  %15157 = vst [vmem:[#allocation171_spill] sm:$0xff] %v11575_v29  ;;  %v2641_v7 = vld [vmem:[#allocation2 + $0x40] sm:$0xf] }
 0x1e2   : > { %15158 = vst [vmem:[#allocation172_spill] sm:$0xff] %v11578_v34  ;;  %v5019_v11 = vld [vmem:[#allocation2 + $0x58] sm:$0xf]  ;;  %v5020_v31 = vld [vmem:[#allocation2 + $0x5c] sm:$0xf]  ;;  %v11583_v22 = vrot.slane %v3848_v24, 7  ;;  %v3234_v32 = vmul.bf16 %v15146_v14, %v2641_v7 }
 0x1e3   : > { %v3851_v0 = vshll.u32 %v11538_v4, 16  ;;  %v11586_v49 = vrot.slane %v4333_v52, 5  ;;  %v2642_v61 = vld [vmem:[#allocation2 + $0x44] sm:$0xf]  ;;  %5051 = vst [vmem:[#allocation3 + $0x25c] sm:$0xf] %v5019_v11  ;;  %v11599_v4 = vor.u32 %v3842_v3, %v11570_v47  ;;  %v11617_v3 = vmul.bf16 %v15145_v6, %v1559_v59 }
 0x1e4   : > { %15159 = vst [vmem:[#allocation173_spill] sm:$0xff] %v11583_v22  ;;  %5052 = vst [vmem:[#allocation3 + $0x280] sm:$0xf] %v5020_v31  ;;  %v11589_v39 = vrot.slane %v4337_v5, 4  ;;  %v11591_v23 = vrot.slane %v4343_v53, 5  ;;  %v11593_v51 = vrot.slane %v4347_v27, 4  ;;  %v11614_v31 = vmul.bf16 %v15142_v56, %v1558_v40 }
 0x1e5   : > { %15160 = vst [vmem:[#allocation174_spill] sm:$0xff] %v11586_v49  ;;  %v3654_v15 = vld [vmem:[#allocation2 + $0x40] sm:$0xf]  ;;  %15164 = vst [vmem:[#allocation178_spill] sm:$0xff] %v11599_v4  ;;  %v11601_v52 = vrot.slane %v4761_v48, 7  ;;  %v4764_v58 = vshll.u32 %v11550_v57, 16  ;;  %v11620_v57 = vor.u32 %v3851_v0, %v11583_v22 }
 0x1e6   : > { %15161 = vst [vmem:[#allocation175_spill] sm:$0xff] %v11589_v39  ;;  %15162 = vst [vmem:[#allocation176_spill] sm:$0xff] %v11591_v23  ;;  %v3655_v11 = vld [vmem:[#allocation2 + $0x44] sm:$0xf]  ;;  %v15166_v5 = vand.u32 15, %v11261_v54  ;;  %v11610_v27 = vrot.slane %v4770_v41, 7  ;;  %v3235_v41 = vmul.bf16 %v15149_v44, %v2642_v61 }
 0x1e7   : > { %15163 = vst [vmem:[#allocation177_spill] sm:$0xff] %v11593_v51  ;;  %15165 = vst [vmem:[#allocation179_spill] sm:$0xff] %v11601_v52  ;;  %v4773_v33 = vshll.u32 %v11559_v37, 16  ;;  %v2573_v48 = vld [vmem:[#allocation2 + $0x30] sm:$0xf]  ;;  %v5253_v54 = vshll.u32 %v5112_v60, 16  ;;  %v11629_v47 = vor.u32 %v4764_v58, %v11601_v52  ;;  %v11635_v7 = vmul.bf16 %v3655_v11, %v10828_v35 }
 0x1e8   : > { %vm11606_vm14 = vcmp.ge.s32.totalorder %v15166_v5, 1  ;;  %15169 = vst [vmem:[#allocation180_spill] sm:$0xff] %v11610_v27  ;;  %15170 = vst [vmem:[#allocation181_spill] sm:$0xff] %v11614_v31  ;;  %v2574_v24 = vld [vmem:[#allocation2 + $0x34] sm:$0xf]  ;;  %v5257_v5 = vshrl.u32 %v5112_v60, 16  ;;  %v11632_v60 = vmul.bf16 %v3654_v15, %v15070_v50 }
 0x1e9   : > { %15171 = vst [vmem:[#allocation182_spill] sm:$0xff] %v11617_v3  ;;  %15172 = vst [vmem:[#allocation183_spill] sm:$0xff] %v11620_v57  ;;  %v4139_v2 = vld [vmem:[#allocation2 + $0x40] sm:$0xf]  ;;  %v5263_v59 = vshll.u32 %v5113_v19, 16  ;;  %v5267_v0 = vshrl.u32 %v5113_v19, 16 }
 0x1ea   : > { %2605 = vst [vmem:[#allocation3 + $0x16c] sm:$0xf] %v2573_v48  ;;  %2606 = vst [vmem:[#allocation3 + $0x190] sm:$0xf] %v2574_v24  ;;  %v11638_v24 = vor.u32 %v4773_v33, %v11610_v27  ;;  %v2339_v48 = vshrl.u32 %v11614_v31, 16  ;;  %v2348_v40 = vshrl.u32 %v11617_v3, 16  ;;  %v4172_v61 = vmul.bf16 %v4139_v2, %v10852_v45 }
 0x1eb   : > { %15173 = vst [vmem:[#allocation184_spill] sm:$0xff] %v11629_v47  ;;  %15174 = vst [vmem:[#allocation185_spill] sm:$0xff] %v11632_v60  ;;  %v4140_v37 = vld [vmem:[#allocation2 + $0x44] sm:$0xf]  ;;  %v11643_v23 = vrot.slane %v5253_v54, 5  ;;  %v11645_v58 = vrot.slane %v5257_v5, 4 }
 0x1ec   : > { %15175 = vst [vmem:[#allocation186_spill] sm:$0xff] %v11635_v7  ;;  %15176 = vst [vmem:[#allocation187_spill] sm:$0xff] %v11638_v24  ;;  %v3393_v19 = vshll.u32 %v3234_v32, 16  ;;  %v3397_v50 = vshrl.u32 %v3234_v32, 16  ;;  %v11647_v15 = vrot.slane %v5263_v59, 5  ;;  %v3403_v11 = vshll.u32 %v3235_v41, 16 }
 0x1ed   : > { %15177 = vst [vmem:[#allocation188_spill] sm:$0xff] %v11643_v23  ;;  %15178 = vst [vmem:[#allocation189_spill] sm:$0xff] %v11645_v58  ;;  %v3407_v33 = vshrl.u32 %v3235_v41, 16  ;;  %v11650_v27 = vrot.slane %v5267_v0, 4  ;;  %v3821_v24 = vshrl.u32 %v11632_v60, 16  ;;  %v3830_v47 = vshrl.u32 %v11635_v7, 16 }
 0x1ee   : > { %15179 = vst [vmem:[#allocation190_spill] sm:$0xff] %v11647_v15  ;;  %v4173_v45 = vmul.bf16 %v4140_v37, %v10859_v10  ;;  %v4592_v2 = vld [vmem:[#allocation2 + $0x40] sm:$0xf]  ;;  %v11655_v54 = vrot.slane %v2339_v48, 7  ;;  %v11657_v5 = vrot.slane %v2348_v40, 7  ;;  %v4313_v59 = vshll.u32 %v4172_v61, 16 }
 0x1ef   : > { %15180 = vst [vmem:[#allocation191_spill] sm:$0xff] %v11650_v27  ;;  %v4593_v52 = vld [vmem:[#allocation2 + $0x44] sm:$0xf]  ;;  %v11660_v35 = vrot.slane %v3393_v19, 5  ;;  %v11662_v41 = vrot.slane %v3397_v50, 4  ;;  %v4317_v51 = vshrl.u32 %v4172_v61, 16  ;;  %v11683_v37 = vmul.bf16 %v4592_v2, %v15081_v38 }
 0x1f0   : > { %15181 = vst [vmem:[#allocation192_spill] sm:$0xff] %v11655_v54  ;;  %15182 = vst [vmem:[#allocation193_spill] sm:$0xff] %v11657_v5  ;;  %v5077_v39 = vld [vmem:[#allocation2 + $0x40] sm:$0xf]  ;;  %v11665_v49 = vrot.slane %v3403_v11, 5  ;;  %v11667_v10 = vrot.slane %v3407_v33, 4  ;;  %v11686_v57 = vmul.bf16 %v4593_v52, %v15082_v26 }
 0x1f1   : > { %15183 = vst [vmem:[#allocation194_spill] sm:$0xff] %v11660_v35  ;;  %15184 = vst [vmem:[#allocation195_spill] sm:$0xff] %v11662_v41  ;;  %v5078_v40 = vld [vmem:[#allocation2 + $0x44] sm:$0xf]  ;;  %v8444_v48 = vsel %vm11606_vm14, 1.0, %v15061_v21  ;;  %v11673_v32 = vrot.slane %v3821_v24, 7 }
 0x1f2   : > { %15185 = vst [vmem:[#allocation196_spill] sm:$0xff] %v11665_v49  ;;  %15186 = vst [vmem:[#allocation197_spill] sm:$0xff] %v11667_v10  ;;  %v11675_v19 = vrot.slane %v3830_v47, 7  ;;  %v4323_v50 = vshll.u32 %v4173_v45, 16  ;;  %v11678_v0 = vpack.c.bf16 %v15074_v55, %v8444_v48  ;;  %v9759_v61 = vld [vmem:[#allocation9 + $0x168] sm:$0xff]   ;;  %v11680_v22 = vrot.slane %v4313_v59, 5 }
 0x1f3   : > { %15187 = vst [vmem:[#allocation198_spill] sm:$0xff] %v11673_v32  ;;  %v9762_v11 = vld [vmem:[#allocation9 + $0x128] sm:$0xff]   ;;  %v4327_v33 = vshrl.u32 %v4173_v45, 16  ;;  %15190 = vst [vmem:[#allocation201_spill] sm:$0xff] %v11683_v37  ;;  %v11688_v53 = vrot.slane %v4317_v51, 4  ;;  %v2013_v24 = vshrl.u32 %v11306_v12, 16  ;;  %9160 = vmatprep.subr.bf16.mxu1 %v9759_v61  ;;  %v5110_v59 = vmul.bf16 %v5077_v39, %v15084_v8 }
 0x1f4   : > { %15188 = vst [vmem:[#allocation199_spill] sm:$0xff] %v11675_v19  ;;  %15189 = vst [vmem:[#allocation200_spill] sm:$0xff] %v11680_v22  ;;  %v11692_v47 = vrot.slane %v11678_v0, %v15080_v42  ;;  %v2019_v48 = vshll.u32 %v11351_v62, 16  ;;  %v5111_v45 = vmul.bf16 %v5078_v40, %v15085_v20  ;;  %v2023_v38 = vshrl.u32 %v11351_v62, 16  ;;  %9161 = vmatpush3.bf16.msra.mxu1 %v9762_v11  ;;  %v1564_v7 = vld [vmem:[#allocation2 + $0x58] sm:$0xf] }
 0x1f5   : > { %15191 = vst [vmem:[#allocation202_spill] sm:$0xff] %v11686_v57  ;;  %15192 = vst [vmem:[#allocation203_spill] sm:$0xff] %v11688_v53  ;;  %v2029_v26 = vshll.u32 %v11364_v18, 16  ;;  %v11700_v51 = vrot.slane %v4323_v50, 5  ;;  %v15195_v52 = vshll.u32 %v11306_v12, 16  ;;  %v2015_v53 = vrot.slane %v2013_v24, 4 }
 0x1f6   : > { %15193 = vst [vmem:[#allocation204_spill] sm:$0xff] %v11692_v47  ;;  %v2033_v22 = vshrl.u32 %v11364_v18, 16  ;;  %v2021_v4 = vrot.slane %v2019_v48, 5  ;;  %v2025_v34 = vrot.slane %v2023_v38, 4  ;;  %v2039_v8 = vshll.u32 %v11692_v47, 16  ;;  %v15230_v5 = vld [vmem:[#allocation75_spill] sm:$0xff] }
 0x1f7   : > { %15194 = vst [vmem:[#allocation205_spill] sm:$0xff] %v11700_v51  ;;  %v2011_v2 = vrot.slane %v15195_v52, 5  ;;  %v2031_v61 = vrot.slane %v2029_v26, 5  ;;  %v11706_v39 = vrot.slane %v4327_v33, 4  ;;  %v2822_v62 = vrot.slane %v11335_v43, %v15080_v42  ;;  %v1565_v19 = vld [vmem:[#allocation2 + $0x5c] sm:$0xf] }
 0x1f8   : > { %v2035_v20 = vrot.slane %v2033_v22, 4  ;;  %v2829_v40 = vrot.slane %v11335_v43, %v15071_v63  ;;  %v2026_v11 = vor.u32 %v2025_v34, %v2021_v4  ;;  %v3062_v18 = vshrl.u32 %v11369_v36, 16  ;;  %v5083_v35 = vld [vmem:[#allocation2 + $0x58] sm:$0xf]  ;;  %v15231_v54 = vld [vmem:[#allocation23_spill] sm:$0xff]  ;;  %v15237_v42 = vld [vmem:[#allocation81_spill] sm:$0xff] }
 0x1f9   : > { %15196 = vst [vmem:[#allocation206_spill] sm:$0xff] %v11706_v39  ;;  %v5237_v24 = vshrl.u32 %v5110_v59, 16  ;;  %v2016_v48 = vor.u32 %v2015_v53, %v2011_v2  ;;  %v3071_v33 = vshrl.u32 %v11372_v17, 16  ;;  %v11716_v22 = vrot.slane %v2039_v8, 5  ;;  %v15306_v23 = vld [vmem:[#allocation115_spill] sm:$0xff] }
 0x1fa   : > { %v2036_v38 = vor.u32 %v2035_v20, %v2031_v61  ;;  %v2027_v26 = vrot.slane %v2026_v11, 4  ;;  %v3080_v52 = vshrl.u32 %v2822_v62, 16  ;;  %v3083_v39 = vshll.u32 %v2822_v62, 16 }
 0x1fb   : > { %15197 = vst [vmem:[#allocation207_spill] sm:$0xff] %v11716_v22  ;;  %v3073_v29 = vrot.slane %v3071_v33, 7  ;;  %v3074_v43 = vshll.u32 %v11372_v17, 16  ;;  %v3089_v12 = vshrl.u32 %v2829_v40, 16  ;;  %v5233_v10 = vshll.u32 %v5110_v59, 16 }
 0x1fc   : > { %v2037_v51 = vrot.slane %v2036_v38, 4  ;;  %v3064_v50 = vrot.slane %v3062_v18, 7  ;;  %v3065_v34 = vshll.u32 %v11369_v36, 16  ;;  %v3082_v49 = vrot.slane %v3080_v52, 7 }
 0x1fd   : > { %v5239_v41 = vrot.slane %v5237_v24, 4  ;;  %v5243_v53 = vshll.u32 %v5111_v45, 16  ;;  %v5247_v20 = vshrl.u32 %v5111_v45, 16  ;;  %v15198_v11 = vor.u32 %v11314_v28, %v10869_v25  ;;  %v2647_v28 = vld [vmem:[#allocation2 + $0x58] sm:$0xf] }
 0x1fe   : > { %v11725_v62 = vsel %vm10432_vm5, %v2027_v26, %v2031_v61  ;;  %v11730_v17 = vsel %vm10432_vm5, %v2037_v51, %v11716_v22  ;;  %v3078_v36 = vrot.slane %v3073_v29, 4  ;;  %v3085_v59 = vor.u32 %v3083_v39, %v3082_v49 }
 0x1ff   : > { %v2007_v8 = vrot.slane %v15198_v11, 4  ;;  %15199 = vst [vmem:[#allocation208_spill] sm:$0xff] %v11725_v62  ;;  %15200 = vst [vmem:[#allocation209_spill] sm:$0xff] %v11730_v17  ;;  %v2017_v18 = vrot.slane %v2016_v48, 4  ;;  %v3069_v24 = vrot.slane %v3064_v50, 4  ;;  %v3076_v45 = vor.u32 %v3074_v43, %v3073_v29 }
 0x200   : > { %v11732_v38 = vrot.slane %v3089_v12, 7  ;;  %v11734_v25 = vrot.slane %v5233_v10, 5  ;;  %v3067_v33 = vor.u32 %v3065_v34, %v3064_v50  ;;  %v3087_v52 = vrot.slane %v3082_v49, 4  ;;  %v3660_v48 = vld [vmem:[#allocation2 + $0x58] sm:$0xf] }
 0x201   : > { %v3092_v11 = vshll.u32 %v2829_v40, 16  ;;  %v4752_v61 = vshrl.u32 %v11686_v57, 16  ;;  %v11737_v26 = vrot.slane %v5243_v53, 5  ;;  %v11740_v51 = vmul.bf16 %v11725_v62, %v1564_v7  ;;  %v3661_v29 = vld [vmem:[#allocation2 + $0x5c] sm:$0xf] }
 0x202   : > { %15201 = vst [vmem:[#allocation210_spill] sm:$0xff] %v11732_v38  ;;  %15202 = vst [vmem:[#allocation211_spill] sm:$0xff] %v11734_v25  ;;  %v11743_v39 = vmul.bf16 %v11730_v17, %v1565_v19  ;;  %v5240_v12 = vor.u32 %v5239_v41, %v11734_v25  ;;  %v11746_v10 = vrot.slane %v5247_v20, 4  ;;  %v11750_v49 = vsel %vm10454_vm8, %v3078_v36, %v3085_v59  ;;  %v4145_v50 = vld [vmem:[#allocation2 + $0x58] sm:$0xf]  ;;  %v650_v17 = vpop.f32.mrf.mxu1 }
 0x203   : > { %15203 = vst [vmem:[#allocation212_spill] sm:$0xff] %v11737_v26  ;;  %15205 = vst [vmem:[#allocation20_spill] sm:$0xff] %v11750_v49  ;;  %v3094_v40 = vor.u32 %v3092_v11, %v11732_v38  ;;  %v11755_v7 = vsel %vm10432_vm5, %v2007_v8, %v2011_v2  ;;  %v11759_v19 = vsel %vm10432_vm5, %v2017_v18, %v2021_v4  ;;  %v2648_v34 = vld [vmem:[#allocation2 + $0x5c] sm:$0xf]  ;;  %v15209_v36 = vrot.slane %v10837_v13, 4  ;;  %v15236_v38 = vld [vmem:[#allocation21_spill] sm:$0xff] }
 0x204   : > { %15206 = vst [vmem:[#allocation213_spill] sm:$0xff] %v11755_v7  ;;  %15207 = vst [vmem:[#allocation214_spill] sm:$0xff] %v11759_v19  ;;  %v11763_v41 = vsel %vm10454_vm8, %v3069_v24, %v3076_v45  ;;  %v3240_v53 = vmul.bf16 %v11750_v49, %v2647_v28  ;;  %v4146_v20 = vld [vmem:[#allocation2 + $0x5c] sm:$0xf]  ;;  %v11777_v4 = vmul.bf16 %v3660_v48, %v11755_v7  ;;  %v2393_v24 = vshrl.u32 %v11740_v51, 16 }
 0x205   : > { %15208 = vst [vmem:[#allocation215_spill] sm:$0xff] %v11763_v41  ;;  %v11770_v59 = vsel %vm10454_vm8, %v15209_v36, %v3067_v33  ;;  %v11774_v2 = vsel %vm10454_vm8, %v3087_v52, %v3094_v40  ;;  %v11780_v8 = vmul.bf16 %v3661_v29, %v11759_v19  ;;  %v2402_v13 = vshrl.u32 %v11743_v39, 16  ;;  %v4598_v57 = vld [vmem:[#allocation2 + $0x58] sm:$0xf] }
 0x206   : > { %15210 = vst [vmem:[#allocation216_spill] sm:$0xff] %v11770_v59  ;;  %15211 = vst [vmem:[#allocation217_spill] sm:$0xff] %v11774_v2  ;;  %v4178_v45 = vmul.bf16 %v4145_v50, %v11770_v59  ;;  %v15212_v28 = vshrl.u32 %v11683_v37, 16  ;;  %v11790_v52 = vrot.slane %v4752_v61, 7  ;;  %v3241_v11 = vmul.bf16 %v11774_v2, %v2648_v34  ;;  %v3641_v2 = vld [vmem:[#allocation2 + $0xc] sm:$0x8] }
 0x207   : > { %v4179_v48 = vmul.bf16 %v4146_v20, %v11763_v41  ;;  %v11794_v29 = vrot.slane %v5240_v12, 4  ;;  %v3453_v36 = vshll.u32 %v3240_v53, 16  ;;  %v3457_v18 = vshrl.u32 %v3240_v53, 16 }
 0x208   : > { %v11788_v33 = vrot.slane %v15212_v28, 7  ;;  %15214 = vst [vmem:[#allocation219_spill] sm:$0xff] %v11790_v52  ;;  %v3875_v28 = vshrl.u32 %v11777_v4, 16  ;;  %v3884_v61 = vshrl.u32 %v11780_v8, 16  ;;  %v11802_v52 = vrot.slane %v2393_v24, 7 }
 0x209   : > { %15215 = vst [vmem:[#allocation220_spill] sm:$0xff] %v11794_v29  ;;  %v11804_v34 = vrot.slane %v2402_v13, 7  ;;  %v4373_v12 = vshll.u32 %v4178_v45, 16  ;;  %v4377_v20 = vshrl.u32 %v4178_v45, 16  ;;  %v4599_v29 = vld [vmem:[#allocation2 + $0x5c] sm:$0xf]  ;;  %v11812_v32 = vmul.bf16 %v4598_v57, %v15130_v46 }
 0x20a   : > { %15213 = vst [vmem:[#allocation218_spill] sm:$0xff] %v11788_v33  ;;  %15216 = vst [vmem:[#allocation221_spill] sm:$0xff] %v11802_v52  ;;  %v3463_v37 = vshll.u32 %v3241_v11, 16  ;;  %v3467_v40 = vshrl.u32 %v3241_v11, 16  ;;  %v4383_v33 = vshll.u32 %v4179_v48, 16  ;;  %v4387_v53 = vshrl.u32 %v4179_v48, 16 }
 0x20b   : > { %15217 = vst [vmem:[#allocation222_spill] sm:$0xff] %v11804_v34  ;;  %v11806_v25 = vrot.slane %v3453_v36, 5  ;;  %v11808_v50 = vrot.slane %v3457_v18, 4  ;;  %v11814_v24 = vrot.slane %v3875_v28, 7  ;;  %v11816_v13 = vrot.slane %v3884_v61, 7  ;;  %v15224_v57 = vld [vmem:[#allocation24_spill] sm:$0xff] }
 0x20c   : > { %v11820_v11 = vmul.bf16 %v4599_v29, %v15131_v9  ;;  %v11822_v48 = vrot.slane %v4373_v12, 5  ;;  %v11824_v36 = vrot.slane %v4377_v20, 4  ;;  %v5084_v18 = vld [vmem:[#allocation2 + $0x5c] sm:$0xf]  ;;  %v11827_v3 = vmul.bf16 %v5083_v35, %v15134_v30 }
 0x20d   : > { %15218 = vst [vmem:[#allocation223_spill] sm:$0xff] %v11806_v25  ;;  %15219 = vst [vmem:[#allocation224_spill] sm:$0xff] %v11808_v50  ;;  %v15225_v60 = vrot.slane %v15224_v57, 4  ;;  %v11834_v61 = vrot.slane %v3463_v37, 5  ;;  %v11836_v45 = vrot.slane %v3467_v40, 4  ;;  %v11838_v29 = vrot.slane %v4383_v33, 5 }
 0x20e   : > { %15220 = vst [vmem:[#allocation225_spill] sm:$0xff] %v11814_v24  ;;  %15221 = vst [vmem:[#allocation226_spill] sm:$0xff] %v11816_v13  ;;  %v11840_v12 = vrot.slane %v4387_v53, 4  ;;  %v2238_v31 = vrot.slane %v15230_v5, 4  ;;  %v3254_v57 = vshrl.u32 %v15231_v54, 16  ;;  %v15232_v37 = vld [vmem:[#allocation47_spill] sm:$0xff]  ;;  %v3674_v22 = vmul.bf16 %v3641_v2, %v15236_v38 }
 0x20f   : > { %15222 = vst [vmem:[#allocation227_spill] sm:$0xff] %v11822_v48  ;;  %15223 = vst [vmem:[#allocation228_spill] sm:$0xff] %v11824_v36  ;;  %v2237_v28 = vsel %vm10454_vm8, %v15225_v60, %v11342_v16  ;;  %v11849_v40 = vmul.bf16 %v5084_v18, %v15232_v37  ;;  %v3257_v33 = vshll.u32 %v15231_v54, 16  ;;  %v15234_v5 = vld [vmem:[#allocation22_spill] sm:$0xff]  ;;  %v15238_v53 = vld [vmem:[#allocation71_spill] sm:$0xff]  ;;  %v12049_v27 = vrot.slane %v11678_v0, %v15071_v63 }
 0x210   : > { %15226 = vst [vmem:[#allocation24_spill] sm:$0xff] %v11834_v61  ;;  %15227 = vst [vmem:[#allocation229_spill] sm:$0xff] %v11836_v45  ;;  %v3256_v20 = vrot.slane %v3254_v57, 4  ;;  %v3263_v49 = vshll.u32 %v15234_v5, 16  ;;  %v15235_v60 = vshrl.u32 %v15234_v5, 16  ;;  %v15239_v47 = vshll.u32 %v15238_v53, 16 }
 0x211   : > { %15228 = vst [vmem:[#allocation230_spill] sm:$0xff] %v11838_v29  ;;  %15229 = vst [vmem:[#allocation231_spill] sm:$0xff] %v11840_v12  ;;  %v3259_v16 = vrot.slane %v3257_v33, 5  ;;  %v15240_v57 = vld [vmem:[#allocation82_spill] sm:$0xff]  ;;  %v3708_v62 = vshrl.u32 %v3674_v22, 16  ;;  %v15245_v53 = vld [vmem:[#allocation77_spill] sm:$0xff] }
 0x212   : > { %2533 = vst [vmem:[#allocation3 + $0x48] sm:$0xf] %v2237_v28  ;;  %v15233_v28 = vld [vmem:[#allocation65_spill] sm:$0xff]  ;;  %v3269_v18 = vrot.slane %v15235_v60, 4  ;;  %v3265_v54 = vrot.slane %v3263_v49, 5  ;;  %v3718_v55 = vor.u32 %v15239_v47, %v15237_v42  ;;  %v15243_v49 = vld [vmem:[#allocation76_spill] sm:$0xff] }
 0x213   : > { %v2246_v35 = vsel %vm10454_vm8, %v2238_v31, %v15233_v28  ;;  %v3720_v31 = vrot.slane %v15237_v42, 4  ;;  %v15241_v28 = vld [vmem:[#allocation73_spill] sm:$0xff]  ;;  %v3260_v14 = vor.u32 %v3259_v16, %v3256_v20  ;;  %v2247_v2 = vrot.slane %v15243_v49, 4  ;;  %v15244_v42 = vld [vmem:[#allocation48_spill] sm:$0xff]  ;;  %v15246_v5 = vld [vmem:[#allocation78_spill] sm:$0xff] }
 0x214   : > { %2534 = vst [vmem:[#allocation3 + $0x6c] sm:$0xf] %v2246_v35  ;;  %v15242_v21 = vshll.u32 %v15241_v28, 16  ;;  %v11871_v35 = vld [vmem:[%s14496_s4] ss:$0 sm:$0xff]  ;;  %v3270_v60 = vor.u32 %v3269_v18, %v3265_v54  ;;  %v2256_v33 = vrot.slane %v15244_v42, 4 }
 0x215   : > { %v651_v38 = vadd.f32 %v11871_v35, %v650_v17  ;;  %v3261_v20 = vrot.slane %v3260_v14, 4  ;;  %v8466_v22 = vrot.slane %v3708_v62, 11  ;;  %v15247_v28 = vld [vmem:[#allocation54_spill] sm:$0xff]  ;;  %v9466_v17 = vpop.f32.mrf.mxu1  ;;  %v15248_v49 = vld [vmem:[#allocation55_spill] sm:$0xff]  ;;  %v15250_v42 = vld [vmem:[#allocation80_spill] sm:$0xff] }
 0x216   : > { %v3727_v44 = vor.u32 %v15242_v21, %v15240_v57  ;;  %v3280_v21 = vor.u32 %v15246_v5, %v15245_v53  ;;  %v2255_v6 = vsel %vm10454_vm8, %v2247_v2, %v15247_v28  ;;  %v3271_v56 = vrot.slane %v3270_v60, 4  ;;  %v9735_v5 = vld [vmem:[#allocation3 + $0x4c] ss:$36 sps:$4 sm:$0xff]   ;;  %v15310_v12 = vld [vmem:[#allocation136_spill] sm:$0xff] }
 0x217   : > { %v727_v16 = vmax.f32 %v651_v38, 0.0  ;;  %v2264_v18 = vsel %vm10454_vm8, %v2256_v33, %v15248_v49  ;;  %2535 = vst [vmem:[#allocation3 + $0x90] sm:$0xf] %v2255_v6  ;;  %v3266_v14 = vsel %vm10432_vm5, %v3261_v20, %v3265_v54  ;;  %v3719_v62 = vsel %vm10454_vm8, %v8466_v22, %v3718_v55  ;;  %v15251_v38 = vld [vmem:[#allocation41_spill] sm:$0xff]  ;;  %v15253_v55 = vld [vmem:[#allocation112_spill] sm:$0xff]  ;;  %v15254_v20 = vld [vmem:[#allocation98_spill] sm:$0xff]  ;;  %7040 = vmatprep.mubr.bf16.mxu1 %v9735_v5 }
 0x218   : > { %v3728_v47 = vsel %vm10454_vm8, %v3720_v31, %v3727_v44  ;;  %v3281_v44 = vrot.slane %v3280_v21, 4  ;;  %v15249_v31 = vld [vmem:[#allocation79_spill] sm:$0xff]  ;;  %2536 = vst [vmem:[#allocation3 + $0xb4] sm:$0xf] %v2264_v18  ;;  %v3729_v60 = vrot.slane %v15240_v57, 4  ;;  %v3276_v6 = vsel %vm10432_vm5, %v3271_v56, %v15245_v53  ;;  %v15257_v56 = vld [vmem:[#allocation56_spill] sm:$0xff] }
 0x219   : > { %4032 = vst [vmem:[#allocation3 + $0x30] sm:$0xf] %v3728_v47  ;;  %v3290_v37 = vor.u32 %v15250_v42, %v15249_v31  ;;  %v15252_v47 = vmax.f32 %v15251_v38, 0.0  ;;  %3609 = vst [vmem:[#allocation3 + $0x8] sm:$0xf] %v3266_v14  ;;  %v15255_v22 = vshll.u32 %v15254_v20, 16  ;;  %v663_v14 = vpop.f32.mrf.mxu1 }
 0x21a   : > { %4031 = vst [vmem:[#allocation3 + $0xc] sm:$0xf] %v3719_v62  ;;  %v3286_v54 = vsel %vm10432_vm5, %v3281_v44, %v15249_v31  ;;  %3610 = vst [vmem:[#allocation3 + $0x2c] sm:$0xf] %v3276_v6  ;;  %v15256_v57 = vld [vmem:[#allocation63_spill] sm:$0xff]  ;;  %v3738_v53 = vrot.slane %v15257_v56, 4 }
 0x21b   : > { %v8776_v2 = vpack.c.bf16 %v727_v16, %v15252_v47  ;;  %v9740_v33 = vld [vmem:[#allocation3 + $0x48] ss:$36 sps:$4 sm:$0xff]   ;;  %v3291_v21 = vrot.slane %v3290_v37, 4  ;;  %v2272_v16 = vor.u32 %v15255_v22, %v15253_v55  ;;  %3611 = vst [vmem:[#allocation3 + $0x50] sm:$0xf] %v3286_v54  ;;  %v3737_v28 = vsel %vm10454_vm8, %v3729_v60, %v15256_v57  ;;  %v15258_v49 = vld [vmem:[#allocation49_spill] sm:$0xff] }
 0x21c   : > { %v2265_v18 = vrot.slane %v15258_v49, 4  ;;  %v2274_v42 = vrot.slane %v15253_v55, 4  ;;  %v15259_v37 = vld [vmem:[#allocation50_spill] sm:$0xff]  ;;  %4033 = vst [vmem:[#allocation3 + $0x54] sm:$0xf] %v3737_v28  ;;  %v15260_v31 = vld [vmem:[#allocation113_spill] sm:$0xff]  ;;  %7041 = vmatmul.mubr.bf16.gmra.mxu1 %v9740_v33 }
 0x21d   : > { %8885 = vst [vmem:[#allocation2 + $0x50] sm:$0xff] %v8776_v2   ;;  %v3296_v44 = vsel %vm10432_vm5, %v3291_v21, %v15259_v37  ;;  %v15261_v62 = vld [vmem:[#allocation99_spill] sm:$0xff]  ;;  %v15265_v54 = vld [vmem:[#allocation53_spill] sm:$0xff]  ;;  %v15266_v20 = vld [vmem:[#allocation52_spill] sm:$0xff]  ;;  %v15311_v36 = vshll.u32 %v15310_v12, 16 }
 0x21e   : > { %v15262_v38 = vshll.u32 %v15261_v62, 16  ;;  %v15263_v2 = vld [vmem:[#allocation51_spill] sm:$0xff]  ;;  %v15267_v22 = vor.u32 %v15265_v54, %v15266_v20  ;;  %3612 = vst [vmem:[#allocation3 + $0x74] sm:$0xf] %v3296_v44  ;;  %v15268_v5 = vld [vmem:[#allocation66_spill] sm:$0xff]  ;;  %v2273_v21 = vsel %vm10454_vm8, %v2265_v18, %v2272_v16  ;;  %v15269_v28 = vld [vmem:[#allocation57_spill] sm:$0xff] }
 0x21f   : > { %v15264_v60 = vor.u32 %v15263_v2, %v15259_v37  ;;  %v3746_v55 = vsel %vm10454_vm8, %v3738_v53, %v15268_v5  ;;  %v3747_v56 = vrot.slane %v15269_v28, 4  ;;  %v15270_v49 = vld [vmem:[#allocation121_spill] sm:$0xff]  ;;  %v15271_v62 = vld [vmem:[#allocation107_spill] sm:$0xff]  ;;  %2537 = vst [vmem:[#allocation3 + $0xd8] sm:$0xf] %v2273_v21  ;;  %v15273_v44 = vld [vmem:[#allocation114_spill] sm:$0xff]  ;;  %v9467_v5 = vpop.f32.mrf.mxu1 }
 0x220   : > { %v2281_v47 = vor.u32 %v15262_v38, %v15260_v31  ;;  %v3311_v57 = vrot.slane %v15267_v22, 4  ;;  %v15272_v38 = vshll.u32 %v15271_v62, 16  ;;  %4034 = vst [vmem:[#allocation3 + $0x78] sm:$0xf] %v3746_v55  ;;  %v3756_v16 = vrot.slane %v15270_v49, 4  ;;  %v15277_v54 = vld [vmem:[#allocation109_spill] sm:$0xff] }
 0x221   : > { %v3301_v6 = vrot.slane %v15264_v60, 4  ;;  %v15274_v18 = vshrl.u32 %v11812_v32, 16  ;;  %v15278_v22 = vshll.u32 %v15277_v54, 16  ;;  %v15281_v21 = vshll.u32 %v11827_v3, 16  ;;  %v9741_v62 = vld [vmem:[#allocation3 + $0x94] ss:$36 sps:$4 sm:$0xff]  }
 0x222   : > { %v3754_v37 = vor.u32 %v15272_v38, %v15270_v49  ;;  %v2282_v2 = vsel %vm10454_vm8, %v2274_v42, %v2281_v47  ;;  %v3316_v53 = vsel %vm10432_vm5, %v3311_v57, %v15273_v44  ;;  %v15276_v47 = vld [vmem:[#allocation122_spill] sm:$0xff]  ;;  %v15279_v57 = vshrl.u32 %v11820_v11, 16  ;;  %7048 = vmatprep.mubr.bf16.mxu1 %v9741_v62 }
 0x223   : > { %v3306_v33 = vsel %vm10432_vm5, %v3301_v6, %v15266_v20  ;;  %v11942_v60 = vrot.slane %v15274_v18, 7  ;;  %2538 = vst [vmem:[#allocation3 + $0xfc] sm:$0xf] %v2282_v2  ;;  %3614 = vst [vmem:[#allocation3 + $0xbc] sm:$0xf] %v3316_v53  ;;  %v3763_v6 = vor.u32 %v15278_v22, %v15276_v47  ;;  %v672_v20 = vadd.f32 %v11871_v35, %v9466_v17  ;;  %v15309_v29 = vld [vmem:[#allocation150_spill] sm:$0xff] }
 0x224   : > { %3613 = vst [vmem:[#allocation3 + $0x98] sm:$0xf] %v3306_v33  ;;  %v3755_v42 = vsel %vm10454_vm8, %v3747_v56, %v3754_v37  ;;  %v11952_v55 = vrot.slane %v15279_v57, 7  ;;  %v11956_v28 = vrot.slane %v15281_v21, 5  ;;  %v5303_v49 = vshll.u32 %v11849_v40, 16  ;;  %v15336_v25 = vld [vmem:[#allocation18_spill] sm:$0xff] }
 0x225   : > { %15275 = vst [vmem:[#allocation75_spill] sm:$0xff] %v11942_v60  ;;  %4035 = vst [vmem:[#allocation3 + $0x9c] sm:$0xf] %v3755_v42  ;;  %v675_v56 = vadd.f32 %v11871_v35, %v9467_v5  ;;  %v15283_v38 = vshrl.u32 %v11827_v3, 16  ;;  %v5307_v17 = vshrl.u32 %v11849_v40, 16  ;;  %v3764_v33 = vsel %vm10454_vm8, %v3756_v16, %v3763_v6 }
 0x226   : > { %15280 = vst [vmem:[#allocation23_spill] sm:$0xff] %v11952_v55  ;;  %15282 = vst [vmem:[#allocation65_spill] sm:$0xff] %v11956_v28  ;;  %v9746_v2 = vld [vmem:[#allocation3 + $0x90] ss:$36 sps:$4 sm:$0xff]   ;;  %v732_v53 = vmax.f32 %v672_v20, 0.0  ;;  %v15285_v42 = vshll.u32 %v11740_v51, 16  ;;  %v12065_v48 = vor.u32 %v15311_v36, %v15309_v29 }
 0x227   : > { %v11962_v37 = vrot.slane %v15283_v38, 4  ;;  %v9737_v3 = vld [vmem:[#allocation3 + $0x8] ss:$36 sps:$4 sm:$0xff]   ;;  %4036 = vst [vmem:[#allocation3 + $0xc0] sm:$0xf] %v3764_v33  ;;  %v733_v40 = vmax.f32 %v675_v56, 0.0  ;;  %7049 = vmatmul.mubr.bf16.gmra.mxu1 %v9746_v2 }
 0x228   : > { %v11974_v22 = vor.u32 %v15285_v42, %v11802_v52  ;;  %v9739_v5 = vld [vmem:[#allocation3 + $0xc] ss:$36 sps:$4 sm:$0xff]   ;;  %v15287_v16 = vshll.u32 %v11743_v39, 16  ;;  %v15289_v57 = vshll.u32 %v11777_v4, 16  ;;  %v15291_v51 = vshll.u32 %v11780_v8, 16 }
 0x229   : > { %15284 = vst [vmem:[#allocation22_spill] sm:$0xff] %v11962_v37  ;;  %v1562_v62 = vld [vmem:[#allocation2 + $0x50] sm:$0xf]  ;;  %v1563_v56 = vld [vmem:[#allocation2 + $0x54] sm:$0xf]  ;;  %7193 = vmatprep.mubr.bf16.mxu0 %v9739_v5  ;;  %v11998_v4 = vadd.f32 %v11871_v35, %v663_v14  ;;  %v15293_v8 = vor.u32 %v11746_v10, %v11737_v26  ;;  %v12027_v2 = vrot.slane %v5303_v49, 5 }
 0x22a   : > { %15286 = vst [vmem:[#allocation21_spill] sm:$0xff] %v11974_v22  ;;  %v11979_v6 = vor.u32 %v15287_v16, %v11804_v34  ;;  %v11986_v21 = vor.u32 %v15289_v57, %v11814_v24  ;;  %v11991_v38 = vor.u32 %v15291_v51, %v11816_v13  ;;  %v2645_v33 = vld [vmem:[#allocation2 + $0x50] sm:$0xf]  ;;  %v2646_v16 = vld [vmem:[#allocation2 + $0x54] sm:$0xf]  ;;  %v8791_v57 = vpack.c.bf16 %v733_v40, %v732_v53 }
 0x22b   : > { %v3658_v54 = vld [vmem:[#allocation2 + $0x50] sm:$0xf]  ;;  %v12003_v51 = vrot.slane %v15293_v8, 4  ;;  %v12006_v18 = vmul.bf16 %v11755_v7, %v1562_v62  ;;  %v12009_v39 = vmul.bf16 %v11759_v19, %v1563_v56  ;;  %v3238_v42 = vmul.bf16 %v11770_v59, %v2645_v33  ;;  %v3659_v5 = vld [vmem:[#allocation2 + $0x54] sm:$0xf]  ;;  %7194 = vmatmul.mubr.bf16.vlgmr.msra.gmra.mxu0 %v9737_v3  ;;  %15301 = vst [vmem:[#allocation54_spill] sm:$0xff] %v12027_v2 }
 0x22c   : > { %15288 = vst [vmem:[#allocation81_spill] sm:$0xff] %v11979_v6  ;;  %15290 = vst [vmem:[#allocation71_spill] sm:$0xff] %v11986_v21  ;;  %v15297_v53 = vshll.u32 %v11812_v32, 16  ;;  %v15299_v40 = vshll.u32 %v11820_v11, 16  ;;  %v3239_v56 = vmul.bf16 %v11763_v41, %v2646_v16  ;;  %v12029_v33 = vrot.slane %v5307_v17, 4  ;;  %v15318_v36 = vld [vmem:[#allocation39_spill] sm:$0xff] }
 0x22d   : > { %15292 = vst [vmem:[#allocation82_spill] sm:$0xff] %v11991_v38  ;;  %15294 = vst [vmem:[#allocation73_spill] sm:$0xff] %v12003_v51  ;;  %v12032_v8 = vmul.bf16 %v3658_v54, %v15130_v46  ;;  %v12035_v32 = vmul.bf16 %v3659_v5, %v15131_v9  ;;  %v2375_v49 = vshrl.u32 %v12006_v18, 16  ;;  %v2384_v46 = vshrl.u32 %v12009_v39, 16  ;;  %v4144_v3 = vld [vmem:[#allocation2 + $0x54] sm:$0xf] }
 0x22e   : > { %15295 = vst [vmem:[#allocation76_spill] sm:$0xff] %v12006_v18  ;;  %15296 = vst [vmem:[#allocation48_spill] sm:$0xff] %v12009_v39  ;;  %v12017_v10 = vor.u32 %v15297_v53, %v11942_v60  ;;  %v12022_v62 = vor.u32 %v15299_v40, %v11952_v55  ;;  %v4143_v53 = vld [vmem:[#allocation2 + $0x50] sm:$0xf]  ;;  %v15305_v40 = vld [vmem:[#allocation17_spill] sm:$0xff]  ;;  %v3433_v54 = vshll.u32 %v3238_v42, 16 }
 0x22f   : > { %8888 = vst [vmem:[#allocation2 + $0x68] sm:$0xff] %v8791_v57   ;;  %15302 = vst [vmem:[#allocation55_spill] sm:$0xff] %v12029_v33  ;;  %v12039_v14 = vadd.s32 184, %v15305_v40  ;;  %v12042_v16 = vadd.s32 192, %v15305_v40  ;;  %v666_v57 = vpop.f32.mrf.mxu1  ;;  %v4596_v9 = vld [vmem:[#allocation2 + $0x50] sm:$0xf]  ;;  %v4176_v0 = vmul.bf16 %v4143_v53, %v15134_v30 }
 0x230   : > { %15298 = vst [vmem:[#allocation77_spill] sm:$0xff] %v12017_v10  ;;  %15300 = vst [vmem:[#allocation78_spill] sm:$0xff] %v12022_v62  ;;  %v3437_v5 = vshrl.u32 %v3238_v42, 16  ;;  %v3443_v20 = vshll.u32 %v3239_v56, 16  ;;  %v3447_v37 = vshrl.u32 %v3239_v56, 16  ;;  %v3857_v58 = vshrl.u32 %v12032_v8, 16 }
 0x231   : > { %15303 = vst [vmem:[#allocation79_spill] sm:$0xff] %v12032_v8  ;;  %15304 = vst [vmem:[#allocation80_spill] sm:$0xff] %v12035_v32  ;;  %v4597_v11 = vld [vmem:[#allocation2 + $0x54] sm:$0xf]  ;;  %v9749_v51 = vld [vmem:[#allocation3 + $0xdc] ss:$36 sps:$4 sm:$0xff]   ;;  %v12053_v17 = vadd.f32 %v11871_v35, %v666_v57  ;;  %v12082_v12 = vmul.bf16 %v4596_v9, %v15318_v36 }
 0x232   : > { %v9743_v15 = vld [vmem:[#allocation3 + $0x54] ss:$36 sps:$4 sm:$0xff]   ;;  %v15307_v55 = vld [vmem:[#allocation118_spill] sm:$0xff]  ;;  %v3866_v10 = vshrl.u32 %v12035_v32, 16  ;;  %v5081_v60 = vld [vmem:[#allocation2 + $0x50] sm:$0xf]  ;;  %7056 = vmatprep.mubr.bf16.mxu1 %v9749_v51 }
 0x233   : > { %v9747_v28 = vld [vmem:[#allocation3 + $0x50] ss:$36 sps:$4 sm:$0xff]   ;;  %v15308_v42 = vld [vmem:[#allocation120_spill] sm:$0xff]  ;;  %7201 = vmatprep.mubr.bf16.mxu0 %v9743_v15  ;;  %v12067_v57 = vrot.slane %v2375_v49, 7  ;;  %v12069_v13 = vrot.slane %v2384_v46, 7  ;;  %v12071_v26 = vrot.slane %v3433_v54, 5 }
 0x234   : > { %7202 = vmatmul.mubr.bf16.gmra.mxu0 %v9747_v28  ;;  %v9751_v56 = vld [vmem:[#allocation3 + $0x9c] ss:$36 sps:$4 sm:$0xff]   ;;  %v12074_v61 = vrot.slane %v3437_v5, 4  ;;  %v12076_v30 = vrot.slane %v3443_v20, 5  ;;  %v15317_v15 = vld [vmem:[#allocation47_spill] sm:$0xff]  ;;  %15319 = vst [vmem:[#allocation49_spill] sm:$0xff] %v12082_v12 }
 0x235   : > { %15312 = vst [vmem:[#allocation41_spill] sm:$0xff] %v12067_v57  ;;  %15313 = vst [vmem:[#allocation112_spill] sm:$0xff] %v12069_v13  ;;  %v12079_v53 = vmul.bf16 %v4144_v3, %v15317_v15  ;;  %v5082_v49 = vld [vmem:[#allocation2 + $0x54] sm:$0xf]  ;;  %v12084_v46 = vrot.slane %v3447_v37, 4  ;;  %v12086_v54 = vrot.slane %v3857_v58, 7  ;;  %7209 = vmatprep.mubr.bf16.mxu0 %v9751_v56 }
 0x236   : > { %15314 = vst [vmem:[#allocation98_spill] sm:$0xff] %v12071_v26  ;;  %15315 = vst [vmem:[#allocation63_spill] sm:$0xff] %v12074_v61  ;;  %v15322_v28 = vld [vmem:[#allocation40_spill] sm:$0xff]  ;;  %v12092_v5 = vrot.slane %v3866_v10, 7  ;;  %v4353_v20 = vshll.u32 %v4176_v0, 16  ;;  %v4357_v45 = vshrl.u32 %v4176_v0, 16 }
 0x237   : > { %15316 = vst [vmem:[#allocation56_spill] sm:$0xff] %v12076_v30  ;;  %15320 = vst [vmem:[#allocation50_spill] sm:$0xff] %v12084_v46  ;;  %v12090_v51 = vmul.bf16 %v4597_v11, %v15322_v28  ;;  %v15325_v3 = vld [vmem:[#allocation44_spill] sm:$0xff]  ;;  %v2587_v9 = vld [vmem:[#allocation2 + $0x68] sm:$0xf]  ;;  %v928_v58 = vadd.s32 200, %v15305_v40 }
 0x238   : > { %15321 = vst [vmem:[#allocation113_spill] sm:$0xff] %v12086_v54  ;;  %15324 = vst [vmem:[#allocation51_spill] sm:$0xff] %v12092_v5  ;;  %v12095_v15 = vmul.bf16 %v5081_v60, %v15325_v3  ;;  %v15326_v36 = vld [vmem:[#allocation45_spill] sm:$0xff]  ;;  %v929_v37 = vadd.s32 208, %v15305_v40  ;;  %v1100_v62 = vand.u32 15, %v12039_v14  ;;  %v1107_v60 = vand.u32 15, %v12042_v16 }
 0x239   : > { %15323 = vst [vmem:[#allocation99_spill] sm:$0xff] %v12090_v51  ;;  %v12098_v50 = vmul.bf16 %v5082_v49, %v15326_v36  ;;  %v2588_v11 = vld [vmem:[#allocation2 + $0x6c] sm:$0xf]  ;;  %2619 = vst [vmem:[#allocation3 + $0x364] sm:$0xf] %v2587_v9  ;;  %v1114_v28 = vand.u32 15, %v928_v58 }
 0x23a   : > { %2620 = vst [vmem:[#allocation3 + $0x388] sm:$0xf] %v2588_v11  ;;  %v1121_v3 = vand.u32 15, %v929_v37  ;;  %vm1454_vm15 = vcmp.lt.s32.totalorder %v1100_v62, 15  ;;  %v12108_v36 = vrot.slane %v4353_v20, 5  ;;  %v12110_v38 = vrot.slane %v4357_v45, 4 }
 0x23b   : > { %vm1343_vm0 = vcmp.ge.s32.totalorder %v1107_v60, 1  ;;  %v15329_v14 = vmov 0.0   ;;  %vm1456_vm2 = vcmp.lt.s32.totalorder %v1114_v28, 15  ;;  %v4085_v0 = vld [vmem:[#allocation2 + $0x68] sm:$0xf]  ;;  %v15331_v16 = vld [vmem:[#allocation139_spill] sm:$0xff] }
 0x23c   : > { %15327 = vst [vmem:[#allocation53_spill] sm:$0xff] %v12108_v36  ;;  %15328 = vst [vmem:[#allocation52_spill] sm:$0xff] %v12110_v38  ;;  %v8460_v9 = vsel %vm1454_vm15, 1.0, %v15329_v14  ;;  %vm1345_vm1 = vcmp.ge.s32.totalorder %v1121_v3, 1  ;;  %v8445_v56 = vsel %vm1343_vm0, 1.0, %v15329_v14  ;;  %v15330_v10 = vld [vmem:[#allocation30_spill] sm:$0xff] }
 0x23d   : > { %v15332_v11 = vshll.u32 %v15331_v16, 16  ;;  %v9773_v58 = vld [vmem:[#allocation9 + $0x160] sm:$0xff]   ;;  %v5273_v20 = vshll.u32 %v12095_v15, 16  ;;  %v8446_v45 = vsel %vm1345_vm1, 1.0, %v15329_v14  ;;  %v15333_v37 = vmov 1.0  }
 0x23e   : > { %v1427_v60 = vpack.c.bf16 %v15333_v37, %v8445_v56  ;;  %v4086_v49 = vld [vmem:[#allocation2 + $0x6c] sm:$0xf]  ;;  %4117 = vst [vmem:[#allocation3 + $0x328] sm:$0xf] %v4085_v0  ;;  %v9776_v3 = vld [vmem:[#allocation9 + $0x120] sm:$0xff]   ;;  %v12124_v28 = vpack.c.bf16 %v15333_v37, %v8446_v45  ;;  %v8461_v38 = vsel %vm1456_vm2, 1.0, %v15329_v14  ;;  %v1538_v16 = vpack.c.bf16 %v8460_v9, %v15333_v37  ;;  %9162 = vmatprep.subr.bf16.mxu1 %v9773_v58 }
 0x23f   : > { %v12117_v21 = vor.u32 %v15332_v11, %v15330_v10  ;;  %v15335_v11 = vld [vmem:[#allocation204_spill] sm:$0xff]  ;;  %4118 = vst [vmem:[#allocation3 + $0x34c] sm:$0xf] %v4086_v49  ;;  %v5277_v62 = vshrl.u32 %v12095_v15, 16  ;;  %v5283_v34 = vshll.u32 %v12098_v50, 16  ;;  %9163 = vmatpush3.bf16.msra.mxu1 %v9776_v3  ;;  %v5287_v45 = vshrl.u32 %v12098_v50, 16 }
 0x240   : > { %15334 = vst [vmem:[#allocation66_spill] sm:$0xff] %v12124_v28  ;;  %v2043_v36 = vshrl.u32 %v15335_v11, 16  ;;  %v1766_v56 = vrot.slane %v1427_v60, %v15336_v25  ;;  %v1773_v0 = vrot.slane %v1427_v60, %v15071_v63  ;;  %v1539_v24 = vpack.c.bf16 %v8461_v38, %v15333_v37  ;;  %v5023_v58 = vld [vmem:[#allocation2 + $0x68] sm:$0xf]  ;;  %v5024_v52 = vld [vmem:[#allocation2 + $0x6c] sm:$0xf] }
 0x241   : > { %v12137_v9 = vrot.slane %v12124_v28, %v15336_v25  ;;  %v2049_v49 = vshll.u32 %v12049_v27, 16  ;;  %v2053_v15 = vshrl.u32 %v12049_v27, 16  ;;  %5055 = vst [vmem:[#allocation3 + $0x2ec] sm:$0xf] %v5023_v58  ;;  %v2836_v50 = vrot.slane %v1538_v16, %v15336_v25  ;;  %5056 = vst [vmem:[#allocation3 + $0x310] sm:$0xf] %v5024_v52 }
 0x242   : > { %v2059_v11 = vshll.u32 %v1766_v56, 16  ;;  %v2063_v6 = vshrl.u32 %v1766_v56, 16  ;;  %v2069_v22 = vshll.u32 %v1773_v0, 16  ;;  %v2045_v60 = vrot.slane %v2043_v36, 4  ;;  %v9753_v5 = vld [vmem:[#allocation3 + $0xd8] ss:$36 sps:$4 sm:$0xff]  }
 0x243   : > { %15337 = vst [vmem:[#allocation57_spill] sm:$0xff] %v12137_v9  ;;  %v2073_v3 = vshrl.u32 %v1773_v0, 16  ;;  %v2843_v38 = vrot.slane %v1538_v16, %v15071_v63  ;;  %v2079_v26 = vshll.u32 %v12137_v9, 16  ;;  %v12146_v32 = vrot.slane %v5273_v20, 5  ;;  %v9754_v58 = vld [vmem:[#allocation3 + $0x98] ss:$36 sps:$4 sm:$0xff]   ;;  %7057 = vmatmul.mubr.bf16.gmra.mxu1 %v9753_v5 }
 0x244   : > { %v12143_v46 = vrot.slane %v2059_v11, 5  ;;  %v2065_v30 = vrot.slane %v2063_v6, 4  ;;  %v2071_v61 = vrot.slane %v2069_v22, 5  ;;  %v2850_v56 = vrot.slane %v1539_v24, %v15336_v25  ;;  %v15339_v36 = vld [vmem:[#allocation154_spill] sm:$0xff]  ;;  %v15340_v0 = vld [vmem:[#allocation145_spill] sm:$0xff]  ;;  %v15342_v22 = vld [vmem:[#allocation155_spill] sm:$0xff]  ;;  %7210 = vmatmul.mubr.bf16.gmra.mxu0 %v9754_v58 }
 0x245   : > { %15338 = vst [vmem:[#allocation121_spill] sm:$0xff] %v12146_v32  ;;  %v2075_v27 = vrot.slane %v2073_v3, 4  ;;  %v15341_v8 = vshll.u32 %v15340_v0, 16  ;;  %v12154_v16 = vrot.slane %v2049_v49, 5  ;;  %v2055_v52 = vrot.slane %v2053_v15, 4  ;;  %v15343_v11 = vld [vmem:[#allocation147_spill] sm:$0xff] }
 0x246   : > { %v2066_v6 = vor.u32 %v2065_v30, %v12143_v46  ;;  %v15344_v39 = vshll.u32 %v15343_v11, 16  ;;  %v2577_v3 = vld [vmem:[#allocation2 + $0x40] sm:$0xf]  ;;  %v2578_v13 = vld [vmem:[#allocation2 + $0x44] sm:$0xf]  ;;  %v2857_v57 = vrot.slane %v1539_v24, %v15071_v63  ;;  %v3098_v10 = vshrl.u32 %v2836_v50, 16 }
 0x247   : > { %v12152_v54 = vor.u32 %v15341_v8, %v15339_v36  ;;  %v2076_v18 = vor.u32 %v2075_v27, %v2071_v61  ;;  %v3107_v25 = vshrl.u32 %v2843_v38, 16  ;;  %2609 = vst [vmem:[#allocation3 + $0x1fc] sm:$0xf] %v2577_v3  ;;  %2610 = vst [vmem:[#allocation3 + $0x220] sm:$0xf] %v2578_v13  ;;  %v15345_v49 = vld [vmem:[#allocation207_spill] sm:$0xff]  ;;  %v2056_v24 = vor.u32 %v2055_v52, %v12154_v16 }
 0x248   : > { %v12160_v20 = vor.u32 %v15344_v39, %v15342_v22  ;;  %v4063_v8 = vld [vmem:[#allocation2 + $0x10] sm:$0xf]  ;;  %v2046_v15 = vor.u32 %v2045_v60, %v15345_v49  ;;  %v2067_v30 = vrot.slane %v2066_v6, 4  ;;  %v12164_v0 = vrot.slane %v2079_v26, 5  ;;  %v4064_v39 = vld [vmem:[#allocation2 + $0x14] sm:$0xf] }
 0x249   : > { %v3116_v11 = vshrl.u32 %v2850_v56, 16  ;;  %4095 = vst [vmem:[#allocation3 + $0x10] sm:$0xf] %v4063_v8  ;;  %v2077_v22 = vrot.slane %v2076_v18, 4  ;;  %v3109_v9 = vrot.slane %v3107_v25, 7  ;;  %v3110_v27 = vshll.u32 %v2843_v38, 16 }
 0x24a   : > { %15346 = vst [vmem:[#allocation107_spill] sm:$0xff] %v12164_v0  ;;  %v3119_v37 = vshll.u32 %v2850_v56, 16  ;;  %4096 = vst [vmem:[#allocation3 + $0x34] sm:$0xf] %v4064_v39  ;;  %v3100_v5 = vrot.slane %v3098_v10, 7  ;;  %v3101_v58 = vshll.u32 %v2836_v50, 16  ;;  %v12171_v26 = vsel %vm10432_vm5, %v2067_v30, %v2071_v61 }
 0x24b   : > { %v3118_v3 = vrot.slane %v3116_v11, 7  ;;  %v5279_v13 = vrot.slane %v5277_v62, 4  ;;  %v12167_v14 = vrot.slane %v5283_v34, 5  ;;  %v1568_v60 = vld [vmem:[#allocation2 + $0x68] sm:$0xf]  ;;  %15348 = vst [vmem:[#allocation122_spill] sm:$0xff] %v12171_v26  ;;  %v12176_v10 = vsel %vm10432_vm5, %v2077_v22, %v12164_v0  ;;  %v9470_v0 = vpop.f32.mrf.mxu1 }
 0x24c   : > { %v3125_v6 = vshrl.u32 %v2857_v57, 16  ;;  %v5289_v8 = vrot.slane %v5287_v45, 4  ;;  %v2047_v18 = vrot.slane %v2046_v15, 4  ;;  %v3114_v25 = vrot.slane %v3109_v9, 4  ;;  %v1569_v56 = vld [vmem:[#allocation2 + $0x6c] sm:$0xf] }
 0x24d   : > { %15347 = vst [vmem:[#allocation114_spill] sm:$0xff] %v12167_v14  ;;  %v3121_v38 = vor.u32 %v3119_v37, %v3118_v3  ;;  %15349 = vst [vmem:[#allocation109_spill] sm:$0xff] %v12176_v10  ;;  %v3105_v50 = vrot.slane %v3100_v5, 4  ;;  %v3112_v62 = vor.u32 %v3110_v27, %v3109_v9  ;;  %v3128_v34 = vshll.u32 %v2857_v57, 16  ;;  %v2651_v61 = vld [vmem:[#allocation2 + $0x68] sm:$0xf] }
 0x24e   : > { %v2057_v52 = vrot.slane %v2056_v24, 4  ;;  %v12179_v49 = vmul.bf16 %v12171_v26, %v1568_v60  ;;  %v15350_v30 = vld [vmem:[#allocation210_spill] sm:$0xff]  ;;  %v3103_v45 = vor.u32 %v3101_v58, %v3100_v5  ;;  %v15351_v15 = vshll.u32 %v12079_v53, 16  ;;  %v15384_v28 = vld [vmem:[#allocation88_spill] sm:$0xff]  ;;  %v15423_v33 = vld [vmem:[#allocation213_spill] sm:$0xff] }
 0x24f   : > { %v3096_v11 = vrot.slane %v15350_v30, 4  ;;  %v3123_v41 = vrot.slane %v3118_v3, 4  ;;  %v12187_v22 = vrot.slane %v3125_v6, 7  ;;  %v5280_v57 = vor.u32 %v5279_v13, %v12146_v32  ;;  %v3664_v24 = vld [vmem:[#allocation2 + $0x68] sm:$0xf] }
 0x250   : > { %v12184_v37 = vrot.slane %v15351_v15, 5  ;;  %v12191_v9 = vmul.bf16 %v12176_v10, %v1569_v56  ;;  %v12195_v27 = vsel %vm10454_vm8, %v3114_v25, %v3121_v38  ;;  %v3665_v5 = vld [vmem:[#allocation2 + $0x6c] sm:$0xf]  ;;  %v4149_v58 = vld [vmem:[#allocation2 + $0x68] sm:$0xf]  ;;  %v12198_v60 = vadd.f32 %v11871_v35, %v9470_v0 }
 0x251   : > { %15353 = vst [vmem:[#allocation115_spill] sm:$0xff] %v12187_v22  ;;  %15354 = vst [vmem:[#allocation118_spill] sm:$0xff] %v12195_v27  ;;  %v5290_v3 = vor.u32 %v5289_v8, %v12167_v14  ;;  %v12203_v6 = vsel %vm10454_vm8, %v3105_v50, %v3112_v62  ;;  %v3130_v13 = vor.u32 %v3128_v34, %v12187_v22  ;;  %v4150_v30 = vld [vmem:[#allocation2 + $0x6c] sm:$0xf]  ;;  %v2429_v8 = vshrl.u32 %v12179_v49, 16 }
 0x252   : > { %15352 = vst [vmem:[#allocation17_spill] sm:$0xff] %v12184_v37  ;;  %15355 = vst [vmem:[#allocation120_spill] sm:$0xff] %v12203_v6  ;;  %v3244_v56 = vmul.bf16 %v12195_v27, %v2651_v61  ;;  %v12210_v25 = vsel %vm10432_vm5, %v2047_v18, %v12154_v16  ;;  %v12215_v0 = vsel %vm10432_vm5, %v2057_v52, %v12143_v46  ;;  %v2652_v38 = vld [vmem:[#allocation2 + $0x6c] sm:$0xf]  ;;  %v15358_v18 = vshrl.u32 %v12079_v53, 16 }
 0x253   : > { %15356 = vst [vmem:[#allocation150_spill] sm:$0xff] %v12215_v0  ;;  %v12220_v50 = vsel %vm10454_vm8, %v3096_v11, %v3103_v45  ;;  %v12224_v62 = vsel %vm10454_vm8, %v3123_v41, %v3130_v13  ;;  %v12227_v34 = vmul.bf16 %v3664_v24, %v12210_v25  ;;  %v12230_v16 = vmul.bf16 %v3665_v5, %v12215_v0  ;;  %v4602_v32 = vld [vmem:[#allocation2 + $0x68] sm:$0xf] }
 0x254   : > { %15357 = vst [vmem:[#allocation136_spill] sm:$0xff] %v12224_v62  ;;  %v4182_v46 = vmul.bf16 %v4149_v58, %v12220_v50  ;;  %v12235_v52 = vrot.slane %v15358_v18, 4  ;;  %v15360_v61 = vshrl.u32 %v12082_v12, 16  ;;  %v2438_v45 = vshrl.u32 %v12191_v9, 16 }
 0x255   : > { %v4183_v41 = vmul.bf16 %v4150_v30, %v12203_v6  ;;  %v15362_v15 = vshrl.u32 %v12090_v51, 16  ;;  %v12247_v5 = vrot.slane %v5280_v57, 4  ;;  %v3245_v58 = vmul.bf16 %v12224_v62, %v2652_v38  ;;  %v4603_v57 = vld [vmem:[#allocation2 + $0x6c] sm:$0xf]  ;;  %v15371_v62 = vld [vmem:[#allocation209_spill] sm:$0xff] }
 0x256   : > { %15359 = vst [vmem:[#allocation47_spill] sm:$0xff] %v12235_v52  ;;  %v12239_v11 = vrot.slane %v15360_v61, 7  ;;  %v3493_v13 = vshll.u32 %v3244_v56, 16  ;;  %v12250_v53 = vrot.slane %v5290_v3, 4  ;;  %v3497_v39 = vshrl.u32 %v3244_v56, 16  ;;  %v15370_v52 = vld [vmem:[#allocation208_spill] sm:$0xff] }
 0x257   : > { %v12245_v24 = vrot.slane %v15362_v15, 7  ;;  %15364 = vst [vmem:[#allocation44_spill] sm:$0xff] %v12247_v5  ;;  %v12254_v14 = vrot.slane %v2429_v8, 7  ;;  %v3911_v30 = vshrl.u32 %v12227_v34, 16  ;;  %v3920_v15 = vshrl.u32 %v12230_v16, 16 }
 0x258   : > { %15361 = vst [vmem:[#allocation39_spill] sm:$0xff] %v12239_v11  ;;  %15365 = vst [vmem:[#allocation45_spill] sm:$0xff] %v12250_v53  ;;  %v4413_v51 = vshll.u32 %v4182_v46, 16  ;;  %v12258_v5 = vrot.slane %v2438_v45, 7  ;;  %v4417_v38 = vshrl.u32 %v4182_v46, 16  ;;  %v4427_v3 = vshrl.u32 %v4183_v41, 16 }
 0x259   : > { %15363 = vst [vmem:[#allocation40_spill] sm:$0xff] %v12245_v24  ;;  %15366 = vst [vmem:[#allocation139_spill] sm:$0xff] %v12254_v14  ;;  %v4423_v24 = vshll.u32 %v4183_v41, 16  ;;  %v5087_v53 = vld [vmem:[#allocation2 + $0x68] sm:$0xf]  ;;  %v12260_v12 = vrot.slane %v3493_v13, 5  ;;  %v12267_v37 = vmul.bf16 %v4602_v32, %v15370_v52  ;;  %v12270_v45 = vmul.bf16 %v4603_v57, %v15371_v62 }
 0x25a   : > { %15367 = vst [vmem:[#allocation204_spill] sm:$0xff] %v12258_v5  ;;  %v3503_v18 = vshll.u32 %v3245_v58, 16  ;;  %v3507_v61 = vshrl.u32 %v3245_v58, 16  ;;  %v12263_v8 = vrot.slane %v3497_v39, 4  ;;  %v5088_v46 = vld [vmem:[#allocation2 + $0x6c] sm:$0xf] }
 0x25b   : > { %15368 = vst [vmem:[#allocation154_spill] sm:$0xff] %v12260_v12  ;;  %v12272_v27 = vrot.slane %v3911_v30, 7  ;;  %v12274_v41 = vrot.slane %v3920_v15, 7  ;;  %v12276_v13 = vrot.slane %v4413_v51, 5  ;;  %v15375_v58 = vld [vmem:[#allocation20_spill] sm:$0xff]  ;;  %v12279_v56 = vrot.slane %v4417_v38, 4 }
 0x25c   : > { %15369 = vst [vmem:[#allocation145_spill] sm:$0xff] %v12263_v8  ;;  %v5120_v10 = vmul.bf16 %v5087_v53, %v15375_v58  ;;  %v12281_v39 = vrot.slane %v4423_v24, 5  ;;  %v12283_v11 = vrot.slane %v4427_v3, 4  ;;  %v731_v32 = vmax.f32 %v12053_v17, 0.0  ;;  %v15381_v30 = vld [vmem:[#allocation217_spill] sm:$0xff] }
 0x25d   : > { %15372 = vst [vmem:[#allocation147_spill] sm:$0xff] %v12272_v27  ;;  %15373 = vst [vmem:[#allocation207_spill] sm:$0xff] %v12274_v41  ;;  %v12286_v26 = vrot.slane %v3503_v18, 5  ;;  %v12288_v57 = vrot.slane %v3507_v61, 4  ;;  %v12291_v22 = vmul.bf16 %v5088_v46, %v15381_v30  ;;  %v2283_v51 = vrot.slane %v15260_v31, 4  ;;  %v15383_v61 = vld [vmem:[#allocation90_spill] sm:$0xff] }
 0x25e   : > { %15374 = vst [vmem:[#allocation210_spill] sm:$0xff] %v12276_v13  ;;  %15376 = vst [vmem:[#allocation208_spill] sm:$0xff] %v12279_v56  ;;  %v2581_v15 = vld [vmem:[#allocation2 + $0x50] sm:$0xf]  ;;  %v4833_v53 = vshrl.u32 %v12267_v37, 16  ;;  %v4842_v24 = vshrl.u32 %v12270_v45, 16  ;;  %v15385_v31 = vor.u32 %v15306_v23, %v15273_v44 }
 0x25f   : > { %15377 = vst [vmem:[#allocation209_spill] sm:$0xff] %v12281_v39  ;;  %15378 = vst [vmem:[#allocation20_spill] sm:$0xff] %v12283_v11  ;;  %v15382_v3 = vmax.f32 %v11998_v4, 0.0  ;;  %v2582_v17 = vld [vmem:[#allocation2 + $0x54] sm:$0xf]  ;;  %v5333_v18 = vshll.u32 %v5120_v10, 16  ;;  %v2291_v46 = vsel %vm10454_vm8, %v2283_v51, %v15383_v61  ;;  %v15386_v4 = vor.u32 %v15308_v42, %v15307_v55 }
 0x260   : > { %15379 = vst [vmem:[#allocation232_spill] sm:$0xff] %v12286_v26  ;;  %15380 = vst [vmem:[#allocation233_spill] sm:$0xff] %v12288_v57  ;;  %v2292_v63 = vrot.slane %v15384_v28, 4  ;;  %v3321_v19 = vrot.slane %v15385_v31, 4  ;;  %v5337_v38 = vshrl.u32 %v5120_v10, 16  ;;  %v15388_v30 = vld [vmem:[#allocation91_spill] sm:$0xff] }
 0x261   : > { %v8786_v59 = vpack.c.bf16 %v731_v32, %v15382_v3  ;;  %2613 = vst [vmem:[#allocation3 + $0x28c] sm:$0xf] %v2581_v15  ;;  %2614 = vst [vmem:[#allocation3 + $0x2b0] sm:$0xf] %v2582_v17  ;;  %v3331_v32 = vrot.slane %v15386_v4, 4  ;;  %v3765_v15 = vrot.slane %v15276_v47, 4 }
 0x262   : > { %2539 = vst [vmem:[#allocation3 + $0x120] sm:$0xf] %v2291_v46  ;;  %v15387_v3 = vld [vmem:[#allocation100_spill] sm:$0xff]  ;;  %v2300_v28 = vsel %vm10454_vm8, %v2292_v63, %v15388_v30  ;;  %v3326_v23 = vsel %vm10432_vm5, %v3321_v19, %v15307_v55  ;;  %v15389_v44 = vld [vmem:[#allocation85_spill] sm:$0xff]  ;;  %v15392_v61 = vld [vmem:[#allocation126_spill] sm:$0xff] }
 0x263   : > { %8887 = vst [vmem:[#allocation2 + $0x60] sm:$0xff] %v8786_v59   ;;  %v3774_v7 = vrot.slane %v15387_v3, 4  ;;  %v2301_v10 = vrot.slane %v15389_v44, 4  ;;  %v2310_v59 = vrot.slane %v15309_v29, 4  ;;  %2540 = vst [vmem:[#allocation3 + $0x144] sm:$0xf] %v2300_v28 }
 0x264   : > { %v15390_v51 = vld [vmem:[#allocation92_spill] sm:$0xff]  ;;  %3615 = vst [vmem:[#allocation3 + $0xe0] sm:$0xf] %v3326_v23  ;;  %v15391_v47 = vld [vmem:[#allocation125_spill] sm:$0xff]  ;;  %v15395_v31 = vld [vmem:[#allocation95_spill] sm:$0xff]  ;;  %v4845_v28 = vshll.u32 %v12270_v45, 16 }
 0x265   : > { %v3336_v42 = vsel %vm10432_vm5, %v3331_v32, %v15390_v51  ;;  %v3773_v17 = vsel %vm10454_vm8, %v3765_v15, %v15391_v47  ;;  %v3782_v63 = vsel %vm10454_vm8, %v3774_v7, %v15392_v61  ;;  %v15393_v30 = vld [vmem:[#allocation93_spill] sm:$0xff]  ;;  %v2309_v29 = vsel %vm10454_vm8, %v2301_v10, %v12065_v48  ;;  %v15396_v4 = vld [vmem:[#allocation94_spill] sm:$0xff]  ;;  %v9787_v10 = vld [vmem:[#allocation9 + $0x1f8] sm:$0xff]  }
 0x266   : > { %v15394_v19 = vor.u32 %v15393_v30, %v15390_v51  ;;  %3616 = vst [vmem:[#allocation3 + $0x104] sm:$0xf] %v3336_v42  ;;  %4037 = vst [vmem:[#allocation3 + $0xe4] sm:$0xf] %v3773_v17  ;;  %v2318_v46 = vsel %vm10454_vm8, %v2310_v59, %v12117_v21  ;;  %v15397_v32 = vor.u32 %v15395_v31, %v15396_v4  ;;  %v15398_v7 = vld [vmem:[#allocation101_spill] sm:$0xff]  ;;  %v5343_v23 = vshll.u32 %v12291_v22, 16 }
 0x267   : > { %4038 = vst [vmem:[#allocation3 + $0x108] sm:$0xf] %v3782_v63  ;;  %v3783_v3 = vrot.slane %v15398_v7, 4  ;;  %2541 = vst [vmem:[#allocation3 + $0x168] sm:$0xf] %v2309_v29  ;;  %v3792_v44 = vrot.slane %v15339_v36, 4  ;;  %9268 = vmatprep.subr.bf16.mxu0 %v9787_v10 }
 0x268   : > { %v3341_v55 = vrot.slane %v15394_v19, 4  ;;  %v3351_v15 = vrot.slane %v15397_v32, 4  ;;  %2542 = vst [vmem:[#allocation3 + $0x18c] sm:$0xf] %v2318_v46  ;;  %v9788_v21 = vld [vmem:[#allocation9 + $0x1b8] sm:$0xff]   ;;  %v12347_v51 = vrot.slane %v4833_v53, 7  ;;  %v679_v53 = vpop.f32.mrf.mxu1 }
 0x269   : > { %v9789_v59 = vld [vmem:[#allocation9 + $0x158] sm:$0xff]   ;;  %v5347_v42 = vshrl.u32 %v12291_v22, 16  ;;  %v15400_v47 = vld [vmem:[#allocation151_spill] sm:$0xff]  ;;  %v3791_v61 = vsel %vm10454_vm8, %v3783_v3, %v12152_v54  ;;  %v12356_v30 = vrot.slane %v4842_v24, 7  ;;  %v12358_v36 = vrot.slane %v5333_v18, 5  ;;  %9269 = vmatpush3.bf16.msra.mxu0 %v9788_v21 }
 0x26a   : > { %v3346_v48 = vsel %vm10432_vm5, %v3341_v55, %v15396_v4  ;;  %15399 = vst [vmem:[#allocation90_spill] sm:$0xff] %v12347_v51  ;;  %v3356_v17 = vsel %vm10432_vm5, %v3351_v15, %v15400_v47  ;;  %v9792_v63 = vld [vmem:[#allocation9 + $0x118] sm:$0xff]   ;;  %v12360_v19 = vrot.slane %v5337_v38, 4  ;;  %v3800_v22 = vsel %vm10454_vm8, %v3792_v44, %v12160_v20  ;;  %4039 = vst [vmem:[#allocation3 + $0x12c] sm:$0xf] %v3791_v61  ;;  %v9805_v11 = vld [vmem:[#allocation9 + $0x150] sm:$0xff]  }
 0x26b   : > { %3617 = vst [vmem:[#allocation3 + $0x128] sm:$0xf] %v3346_v48  ;;  %15401 = vst [vmem:[#allocation88_spill] sm:$0xff] %v12356_v30  ;;  %9164 = vmatprep.subr.bf16.mxu1 %v9789_v59  ;;  %v15404_v54 = vshll.u32 %v12179_v49, 16  ;;  %v15406_v38 = vshll.u32 %v12191_v9, 16  ;;  %v12378_v31 = vadd.f32 %v11871_v35, %v679_v53  ;;  %v15408_v49 = vshll.u32 %v12227_v34, 16 }
 0x26c   : > { %15402 = vst [vmem:[#allocation100_spill] sm:$0xff] %v12358_v36  ;;  %15403 = vst [vmem:[#allocation91_spill] sm:$0xff] %v12360_v19  ;;  %v1566_v29 = vld [vmem:[#allocation2 + $0x60] sm:$0xf]  ;;  %v1567_v46 = vld [vmem:[#allocation2 + $0x64] sm:$0xf]  ;;  %9165 = vmatpush3.bf16.msra.mxu1 %v9792_v63 }
 0x26d   : > { %3618 = vst [vmem:[#allocation3 + $0x14c] sm:$0xf] %v3356_v17  ;;  %v12370_v24 = vor.u32 %v15404_v54, %v12254_v14  ;;  %v12375_v18 = vor.u32 %v15406_v38, %v12258_v5  ;;  %v2649_v20 = vld [vmem:[#allocation2 + $0x60] sm:$0xf]  ;;  %4040 = vst [vmem:[#allocation3 + $0x150] sm:$0xf] %v3800_v22  ;;  %v12385_v32 = vor.u32 %v15408_v49, %v12272_v27  ;;  %9166 = vmatprep.subr.bf16.mxu1 %v9805_v11 }
 0x26e   : > { %v15410_v9 = vshll.u32 %v12230_v16, 16  ;;  %v12393_v7 = vmul.bf16 %v12210_v25, %v1566_v29  ;;  %v2650_v3 = vld [vmem:[#allocation2 + $0x64] sm:$0xf]  ;;  %v3662_v48 = vld [vmem:[#allocation2 + $0x60] sm:$0xf]  ;;  %v12395_v10 = vrot.slane %v5343_v23, 5  ;;  %v12400_v34 = vmul.bf16 %v12215_v0, %v1567_v46 }
 0x26f   : > { %15405 = vst [vmem:[#allocation85_spill] sm:$0xff] %v12370_v24  ;;  %15407 = vst [vmem:[#allocation92_spill] sm:$0xff] %v12375_v18  ;;  %v3663_v44 = vld [vmem:[#allocation2 + $0x64] sm:$0xf]  ;;  %v12397_v21 = vrot.slane %v5347_v42, 4  ;;  %v3242_v59 = vmul.bf16 %v12220_v50, %v2649_v20  ;;  %v3243_v16 = vmul.bf16 %v12203_v6, %v2650_v3  ;;  %v12405_v17 = vmul.bf16 %v3662_v48, %v15370_v52  ;;  %v15439_v56 = vld [vmem:[#allocation216_spill] sm:$0xff] }
 0x270   : > { %15409 = vst [vmem:[#allocation125_spill] sm:$0xff] %v12385_v32  ;;  %v12390_v15 = vor.u32 %v15410_v9, %v12274_v41  ;;  %15412 = vst [vmem:[#allocation93_spill] sm:$0xff] %v12393_v7  ;;  %v12409_v22 = vadd.s32 216, %v15305_v40  ;;  %v12412_v23 = vmul.bf16 %v3663_v44, %v15371_v62  ;;  %v4147_v42 = vld [vmem:[#allocation2 + $0x60] sm:$0xf]  ;;  %v12416_v53 = vadd.s32 224, %v15305_v40 }
 0x271   : > { %15413 = vst [vmem:[#allocation95_spill] sm:$0xff] %v12395_v10  ;;  %15414 = vst [vmem:[#allocation94_spill] sm:$0xff] %v12397_v21  ;;  %v12419_v54 = vadd.s32 232, %v15305_v40  ;;  %v2411_v29 = vshrl.u32 %v12393_v7, 16  ;;  %v4148_v46 = vld [vmem:[#allocation2 + $0x64] sm:$0xf]  ;;  %v4180_v52 = vmul.bf16 %v4147_v42, %v15375_v58  ;;  %v12441_v9 = vor.u32 %v4845_v28, %v12356_v30  ;;  %v9471_v10 = vpop.f32.mrf.mxu1 }
 0x272   : > { %15411 = vst [vmem:[#allocation126_spill] sm:$0xff] %v12390_v15  ;;  %15415 = vst [vmem:[#allocation101_spill] sm:$0xff] %v12400_v34  ;;  %v4600_v20 = vld [vmem:[#allocation2 + $0x60] sm:$0xf]  ;;  %v2420_v49 = vshrl.u32 %v12400_v34, 16  ;;  %v3473_v3 = vshll.u32 %v3242_v59, 16  ;;  %v691_v45 = vadd.f32 %v11871_v35, %v9471_v10 }
 0x273   : > { %15416 = vst [vmem:[#allocation151_spill] sm:$0xff] %v12405_v17  ;;  %15417 = vst [vmem:[#allocation234_spill] sm:$0xff] %v12412_v23  ;;  %v3477_v48 = vshrl.u32 %v3242_v59, 16  ;;  %v3483_v44 = vshll.u32 %v3243_v16, 16  ;;  %v3487_v55 = vshrl.u32 %v3243_v16, 16  ;;  %v3893_v4 = vshrl.u32 %v12405_v17, 16 }
 0x274   : > { %v9755_v63 = vld [vmem:[#allocation3 + $0x124] ss:$36 sps:$4 sm:$0xff]   ;;  %v15418_v62 = vshll.u32 %v12267_v37, 16  ;;  %15420 = vst [vmem:[#allocation236_spill] sm:$0xff] %v12441_v9  ;;  %v3902_v59 = vshrl.u32 %v12412_v23, 16  ;;  %v12444_v58 = vrot.slane %v2411_v29, 7  ;;  %v12450_v37 = vmul.bf16 %v4600_v20, %v15423_v33 }
 0x275   : > { %v9757_v16 = vld [vmem:[#allocation3 + $0xe4] ss:$36 sps:$4 sm:$0xff]   ;;  %7064 = vmatprep.mubr.bf16.mxu1 %v9755_v63  ;;  %v12453_v28 = vrot.slane %v2420_v49, 7  ;;  %v12455_v30 = vrot.slane %v3473_v3, 5  ;;  %v12458_v29 = vrot.slane %v3477_v48, 4  ;;  %v4397_v33 = vshrl.u32 %v4180_v52, 16 }
 0x276   : > { %v12436_v61 = vor.u32 %v15418_v62, %v12347_v51  ;;  %v9760_v21 = vld [vmem:[#allocation3 + $0x120] ss:$36 sps:$4 sm:$0xff]   ;;  %15421 = vst [vmem:[#allocation237_spill] sm:$0xff] %v12444_v58  ;;  %7217 = vmatprep.mubr.bf16.mxu0 %v9757_v16  ;;  %v9763_v63 = vld [vmem:[#allocation3 + $0x16c] ss:$36 sps:$4 sm:$0xff]   ;;  %v12464_v20 = vrot.slane %v3893_v4, 7 }
 0x277   : > { %v15422_v42 = vld [vmem:[#allocation217_spill] sm:$0xff]  ;;  %15425 = vst [vmem:[#allocation213_spill] sm:$0xff] %v12453_v28  ;;  %15426 = vst [vmem:[#allocation238_spill] sm:$0xff] %v12455_v30  ;;  %7065 = vmatmul.mubr.bf16.gmra.mxu1 %v9760_v21  ;;  %v12466_v35 = vrot.slane %v3902_v59, 7  ;;  %v15432_v49 = vld [vmem:[#allocation214_spill] sm:$0xff]  ;;  %v682_v21 = vpop.f32.mrf.mxu1  ;;  %v737_v10 = vmax.f32 %v691_v45, 0.0 }
 0x278   : > { %15419 = vst [vmem:[#allocation235_spill] sm:$0xff] %v12436_v61  ;;  %v12447_v2 = vmul.bf16 %v4148_v46, %v15422_v42  ;;  %v4601_v38 = vld [vmem:[#allocation2 + $0x64] sm:$0xf]  ;;  %15424 = vst [vmem:[#allocation217_spill] sm:$0xff] %v12450_v37  ;;  %v4393_v61 = vshll.u32 %v4180_v52, 16  ;;  %v12460_v46 = vrot.slane %v3483_v44, 5  ;;  %7072 = vmatprep.mubr.bf16.mxu1 %v9763_v63 }
 0x279   : > { %v9761_v62 = vld [vmem:[#allocation3 + $0xe0] ss:$36 sps:$4 sm:$0xff]   ;;  %15427 = vst [vmem:[#allocation239_spill] sm:$0xff] %v12458_v29  ;;  %v12462_v42 = vrot.slane %v3487_v55, 4  ;;  %15430 = vst [vmem:[#allocation242_spill] sm:$0xff] %v12464_v20  ;;  %v12470_v3 = vmul.bf16 %v4601_v38, %v15432_v49  ;;  %v9803_v48 = vld [vmem:[#allocation9 + $0x1f0] sm:$0xff]  }
 0x27a   : > { %15428 = vst [vmem:[#allocation240_spill] sm:$0xff] %v12460_v46  ;;  %7218 = vmatmul.mubr.bf16.gmra.mxu0 %v9761_v62  ;;  %15431 = vst [vmem:[#allocation243_spill] sm:$0xff] %v12466_v35  ;;  %v5085_v16 = vld [vmem:[#allocation2 + $0x60] sm:$0xf]  ;;  %v9765_v4 = vld [vmem:[#allocation3 + $0x12c] ss:$36 sps:$4 sm:$0xff]   ;;  %9270 = vmatprep.subr.bf16.mxu0 %v9803_v48 }
 0x27b   : > { %15429 = vst [vmem:[#allocation241_spill] sm:$0xff] %v12462_v42  ;;  %15433 = vst [vmem:[#allocation214_spill] sm:$0xff] %v12470_v3  ;;  %v12476_v59 = vrot.slane %v4393_v61, 5  ;;  %v5086_v9 = vld [vmem:[#allocation2 + $0x64] sm:$0xf]  ;;  %v933_v38 = vadd.s32 240, %v15305_v40  ;;  %7225 = vmatprep.mubr.bf16.mxu0 %v9765_v4  ;;  %v5118_v13 = vmul.bf16 %v5085_v16, %v15439_v56 }
 0x27c   : > { %v1128_v49 = vand.u32 15, %v12409_v22  ;;  %v12480_v51 = vrot.slane %v4397_v33, 4  ;;  %v1135_v55 = vand.u32 15, %v12416_v53  ;;  %v15436_v44 = vld [vmem:[#allocation19_spill] sm:$0xff]  ;;  %v15437_v52 = vld [vmem:[#allocation66_spill] sm:$0xff]  ;;  %v15438_v22 = vmax.f32 %v12198_v60, 0.0 }
 0x27d   : > { %15434 = vst [vmem:[#allocation244_spill] sm:$0xff] %v12476_v59  ;;  %v1787_v39 = vrot.slane %v15437_v52, %v15436_v44  ;;  %v12488_v61 = vld [vmem:[%s14496_s4] ss:$0 sm:$0xff]  ;;  %v9767_v63 = vld [vmem:[#allocation3 + $0x168] ss:$36 sps:$4 sm:$0xff]   ;;  %v1142_v48 = vand.u32 15, %v12419_v54 }
 0x27e   : > { %15435 = vst [vmem:[#allocation245_spill] sm:$0xff] %v12480_v51  ;;  %v12491_v45 = vadd.f32 %v12488_v61, %v682_v21  ;;  %v9768_v62 = vld [vmem:[#allocation3 + $0x128] ss:$36 sps:$4 sm:$0xff]   ;;  %v8801_v33 = vpack.c.bf16 %v737_v10, %v15438_v22  ;;  %v1149_v4 = vand.u32 15, %v933_v38  ;;  %vm1458_vm3 = vcmp.lt.s32.totalorder %v1128_v49, 15  ;;  %v9804_v53 = vld [vmem:[#allocation9 + $0x1b0] sm:$0xff]  }
 0x27f   : > { %v9808_v52 = vld [vmem:[#allocation9 + $0x110] sm:$0xff]   ;;  %vm1347_vm4 = vcmp.ge.s32.totalorder %v1135_v55, 1  ;;  %v15441_v21 = vmov 0.0   ;;  %v2585_v26 = vld [vmem:[#allocation2 + $0x60] sm:$0xf]  ;;  %vm1460_vm7 = vcmp.lt.s32.totalorder %v1142_v48, 15  ;;  %7073 = vmatmul.mubr.bf16.gmra.mxu1 %v9767_v63  ;;  %9271 = vmatpush3.bf16.msra.mxu0 %v9804_v53 }
 0x280   : > { %v15440_v51 = vld [vmem:[#allocation215_spill] sm:$0xff]  ;;  %v8462_v41 = vsel %vm1458_vm3, 1.0, %v15441_v21  ;;  %v2586_v57 = vld [vmem:[#allocation2 + $0x64] sm:$0xf]  ;;  %8890 = vst [vmem:[#allocation2 + $0x78] sm:$0xff] %v8801_v33   ;;  %vm1349_vm6 = vcmp.ge.s32.totalorder %v1149_v4, 1  ;;  %9167 = vmatpush3.bf16.msra.mxu1 %v9808_v52 }
 0x281   : > { %v12498_v59 = vmul.bf16 %v5086_v9, %v15440_v51  ;;  %v8447_v54 = vsel %vm1347_vm4, 1.0, %v15441_v21  ;;  %2617 = vst [vmem:[#allocation3 + $0x31c] sm:$0xf] %v2585_v26  ;;  %2618 = vst [vmem:[#allocation3 + $0x340] sm:$0xf] %v2586_v57  ;;  %v8448_v51 = vsel %vm1349_vm6, 1.0, %v15441_v21 }
 0x282   : > { %v15442_v9 = vmov 1.0   ;;  %7226 = vmatmul.mubr.bf16.gmra.mxu0 %v9768_v62  ;;  %v8463_v38 = vsel %vm1460_vm7, 1.0, %v15441_v21  ;;  %v15443_v49 = vld [vmem:[#allocation57_spill] sm:$0xff]  ;;  %v2089_v22 = vshll.u32 %v1787_v39, 16  ;;  %v5313_v26 = vshll.u32 %v5118_v13, 16  ;;  %v15444_v57 = vld [vmem:[#allocation18_spill] sm:$0xff] }
 0x283   : > { %v1429_v10 = vpack.c.bf16 %v15442_v9, %v8447_v54  ;;  %v1540_v16 = vpack.c.bf16 %v8462_v41, %v15442_v9  ;;  %v12508_v55 = vpack.c.bf16 %v15442_v9, %v8448_v51  ;;  %v2083_v63 = vshrl.u32 %v15443_v49, 16  ;;  %v9819_v52 = vld [vmem:[#allocation9 + $0x1e8] sm:$0xff]   ;;  %v15495_v21 = vld [vmem:[#allocation132_spill] sm:$0xff] }
 0x284   : > { %v2093_v4 = vshrl.u32 %v1787_v39, 16  ;;  %v5317_v53 = vshrl.u32 %v5118_v13, 16  ;;  %v5323_v41 = vshll.u32 %v12498_v59, 16  ;;  %v1541_v11 = vpack.c.bf16 %v8463_v38, %v15442_v9  ;;  %v9820_v60 = vld [vmem:[#allocation9 + $0x1a8] sm:$0xff]   ;;  %9272 = vmatprep.subr.bf16.mxu0 %v9819_v52  ;;  %v5014_v9 = vld [vmem:[#allocation2 + $0x44] sm:$0xf] }
 0x285   : > { %v1794_v33 = vrot.slane %v1429_v10, %v15444_v57  ;;  %v1801_v48 = vrot.slane %v1429_v10, %v15436_v44  ;;  %v12518_v62 = vrot.slane %v12508_v55, %v15444_v57  ;;  %v2085_v54 = vrot.slane %v2083_v63, 4  ;;  %v9821_v39 = vld [vmem:[#allocation9 + $0x148] sm:$0xff]   ;;  %9273 = vmatpush3.bf16.msra.mxu0 %v9820_v60  ;;  %5046 = vst [vmem:[#allocation3 + $0x1a8] sm:$0xf] %v5014_v9 }
 0x286   : > { %v12520_v12 = vrot.slane %v2089_v22, 5  ;;  %v2095_v8 = vrot.slane %v2093_v4, 4  ;;  %v12523_v13 = vrot.slane %v1540_v16, %v15444_v57  ;;  %v2871_v63 = vrot.slane %v1540_v16, %v15436_v44  ;;  %9168 = vmatprep.subr.bf16.mxu1 %v9821_v39 }
 0x287   : > { %v2099_v51 = vshll.u32 %v1794_v33, 16  ;;  %v2103_v49 = vshrl.u32 %v1794_v33, 16  ;;  %v2109_v56 = vshll.u32 %v1801_v48, 16  ;;  %v2113_v10 = vshrl.u32 %v1801_v48, 16  ;;  %v2591_v22 = vld [vmem:[#allocation2 + $0x78] sm:$0xf] }
 0x288   : > { %v2119_v15 = vshll.u32 %v12518_v62, 16  ;;  %v5327_v33 = vshrl.u32 %v12498_v59, 16  ;;  %v2878_v4 = vrot.slane %v1541_v11, %v15444_v57  ;;  %v12531_v48 = vrot.slane %v5313_v26, 5  ;;  %2623 = vst [vmem:[#allocation3 + $0x3f4] sm:$0xf] %v2591_v22  ;;  %v15447_v59 = vld [vmem:[#allocation107_spill] sm:$0xff] }
 0x289   : > { %v12525_v5 = vrot.slane %v2099_v51, 5  ;;  %v2105_v38 = vrot.slane %v2103_v49, 4  ;;  %v2111_v32 = vrot.slane %v2109_v56, 5  ;;  %v2115_v27 = vrot.slane %v2113_v10, 4  ;;  %v2592_v49 = vld [vmem:[#allocation2 + $0x7c] sm:$0xf] }
 0x28a   : > { %15445 = vst [vmem:[#allocation19_spill] sm:$0xff] %v12531_v48  ;;  %v12533_v18 = vrot.slane %v5317_v53, 4  ;;  %v2885_v24 = vrot.slane %v1541_v11, %v15436_v44  ;;  %v12537_v16 = vrot.slane %v5323_v41, 5  ;;  %v2086_v56 = vor.u32 %v2085_v54, %v15447_v59  ;;  %2624 = vst [vmem:[#allocation3 + $0x418] sm:$0xf] %v2592_v49  ;;  %v9824_v59 = vld [vmem:[#allocation9 + $0x108] sm:$0xff]  }
 0x28b   : > { %v2106_v51 = vor.u32 %v2105_v38, %v12525_v5  ;;  %v2116_v52 = vor.u32 %v2115_v27, %v2111_v32  ;;  %v3134_v10 = vshrl.u32 %v12523_v13, 16  ;;  %v2096_v60 = vor.u32 %v2095_v8, %v12520_v12  ;;  %v4089_v22 = vld [vmem:[#allocation2 + $0x78] sm:$0xf]  ;;  %v4090_v54 = vld [vmem:[#allocation2 + $0x7c] sm:$0xf]  ;;  %v15449_v27 = vld [vmem:[#allocation29_spill] sm:$0xff]  ;;  %9169 = vmatpush3.bf16.msra.mxu1 %v9824_v59 }
 0x28c   : > { %15446 = vst [vmem:[#allocation66_spill] sm:$0xff] %v12537_v16  ;;  %v12542_v39 = vrot.slane %v2119_v15, 5  ;;  %v3143_v53 = vshrl.u32 %v2871_v63, 16  ;;  %v12544_v42 = vrot.slane %v5327_v33, 4  ;;  %v3146_v46 = vshll.u32 %v2871_v63, 16 }
 0x28d   : > { %v2107_v26 = vrot.slane %v2106_v51, 4  ;;  %v2117_v38 = vrot.slane %v2116_v52, 4  ;;  %v3152_v11 = vshrl.u32 %v2878_v4, 16  ;;  %v3155_v29 = vshll.u32 %v2878_v4, 16  ;;  %4121 = vst [vmem:[#allocation3 + $0x3b8] sm:$0xf] %v4089_v22 }
 0x28e   : > { %15448 = vst [vmem:[#allocation216_spill] sm:$0xff] %v12542_v39  ;;  %v3145_v41 = vrot.slane %v3143_v53, 7  ;;  %v3161_v14 = vshrl.u32 %v2885_v24, 16  ;;  %v2087_v8 = vrot.slane %v2086_v56, 4  ;;  %v3136_v51 = vrot.slane %v3134_v10, 7 }
 0x28f   : > { %v3137_v15 = vshll.u32 %v12523_v13, 16  ;;  %v3164_v30 = vshll.u32 %v2885_v24, 16  ;;  %4122 = vst [vmem:[#allocation3 + $0x3dc] sm:$0xf] %v4090_v54  ;;  %v1572_v33 = vld [vmem:[#allocation2 + $0x78] sm:$0xf]  ;;  %v12551_v53 = vsel %vm10432_vm5, %v2107_v26, %v2111_v32  ;;  %v12556_v4 = vsel %vm10432_vm5, %v2117_v38, %v12542_v39 }
 0x290   : > { %v1573_v52 = vld [vmem:[#allocation2 + $0x7c] sm:$0xf]  ;;  %v2097_v63 = vrot.slane %v2096_v60, 4  ;;  %15450 = vst [vmem:[#allocation215_spill] sm:$0xff] %v12551_v53  ;;  %15451 = vst [vmem:[#allocation57_spill] sm:$0xff] %v12556_v4  ;;  %v3154_v22 = vrot.slane %v3152_v11, 7  ;;  %v3148_v49 = vor.u32 %v3146_v46, %v3145_v41  ;;  %v5320_v32 = vor.u32 %v12533_v18, %v12531_v48 }
 0x291   : > { %v2655_v56 = vld [vmem:[#allocation2 + $0x78] sm:$0xf]  ;;  %v3141_v10 = vrot.slane %v3136_v51, 4  ;;  %v3150_v13 = vrot.slane %v3145_v41, 4  ;;  %v12558_v24 = vrot.slane %v3161_v14, 7  ;;  %v15453_v60 = vshll.u32 %v12447_v2, 16 }
 0x292   : > { %v5027_v54 = vld [vmem:[#allocation2 + $0x78] sm:$0xf]  ;;  %v15455_v26 = vld [vmem:[#allocation115_spill] sm:$0xff]  ;;  %v3157_v38 = vor.u32 %v3155_v29, %v3154_v22  ;;  %v5028_v11 = vld [vmem:[#allocation2 + $0x7c] sm:$0xf]  ;;  %v12568_v59 = vmul.bf16 %v12551_v53, %v1572_v33  ;;  %v3139_v46 = vor.u32 %v3137_v15, %v3136_v51  ;;  %v3159_v14 = vrot.slane %v3154_v22, 4 }
 0x293   : > { %15452 = vst [vmem:[#allocation107_spill] sm:$0xff] %v12558_v24  ;;  %v12562_v23 = vrot.slane %v15453_v60, 5  ;;  %v3132_v35 = vrot.slane %v15455_v26, 4  ;;  %v3668_v17 = vld [vmem:[#allocation2 + $0x78] sm:$0xf]  ;;  %v3166_v41 = vor.u32 %v3164_v30, %v12558_v24  ;;  %v12576_v18 = vsel %vm10432_vm5, %v2087_v8, %v12520_v12 }
 0x294   : > { %5059 = vst [vmem:[#allocation3 + $0x37c] sm:$0xf] %v5027_v54  ;;  %v3669_v20 = vld [vmem:[#allocation2 + $0x7c] sm:$0xf]  ;;  %5060 = vst [vmem:[#allocation3 + $0x3a0] sm:$0xf] %v5028_v11  ;;  %v12581_v29 = vsel %vm10432_vm5, %v2097_v63, %v12525_v5  ;;  %v12584_v51 = vmul.bf16 %v12556_v4, %v1573_v52  ;;  %v12592_v12 = vsel %vm10454_vm8, %v3150_v13, %v3157_v38 }
 0x295   : > { %15454 = vst [vmem:[#allocation29_spill] sm:$0xff] %v12562_v23  ;;  %v4067_v60 = vld [vmem:[#allocation2 + $0x20] sm:$0xf]  ;;  %v5330_v23 = vor.u32 %v12544_v42, %v12537_v16  ;;  %v2656_v30 = vld [vmem:[#allocation2 + $0x7c] sm:$0xf]  ;;  %v12588_v42 = vsel %vm10454_vm8, %v3141_v10, %v3148_v49  ;;  %15456 = vst [vmem:[#allocation115_spill] sm:$0xff] %v12592_v12  ;;  %v12596_v8 = vsel %vm10454_vm8, %v3159_v14, %v3166_v41 }
 0x296   : > { %v4068_v15 = vld [vmem:[#allocation2 + $0x24] sm:$0xf]  ;;  %4099 = vst [vmem:[#allocation3 + $0xa0] sm:$0xf] %v4067_v60  ;;  %v5005_v33 = vld [vmem:[#allocation2 + $0x20] sm:$0xf]  ;;  %v12599_v5 = vmul.bf16 %v3668_v17, %v12576_v18  ;;  %v3248_v26 = vmul.bf16 %v12592_v12, %v2655_v56  ;;  %v12611_v38 = vmul.bf16 %v3669_v20, %v12581_v29 }
 0x297   : > { %15457 = vst [vmem:[#allocation246_spill] sm:$0xff] %v12596_v8  ;;  %v4153_v52 = vld [vmem:[#allocation2 + $0x78] sm:$0xf]  ;;  %v4154_v63 = vld [vmem:[#allocation2 + $0x7c] sm:$0xf]  ;;  %v15458_v54 = vshrl.u32 %v12447_v2, 16 }
 0x298   : > { %4100 = vst [vmem:[#allocation3 + $0xc4] sm:$0xf] %v4068_v15  ;;  %v5006_v22 = vld [vmem:[#allocation2 + $0x24] sm:$0xf]  ;;  %5037 = vst [vmem:[#allocation3 + $0x64] sm:$0xf] %v5005_v33  ;;  %v12620_v15 = vsel %vm10454_vm8, %v3132_v35, %v3139_v46  ;;  %v3249_v33 = vmul.bf16 %v12596_v8, %v2656_v30 }
 0x299   : > { %v12603_v49 = vrot.slane %v15458_v54, 4  ;;  %v15460_v10 = vshrl.u32 %v12450_v37, 16  ;;  %v9835_v17 = vld [vmem:[#allocation9 + $0x1e0] sm:$0xff]   ;;  %5038 = vst [vmem:[#allocation3 + $0x88] sm:$0xf] %v5006_v22  ;;  %v15462_v41 = vshrl.u32 %v12470_v3, 16  ;;  %v4186_v54 = vmul.bf16 %v4153_v52, %v12620_v15 }
 0x29a   : > { %v9836_v11 = vld [vmem:[#allocation9 + $0x1a0] sm:$0xff]   ;;  %v2465_v2 = vshrl.u32 %v12568_v59, 16  ;;  %v12623_v56 = vrot.slane %v5320_v32, 4  ;;  %v12625_v20 = vrot.slane %v5330_v23, 4  ;;  %v4187_v22 = vmul.bf16 %v4154_v63, %v12588_v42  ;;  %9274 = vmatprep.subr.bf16.mxu0 %v9835_v17  ;;  %v4607_v35 = vld [vmem:[#allocation2 + $0x7c] sm:$0xf] }
 0x29b   : > { %15459 = vst [vmem:[#allocation247_spill] sm:$0xff] %v12603_v49  ;;  %v12607_v13 = vrot.slane %v15460_v10, 7  ;;  %v9837_v14 = vld [vmem:[#allocation9 + $0x140] sm:$0xff]   ;;  %v12615_v60 = vrot.slane %v15462_v41, 7  ;;  %v4606_v10 = vld [vmem:[#allocation2 + $0x78] sm:$0xf]  ;;  %9275 = vmatpush3.bf16.msra.mxu0 %v9836_v11 }
 0x29c   : > { %15464 = vst [vmem:[#allocation250_spill] sm:$0xff] %v12623_v56  ;;  %15465 = vst [vmem:[#allocation251_spill] sm:$0xff] %v12625_v20  ;;  %9170 = vmatprep.subr.bf16.mxu1 %v9837_v14  ;;  %v5009_v41 = vld [vmem:[#allocation2 + $0x30] sm:$0xf]  ;;  %v2474_v48 = vshrl.u32 %v12584_v51, 16  ;;  %v3947_v16 = vshrl.u32 %v12599_v5, 16 }
 0x29d   : > { %15461 = vst [vmem:[#allocation248_spill] sm:$0xff] %v12607_v13  ;;  %15463 = vst [vmem:[#allocation249_spill] sm:$0xff] %v12615_v60  ;;  %v15466_v46 = vld [vmem:[#allocation152_spill] sm:$0xff]  ;;  %v15467_v3 = vld [vmem:[#allocation153_spill] sm:$0xff]  ;;  %v3533_v14 = vshll.u32 %v3248_v26, 16  ;;  %v3956_v60 = vshrl.u32 %v12611_v38, 16 }
 0x29e   : > { %v3370_v30 = vor.u32 %v15467_v3, %v15466_v46  ;;  %v15468_v32 = vld [vmem:[#allocation192_spill] sm:$0xff]  ;;  %v15469_v56 = vld [vmem:[#allocation181_spill] sm:$0xff]  ;;  %v4071_v52 = vld [vmem:[#allocation2 + $0x30] sm:$0xf]  ;;  %5041 = vst [vmem:[#allocation3 + $0xf4] sm:$0xf] %v5009_v41 }
 0x29f   : > { %v15470_v23 = vshll.u32 %v15469_v56, 16  ;;  %v4072_v37 = vld [vmem:[#allocation2 + $0x34] sm:$0xf]  ;;  %4103 = vst [vmem:[#allocation3 + $0x130] sm:$0xf] %v4071_v52  ;;  %v12641_v13 = vrot.slane %v2465_v2, 7 }
 0x2a0   : > { %v3537_v3 = vshrl.u32 %v3248_v26, 16  ;;  %v3543_v49 = vshll.u32 %v3249_v33, 16  ;;  %v3547_v34 = vshrl.u32 %v3249_v33, 16  ;;  %4104 = vst [vmem:[#allocation3 + $0x154] sm:$0xf] %v4072_v37  ;;  %v4457_v11 = vshrl.u32 %v4186_v54, 16 }
 0x2a1   : > { %v12636_v20 = vor.u32 %v15470_v23, %v15468_v32  ;;  %15471 = vst [vmem:[#allocation152_spill] sm:$0xff] %v12641_v13  ;;  %v5010_v56 = vld [vmem:[#allocation2 + $0x34] sm:$0xf]  ;;  %v4453_v23 = vshll.u32 %v4186_v54, 16  ;;  %v4463_v28 = vshll.u32 %v4187_v22, 16  ;;  %v4467_v41 = vshrl.u32 %v4187_v22, 16 }
 0x2a2   : > { %v5091_v7 = vld [vmem:[#allocation2 + $0x78] sm:$0xf]  ;;  %5042 = vst [vmem:[#allocation3 + $0x118] sm:$0xf] %v5010_v56  ;;  %v12643_v63 = vrot.slane %v2474_v48, 7  ;;  %v12645_v17 = vrot.slane %v3947_v16, 7 }
 0x2a3   : > { %v15474_v52 = vld [vmem:[#allocation122_spill] sm:$0xff]  ;;  %v9840_v26 = vld [vmem:[#allocation9 + $0x100] sm:$0xff]   ;;  %v12651_v8 = vrot.slane %v3533_v14, 5  ;;  %v12653_v37 = vrot.slane %v3956_v60, 7  ;;  %v12659_v56 = vrot.slane %v3537_v3, 4  ;;  %v12661_v48 = vrot.slane %v3543_v49, 5 }
 0x2a4   : > { %15472 = vst [vmem:[#allocation153_spill] sm:$0xff] %v12643_v63  ;;  %15473 = vst [vmem:[#allocation192_spill] sm:$0xff] %v12645_v17  ;;  %v12649_v2 = vmul.bf16 %v4606_v10, %v15474_v52  ;;  %v15478_v54 = vld [vmem:[#allocation109_spill] sm:$0xff]  ;;  %v12663_v16 = vrot.slane %v3547_v34, 4  ;;  %v5092_v58 = vld [vmem:[#allocation2 + $0x7c] sm:$0xf]  ;;  %9171 = vmatpush3.bf16.msra.mxu1 %v9840_v26 }
 0x2a5   : > { %15476 = vst [vmem:[#allocation122_spill] sm:$0xff] %v12651_v8  ;;  %15477 = vst [vmem:[#allocation252_spill] sm:$0xff] %v12653_v37  ;;  %v12657_v22 = vmul.bf16 %v4607_v35, %v15478_v54  ;;  %v15483_v12 = vld [vmem:[#allocation118_spill] sm:$0xff]  ;;  %v12668_v14 = vrot.slane %v4453_v23, 5  ;;  %v12670_v60 = vrot.slane %v4457_v11, 4  ;;  %v12672_v4 = vrot.slane %v4463_v28, 5 }
 0x2a6   : > { %15475 = vst [vmem:[#allocation181_spill] sm:$0xff] %v12649_v2  ;;  %15480 = vst [vmem:[#allocation253_spill] sm:$0xff] %v12659_v56  ;;  %v12666_v10 = vmul.bf16 %v5091_v7, %v15483_v12  ;;  %v12674_v33 = vrot.slane %v4467_v41, 4  ;;  %v4869_v35 = vshrl.u32 %v12649_v2, 16  ;;  %v735_v34 = vmax.f32 %v12491_v45, 0.0  ;;  %v15488_v3 = vld [vmem:[#allocation30_spill] sm:$0xff] }
 0x2a7   : > { %15479 = vst [vmem:[#allocation109_spill] sm:$0xff] %v12657_v22  ;;  %15481 = vst [vmem:[#allocation254_spill] sm:$0xff] %v12661_v48  ;;  %v2319_v53 = vrot.slane %v15488_v3, 4  ;;  %v4878_v7 = vshrl.u32 %v12657_v22, 16  ;;  %v15489_v23 = vld [vmem:[#allocation136_spill] sm:$0xff]  ;;  %v15491_v11 = vld [vmem:[#allocation193_spill] sm:$0xff] }
 0x2a8   : > { %15482 = vst [vmem:[#allocation255_spill] sm:$0xff] %v12663_v16  ;;  %15484 = vst [vmem:[#allocation118_spill] sm:$0xff] %v12668_v14  ;;  %v12683_v0 = vmul.bf16 %v5092_v58, %v15489_v23  ;;  %v15492_v28 = vld [vmem:[#allocation182_spill] sm:$0xff]  ;;  %v5013_v57 = vld [vmem:[#allocation2 + $0x40] sm:$0xf]  ;;  %v5373_v39 = vshll.u32 %v12666_v10, 16 }
 0x2a9   : > { %15485 = vst [vmem:[#allocation256_spill] sm:$0xff] %v12670_v60  ;;  %15486 = vst [vmem:[#allocation257_spill] sm:$0xff] %v12672_v4  ;;  %v15493_v24 = vshll.u32 %v15492_v28, 16  ;;  %v15494_v49 = vmax.f32 %v12378_v31, 0.0  ;;  %v2327_v3 = vsel %vm10454_vm8, %v2319_v53, %v15495_v21  ;;  %v15496_v2 = vld [vmem:[#allocation33_spill] sm:$0xff]  ;;  %v5377_v58 = vshrl.u32 %v12666_v10, 16 }
 0x2aa   : > { %15487 = vst [vmem:[#allocation258_spill] sm:$0xff] %v12674_v33  ;;  %15490 = vst [vmem:[#allocation30_spill] sm:$0xff] %v12683_v0  ;;  %v2328_v26 = vrot.slane %v15496_v2, 4  ;;  %v3371_v22 = vrot.slane %v3370_v30, 4  ;;  %v15499_v31 = vld [vmem:[#allocation26_spill] sm:$0xff]  ;;  %v15500_v21 = vld [vmem:[#allocation31_spill] sm:$0xff] }
 0x2ab   : > { %v2353_v41 = vor.u32 %v15493_v24, %v15491_v11  ;;  %v8796_v45 = vpack.c.bf16 %v735_v34, %v15494_v49  ;;  %5045 = vst [vmem:[#allocation3 + $0x184] sm:$0xf] %v5013_v57  ;;  %2543 = vst [vmem:[#allocation3 + $0x1b0] sm:$0xf] %v2327_v3  ;;  %v15497_v24 = vor.u32 %v15449_v27, %v15400_v47  ;;  %v15498_v11 = vld [vmem:[#allocation155_spill] sm:$0xff]  ;;  %v3810_v53 = vrot.slane %v15500_v21, 4 }
 0x2ac   : > { %v3801_v6 = vrot.slane %v15498_v11, 4  ;;  %v2336_v49 = vsel %vm10454_vm8, %v2328_v26, %v15499_v31  ;;  %v15501_v2 = vld [vmem:[#allocation34_spill] sm:$0xff]  ;;  %v2346_v9 = vrot.slane %v15468_v32, 4  ;;  %v9847_v10 = vld [vmem:[#allocation9 + $0x1d8] sm:$0xff]   ;;  %v15502_v27 = vld [vmem:[#allocation37_spill] sm:$0xff] }
 0x2ad   : > { %v3361_v28 = vrot.slane %v15497_v24, 4  ;;  %8889 = vst [vmem:[#allocation2 + $0x70] sm:$0xff] %v8796_v45   ;;  %v2337_v57 = vrot.slane %v15501_v2, 4  ;;  %2544 = vst [vmem:[#allocation3 + $0x1d4] sm:$0xf] %v2336_v49  ;;  %v3376_v30 = vsel %vm10432_vm5, %v3371_v22, %v15502_v27  ;;  %v15503_v34 = vld [vmem:[#allocation140_spill] sm:$0xff]  ;;  %v9474_v24 = vpop.f32.mrf.mxu1  ;;  %9276 = vmatprep.subr.bf16.mxu0 %v9847_v10 }
 0x2ae   : > { %v3809_v26 = vsel %vm10454_vm8, %v3801_v6, %v15503_v34  ;;  %v15504_v11 = vld [vmem:[#allocation38_spill] sm:$0xff]  ;;  %v9853_v32 = vld [vmem:[#allocation9 + $0x198] sm:$0xff]   ;;  %v9854_v31 = vld [vmem:[#allocation9 + $0x1d0] sm:$0xff]   ;;  %3620 = vst [vmem:[#allocation3 + $0x194] sm:$0xf] %v3376_v30  ;;  %v2354_v6 = vsel %vm10454_vm8, %v2346_v9, %v2353_v41  ;;  %v12739_v10 = vrot.slane %v4878_v7, 7 }
 0x2af   : > { %v3366_v47 = vsel %vm10432_vm5, %v3361_v28, %v15466_v46  ;;  %v15505_v45 = vor.u32 %v15504_v11, %v15502_v27  ;;  %v15506_v49 = vld [vmem:[#allocation141_spill] sm:$0xff]  ;;  %4041 = vst [vmem:[#allocation3 + $0x174] sm:$0xf] %v3809_v26  ;;  %v2345_v22 = vsel %vm10454_vm8, %v2337_v57, %v12636_v20  ;;  %v15507_v28 = vld [vmem:[#allocation131_spill] sm:$0xff]  ;;  %v9856_v34 = vld [vmem:[#allocation9 + $0x238] sm:$0xff]   ;;  %9277 = vmatpush3.bf16.msra.mxu0 %v9853_v32  ;;  %v5383_v32 = vshll.u32 %v12683_v0, 16 }
 0x2b0   : > { %3619 = vst [vmem:[#allocation3 + $0x170] sm:$0xf] %v3366_v47  ;;  %v3818_v46 = vsel %vm10454_vm8, %v3810_v53, %v15506_v49  ;;  %v15508_v21 = vld [vmem:[#allocation25_spill] sm:$0xff]  ;;  %2545 = vst [vmem:[#allocation3 + $0x1f8] sm:$0xf] %v2345_v22  ;;  %v15511_v26 = vld [vmem:[#allocation198_spill] sm:$0xff]  ;;  %9278 = vmatprep.subr.bf16.mxu0 %v9854_v31  ;;  %9476 = vmatprep.subr.bf16.mxu1 %v9856_v34 }
 0x2b1   : > { %v3381_v3 = vrot.slane %v15505_v45, 4  ;;  %v15509_v2 = vor.u32 %v15507_v28, %v15508_v21  ;;  %4042 = vst [vmem:[#allocation3 + $0x198] sm:$0xf] %v3818_v46  ;;  %2546 = vst [vmem:[#allocation3 + $0x21c] sm:$0xf] %v2354_v6  ;;  %v15510_v47 = vld [vmem:[#allocation133_spill] sm:$0xff] }
 0x2b2   : > { %v3819_v30 = vrot.slane %v15510_v47, 4  ;;  %v15512_v20 = vld [vmem:[#allocation185_spill] sm:$0xff]  ;;  %v3828_v41 = vrot.slane %v15511_v26, 4  ;;  %v9855_v9 = vld [vmem:[#allocation9 + $0x190] sm:$0xff]   ;;  %v12737_v45 = vrot.slane %v4869_v35, 7  ;;  %15515 = vst [vmem:[#allocation182_spill] sm:$0xff] %v12739_v10 }
 0x2b3   : > { %v3391_v27 = vrot.slane %v15509_v2, 4  ;;  %v3386_v53 = vsel %vm10432_vm5, %v3381_v3, %v15508_v21  ;;  %v15513_v57 = vshll.u32 %v15512_v20, 16  ;;  %v15516_v49 = vld [vmem:[#allocation194_spill] sm:$0xff]  ;;  %v15517_v3 = vld [vmem:[#allocation199_spill] sm:$0xff]  ;;  %v4075_v21 = vld [vmem:[#allocation2 + $0x40] sm:$0xf]  ;;  %9279 = vmatpush3.bf16.msra.mxu0 %v9855_v9 }
 0x2b4   : > { %15514 = vst [vmem:[#allocation136_spill] sm:$0xff] %v12737_v45  ;;  %3621 = vst [vmem:[#allocation3 + $0x1b8] sm:$0xf] %v3386_v53  ;;  %v15518_v22 = vld [vmem:[#allocation186_spill] sm:$0xff]  ;;  %v4076_v2 = vld [vmem:[#allocation2 + $0x44] sm:$0xf] }
 0x2b5   : > { %v3826_v11 = vor.u32 %v15513_v57, %v15511_v26  ;;  %v3396_v46 = vsel %vm10432_vm5, %v3391_v27, %v15516_v49  ;;  %v15519_v6 = vshll.u32 %v15518_v22, 16  ;;  %v12747_v47 = vrot.slane %v5373_v39, 5  ;;  %v695_v26 = vpop.f32.mrf.mxu1  ;;  %4107 = vst [vmem:[#allocation3 + $0x1c0] sm:$0xf] %v4075_v21  ;;  %4108 = vst [vmem:[#allocation3 + $0x1e4] sm:$0xf] %v4076_v2 }
 0x2b6   : > { %3622 = vst [vmem:[#allocation3 + $0x1dc] sm:$0xf] %v3396_v46  ;;  %v12753_v27 = vrot.slane %v5377_v58, 4  ;;  %v12758_v39 = vadd.f32 %v12488_v61, %v9474_v24  ;;  %v12761_v53 = vadd.f32 %v12488_v61, %v695_v26  ;;  %v15522_v34 = vshll.u32 %v12568_v59, 16  ;;  %v1571_v46 = vld [vmem:[#allocation2 + $0x74] sm:$0xf] }
 0x2b7   : > { %v3835_v28 = vor.u32 %v15519_v6, %v15517_v3  ;;  %15520 = vst [vmem:[#allocation132_spill] sm:$0xff] %v12747_v47  ;;  %v3827_v7 = vsel %vm10454_vm8, %v3819_v30, %v3826_v11  ;;  %v15524_v58 = vshll.u32 %v12584_v51, 16  ;;  %v15526_v24 = vshll.u32 %v12599_v5, 16  ;;  %v2653_v22 = vld [vmem:[#allocation2 + $0x70] sm:$0xf]  ;;  %v9475_v0 = vpop.f32.mrf.mxu1  ;;  %v15546_v48 = vld [vmem:[#allocation197_spill] sm:$0xff] }
 0x2b8   : > { %15521 = vst [vmem:[#allocation33_spill] sm:$0xff] %v12753_v27  ;;  %4043 = vst [vmem:[#allocation3 + $0x1bc] sm:$0xf] %v3827_v7  ;;  %v12768_v30 = vor.u32 %v15522_v34, %v12641_v13  ;;  %v15528_v59 = vshll.u32 %v12611_v38, 16  ;;  %v12789_v51 = vmul.bf16 %v12581_v29, %v1571_v46  ;;  %v2654_v21 = vld [vmem:[#allocation2 + $0x74] sm:$0xf]  ;;  %v3246_v5 = vmul.bf16 %v12620_v15, %v2653_v22 }
 0x2b9   : > { %v3836_v31 = vsel %vm10454_vm8, %v3828_v41, %v3835_v28  ;;  %v12773_v57 = vor.u32 %v15524_v58, %v12643_v63  ;;  %v12778_v11 = vor.u32 %v15526_v24, %v12645_v17  ;;  %v1570_v41 = vld [vmem:[#allocation2 + $0x70] sm:$0xf]  ;;  %v3667_v7 = vld [vmem:[#allocation2 + $0x74] sm:$0xf]  ;;  %v12792_v26 = vrot.slane %v5383_v32, 5  ;;  %v15599_v17 = vld [vmem:[#allocation80_spill] sm:$0xff] }
 0x2ba   : > { %15523 = vst [vmem:[#allocation155_spill] sm:$0xff] %v12768_v30  ;;  %4044 = vst [vmem:[#allocation3 + $0x1e0] sm:$0xf] %v3836_v31  ;;  %v12783_v6 = vor.u32 %v15528_v59, %v12653_v37  ;;  %v12786_v28 = vmul.bf16 %v12576_v18, %v1570_v41  ;;  %v3666_v2 = vld [vmem:[#allocation2 + $0x70] sm:$0xf]  ;;  %v3247_v9 = vmul.bf16 %v12588_v42, %v2654_v21  ;;  %v12799_v38 = vadd.s32 248, %v15305_v40 }
 0x2bb   : > { %15525 = vst [vmem:[#allocation26_spill] sm:$0xff] %v12773_v57  ;;  %15527 = vst [vmem:[#allocation31_spill] sm:$0xff] %v12778_v11  ;;  %v12796_v31 = vmul.bf16 %v3666_v2, %v15474_v52  ;;  %v12803_v58 = vmul.bf16 %v3667_v7, %v15478_v54  ;;  %v4151_v24 = vld [vmem:[#allocation2 + $0x70] sm:$0xf]  ;;  %v2456_v22 = vshrl.u32 %v12789_v51, 16  ;;  %v2123_v40 = vshrl.u32 %v12518_v62, 16 }
 0x2bc   : > { %15529 = vst [vmem:[#allocation34_spill] sm:$0xff] %v12783_v6  ;;  %15530 = vst [vmem:[#allocation37_spill] sm:$0xff] %v12792_v26  ;;  %v2447_v34 = vshrl.u32 %v12786_v28, 16  ;;  %v4152_v59 = vld [vmem:[#allocation2 + $0x74] sm:$0xf]  ;;  %v3513_v21 = vshll.u32 %v3246_v5, 16  ;;  %v707_v36 = vadd.f32 %v12488_v61, %v9475_v0  ;;  %v1815_v62 = vrot.slane %v12508_v55, %v15436_v44 }
 0x2bd   : > { %15531 = vst [vmem:[#allocation140_spill] sm:$0xff] %v12803_v58  ;;  %v3517_v2 = vshrl.u32 %v3246_v5, 16  ;;  %v3523_v35 = vshll.u32 %v3247_v9, 16  ;;  %v3527_v20 = vshrl.u32 %v3247_v9, 16  ;;  %v4604_v54 = vld [vmem:[#allocation2 + $0x70] sm:$0xf]  ;;  %v12824_v9 = vmul.bf16 %v4151_v24, %v15483_v12 }
 0x2be   : > { %v12815_v41 = vrot.slane %v2447_v34, 7  ;;  %v3929_v32 = vshrl.u32 %v12796_v31, 16  ;;  %v5089_v26 = vld [vmem:[#allocation2 + $0x70] sm:$0xf]  ;;  %v3938_v5 = vshrl.u32 %v12803_v58, 16  ;;  %v12827_v34 = vmul.bf16 %v4152_v59, %v15489_v23  ;;  %v15535_v0 = vld [vmem:[#allocation120_spill] sm:$0xff] }
 0x2bf   : > { %v5090_v7 = vld [vmem:[#allocation2 + $0x74] sm:$0xf]  ;;  %v12830_v46 = vmul.bf16 %v4604_v54, %v12210_v25  ;;  %v12835_v4 = vrot.slane %v2456_v22, 7  ;;  %v4433_v24 = vshll.u32 %v12824_v9, 16  ;;  %v12840_v23 = vmul.bf16 %v5089_v26, %v12220_v50  ;;  %v9777_v55 = vld [vmem:[#allocation3 + $0x1fc] ss:$36 sps:$4 sm:$0xff]  }
 0x2c0   : > { %v9769_v27 = vld [vmem:[#allocation3 + $0x1b4] ss:$36 sps:$4 sm:$0xff]   ;;  %v12842_v25 = vrot.slane %v3513_v21, 5  ;;  %v12844_v59 = vrot.slane %v3517_v2, 4  ;;  %v12846_v54 = vrot.slane %v3523_v35, 5  ;;  %v12849_v33 = vmul.bf16 %v5090_v7, %v15535_v0 }
 0x2c1   : > { %15532 = vst [vmem:[#allocation38_spill] sm:$0xff] %v12830_v46  ;;  %v9771_v19 = vld [vmem:[#allocation3 + $0x174] ss:$36 sps:$4 sm:$0xff]   ;;  %7080 = vmatprep.mubr.bf16.mxu1 %v9769_v27  ;;  %v12851_v22 = vrot.slane %v3527_v20, 4  ;;  %v12853_v12 = vrot.slane %v3929_v32, 7  ;;  %v12855_v60 = vrot.slane %v3938_v5, 7  ;;  %v698_v20 = vpop.f32.mrf.mxu1 }
 0x2c2   : > { %v9774_v47 = vld [vmem:[#allocation3 + $0x1b0] ss:$36 sps:$4 sm:$0xff]   ;;  %15533 = vst [vmem:[#allocation141_spill] sm:$0xff] %v12844_v59  ;;  %15534 = vst [vmem:[#allocation131_spill] sm:$0xff] %v12846_v54  ;;  %7233 = vmatprep.mubr.bf16.mxu0 %v9771_v19  ;;  %v9858_v27 = vld [vmem:[#allocation9 + $0x1c8] sm:$0xff]   ;;  %v4437_v26 = vshrl.u32 %v12824_v9, 16  ;;  %v699_v35 = vadd.f32 %v12488_v61, %v698_v20 }
 0x2c3   : > { %v9775_v52 = vld [vmem:[#allocation3 + $0x170] ss:$36 sps:$4 sm:$0xff]   ;;  %7081 = vmatmul.mubr.bf16.gmra.mxu1 %v9774_v47  ;;  %15536 = vst [vmem:[#allocation25_spill] sm:$0xff] %v12851_v22  ;;  %v9779_v47 = vld [vmem:[#allocation3 + $0x1bc] ss:$36 sps:$4 sm:$0xff]   ;;  %v12862_v2 = vrot.slane %v4433_v24, 5  ;;  %9280 = vmatprep.subr.bf16.mxu0 %v9858_v27 }
 0x2c4   : > { %7234 = vmatmul.mubr.bf16.gmra.mxu0 %v9775_v52  ;;  %7088 = vmatprep.mubr.bf16.mxu1 %v9777_v55  ;;  %v5353_v7 = vshll.u32 %v12840_v23, 16  ;;  %v5357_v52 = vshrl.u32 %v12840_v23, 16  ;;  %v5363_v5 = vshll.u32 %v12849_v33, 16  ;;  %v741_v9 = vmax.f32 %v707_v36, 0.0  ;;  %v15538_v55 = vld [vmem:[#allocation181_spill] sm:$0xff]  ;;  %v15545_v20 = vld [vmem:[#allocation196_spill] sm:$0xff] }
 0x2c5   : > { %15537 = vst [vmem:[#allocation133_spill] sm:$0xff] %v12862_v2  ;;  %7241 = vmatprep.mubr.bf16.mxu0 %v9779_v47  ;;  %v1156_v0 = vand.u32 15, %v12799_v38  ;;  %v2125_v50 = vrot.slane %v2123_v40, 4  ;;  %v15539_v19 = vshll.u32 %v15538_v55, 16  ;;  %v5367_v24 = vshrl.u32 %v12849_v33, 16  ;;  %v15542_v38 = vld [vmem:[#allocation195_spill] sm:$0xff] }
 0x2c6   : > { %v2129_v32 = vshll.u32 %v1815_v62, 16  ;;  %v9781_v14 = vld [vmem:[#allocation3 + $0x1f8] ss:$36 sps:$4 sm:$0xff]   ;;  %v2589_v23 = vld [vmem:[#allocation2 + $0x70] sm:$0xf]  ;;  %v15541_v27 = vmax.f32 %v12758_v39, 0.0  ;;  %v3400_v40 = vor.u32 %v15542_v38, %v15516_v49  ;;  %v3410_v39 = vor.u32 %v15546_v48, %v15545_v20 }
 0x2c7   : > { %v12872_v21 = vor.u32 %v15539_v19, %v12737_v45  ;;  %vm1462_vm9 = vcmp.lt.s32.totalorder %v1156_v0, 15  ;;  %v2133_v36 = vshrl.u32 %v1815_v62, 16  ;;  %v2590_v47 = vld [vmem:[#allocation2 + $0x74] sm:$0xf]  ;;  %2621 = vst [vmem:[#allocation3 + $0x3ac] sm:$0xf] %v2589_v23 }
 0x2c8   : > { %v8811_v2 = vpack.c.bf16 %v741_v9, %v15541_v27  ;;  %v9861_v55 = vld [vmem:[#allocation9 + $0x188] sm:$0xff]   ;;  %v9865_v19 = vld [vmem:[#allocation9 + $0x1c0] sm:$0xff]   ;;  %v15544_v33 = vld [vmem:[#allocation216_spill] sm:$0xff]  ;;  %v12882_v6 = vrot.slane %v2129_v32, 5  ;;  %2622 = vst [vmem:[#allocation3 + $0x3d0] sm:$0xf] %v2590_v47 }
 0x2c9   : > { %15540 = vst [vmem:[#allocation198_spill] sm:$0xff] %v12872_v21  ;;  %v15543_v21 = vmov 0.0   ;;  %v2126_v37 = vor.u32 %v2125_v50, %v15544_v33  ;;  %v9782_v61 = vld [vmem:[#allocation3 + $0x1b8] ss:$36 sps:$4 sm:$0xff]   ;;  %v4079_v9 = vld [vmem:[#allocation2 + $0x50] sm:$0xf]  ;;  %9281 = vmatpush3.bf16.msra.mxu0 %v9861_v55 }
 0x2ca   : > { %v8464_v45 = vsel %vm1462_vm9, 1.0, %v15543_v21  ;;  %v12886_v62 = vrot.slane %v4437_v26, 4  ;;  %v12888_v0 = vrot.slane %v5353_v7, 5  ;;  %8892 = vst [vmem:[#allocation2 + $0x88] sm:$0xff] %v8811_v2   ;;  %v15549_v49 = vmov 1.0   ;;  %v9866_v21 = vld [vmem:[#allocation9 + $0x180] sm:$0xff]   ;;  %9282 = vmatprep.subr.bf16.mxu0 %v9865_v19 }
 0x2cb   : > { %v1542_v23 = vpack.c.bf16 %v8464_v45, %v15549_v49  ;;  %v2135_v27 = vrot.slane %v2133_v36, 4  ;;  %7089 = vmatmul.mubr.bf16.gmra.mxu1 %v9781_v14  ;;  %v4080_v50 = vld [vmem:[#allocation2 + $0x54] sm:$0xf]  ;;  %4111 = vst [vmem:[#allocation3 + $0x250] sm:$0xf] %v4079_v9  ;;  %v12891_v32 = vrot.slane %v5357_v52, 4 }
 0x2cc   : > { %15547 = vst [vmem:[#allocation185_spill] sm:$0xff] %v12886_v62  ;;  %15548 = vst [vmem:[#allocation194_spill] sm:$0xff] %v12888_v0  ;;  %v12893_v38 = vrot.slane %v5363_v5, 5  ;;  %v739_v48 = vmax.f32 %v699_v35, 0.0  ;;  %7242 = vmatmul.mubr.bf16.gmra.mxu0 %v9782_v61  ;;  %v15551_v47 = vld [vmem:[#allocation193_spill] sm:$0xff]  ;;  %v12896_v2 = vrot.slane %v5367_v24, 4 }
 0x2cd   : > { %v2355_v26 = vrot.slane %v15551_v47, 4  ;;  %4112 = vst [vmem:[#allocation3 + $0x274] sm:$0xf] %v4080_v50  ;;  %v5017_v7 = vld [vmem:[#allocation2 + $0x50] sm:$0xf]  ;;  %v2136_v45 = vor.u32 %v2135_v27, %v12882_v6  ;;  %v15552_v14 = vld [vmem:[#allocation18_spill] sm:$0xff]  ;;  %v2899_v55 = vrot.slane %v1542_v23, %v15436_v44  ;;  %9283 = vmatpush3.bf16.msra.mxu0 %v9866_v21 }
 0x2ce   : > { %15550 = vst [vmem:[#allocation199_spill] sm:$0xff] %v12893_v38  ;;  %v2892_v36 = vrot.slane %v1542_v23, %v15552_v14  ;;  %v5018_v33 = vld [vmem:[#allocation2 + $0x54] sm:$0xf]  ;;  %5049 = vst [vmem:[#allocation3 + $0x214] sm:$0xf] %v5017_v7  ;;  %v2127_v5 = vrot.slane %v2126_v37, 4 }
 0x2cf   : > { %v4605_v52 = vld [vmem:[#allocation2 + $0x74] sm:$0xf]  ;;  %v15553_v35 = vmax.f32 %v12761_v53, 0.0  ;;  %v15555_v49 = vld [vmem:[#allocation162_spill] sm:$0xff]  ;;  %5050 = vst [vmem:[#allocation3 + $0x238] sm:$0xf] %v5018_v33 }
 0x2d0   : > { %v15554_v9 = vld [vmem:[#allocation171_spill] sm:$0xff]  ;;  %v2364_v24 = vrot.slane %v15555_v49, 4  ;;  %v3170_v47 = vshrl.u32 %v2892_v36, 16  ;;  %v3173_v14 = vshll.u32 %v2892_v36, 16  ;;  %v3179_v62 = vshrl.u32 %v2899_v55, 16  ;;  %v15558_v53 = vld [vmem:[#allocation172_spill] sm:$0xff] }
 0x2d1   : > { %v8806_v61 = vpack.c.bf16 %v739_v48, %v15553_v35  ;;  %v2363_v19 = vsel %vm10454_vm8, %v2355_v26, %v15554_v9  ;;  %v15556_v50 = vld [vmem:[#allocation107_spill] sm:$0xff]  ;;  %v5021_v44 = vld [vmem:[#allocation2 + $0x60] sm:$0xf]  ;;  %v12908_v23 = vrot.slane %v2136_v45, 4  ;;  %v3182_v37 = vshll.u32 %v2899_v55, 16  ;;  %v15562_v55 = vld [vmem:[#allocation150_spill] sm:$0xff] }
 0x2d2   : > { %v3168_v27 = vrot.slane %v15556_v50, 4  ;;  %2547 = vst [vmem:[#allocation3 + $0x240] sm:$0xf] %v2363_v19  ;;  %v2372_v48 = vsel %vm10454_vm8, %v2364_v24, %v15558_v53  ;;  %v3401_v26 = vrot.slane %v3400_v40, 4  ;;  %v5022_v7 = vld [vmem:[#allocation2 + $0x64] sm:$0xf] }
 0x2d3   : > { %15557 = vst [vmem:[#allocation186_spill] sm:$0xff] %v12908_v23  ;;  %8891 = vst [vmem:[#allocation2 + $0x80] sm:$0xff] %v8806_v61   ;;  %v3172_v33 = vrot.slane %v3170_v47, 7  ;;  %v3181_v35 = vrot.slane %v3179_v62, 7  ;;  %v3411_v9 = vrot.slane %v3410_v39, 4  ;;  %v3837_v36 = vrot.slane %v15517_v3, 4 }
 0x2d4   : > { %5053 = vst [vmem:[#allocation3 + $0x2a4] sm:$0xf] %v5021_v44  ;;  %2548 = vst [vmem:[#allocation3 + $0x264] sm:$0xf] %v2372_v48  ;;  %v15559_v21 = vld [vmem:[#allocation109_spill] sm:$0xff]  ;;  %v12920_v61 = vmul.bf16 %v4605_v52, %v15562_v55  ;;  %v3406_v62 = vsel %vm10432_vm5, %v3401_v26, %v15545_v20  ;;  %v15565_v39 = vld [vmem:[#allocation76_spill] sm:$0xff]  ;;  %v12935_v55 = vsel %vm10432_vm5, %v2127_v5, %v12882_v6 }
 0x2d5   : > { %5054 = vst [vmem:[#allocation3 + $0x2c8] sm:$0xf] %v5022_v7  ;;  %v15560_v45 = vshll.u32 %v15559_v21, 16  ;;  %v2659_v49 = vld [vmem:[#allocation2 + $0x88] sm:$0x1]  ;;  %v15564_v50 = vld [vmem:[#allocation41_spill] sm:$0xff]  ;;  %v3175_v44 = vor.u32 %v3173_v14, %v3172_v33  ;;  %v3184_v48 = vor.u32 %v3182_v37, %v3181_v35 }
 0x2d6   : > { %15563 = vst [vmem:[#allocation181_spill] sm:$0xff] %v12920_v61  ;;  %v3672_v24 = vld [vmem:[#allocation2 + $0x88] sm:$0xf]  ;;  %v3673_v40 = vld [vmem:[#allocation2 + $0x8c] sm:$0xf]  ;;  %v15566_v47 = vshll.u32 %v15565_v39, 16 }
 0x2d7   : > { %v12917_v19 = vor.u32 %v15560_v45, %v12739_v10  ;;  %v3177_v53 = vrot.slane %v3172_v33, 4  ;;  %v12930_v7 = vrot.slane %v3181_v35, 4  ;;  %v4093_v21 = vld [vmem:[#allocation2 + $0x88] sm:$0xf]  ;;  %v4094_v52 = vld [vmem:[#allocation2 + $0x8c] sm:$0xf]  ;;  %v12953_v5 = vmul.bf16 %v3672_v24, %v12935_v55 }
 0x2d8   : > { %v12928_v3 = vor.u32 %v15566_v47, %v15564_v50  ;;  %v4612_v45 = vld [vmem:[#allocation2 + $0x90] sm:$0xf]  ;;  %3623 = vst [vmem:[#allocation3 + $0x200] sm:$0xf] %v3406_v62  ;;  %v4157_v20 = vld [vmem:[#allocation2 + $0x88] sm:$0xf]  ;;  %v12967_v24 = vsel %vm10454_vm8, %v3168_v27, %v3175_v44  ;;  %v5370_v27 = vor.u32 %v12896_v2, %v12893_v38 }
 0x2d9   : > { %15561 = vst [vmem:[#allocation120_spill] sm:$0xff] %v12917_v19  ;;  %15567 = vst [vmem:[#allocation195_spill] sm:$0xff] %v12930_v7  ;;  %v4158_v26 = vld [vmem:[#allocation2 + $0x8c] sm:$0xf]  ;;  %v4610_v19 = vld [vmem:[#allocation2 + $0x88] sm:$0xf]  ;;  %v12950_v6 = vsel %vm10454_vm8, %v3177_v53, %v3184_v48 }
 0x2da   : > { %4125 = vst [vmem:[#allocation3 + $0x448] sm:$0xf] %v4093_v21  ;;  %4126 = vst [vmem:[#allocation3 + $0x46c] sm:$0xf] %v4094_v52  ;;  %v15568_v39 = vld [vmem:[#allocation166_spill] sm:$0xff]  ;;  %v15570_v35 = vld [vmem:[#allocation112_spill] sm:$0xff]  ;;  %v12956_v21 = vmul.bf16 %v3673_v40, %v12908_v23 }
 0x2db   : > { %v3416_v14 = vsel %vm10432_vm5, %v3411_v9, %v15568_v39  ;;  %v15569_v37 = vld [vmem:[#allocation178_spill] sm:$0xff]  ;;  %v15571_v62 = vld [vmem:[#allocation48_spill] sm:$0xff]  ;;  %15573 = vst [vmem:[#allocation216_spill] sm:$0xff] %v12950_v6  ;;  %v4860_v56 = vshrl.u32 %v12920_v61, 16  ;;  %15577 = vst [vmem:[#allocation196_spill] sm:$0xff] %v12967_v24  ;;  %v15579_v11 = vshll.u32 %v12827_v34, 16 }
 0x2dc   : > { %v3845_v33 = vsel %vm10454_vm8, %v3837_v36, %v15569_v37  ;;  %v15572_v47 = vshll.u32 %v15571_v62, 16  ;;  %v4611_v9 = vld [vmem:[#allocation2 + $0x8c] sm:$0xf]  ;;  %v5031_v52 = vld [vmem:[#allocation2 + $0x88] sm:$0xf]  ;;  %v15574_v36 = vld [vmem:[#allocation113_spill] sm:$0xff] }
 0x2dd   : > { %v5032_v16 = vld [vmem:[#allocation2 + $0x8c] sm:$0xf]  ;;  %3624 = vst [vmem:[#allocation3 + $0x224] sm:$0xf] %v3416_v14  ;;  %4045 = vst [vmem:[#allocation3 + $0x204] sm:$0xf] %v3845_v33  ;;  %v5360_v14 = vor.u32 %v12891_v32, %v12888_v0  ;;  %v3252_v33 = vmul.bf16 %v12930_v7, %v2659_v49 }
 0x2de   : > { %v12946_v10 = vor.u32 %v15572_v47, %v15570_v35  ;;  %v15575_v37 = vld [vmem:[#allocation79_spill] sm:$0xff]  ;;  %5063 = vst [vmem:[#allocation3 + $0x40c] sm:$0xf] %v5031_v52  ;;  %5064 = vst [vmem:[#allocation3 + $0x430] sm:$0xf] %v5032_v16  ;;  %v12977_v53 = vrot.slane %v15579_v11, 5  ;;  %v12985_v16 = vmul.bf16 %v4612_v45, %v12935_v55 }
 0x2df   : > { %v15576_v62 = vshll.u32 %v15575_v37, 16  ;;  %v15578_v40 = vld [vmem:[#allocation215_spill] sm:$0xff]  ;;  %v4190_v37 = vmul.bf16 %v4157_v20, %v12967_v24  ;;  %v15581_v44 = vld [vmem:[#allocation57_spill] sm:$0xff]  ;;  %v15583_v32 = vshrl.u32 %v12827_v34, 16  ;;  %v15585_v20 = vshrl.u32 %v12830_v46, 16 }
 0x2e0   : > { %v4643_v48 = vmul.bf16 %v4610_v19, %v15578_v40  ;;  %15580 = vst [vmem:[#allocation197_spill] sm:$0xff] %v12977_v53  ;;  %v12982_v19 = vmul.bf16 %v4611_v9, %v15581_v44  ;;  %15582 = vst [vmem:[#allocation193_spill] sm:$0xff] %v12985_v16  ;;  %v3983_v11 = vshrl.u32 %v12953_v5, 16  ;;  %v3992_v52 = vshrl.u32 %v12956_v21, 16  ;;  %v5095_v7 = vld [vmem:[#allocation2 + $0x88] sm:$0xf] }
 0x2e1   : > { %v12961_v47 = vor.u32 %v15576_v62, %v15574_v36  ;;  %v4191_v62 = vmul.bf16 %v4158_v26, %v12950_v6  ;;  %v12989_v49 = vrot.slane %v15583_v32, 4  ;;  %v12993_v26 = vrot.slane %v15585_v20, 7  ;;  %v1575_v8 = vld [vmem:[#allocation2 + $0x84] sm:$0xf]  ;;  %v2657_v63 = vld [vmem:[#allocation2 + $0x80] sm:$0xf] }
 0x2e2   : > { %v12997_v0 = vrot.slane %v4860_v56, 7  ;;  %v4493_v2 = vshll.u32 %v4190_v37, 16  ;;  %v4497_v9 = vshrl.u32 %v4190_v37, 16  ;;  %v4905_v38 = vshrl.u32 %v4643_v48, 16  ;;  %v1574_v56 = vld [vmem:[#allocation2 + $0x80] sm:$0xf] }
 0x2e3   : > { %15584 = vst [vmem:[#allocation18_spill] sm:$0xff] %v12989_v49  ;;  %15586 = vst [vmem:[#allocation171_spill] sm:$0xff] %v12993_v26  ;;  %v12999_v45 = vrot.slane %v5360_v14, 4  ;;  %v13001_v61 = vshll.u32 %v3252_v33, 16  ;;  %v4503_v34 = vshll.u32 %v4191_v62, 16  ;;  %v4507_v32 = vshrl.u32 %v4191_v62, 16 }
 0x2e4   : > { %15587 = vst [vmem:[#allocation162_spill] sm:$0xff] %v12997_v0  ;;  %v13003_v49 = vrot.slane %v5370_v27, 4  ;;  %v3986_v20 = vshll.u32 %v12953_v5, 16  ;;  %v4914_v46 = vshrl.u32 %v12982_v19, 16  ;;  %v13008_v0 = vrot.slane %v3983_v11, 7  ;;  %v15598_v16 = vld [vmem:[#allocation51_spill] sm:$0xff] }
 0x2e5   : > { %15588 = vst [vmem:[#allocation107_spill] sm:$0xff] %v12999_v45  ;;  %15589 = vst [vmem:[#allocation172_spill] sm:$0xff] %v13001_v61  ;;  %v3994_v37 = vrot.slane %v3992_v52, 7  ;;  %v3995_v53 = vshll.u32 %v12956_v21, 16  ;;  %v5096_v14 = vld [vmem:[#allocation2 + $0x8c] sm:$0xf] }
 0x2e6   : > { %15590 = vst [vmem:[#allocation109_spill] sm:$0xff] %v13003_v49  ;;  %v15591_v45 = vld [vmem:[#allocation115_spill] sm:$0xff]  ;;  %v13014_v62 = vrot.slane %v4493_v2, 5  ;;  %v13016_v27 = vrot.slane %v4497_v9, 4  ;;  %v13018_v5 = vrot.slane %v4905_v38, 7  ;;  %v4908_v49 = vshll.u32 %v4643_v48, 16 }
 0x2e7   : > { %v13012_v33 = vmul.bf16 %v5095_v7, %v15591_v45  ;;  %v13021_v11 = vrot.slane %v4503_v34, 5  ;;  %v13023_v52 = vrot.slane %v4507_v32, 4  ;;  %v9783_v21 = vld [vmem:[#allocation3 + $0x244] ss:$36 sps:$4 sm:$0xff]   ;;  %v15600_v7 = vshll.u32 %v15599_v17, 16  ;;  %v15603_v22 = vld [vmem:[#allocation63_spill] sm:$0xff] }
 0x2e8   : > { %15593 = vst [vmem:[#allocation41_spill] sm:$0xff] %v13014_v62  ;;  %15594 = vst [vmem:[#allocation76_spill] sm:$0xff] %v13016_v27  ;;  %v13030_v2 = vrot.slane %v4914_v46, 7  ;;  %v4917_v9 = vshll.u32 %v12982_v19, 16  ;;  %v2658_v38 = vld [vmem:[#allocation2 + $0x84] sm:$0xf]  ;;  %v13038_v32 = vor.u32 %v3986_v20, %v13008_v0  ;;  %v13040_v13 = vor.u32 %v3995_v53, %v3994_v37  ;;  %7096 = vmatprep.mubr.bf16.mxu1 %v9783_v21 }
 0x2e9   : > { %15592 = vst [vmem:[#allocation150_spill] sm:$0xff] %v13012_v33  ;;  %15595 = vst [vmem:[#allocation166_spill] sm:$0xff] %v13018_v5  ;;  %v13028_v57 = vor.u32 %v15600_v7, %v15598_v16  ;;  %v9790_v30 = vld [vmem:[#allocation3 + $0x240] ss:$36 sps:$4 sm:$0xff]   ;;  %v15602_v48 = vld [vmem:[#allocation98_spill] sm:$0xff]  ;;  %v5413_v17 = vshll.u32 %v13012_v33, 16  ;;  %v13044_v46 = vmul.bf16 %v12935_v55, %v1574_v56  ;;  %v13049_v54 = vor.u32 %v4908_v49, %v13018_v5 }
 0x2ea   : > { %15596 = vst [vmem:[#allocation178_spill] sm:$0xff] %v13021_v11  ;;  %15597 = vst [vmem:[#allocation112_spill] sm:$0xff] %v13023_v52  ;;  %v15604_v26 = vld [vmem:[#allocation56_spill] sm:$0xff]  ;;  %v15605_v34 = vld [vmem:[#allocation50_spill] sm:$0xff]  ;;  %v13055_v53 = vmul.bf16 %v12908_v23, %v1575_v8  ;;  %7097 = vmatmul.mubr.bf16.gmra.mxu1 %v9790_v30  ;;  %v3250_v49 = vmul.bf16 %v12967_v24, %v2657_v63  ;;  %v13063_v8 = vor.u32 %v4917_v9, %v13030_v2 }
 0x2eb   : > { %15601 = vst [vmem:[#allocation48_spill] sm:$0xff] %v13030_v2  ;;  %v3670_v7 = vld [vmem:[#allocation2 + $0x80] sm:$0xf]  ;;  %15606 = vst [vmem:[#allocation113_spill] sm:$0xff] %v13049_v54  ;;  %v15607_v61 = vld [vmem:[#allocation246_spill] sm:$0xff]  ;;  %v2483_v59 = vshrl.u32 %v13044_v46, 16 }
 0x2ec   : > { %v2593_v19 = vld [vmem:[#allocation2 + $0x80] sm:$0xf]  ;;  %v13052_v58 = vmul.bf16 %v5096_v14, %v15607_v61  ;;  %v3671_v20 = vld [vmem:[#allocation2 + $0x84] sm:$0xf]  ;;  %15609 = vst [vmem:[#allocation215_spill] sm:$0xff] %v13063_v8  ;;  %v2492_v30 = vshrl.u32 %v13055_v53, 16 }
 0x2ed   : > { %v2594_v37 = vld [vmem:[#allocation2 + $0x84] sm:$0xf]  ;;  %2625 = vst [vmem:[#allocation3 + $0x43c] sm:$0xf] %v2593_v19  ;;  %v4083_v55 = vld [vmem:[#allocation2 + $0x60] sm:$0xf]  ;;  %v3251_v19 = vmul.bf16 %v12950_v6, %v2658_v38  ;;  %v13073_v9 = vmul.bf16 %v3671_v20, %v15581_v44 }
 0x2ee   : > { %15608 = vst [vmem:[#allocation79_spill] sm:$0xff] %v13052_v58  ;;  %2626 = vst [vmem:[#allocation3 + $0x460] sm:$0xf] %v2594_v37  ;;  %v4084_v14 = vld [vmem:[#allocation2 + $0x64] sm:$0xf]  ;;  %v13068_v58 = vmul.bf16 %v3670_v7, %v15578_v40  ;;  %v13070_v63 = vrot.slane %v5413_v17, 5 }
 0x2ef   : > { %4115 = vst [vmem:[#allocation3 + $0x2e0] sm:$0xf] %v4083_v55  ;;  %v4155_v56 = vld [vmem:[#allocation2 + $0x80] sm:$0xf]  ;;  %v4156_v54 = vld [vmem:[#allocation2 + $0x84] sm:$0xf] }
 0x2f0   : > { %v4608_v21 = vld [vmem:[#allocation2 + $0x80] sm:$0xf]  ;;  %4116 = vst [vmem:[#allocation3 + $0x304] sm:$0xf] %v4084_v14  ;;  %v5025_v33 = vld [vmem:[#allocation2 + $0x70] sm:$0xf] }
 0x2f1   : > { %v5026_v23 = vld [vmem:[#allocation2 + $0x74] sm:$0xf]  ;;  %15610 = vst [vmem:[#allocation57_spill] sm:$0xff] %v13070_v63  ;;  %v3553_v37 = vshll.u32 %v3250_v49, 16  ;;  %v3557_v55 = vshrl.u32 %v3250_v49, 16  ;;  %v3563_v7 = vshll.u32 %v3251_v19, 16 }
 0x2f2   : > { %v4609_v24 = vld [vmem:[#allocation2 + $0x84] sm:$0xf]  ;;  %v5093_v2 = vld [vmem:[#allocation2 + $0x80] sm:$0xf]  ;;  %5057 = vst [vmem:[#allocation3 + $0x334] sm:$0xf] %v5025_v33 }
 0x2f3   : > { %v5094_v8 = vld [vmem:[#allocation2 + $0x84] sm:$0xf]  ;;  %5058 = vst [vmem:[#allocation3 + $0x358] sm:$0xf] %v5026_v23  ;;  %v3567_v14 = vshrl.u32 %v3251_v19, 16  ;;  %v13077_v5 = vrot.slane %v2483_v59, 7  ;;  %v4188_v59 = vmul.bf16 %v4155_v56, %v15591_v45 }
 0x2f4   : > { %v4087_v6 = vld [vmem:[#allocation2 + $0x70] sm:$0xf]  ;;  %v13079_v17 = vrot.slane %v2492_v30, 7  ;;  %v13081_v49 = vrot.slane %v3553_v37, 5  ;;  %v3965_v44 = vshrl.u32 %v13068_v58, 16  ;;  %v13084_v63 = vrot.slane %v3557_v55, 4 }
 0x2f5   : > { %v4088_v20 = vld [vmem:[#allocation2 + $0x74] sm:$0xf]  ;;  %4119 = vst [vmem:[#allocation3 + $0x370] sm:$0xf] %v4087_v6  ;;  %v13086_v23 = vrot.slane %v3563_v7, 5  ;;  %v3974_v38 = vshrl.u32 %v13073_v9, 16  ;;  %v4189_v30 = vmul.bf16 %v4156_v54, %v15607_v61  ;;  %v13095_v37 = vmul.bf16 %v4608_v21, %v12576_v18 }
 0x2f6   : > { %4120 = vst [vmem:[#allocation3 + $0x394] sm:$0xf] %v4088_v20  ;;  %v13090_v19 = vrot.slane %v3567_v14, 4  ;;  %v13098_v6 = vmul.bf16 %v4609_v24, %v12581_v29  ;;  %v5126_v55 = vmul.bf16 %v5093_v2, %v12620_v15  ;;  %v5127_v7 = vmul.bf16 %v5094_v8, %v12588_v42  ;;  %v15612_v33 = vld [vmem:[#allocation170_spill] sm:$0xff] }
 0x2f7   : > { %v3846_v40 = vrot.slane %v15612_v33, 4  ;;  %v4473_v11 = vshll.u32 %v4188_v59, 16  ;;  %v4477_v20 = vshrl.u32 %v4188_v59, 16  ;;  %v4483_v14 = vshll.u32 %v4189_v30, 16  ;;  %v15614_v33 = vld [vmem:[#allocation163_spill] sm:$0xff] }
 0x2f8   : > { %15611 = vst [vmem:[#allocation115_spill] sm:$0xff] %v13098_v6  ;;  %v4487_v52 = vshrl.u32 %v4189_v30, 16  ;;  %v13103_v62 = vrot.slane %v3965_v44, 7  ;;  %v13105_v45 = vrot.slane %v3974_v38, 7  ;;  %v4887_v54 = vshrl.u32 %v13095_v37, 16  ;;  %v15613_v44 = vld [vmem:[#allocation183_spill] sm:$0xff] }
 0x2f9   : > { %v13109_v29 = vrot.slane %v4473_v11, 5  ;;  %v4896_v42 = vshrl.u32 %v13098_v6, 16  ;;  %v13114_v24 = vrot.slane %v4477_v20, 4  ;;  %v13116_v2 = vrot.slane %v4483_v14, 5  ;;  %v5029_v30 = vld [vmem:[#allocation2 + $0x80] sm:$0xf] }
 0x2fa   : > { %v5393_v56 = vshll.u32 %v5126_v55, 16  ;;  %v5397_v21 = vshrl.u32 %v5126_v55, 16  ;;  %v13118_v8 = vrot.slane %v4487_v52, 4  ;;  %v5403_v38 = vshll.u32 %v5127_v7, 16  ;;  %v15615_v14 = vld [vmem:[#allocation167_spill] sm:$0xff] }
 0x2fb   : > { %v3854_v11 = vsel %vm10454_vm8, %v3846_v40, %v15613_v44  ;;  %v2373_v59 = vrot.slane %v15614_v33, 4  ;;  %v13124_v15 = vrot.slane %v4887_v54, 7  ;;  %v5407_v18 = vshrl.u32 %v5127_v7, 16  ;;  %v5030_v52 = vld [vmem:[#allocation2 + $0x84] sm:$0xf]  ;;  %v15618_v44 = vld [vmem:[#allocation168_spill] sm:$0xff] }
 0x2fc   : > { %4046 = vst [vmem:[#allocation3 + $0x228] sm:$0xf] %v3854_v11  ;;  %v2382_v20 = vrot.slane %v15564_v50, 4  ;;  %v15616_v61 = vor.u32 %v15615_v14, %v15568_v39  ;;  %5061 = vst [vmem:[#allocation3 + $0x3c4] sm:$0xf] %v5029_v30  ;;  %v13130_v27 = vrot.slane %v4896_v42, 7  ;;  %v15622_v14 = vor.u32 %v15603_v22, %v15602_v48 }
 0x2fd   : > { %v13132_v6 = vrot.slane %v5397_v21, 4  ;;  %v2381_v40 = vsel %vm10454_vm8, %v2373_v59, %v12928_v3  ;;  %v15617_v54 = vld [vmem:[#allocation169_spill] sm:$0xff]  ;;  %5062 = vst [vmem:[#allocation3 + $0x3e8] sm:$0xf] %v5030_v52  ;;  %v13140_v50 = vrot.slane %v5393_v56, 5  ;;  %v13149_v33 = vrot.slane %v5403_v38, 5 }
 0x2fe   : > { %v3421_v55 = vrot.slane %v15616_v61, 4  ;;  %v15619_v7 = vor.u32 %v15617_v54, %v15618_v44  ;;  %v2390_v39 = vsel %vm10454_vm8, %v2382_v20, %v12946_v10  ;;  %2549 = vst [vmem:[#allocation3 + $0x288] sm:$0xf] %v2381_v40  ;;  %v15620_v61 = vld [vmem:[#allocation173_spill] sm:$0xff]  ;;  %v3864_v56 = vrot.slane %v15574_v36, 4 }
 0x2ff   : > { %v3855_v21 = vrot.slane %v15620_v61, 4  ;;  %2550 = vst [vmem:[#allocation3 + $0x2ac] sm:$0xf] %v2390_v39  ;;  %v2391_v59 = vrot.slane %v15570_v35, 4  ;;  %v13156_v10 = vrot.slane %v5407_v18, 4  ;;  %v15621_v20 = vld [vmem:[#allocation221_spill] sm:$0xff]  ;;  %v5400_v52 = vor.u32 %v13132_v6, %v13140_v50 }
 0x300   : > { %v3431_v11 = vrot.slane %v15619_v7, 4  ;;  %v3426_v42 = vsel %vm10432_vm5, %v3421_v55, %v15618_v44  ;;  %v2400_v38 = vrot.slane %v15621_v20, 4  ;;  %v3441_v55 = vrot.slane %v15622_v14, 4  ;;  %v15623_v36 = vld [vmem:[#allocation21_spill] sm:$0xff]  ;;  %v9872_v6 = vld [vmem:[#allocation9 + $0x230] sm:$0xff]  }
 0x301   : > { %3625 = vst [vmem:[#allocation3 + $0x248] sm:$0xf] %v3426_v42  ;;  %v3863_v30 = vsel %vm10454_vm8, %v3855_v21, %v12961_v47  ;;  %v3872_v35 = vsel %vm10454_vm8, %v3864_v56, %v13028_v57  ;;  %v2399_v18 = vsel %vm10454_vm8, %v2391_v59, %v15623_v36  ;;  %v15624_v47 = vor.u32 %v15605_v34, %v15604_v26  ;;  %v15625_v54 = vld [vmem:[#allocation81_spill] sm:$0xff]  ;;  %v15627_v34 = vld [vmem:[#allocation223_spill] sm:$0xff]  ;;  %v15628_v21 = vld [vmem:[#allocation222_spill] sm:$0xff] }
 0x302   : > { %v3436_v3 = vsel %vm10432_vm5, %v3431_v11, %v15602_v48  ;;  %4047 = vst [vmem:[#allocation3 + $0x24c] sm:$0xf] %v3863_v30  ;;  %4048 = vst [vmem:[#allocation3 + $0x270] sm:$0xf] %v3872_v35  ;;  %v2408_v22 = vsel %vm10454_vm8, %v2400_v38, %v15625_v54  ;;  %v3446_v48 = vsel %vm10432_vm5, %v3441_v55, %v15604_v26  ;;  %v3873_v57 = vrot.slane %v15598_v16, 4  ;;  %v15626_v44 = vld [vmem:[#allocation225_spill] sm:$0xff] }
 0x303   : > { %3626 = vst [vmem:[#allocation3 + $0x26c] sm:$0xf] %v3436_v3  ;;  %v3451_v40 = vrot.slane %v15624_v47, 4  ;;  %2551 = vst [vmem:[#allocation3 + $0x2d0] sm:$0xf] %v2399_v18  ;;  %v3882_v7 = vrot.slane %v15626_v44, 4 }
 0x304   : > { %v4091_v11 = vld [vmem:[#allocation2 + $0x80] sm:$0xf]  ;;  %v4092_v39 = vld [vmem:[#allocation2 + $0x84] sm:$0xf]  ;;  %2552 = vst [vmem:[#allocation3 + $0x2f4] sm:$0xf] %v2408_v22 }
 0x305   : > { %v9785_v42 = vld [vmem:[#allocation3 + $0x204] ss:$36 sps:$4 sm:$0xff]   ;;  %v3456_v61 = vsel %vm10432_vm5, %v3451_v40, %v15627_v34  ;;  %3627 = vst [vmem:[#allocation3 + $0x290] sm:$0xf] %v3446_v48  ;;  %v2409_v3 = vrot.slane %v15628_v21, 4  ;;  %v15635_v35 = vld [vmem:[#allocation71_spill] sm:$0xff] }
 0x306   : > { %v15629_v56 = vld [vmem:[#allocation237_spill] sm:$0xff]  ;;  %4123 = vst [vmem:[#allocation3 + $0x400] sm:$0xf] %v4091_v11  ;;  %4124 = vst [vmem:[#allocation3 + $0x424] sm:$0xf] %v4092_v39  ;;  %v3881_v36 = vsel %vm10454_vm8, %v3873_v57, %v15635_v35  ;;  %v15636_v18 = vld [vmem:[#allocation82_spill] sm:$0xff]  ;;  %7249 = vmatprep.mubr.bf16.mxu0 %v9785_v42 }
 0x307   : > { %v15630_v59 = vld [vmem:[#allocation93_spill] sm:$0xff]  ;;  %3628 = vst [vmem:[#allocation3 + $0x2b4] sm:$0xf] %v3456_v61  ;;  %v3890_v47 = vsel %vm10454_vm8, %v3882_v7, %v15636_v18  ;;  %v2418_v40 = vrot.slane %v15629_v56, 4  ;;  %v15637_v54 = vld [vmem:[#allocation224_spill] sm:$0xff]  ;;  %v15642_v21 = vld [vmem:[#allocation226_spill] sm:$0xff] }
 0x308   : > { %v15631_v30 = vshll.u32 %v15630_v59, 16  ;;  %v15632_v26 = vld [vmem:[#allocation213_spill] sm:$0xff]  ;;  %v15638_v22 = vor.u32 %v15637_v54, %v15627_v34  ;;  %4049 = vst [vmem:[#allocation3 + $0x294] sm:$0xf] %v3881_v36  ;;  %4050 = vst [vmem:[#allocation3 + $0x2b8] sm:$0xf] %v3890_v47 }
 0x309   : > { %v15633_v38 = vld [vmem:[#allocation101_spill] sm:$0xff]  ;;  %v15640_v39 = vld [vmem:[#allocation24_spill] sm:$0xff]  ;;  %v3891_v59 = vrot.slane %v15642_v21, 4  ;;  %v15644_v7 = vld [vmem:[#allocation151_spill] sm:$0xff] }
 0x30a   : > { %v2416_v20 = vor.u32 %v15631_v30, %v15629_v56  ;;  %v15634_v16 = vshll.u32 %v15633_v38, 16  ;;  %v9791_v55 = vld [vmem:[#allocation3 + $0x200] ss:$36 sps:$4 sm:$0xff]   ;;  %v3461_v48 = vrot.slane %v15638_v22, 4  ;;  %v15643_v30 = vld [vmem:[#allocation242_spill] sm:$0xff]  ;;  %v15645_v38 = vshll.u32 %v15644_v7, 16 }
 0x30b   : > { %v15639_v11 = vld [vmem:[#allocation229_spill] sm:$0xff]  ;;  %7250 = vmatmul.mubr.bf16.gmra.mxu0 %v9791_v55  ;;  %v15647_v35 = vld [vmem:[#allocation234_spill] sm:$0xff]  ;;  %v15650_v22 = vld [vmem:[#allocation139_spill] sm:$0xff] }
 0x30c   : > { %v2425_v14 = vor.u32 %v15634_v16, %v15632_v26  ;;  %v2417_v44 = vsel %vm10454_vm8, %v2409_v3, %v2416_v20  ;;  %v15641_v61 = vor.u32 %v15639_v11, %v15640_v39  ;;  %v3898_v56 = vor.u32 %v15645_v38, %v15643_v30  ;;  %v9793_v16 = vld [vmem:[#allocation3 + $0x28c] ss:$36 sps:$4 sm:$0xff]   ;;  %v15653_v21 = vld [vmem:[#allocation241_spill] sm:$0xff] }
 0x30d   : > { %2553 = vst [vmem:[#allocation3 + $0x318] sm:$0xf] %v2417_v44  ;;  %v3466_v34 = vsel %vm10432_vm5, %v3461_v48, %v15640_v39  ;;  %v3900_v3 = vrot.slane %v15643_v30, 4  ;;  %v15646_v20 = vld [vmem:[#allocation243_spill] sm:$0xff]  ;;  %v15648_v36 = vshll.u32 %v15647_v35, 16  ;;  %v15649_v54 = vld [vmem:[#allocation238_spill] sm:$0xff]  ;;  %v13229_v44 = vpop.f32.mrf.mxu1  ;;  %7104 = vmatprep.mubr.bf16.mxu1 %v9793_v16 }
 0x30e   : > { %v3471_v57 = vrot.slane %v15641_v61, 4  ;;  %v2426_v42 = vsel %vm10454_vm8, %v2418_v40, %v2425_v14  ;;  %v9797_v47 = vld [vmem:[#allocation3 + $0x288] ss:$36 sps:$4 sm:$0xff]   ;;  %3629 = vst [vmem:[#allocation3 + $0x2d8] sm:$0xf] %v3466_v34  ;;  %v3899_v14 = vsel %vm10454_vm8, %v3891_v59, %v3898_v56  ;;  %v2427_v40 = vrot.slane %v15632_v26, 4 }
 0x30f   : > { %v3907_v18 = vor.u32 %v15648_v36, %v15646_v20  ;;  %2554 = vst [vmem:[#allocation3 + $0x33c] sm:$0xf] %v2426_v42  ;;  %v2436_v48 = vrot.slane %v15650_v22, 4  ;;  %4051 = vst [vmem:[#allocation3 + $0x2dc] sm:$0xf] %v3899_v14  ;;  %v15651_v39 = vld [vmem:[#allocation239_spill] sm:$0xff]  ;;  %7105 = vmatmul.mubr.bf16.gmra.mxu1 %v9797_v47 }
 0x310   : > { %v3476_v55 = vsel %vm10432_vm5, %v3471_v57, %v15649_v54  ;;  %v3480_v61 = vor.u32 %v15651_v39, %v15649_v54  ;;  %v15652_v57 = vld [vmem:[#allocation240_spill] sm:$0xff]  ;;  %v3909_v59 = vrot.slane %v15646_v20, 4  ;;  %v9795_v7 = vld [vmem:[#allocation3 + $0x24c] ss:$36 sps:$4 sm:$0xff]   ;;  %v15654_v26 = vld [vmem:[#allocation85_spill] sm:$0xff] }
 0x311   : > { %3630 = vst [vmem:[#allocation3 + $0x2fc] sm:$0xf] %v3476_v55  ;;  %v3908_v11 = vsel %vm10454_vm8, %v3900_v3, %v3907_v18  ;;  %v3490_v30 = vor.u32 %v15653_v21, %v15652_v57  ;;  %v2435_v38 = vsel %vm10454_vm8, %v2427_v40, %v15654_v26  ;;  %v15655_v56 = vld [vmem:[#allocation92_spill] sm:$0xff]  ;;  %v15656_v42 = vld [vmem:[#allocation147_spill] sm:$0xff]  ;;  %v15657_v3 = vshll.u32 %v12786_v28, 16  ;;  %v15658_v47 = vld [vmem:[#allocation125_spill] sm:$0xff]  ;;  %7257 = vmatprep.mubr.bf16.mxu0 %v9795_v7  ;;  %v13262_v26 = vpop.f32.mrf.mxu1 }
 0x312   : > { %4052 = vst [vmem:[#allocation3 + $0x300] sm:$0xf] %v3908_v11  ;;  %v2444_v16 = vsel %vm10454_vm8, %v2436_v48, %v15655_v56  ;;  %v3918_v34 = vrot.slane %v15656_v42, 4  ;;  %v9799_v36 = vld [vmem:[#allocation3 + $0x2d4] ss:$36 sps:$4 sm:$0xff]   ;;  %v3481_v20 = vrot.slane %v3480_v61, 4  ;;  %v3917_v54 = vsel %vm10454_vm8, %v3909_v59, %v15658_v47 }
 0x313   : > { %v2452_v35 = vor.u32 %v15657_v3, %v12815_v41  ;;  %2555 = vst [vmem:[#allocation3 + $0x360] sm:$0xf] %v2435_v38  ;;  %2556 = vst [vmem:[#allocation3 + $0x384] sm:$0xf] %v2444_v16  ;;  %v3491_v18 = vrot.slane %v3490_v30, 4  ;;  %v15659_v55 = vshll.u32 %v12789_v51, 16  ;;  %7112 = vmatprep.mubr.bf16.mxu1 %v9799_v36 }
 0x314   : > { %v15660_v40 = vld [vmem:[#allocation126_spill] sm:$0xff]  ;;  %4053 = vst [vmem:[#allocation3 + $0x324] sm:$0xf] %v3917_v54  ;;  %v15661_v28 = vld [vmem:[#allocation204_spill] sm:$0xff]  ;;  %v2454_v11 = vrot.slane %v12815_v41, 4  ;;  %v15662_v39 = vld [vmem:[#allocation145_spill] sm:$0xff]  ;;  %v3486_v51 = vsel %vm10432_vm5, %v3481_v20, %v15652_v57 }
 0x315   : > { %v2461_v14 = vor.u32 %v15659_v55, %v12835_v4  ;;  %v3926_v22 = vsel %vm10454_vm8, %v3918_v34, %v15660_v40  ;;  %v2445_v48 = vrot.slane %v15661_v28, 4  ;;  %v15663_v61 = vld [vmem:[#allocation154_spill] sm:$0xff]  ;;  %v15665_v38 = vld [vmem:[#allocation233_spill] sm:$0xff]  ;;  %v15666_v56 = vld [vmem:[#allocation232_spill] sm:$0xff]  ;;  %3631 = vst [vmem:[#allocation3 + $0x320] sm:$0xf] %v3486_v51 }
 0x316   : > { %v15664_v21 = vor.u32 %v15662_v39, %v15663_v61  ;;  %v9798_v59 = vld [vmem:[#allocation3 + $0x248] ss:$36 sps:$4 sm:$0xff]   ;;  %v3496_v7 = vsel %vm10432_vm5, %v3491_v18, %v15663_v61  ;;  %4054 = vst [vmem:[#allocation3 + $0x348] sm:$0xf] %v3926_v22  ;;  %v15667_v41 = vor.u32 %v15665_v38, %v15666_v56  ;;  %v15668_v42 = vld [vmem:[#allocation207_spill] sm:$0xff]  ;;  %v15669_v18 = vshll.u32 %v12796_v31, 16 }
 0x317   : > { %v3927_v34 = vrot.slane %v15668_v42, 4  ;;  %v9801_v3 = vld [vmem:[#allocation3 + $0x294] ss:$36 sps:$4 sm:$0xff]   ;;  %3632 = vst [vmem:[#allocation3 + $0x344] sm:$0xf] %v3496_v7  ;;  %v2453_v36 = vsel %vm10454_vm8, %v2445_v48, %v2452_v35  ;;  %v2462_v57 = vsel %vm10454_vm8, %v2454_v11, %v2461_v14  ;;  %7258 = vmatmul.mubr.bf16.gmra.mxu0 %v9798_v59  ;;  %v3936_v14 = vrot.slane %v12853_v12, 4  ;;  %v13293_v11 = vpop.f32.mrf.mxu0  ;;  %v13301_v7 = vpop.f32.mrf.mxu1 }
 0x318   : > { %v3501_v30 = vrot.slane %v15664_v21, 4  ;;  %v3511_v16 = vrot.slane %v15667_v41, 4  ;;  %v3934_v47 = vor.u32 %v15669_v18, %v12853_v12  ;;  %v5033_v54 = vld [vmem:[#allocation2 + $0x90] sm:$0xf]  ;;  %2557 = vst [vmem:[#allocation3 + $0x3a8] sm:$0xf] %v2453_v36  ;;  %7265 = vmatprep.mubr.bf16.mxu0 %v9801_v3 }
 0x319   : > { %v9806_v55 = vld [vmem:[#allocation3 + $0x2d0] ss:$36 sps:$4 sm:$0xff]   ;;  %2558 = vst [vmem:[#allocation3 + $0x3cc] sm:$0xf] %v2462_v57  ;;  %v15670_v40 = vld [vmem:[#allocation140_spill] sm:$0xff]  ;;  %v15672_v48 = vld [vmem:[#allocation141_spill] sm:$0xff] }
 0x31a   : > { %v3506_v20 = vsel %vm10432_vm5, %v3501_v30, %v15666_v56  ;;  %v3516_v35 = vsel %vm10432_vm5, %v3511_v16, %v12842_v25  ;;  %v15671_v22 = vshll.u32 %v15670_v40, 16  ;;  %v3520_v31 = vor.u32 %v15672_v48, %v12842_v25  ;;  %5065 = vst [vmem:[#allocation3 + $0x454] sm:$0xf] %v5033_v54  ;;  %v15673_v21 = vld [vmem:[#allocation152_spill] sm:$0xff]  ;;  %v15674_v12 = vld [vmem:[#allocation131_spill] sm:$0xff]  ;;  %v15675_v59 = vld [vmem:[#allocation25_spill] sm:$0xff]  ;;  %7113 = vmatmul.mubr.bf16.gmra.mxu1 %v9806_v55 }
 0x31b   : > { %3633 = vst [vmem:[#allocation3 + $0x368] sm:$0xf] %v3506_v20  ;;  %3634 = vst [vmem:[#allocation3 + $0x38c] sm:$0xf] %v3516_v35  ;;  %v3935_v39 = vsel %vm10454_vm8, %v3927_v34, %v3934_v47  ;;  %v2463_v61 = vrot.slane %v12835_v4, 4  ;;  %v2472_v30 = vrot.slane %v15673_v21, 4  ;;  %v3530_v51 = vor.u32 %v15675_v59, %v15674_v12 }
 0x31c   : > { %v3943_v28 = vor.u32 %v15671_v22, %v12855_v60  ;;  %v5034_v38 = vld [vmem:[#allocation2 + $0x94] sm:$0xf]  ;;  %v9809_v56 = vld [vmem:[#allocation3 + $0x31c] ss:$36 sps:$4 sm:$0xff]   ;;  %4055 = vst [vmem:[#allocation3 + $0x36c] sm:$0xf] %v3935_v39 }
 0x31d   : > { %v3521_v41 = vrot.slane %v3520_v31, 4  ;;  %v15676_v16 = vshll.u32 %v13044_v46, 16  ;;  %v15677_v4 = vshll.u32 %v13055_v53, 16  ;;  %5066 = vst [vmem:[#allocation3 + $0x478] sm:$0xf] %v5034_v38  ;;  %v15678_v3 = vld [vmem:[#allocation155_spill] sm:$0xff]  ;;  %7120 = vmatprep.mubr.bf16.mxu1 %v9809_v56 }
 0x31e   : > { %v3944_v25 = vsel %vm10454_vm8, %v3936_v14, %v3943_v28  ;;  %v2471_v36 = vsel %vm10454_vm8, %v2463_v61, %v15678_v3  ;;  %v15679_v57 = vld [vmem:[#allocation26_spill] sm:$0xff]  ;;  %v3531_v18 = vrot.slane %v3530_v51, 4  ;;  %v3945_v47 = vrot.slane %v12855_v60, 4  ;;  %v15680_v53 = vld [vmem:[#allocation192_spill] sm:$0xff]  ;;  %v15681_v54 = vld [vmem:[#allocation153_spill] sm:$0xff]  ;;  %v13324_v14 = vpop.f32.mrf.mxu0 }
 0x31f   : > { %v2488_v42 = vor.u32 %v15676_v16, %v13077_v5  ;;  %v2497_v34 = vor.u32 %v15677_v4, %v13079_v17  ;;  %4056 = vst [vmem:[#allocation3 + $0x390] sm:$0xf] %v3944_v25  ;;  %v2480_v20 = vsel %vm10454_vm8, %v2472_v30, %v15679_v57  ;;  %2559 = vst [vmem:[#allocation3 + $0x3f0] sm:$0xf] %v2471_v36  ;;  %v3954_v17 = vrot.slane %v15680_v53, 4  ;;  %v15682_v40 = vld [vmem:[#allocation122_spill] sm:$0xff] }
 0x320   : > { %2560 = vst [vmem:[#allocation3 + $0x414] sm:$0xf] %v2480_v20  ;;  %v3526_v46 = vsel %vm10432_vm5, %v3521_v41, %v15674_v12  ;;  %v2481_v55 = vrot.slane %v15681_v54, 4  ;;  %v2490_v35 = vrot.slane %v13077_v5, 4  ;;  %v3536_v22 = vsel %vm10432_vm5, %v3531_v18, %v15682_v40  ;;  %v15683_v60 = vld [vmem:[#allocation31_spill] sm:$0xff]  ;;  %v15684_v48 = vld [vmem:[#allocation253_spill] sm:$0xff]  ;;  %v13338_v5 = vpop.f32.mrf.mxu1 }
 0x321   : > { %3635 = vst [vmem:[#allocation3 + $0x3b0] sm:$0xf] %v3526_v46  ;;  %v3953_v28 = vsel %vm10454_vm8, %v3945_v47, %v15683_v60  ;;  %v15685_v31 = vor.u32 %v15684_v48, %v15682_v40  ;;  %v15686_v61 = vld [vmem:[#allocation255_spill] sm:$0xff]  ;;  %v15687_v21 = vld [vmem:[#allocation254_spill] sm:$0xff]  ;;  %3636 = vst [vmem:[#allocation3 + $0x3d4] sm:$0xf] %v3536_v22  ;;  %v3560_v46 = vor.u32 %v13084_v63, %v13081_v49 }
 0x322   : > { %v15688_v30 = vor.u32 %v15686_v61, %v15687_v21  ;;  %v9807_v59 = vld [vmem:[#allocation3 + $0x290] ss:$36 sps:$4 sm:$0xff]   ;;  %v15689_v51 = vld [vmem:[#allocation34_spill] sm:$0xff]  ;;  %4057 = vst [vmem:[#allocation3 + $0x3b4] sm:$0xf] %v3953_v28  ;;  %v2489_v56 = vsel %vm10454_vm8, %v2481_v55, %v2488_v42  ;;  %v2498_v25 = vsel %vm10454_vm8, %v2490_v35, %v2497_v34  ;;  %v15690_v41 = vld [vmem:[#allocation252_spill] sm:$0xff]  ;;  %v13358_v20 = vpop.f32.mrf.mxu1  ;;  %v3570_v53 = vor.u32 %v13090_v19, %v13086_v23 }
 0x323   : > { %v3541_v39 = vrot.slane %v15685_v31, 4  ;;  %v3962_v38 = vsel %vm10454_vm8, %v3954_v17, %v15689_v51  ;;  %v3963_v16 = vrot.slane %v15690_v41, 4  ;;  %v9811_v4 = vld [vmem:[#allocation3 + $0x2dc] ss:$36 sps:$4 sm:$0xff]   ;;  %2561 = vst [vmem:[#allocation3 + $0x438] sm:$0xf] %v2489_v56  ;;  %7266 = vmatmul.mubr.bf16.gmra.mxu0 %v9807_v59  ;;  %v13368_v17 = vpop.f32.mrf.mxu0 }
 0x324   : > { %v3551_v12 = vrot.slane %v15688_v30, 4  ;;  %4058 = vst [vmem:[#allocation3 + $0x3d8] sm:$0xf] %v3962_v38  ;;  %2562 = vst [vmem:[#allocation3 + $0x45c] sm:$0xf] %v2498_v25  ;;  %v15691_v42 = vshll.u32 %v13068_v58, 16  ;;  %7273 = vmatprep.mubr.bf16.mxu0 %v9811_v4 }
 0x325   : > { %v3546_v3 = vsel %vm10432_vm5, %v3541_v39, %v15687_v21  ;;  %v3972_v34 = vrot.slane %v13103_v62, 4  ;;  %v15692_v18 = vshll.u32 %v13073_v9, 16  ;;  %v3981_v58 = vrot.slane %v13105_v45, 4  ;;  %v15693_v35 = vld [vmem:[#allocation84_spill] sm:$0xff]  ;;  %v15694_v9 = vld [vmem:[#allocation86_spill] sm:$0xff]  ;;  %v15695_v22 = vld [vmem:[#allocation87_spill] sm:$0xff] }
 0x326   : > { %v3556_v36 = vsel %vm10432_vm5, %v3551_v12, %v13081_v49  ;;  %v3970_v57 = vor.u32 %v15691_v42, %v13103_v62  ;;  %3637 = vst [vmem:[#allocation3 + $0x3f8] sm:$0xf] %v3546_v3  ;;  %v9813_v62 = vld [vmem:[#allocation3 + $0x318] ss:$36 sps:$4 sm:$0xff]   ;;  %v3990_v55 = vrot.slane %v13008_v0, 4  ;;  %v4200_v40 = vor.u32 %v15694_v9, %v15693_v35  ;;  %v15696_v60 = vld [vmem:[#allocation89_spill] sm:$0xff] }
 0x327   : > { %3638 = vst [vmem:[#allocation3 + $0x41c] sm:$0xf] %v3556_v36  ;;  %v3979_v47 = vor.u32 %v15692_v18, %v13105_v45  ;;  %v4210_v63 = vor.u32 %v15696_v60, %v15695_v22  ;;  %v9815_v49 = vld [vmem:[#allocation3 + $0x364] ss:$36 sps:$4 sm:$0xff]   ;;  %v3561_v45 = vrot.slane %v3560_v46, 4  ;;  %v3989_v28 = vsel %vm10454_vm8, %v3981_v58, %v13038_v32  ;;  %v15697_v48 = vld [vmem:[#allocation67_spill] sm:$0xff]  ;;  %7121 = vmatmul.mubr.bf16.gmra.mxu1 %v9813_v62  ;;  %v13392_v32 = vpop.f32.mrf.mxu1 }
 0x328   : > { %v3971_v54 = vsel %vm10454_vm8, %v3963_v16, %v3970_v57  ;;  %v15698_v31 = vld [vmem:[#allocation83_spill] sm:$0xff]  ;;  %v3571_v61 = vrot.slane %v3570_v53, 4  ;;  %v3998_v21 = vsel %vm10454_vm8, %v3990_v55, %v13040_v13  ;;  %4061 = vst [vmem:[#allocation3 + $0x444] sm:$0xf] %v3989_v28  ;;  %v4201_v30 = vrot.slane %v4200_v40, 4  ;;  %v15701_v59 = vld [vmem:[#allocation124_spill] sm:$0xff]  ;;  %7128 = vmatprep.mubr.bf16.mxu1 %v9815_v49  ;;  %v13403_v57 = vpop.f32.mrf.mxu0 }
 0x329   : > { %v3980_v19 = vsel %vm10454_vm8, %v3972_v34, %v3979_v47  ;;  %4059 = vst [vmem:[#allocation3 + $0x3fc] sm:$0xf] %v3971_v54  ;;  %v15699_v39 = vrot.slane %v15698_v31, 11  ;;  %v15700_v12 = vld [vmem:[#allocation123_spill] sm:$0xff]  ;;  %v3566_v38 = vsel %vm10432_vm5, %v3561_v45, %v13086_v23  ;;  %4062 = vst [vmem:[#allocation3 + $0x468] sm:$0xf] %v3998_v21 }
 0x32a   : > { %4060 = vst [vmem:[#allocation3 + $0x420] sm:$0xf] %v3980_v19  ;;  %v4240_v51 = vor.u32 %v15701_v59, %v15700_v12  ;;  %v4211_v56 = vrot.slane %v4210_v63, 4  ;;  %v15702_v25 = vld [vmem:[#allocation59_spill] sm:$0xff]  ;;  %v15703_v41 = vld [vmem:[#allocation58_spill] sm:$0xff]  ;;  %v15705_v13 = vld [vmem:[#allocation61_spill] sm:$0xff]  ;;  %v4206_v23 = vsel %vm10432_vm5, %v4201_v30, %v15695_v22 }
 0x32b   : > { %v4659_v0 = vsel %vm10454_vm8, %v15699_v39, %v15697_v48  ;;  %v15704_v16 = vor.u32 %v15702_v25, %v15703_v41  ;;  %v15706_v3 = vld [vmem:[#allocation60_spill] sm:$0xff]  ;;  %3639 = vst [vmem:[#allocation3 + $0x440] sm:$0xf] %v3566_v38  ;;  %v15710_v46 = vld [vmem:[#allocation62_spill] sm:$0xff]  ;;  %4549 = vst [vmem:[#allocation3 + $0x14] sm:$0xf] %v4206_v23 }
 0x32c   : > { %4971 = vst [vmem:[#allocation3 + $0x18] sm:$0xf] %v4659_v0  ;;  %v15707_v36 = vor.u32 %v15705_v13, %v15706_v3  ;;  %v15708_v34 = vld [vmem:[#allocation172_spill] sm:$0xff]  ;;  %v4660_v53 = vrot.slane %v15710_v46, 4  ;;  %v4241_v58 = vrot.slane %v4240_v51, 4  ;;  %v4216_v54 = vsel %vm10432_vm5, %v4211_v56, %v15703_v41  ;;  %v15711_v9 = vld [vmem:[#allocation129_spill] sm:$0xff] }
 0x32d   : > { %v4221_v4 = vrot.slane %v15704_v16, 4  ;;  %v15709_v18 = vrot.slane %v15708_v34, 5  ;;  %v9814_v62 = vld [vmem:[#allocation3 + $0x2d8] ss:$36 sps:$4 sm:$0xff]   ;;  %v15712_v40 = vld [vmem:[#allocation130_spill] sm:$0xff]  ;;  %v15715_v48 = vld [vmem:[#allocation35_spill] sm:$0xff] }
 0x32e   : > { %v4231_v42 = vrot.slane %v15707_v36, 4  ;;  %v4250_v22 = vor.u32 %v15712_v40, %v15711_v9  ;;  %v9817_v60 = vld [vmem:[#allocation3 + $0x324] ss:$36 sps:$4 sm:$0xff]   ;;  %4550 = vst [vmem:[#allocation3 + $0x38] sm:$0xf] %v4216_v54  ;;  %v15713_v63 = vld [vmem:[#allocation72_spill] sm:$0xff]  ;;  %v4246_v19 = vsel %vm10432_vm5, %v4241_v58, %v15711_v9  ;;  %7274 = vmatmul.mubr.bf16.gmra.mxu0 %v9814_v62 }
 0x32f   : > { %v3576_v47 = vsel %vm10432_vm5, %v3571_v61, %v15709_v18  ;;  %v4226_v55 = vsel %vm10432_vm5, %v4221_v4, %v15706_v3  ;;  %v4668_v49 = vsel %vm10454_vm8, %v4660_v53, %v15713_v63  ;;  %v15714_v45 = vld [vmem:[#allocation64_spill] sm:$0xff]  ;;  %v13434_v61 = vpop.f32.mrf.mxu1  ;;  %4553 = vst [vmem:[#allocation3 + $0xa4] sm:$0xf] %v4246_v19  ;;  %v4678_v30 = vrot.slane %v15715_v48, 4  ;;  %v15719_v59 = vld [vmem:[#allocation119_spill] sm:$0xff]  ;;  %v15722_v25 = vld [vmem:[#allocation102_spill] sm:$0xff]  ;;  %v13443_v4 = vpop.f32.mrf.mxu0  ;;  %7281 = vmatprep.mubr.bf16.mxu0 %v9817_v60 }
 0x330   : > { %3640 = vst [vmem:[#allocation3 + $0x464] sm:$0xf] %v3576_v47  ;;  %v4236_v35 = vsel %vm10432_vm5, %v4231_v42, %v15700_v12  ;;  %4551 = vst [vmem:[#allocation3 + $0x5c] sm:$0xf] %v4226_v55  ;;  %v4669_v28 = vrot.slane %v15714_v45, 4  ;;  %v15716_v31 = vld [vmem:[#allocation116_spill] sm:$0xff] }
 0x331   : > { %4552 = vst [vmem:[#allocation3 + $0x80] sm:$0xf] %v4236_v35  ;;  %v15717_v39 = vshll.u32 %v15716_v31, 16  ;;  %4972 = vst [vmem:[#allocation3 + $0x3c] sm:$0xf] %v4668_v49  ;;  %v4251_v21 = vrot.slane %v4250_v22, 4 }
 0x332   : > { %v15718_v12 = vld [vmem:[#allocation36_spill] sm:$0xff]  ;;  %v15720_v51 = vshll.u32 %v15719_v59, 16  ;;  %v15721_v56 = vld [vmem:[#allocation103_spill] sm:$0xff]  ;;  %v9822_v13 = vld [vmem:[#allocation3 + $0x360] ss:$36 sps:$4 sm:$0xff]  }
 0x333   : > { %v4676_v0 = vor.u32 %v15717_v39, %v15715_v48  ;;  %v15723_v41 = vor.u32 %v15721_v56, %v15722_v25  ;;  %v15724_v36 = vld [vmem:[#allocation105_spill] sm:$0xff]  ;;  %v15725_v42 = vld [vmem:[#allocation104_spill] sm:$0xff]  ;;  %v4687_v47 = vrot.slane %v15718_v12, 4  ;;  %v15727_v23 = vld [vmem:[#allocation106_spill] sm:$0xff]  ;;  %v4256_v58 = vsel %vm10432_vm5, %v4251_v21, %v15722_v25  ;;  %7129 = vmatmul.mubr.bf16.gmra.mxu1 %v9822_v13  ;;  %v13473_v48 = vpop.f32.mrf.mxu1 }
 0x334   : > { %v4685_v38 = vor.u32 %v15720_v51, %v15718_v12  ;;  %v15726_v34 = vor.u32 %v15724_v36, %v15725_v42  ;;  %v4696_v46 = vrot.slane %v15727_v23, 4  ;;  %v9825_v53 = vld [vmem:[#allocation3 + $0x3ac] ss:$36 sps:$4 sm:$0xff]   ;;  %4554 = vst [vmem:[#allocation3 + $0xc8] sm:$0xf] %v4256_v58  ;;  %v15731_v63 = vld [vmem:[#allocation128_spill] sm:$0xff] }
 0x335   : > { %v4261_v16 = vrot.slane %v15723_v41, 4  ;;  %v4677_v3 = vsel %vm10454_vm8, %v4669_v28, %v4676_v0  ;;  %v15728_v55 = vld [vmem:[#allocation42_spill] sm:$0xff]  ;;  %v15730_v22 = vld [vmem:[#allocation127_spill] sm:$0xff]  ;;  %v15732_v19 = vld [vmem:[#allocation156_spill] sm:$0xff]  ;;  %7136 = vmatprep.mubr.bf16.mxu1 %v9825_v53 }
 0x336   : > { %v4271_v18 = vrot.slane %v15726_v34, 4  ;;  %v4686_v62 = vsel %vm10454_vm8, %v4678_v30, %v4685_v38  ;;  %4973 = vst [vmem:[#allocation3 + $0x60] sm:$0xf] %v4677_v3  ;;  %v15729_v35 = vld [vmem:[#allocation46_spill] sm:$0xff]  ;;  %v4695_v60 = vsel %vm10454_vm8, %v4687_v47, %v15730_v22  ;;  %v4704_v49 = vsel %vm10454_vm8, %v4696_v46, %v15731_v63  ;;  %v15734_v39 = vld [vmem:[#allocation108_spill] sm:$0xff]  ;;  %v15735_v21 = vld [vmem:[#allocation159_spill] sm:$0xff]  ;;  %v13480_v38 = vpop.f32.mrf.mxu0 }
 0x337   : > { %v4266_v54 = vsel %vm10432_vm5, %v4261_v16, %v15725_v42  ;;  %v4280_v9 = vor.u32 %v15729_v35, %v15728_v55  ;;  %4974 = vst [vmem:[#allocation3 + $0x84] sm:$0xf] %v4686_v62  ;;  %v15733_v45 = vld [vmem:[#allocation158_spill] sm:$0xff]  ;;  %4975 = vst [vmem:[#allocation3 + $0xa8] sm:$0xf] %v4695_v60  ;;  %v4705_v0 = vrot.slane %v15734_v39, 4 }
 0x338   : > { %v4276_v40 = vsel %vm10432_vm5, %v4271_v18, %v15728_v55  ;;  %4555 = vst [vmem:[#allocation3 + $0xec] sm:$0xf] %v4266_v54  ;;  %v4290_v28 = vor.u32 %v15733_v45, %v15732_v19  ;;  %4976 = vst [vmem:[#allocation3 + $0xcc] sm:$0xf] %v4704_v49  ;;  %v15736_v30 = vld [vmem:[#allocation27_spill] sm:$0xff]  ;;  %v4714_v51 = vrot.slane %v15735_v21, 4 }
 0x339   : > { %4556 = vst [vmem:[#allocation3 + $0x110] sm:$0xf] %v4276_v40  ;;  %v4281_v31 = vrot.slane %v4280_v9, 4  ;;  %v15737_v12 = vshll.u32 %v15736_v30, 16  ;;  %v15738_v25 = vld [vmem:[#allocation160_spill] sm:$0xff]  ;;  %v15741_v3 = vld [vmem:[#allocation134_spill] sm:$0xff] }
 0x33a   : > { %v4291_v56 = vrot.slane %v4290_v28, 4  ;;  %v15739_v41 = vld [vmem:[#allocation28_spill] sm:$0xff]  ;;  %v15745_v47 = vld [vmem:[#allocation203_spill] sm:$0xff]  ;;  %v9823_v46 = vld [vmem:[#allocation3 + $0x320] ss:$36 sps:$4 sm:$0xff]   ;;  %v4723_v45 = vrot.slane %v15738_v25, 4  ;;  %v13509_v28 = vpop.f32.mrf.mxu1 }
 0x33b   : > { %v4712_v59 = vor.u32 %v15737_v12, %v15735_v21  ;;  %v15740_v16 = vshll.u32 %v15739_v41, 16  ;;  %v15742_v36 = vld [vmem:[#allocation32_spill] sm:$0xff]  ;;  %v4286_v53 = vsel %vm10432_vm5, %v4281_v31, %v15732_v19  ;;  %v15746_v62 = vld [vmem:[#allocation137_spill] sm:$0xff]  ;;  %v15747_v54 = vld [vmem:[#allocation135_spill] sm:$0xff]  ;;  %v5410_v31 = vor.u32 %v13156_v10, %v13149_v33  ;;  %7282 = vmatmul.mubr.bf16.gmra.mxu0 %v9823_v46 }
 0x33c   : > { %v15743_v42 = vor.u32 %v15741_v3, %v15742_v36  ;;  %v15744_v18 = vld [vmem:[#allocation200_spill] sm:$0xff]  ;;  %v15748_v55 = vor.u32 %v15746_v62, %v15747_v54  ;;  %v15749_v9 = vld [vmem:[#allocation205_spill] sm:$0xff]  ;;  %v15750_v40 = vld [vmem:[#allocation206_spill] sm:$0xff]  ;;  %v4296_v63 = vsel %vm10432_vm5, %v4291_v56, %v15742_v36  ;;  %4557 = vst [vmem:[#allocation3 + $0x134] sm:$0xf] %v4286_v53  ;;  %v13520_v56 = vpop.f32.mrf.mxu0 }
 0x33d   : > { %v4721_v13 = vor.u32 %v15740_v16, %v15738_v25  ;;  %v4320_v23 = vor.u32 %v15745_v47, %v15744_v18  ;;  %v4713_v58 = vsel %vm10454_vm8, %v4705_v0, %v4712_v59  ;;  %v4330_v22 = vor.u32 %v15750_v40, %v15749_v9  ;;  %v9827_v60 = vld [vmem:[#allocation3 + $0x36c] ss:$36 sps:$4 sm:$0xff]   ;;  %4558 = vst [vmem:[#allocation3 + $0x158] sm:$0xf] %v4296_v63  ;;  %v15753_v12 = vld [vmem:[#allocation201_spill] sm:$0xff]  ;;  %v15760_v47 = vld [vmem:[#allocation52_spill] sm:$0xff] }
 0x33e   : > { %v4301_v34 = vrot.slane %v15743_v42, 4  ;;  %v4311_v35 = vrot.slane %v15748_v55, 4  ;;  %4977 = vst [vmem:[#allocation3 + $0xf0] sm:$0xf] %v4713_v58  ;;  %v15751_v0 = vld [vmem:[#allocation138_spill] sm:$0xff]  ;;  %v15754_v59 = vshll.u32 %v15753_v12, 16  ;;  %7289 = vmatprep.mubr.bf16.mxu0 %v9827_v60  ;;  %v13550_v12 = vpop.f32.mrf.mxu1 }
 0x33f   : > { %v4722_v49 = vsel %vm10454_vm8, %v4714_v51, %v4721_v13  ;;  %v4732_v21 = vrot.slane %v15751_v0, 4  ;;  %v15752_v30 = vld [vmem:[#allocation218_spill] sm:$0xff]  ;;  %v4321_v13 = vrot.slane %v4320_v23, 4  ;;  %v15756_v3 = vld [vmem:[#allocation219_spill] sm:$0xff]  ;;  %v15761_v58 = vld [vmem:[#allocation161_spill] sm:$0xff] }
 0x340   : > { %v4306_v19 = vsel %vm10432_vm5, %v4301_v34, %v15747_v54  ;;  %4978 = vst [vmem:[#allocation3 + $0x114] sm:$0xf] %v4722_v49  ;;  %v4316_v39 = vsel %vm10432_vm5, %v4311_v35, %v15744_v18  ;;  %v4748_v51 = vor.u32 %v15754_v59, %v15752_v30  ;;  %v9829_v25 = vld [vmem:[#allocation3 + $0x3a8] ss:$36 sps:$4 sm:$0xff]   ;;  %v15759_v18 = vld [vmem:[#allocation53_spill] sm:$0xff]  ;;  %v4331_v54 = vrot.slane %v4330_v22, 4 }
 0x341   : > { %4559 = vst [vmem:[#allocation3 + $0x17c] sm:$0xf] %v4306_v19  ;;  %4560 = vst [vmem:[#allocation3 + $0x1a0] sm:$0xf] %v4316_v39  ;;  %v15755_v41 = vld [vmem:[#allocation146_spill] sm:$0xff]  ;;  %v4360_v46 = vor.u32 %v15760_v47, %v15759_v18  ;;  %v4740_v62 = vsel %vm10454_vm8, %v4732_v21, %v15761_v58  ;;  %v15763_v40 = vld [vmem:[#allocation17_spill] sm:$0xff]  ;;  %7137 = vmatmul.mubr.bf16.gmra.mxu1 %v9829_v25  ;;  %v4326_v23 = vsel %vm10432_vm5, %v4321_v13, %v15749_v9 }
 0x342   : > { %v4731_v16 = vsel %vm10454_vm8, %v4723_v45, %v15755_v41  ;;  %v15757_v36 = vld [vmem:[#allocation202_spill] sm:$0xff]  ;;  %v9831_v53 = vld [vmem:[#allocation3 + $0x3f4] ss:$36 sps:$4 sm:$0xff]   ;;  %4980 = vst [vmem:[#allocation3 + $0x15c] sm:$0xf] %v4740_v62  ;;  %v4750_v49 = vrot.slane %v15752_v30, 4  ;;  %v8950_v21 = vadd.f32 %v13262_v26, %v13229_v44  ;;  %v13563_v44 = vpop.f32.mrf.mxu0 }
 0x343   : > { %v15758_v42 = vshll.u32 %v15757_v36, 16  ;;  %4979 = vst [vmem:[#allocation3 + $0x138] sm:$0xf] %v4731_v16  ;;  %v15762_v55 = vld [vmem:[#allocation142_spill] sm:$0xff]  ;;  %v15764_v60 = vld [vmem:[#allocation47_spill] sm:$0xff]  ;;  %v15766_v45 = vld [vmem:[#allocation49_spill] sm:$0xff]  ;;  %7144 = vmatprep.mubr.bf16.mxu1 %v9831_v53 }
 0x344   : > { %v4741_v35 = vrot.slane %v15762_v55, 4  ;;  %v4370_v63 = vor.u32 %v15764_v60, %v15763_v40  ;;  %v15765_v19 = vld [vmem:[#allocation39_spill] sm:$0xff]  ;;  %v15767_v39 = vshll.u32 %v15766_v45, 16  ;;  %v13546_v22 = vld [vmem:[%s14497_s5] ss:$0 sm:$0xff]  ;;  %v15768_v59 = vld [vmem:[#allocation174_spill] sm:$0xff] }
 0x345   : > { %v4757_v34 = vor.u32 %v15758_v42, %v15756_v3  ;;  %v4336_v9 = vsel %vm10432_vm5, %v4331_v54, %v15768_v59  ;;  %4561 = vst [vmem:[#allocation3 + $0x1c4] sm:$0xf] %v4326_v23  ;;  %v15769_v25 = vld [vmem:[#allocation175_spill] sm:$0xff]  ;;  %v15771_v13 = vld [vmem:[#allocation177_spill] sm:$0xff]  ;;  %v15772_v36 = vld [vmem:[#allocation176_spill] sm:$0xff]  ;;  %v4759_v53 = vrot.slane %v15756_v3, 4  ;;  %v8953_v3 = vadd.f32 %v13338_v5, %v13301_v7 }
 0x346   : > { %v4784_v0 = vor.u32 %v15767_v39, %v15765_v19  ;;  %v4749_v30 = vsel %vm10454_vm8, %v4741_v35, %v4748_v51  ;;  %v15770_v41 = vor.u32 %v15769_v25, %v15768_v59  ;;  %v15773_v42 = vor.u32 %v15771_v13, %v15772_v36  ;;  %4562 = vst [vmem:[#allocation3 + $0x1e8] sm:$0xf] %v4336_v9  ;;  %v15774_v58 = vld [vmem:[#allocation179_spill] sm:$0xff]  ;;  %v15775_v51 = vld [vmem:[#allocation40_spill] sm:$0xff]  ;;  %v9830_v60 = vld [vmem:[#allocation3 + $0x368] ss:$36 sps:$4 sm:$0xff]  }
 0x347   : > { %v4758_v26 = vsel %vm10454_vm8, %v4750_v49, %v4757_v34  ;;  %4981 = vst [vmem:[#allocation3 + $0x180] sm:$0xf] %v4749_v30  ;;  %v4768_v62 = vrot.slane %v15774_v58, 4  ;;  %v15776_v54 = vld [vmem:[#allocation99_spill] sm:$0xff]  ;;  %v13579_v34 = vadd.f32 %v8950_v21, %v13546_v22  ;;  %v15778_v39 = vld [vmem:[#allocation184_spill] sm:$0xff]  ;;  %v4361_v25 = vrot.slane %v4360_v46, 4  ;;  %7290 = vmatmul.mubr.bf16.gmra.mxu0 %v9830_v60 }
 0x348   : > { %v4341_v16 = vrot.slane %v15770_v41, 4  ;;  %v4351_v47 = vrot.slane %v15773_v42, 4  ;;  %v15777_v55 = vshll.u32 %v15776_v54, 16  ;;  %4982 = vst [vmem:[#allocation3 + $0x1a4] sm:$0xf] %v4758_v26  ;;  %v4767_v59 = vsel %vm10454_vm8, %v4759_v53, %v15778_v39  ;;  %v15779_v9 = vld [vmem:[#allocation187_spill] sm:$0xff]  ;;  %v13597_v53 = vpop.f32.mrf.mxu0 }
 0x349   : > { %v9833_v49 = vld [vmem:[#allocation3 + $0x3b4] ss:$36 sps:$4 sm:$0xff]   ;;  %v4776_v30 = vsel %vm10454_vm8, %v4768_v62, %v15779_v9  ;;  %v4371_v41 = vrot.slane %v4370_v63, 4  ;;  %4983 = vst [vmem:[#allocation3 + $0x1c8] sm:$0xf] %v4767_v59  ;;  %v4786_v5 = vrot.slane %v15765_v19, 4  ;;  %v4366_v63 = vsel %vm10432_vm5, %v4361_v25, %v15763_v40 }
 0x34a   : > { %v4793_v35 = vor.u32 %v15777_v55, %v15775_v51  ;;  %v4346_v23 = vsel %vm10432_vm5, %v4341_v16, %v15772_v36  ;;  %v4356_v45 = vsel %vm10432_vm5, %v4351_v47, %v15759_v18  ;;  %v13589_v18 = vpop.f32.mrf.mxu1  ;;  %4984 = vst [vmem:[#allocation3 + $0x1ec] sm:$0xf] %v4776_v30  ;;  %v15780_v21 = vld [vmem:[#allocation180_spill] sm:$0xff]  ;;  %v15782_v13 = vld [vmem:[#allocation245_spill] sm:$0xff]  ;;  %v15784_v47 = vld [vmem:[#allocation247_spill] sm:$0xff]  ;;  %7297 = vmatprep.mubr.bf16.mxu0 %v9833_v49 }
 0x34b   : > { %4563 = vst [vmem:[#allocation3 + $0x20c] sm:$0xf] %v4346_v23  ;;  %4564 = vst [vmem:[#allocation3 + $0x230] sm:$0xf] %v4356_v45  ;;  %v4777_v7 = vrot.slane %v15780_v21, 4  ;;  %v15781_v16 = vld [vmem:[#allocation244_spill] sm:$0xff] }
 0x34c   : > { %v4400_v36 = vor.u32 %v15782_v13, %v15781_v16  ;;  %v15783_v42 = vld [vmem:[#allocation29_spill] sm:$0xff]  ;;  %v9838_v46 = vld [vmem:[#allocation3 + $0x3f0] ss:$36 sps:$4 sm:$0xff]   ;;  %v15786_v54 = vld [vmem:[#allocation228_spill] sm:$0xff]  ;;  %4565 = vst [vmem:[#allocation3 + $0x254] sm:$0xf] %v4366_v63  ;;  %v4794_v40 = vsel %vm10454_vm8, %v4786_v5, %v4793_v35  ;;  %v8956_v35 = vadd.f32 %v13392_v32, %v13358_v20  ;;  %v8964_v5 = vpop.f32.mrf.mxu1 }
 0x34d   : > { %v4410_v26 = vor.u32 %v15784_v47, %v15783_v42  ;;  %v15785_v58 = vld [vmem:[#allocation227_spill] sm:$0xff]  ;;  %v15788_v60 = vld [vmem:[#allocation248_spill] sm:$0xff]  ;;  %v15789_v23 = vld [vmem:[#allocation217_spill] sm:$0xff]  ;;  %v4785_v49 = vsel %vm10454_vm8, %v4777_v7, %v4784_v0  ;;  %v4795_v21 = vrot.slane %v15775_v51, 4  ;;  %7145 = vmatmul.mubr.bf16.gmra.mxu1 %v9838_v46  ;;  %4986 = vst [vmem:[#allocation3 + $0x234] sm:$0xf] %v4794_v40 }
 0x34e   : > { %v4376_v62 = vsel %vm10432_vm5, %v4371_v41, %v15785_v58  ;;  %v15787_v19 = vor.u32 %v15786_v54, %v15785_v58  ;;  %v15790_v45 = vshll.u32 %v15789_v23, 16  ;;  %v9841_v59 = vld [vmem:[#allocation3 + $0x43c] ss:$36 sps:$4 sm:$0xff]   ;;  %v15791_v9 = vld [vmem:[#allocation231_spill] sm:$0xff]  ;;  %v15792_v30 = vld [vmem:[#allocation230_spill] sm:$0xff]  ;;  %v13634_v23 = vpop.f32.mrf.mxu0 }
 0x34f   : > { %4566 = vst [vmem:[#allocation3 + $0x278] sm:$0xf] %v4376_v62  ;;  %v15793_v25 = vor.u32 %v15791_v9, %v15792_v30  ;;  %4985 = vst [vmem:[#allocation3 + $0x210] sm:$0xf] %v4785_v49  ;;  %v15794_v47 = vld [vmem:[#allocation75_spill] sm:$0xff]  ;;  %v15795_v58 = vld [vmem:[#allocation249_spill] sm:$0xff]  ;;  %7152 = vmatprep.mubr.bf16.mxu1 %v9841_v59  ;;  %v9062_v9 = vadd.f32 %v13324_v14, %v13293_v11  ;;  %v8966_v11 = vpop.f32.mrf.mxu1  ;;  %v7043_v14 = vadd.f32 %v8956_v35, %v13546_v22 }
 0x350   : > { %v4381_v55 = vrot.slane %v15787_v19, 4  ;;  %v4820_v39 = vor.u32 %v15790_v45, %v15788_v60  ;;  %v4804_v63 = vrot.slane %v15794_v47, 4  ;;  %v15796_v0 = vld [vmem:[#allocation214_spill] sm:$0xff]  ;;  %v15798_v46 = vld [vmem:[#allocation77_spill] sm:$0xff]  ;;  %v4401_v19 = vrot.slane %v4400_v36, 4  ;;  %v15800_v32 = vld [vmem:[#allocation23_spill] sm:$0xff] }
 0x351   : > { %v4391_v41 = vrot.slane %v15793_v25, 4  ;;  %v15797_v7 = vshll.u32 %v15796_v0, 16  ;;  %v4803_v54 = vsel %vm10454_vm8, %v4795_v21, %v15798_v46  ;;  %v7038_v45 = vadd.f32 %v8953_v3, %v13546_v22  ;;  %v15799_v49 = vld [vmem:[#allocation78_spill] sm:$0xff]  ;;  %v9839_v40 = vld [vmem:[#allocation3 + $0x3b0] ss:$36 sps:$4 sm:$0xff]   ;;  %v15802_v21 = vld [vmem:[#allocation208_spill] sm:$0xff] }
 0x352   : > { %v4386_v13 = vsel %vm10432_vm5, %v4381_v55, %v15792_v30  ;;  %v4411_v55 = vrot.slane %v4410_v26, 4  ;;  %v4812_v20 = vsel %vm10454_vm8, %v4804_v63, %v15799_v49  ;;  %4987 = vst [vmem:[#allocation3 + $0x258] sm:$0xf] %v4803_v54  ;;  %v4813_v59 = vrot.slane %v15800_v32, 4  ;;  %v15801_v26 = vld [vmem:[#allocation210_spill] sm:$0xff]  ;;  %7298 = vmatmul.mubr.bf16.gmra.mxu0 %v9839_v40 }
 0x353   : > { %v4829_v62 = vor.u32 %v15797_v7, %v15795_v58  ;;  %v4396_v51 = vsel %vm10432_vm5, %v4391_v41, %v15781_v16  ;;  %4567 = vst [vmem:[#allocation3 + $0x29c] sm:$0xf] %v4386_v13  ;;  %v4822_v16 = vrot.slane %v15788_v60, 4  ;;  %4988 = vst [vmem:[#allocation3 + $0x27c] sm:$0xf] %v4812_v20  ;;  %v4406_v36 = vsel %vm10432_vm5, %v4401_v19, %v15783_v42  ;;  %v15807_v46 = vld [vmem:[#allocation90_spill] sm:$0xff] }
 0x354   : > { %4568 = vst [vmem:[#allocation3 + $0x2c0] sm:$0xf] %v4396_v51  ;;  %v4416_v3 = vsel %vm10432_vm5, %v4411_v55, %v15801_v26  ;;  %v8959_v30 = vadd.f32 %v13473_v48, %v13434_v61  ;;  %v9843_v25 = vld [vmem:[#allocation3 + $0x3fc] ss:$36 sps:$4 sm:$0xff]   ;;  %4569 = vst [vmem:[#allocation3 + $0x2e4] sm:$0xf] %v4406_v36  ;;  %v4821_v60 = vsel %vm10454_vm8, %v4813_v59, %v4820_v39  ;;  %v8967_v36 = vpop.f32.mrf.mxu1 }
 0x355   : > { %4570 = vst [vmem:[#allocation3 + $0x308] sm:$0xf] %v4416_v3  ;;  %v4830_v41 = vsel %vm10454_vm8, %v4822_v16, %v4829_v62  ;;  %v9065_v42 = vadd.f32 %v13403_v57, %v13368_v17  ;;  %v15803_v13 = vor.u32 %v15802_v21, %v15801_v26  ;;  %4989 = vst [vmem:[#allocation3 + $0x2a0] sm:$0xf] %v4821_v60  ;;  %v15804_v48 = vld [vmem:[#allocation20_spill] sm:$0xff]  ;;  %v15805_v39 = vld [vmem:[#allocation209_spill] sm:$0xff]  ;;  %v9075_v17 = vpop.f32.mrf.mxu0  ;;  %7305 = vmatprep.mubr.bf16.mxu0 %v9843_v25 }
 0x356   : > { %4990 = vst [vmem:[#allocation3 + $0x2c4] sm:$0xf] %v4830_v41  ;;  %v13663_v61 = vadd.f32 %v9062_v9, %v13579_v34  ;;  %v15806_v63 = vor.u32 %v15804_v48, %v15805_v39  ;;  %v4831_v7 = vrot.slane %v15795_v58, 4  ;;  %v9845_v57 = vld [vmem:[#allocation3 + $0x438] ss:$36 sps:$4 sm:$0xff]   ;;  %v4840_v35 = vrot.slane %v15807_v46, 4 }
 0x357   : > { %v4421_v47 = vrot.slane %v15803_v13, 4  ;;  %v13669_v62 = vadd.f32 %v9065_v42, %v7038_v45  ;;  %v8962_v34 = vadd.f32 %v13550_v12, %v13509_v28  ;;  %v9852_v54 = vld [vmem:[#allocation3 + $0x14] ss:$36 sps:$4 sm:$0xff]   ;;  %v15808_v19 = vld [vmem:[#allocation133_spill] sm:$0xff]  ;;  %v9068_v49 = vadd.f32 %v13480_v38, %v13443_v4  ;;  %7153 = vmatmul.mubr.bf16.gmra.mxu1 %v9845_v57  ;;  %v15818_v21 = vld [vmem:[#allocation162_spill] sm:$0xff] }
 0x358   : > { %v4431_v0 = vrot.slane %v15806_v63, 4  ;;  %v15809_v58 = vld [vmem:[#allocation235_spill] sm:$0xff]  ;;  %v8965_v20 = vadd.f32 %v8964_v5, %v13589_v18  ;;  %v7046_v32 = vadd.f32 %v8959_v30, %v13546_v22  ;;  %v15810_v28 = vld [vmem:[#allocation236_spill] sm:$0xff]  ;;  %v9071_v59 = vadd.f32 %v13563_v44, %v13520_v56  ;;  %v15811_v16 = vld [vmem:[#allocation185_spill] sm:$0xff]  ;;  %7354 = vmatprep.mubr.bf16.mxu1 %v9852_v54  ;;  %v9076_v30 = vpop.f32.mrf.mxu0 }
 0x359   : > { %v4426_v51 = vsel %vm10432_vm5, %v4421_v47, %v15805_v39  ;;  %v4839_v45 = vsel %vm10454_vm8, %v4831_v7, %v15809_v58  ;;  %v4848_v12 = vsel %vm10454_vm8, %v4840_v35, %v15810_v28  ;;  %v4440_v40 = vor.u32 %v15811_v16, %v15808_v19  ;;  %v15812_v18 = vld [vmem:[#allocation197_spill] sm:$0xff]  ;;  %v15813_v5 = vld [vmem:[#allocation18_spill] sm:$0xff]  ;;  %v15814_v3 = vld [vmem:[#allocation88_spill] sm:$0xff] }
 0x35a   : > { %v4436_v55 = vsel %vm10432_vm5, %v4431_v0, %v15808_v19  ;;  %4571 = vst [vmem:[#allocation3 + $0x32c] sm:$0xf] %v4426_v51  ;;  %4991 = vst [vmem:[#allocation3 + $0x2e8] sm:$0xf] %v4839_v45  ;;  %v7051_v4 = vadd.f32 %v8962_v34, %v13546_v22  ;;  %v13695_v38 = vadd.f32 %v9068_v49, %v7043_v14  ;;  %v4849_v9 = vrot.slane %v15814_v3, 4  ;;  %v15815_v56 = vld [vmem:[#allocation171_spill] sm:$0xff] }
 0x35b   : > { %4572 = vst [vmem:[#allocation3 + $0x350] sm:$0xf] %v4436_v55  ;;  %4992 = vst [vmem:[#allocation3 + $0x30c] sm:$0xf] %v4848_v12  ;;  %v4450_v26 = vor.u32 %v15813_v5, %v15812_v18  ;;  %v13700_v25 = vadd.f32 %v9071_v59, %v7046_v32  ;;  %v4441_v60 = vrot.slane %v4440_v40, 4  ;;  %v15816_v44 = vld [vmem:[#allocation38_spill] sm:$0xff]  ;;  %v7054_v14 = vadd.f32 %v8965_v20, %v13546_v22 }
 0x35c   : > { %v15817_v41 = vshll.u32 %v15816_v44, 16  ;;  %v15819_v13 = vld [vmem:[#allocation181_spill] sm:$0xff]  ;;  %v9846_v39 = vld [vmem:[#allocation3 + $0x3f8] ss:$36 sps:$4 sm:$0xff]   ;;  %v13709_v0 = vadd.f32 %v8967_v36, %v8966_v11  ;;  %v9074_v7 = vadd.f32 %v13634_v23, %v13597_v53  ;;  %v4858_v35 = vrot.slane %v15815_v56, 4  ;;  %v15821_v23 = vld [vmem:[#allocation118_spill] sm:$0xff] }
 0x35d   : > { %v15820_v47 = vshll.u32 %v15819_v13, 16  ;;  %v4451_v63 = vrot.slane %v4450_v26, 4  ;;  %v9848_v57 = vld [vmem:[#allocation3 + $0x444] ss:$36 sps:$4 sm:$0xff]   ;;  %v4446_v51 = vsel %vm10432_vm5, %v4441_v60, %v15812_v18  ;;  %v9077_v34 = vadd.f32 %v9076_v30, %v9075_v17  ;;  %7306 = vmatmul.mubr.bf16.gmra.mxu0 %v9846_v39  ;;  %v4159_v17 = vld [vmem:[#allocation2 + $0x90] sm:$0x1] }
 0x35e   : > { %v4856_v42 = vor.u32 %v15817_v41, %v15815_v56  ;;  %v13722_v54 = vrot.slane %v5400_v52, 4  ;;  %v13727_v53 = vrot.slane %v5410_v31, 4  ;;  %4573 = vst [vmem:[#allocation3 + $0x374] sm:$0xf] %v4446_v51  ;;  %v13732_v19 = vadd.f32 %v9074_v7, %v7051_v4  ;;  %7313 = vmatprep.mubr.bf16.mxu0 %v9848_v57  ;;  %v9850_v55 = vld [vmem:[#allocation3 + $0x10] ss:$36 sps:$4 sm:$0xff]  }
 0x35f   : > { %v4865_v48 = vor.u32 %v15820_v47, %v15818_v21  ;;  %v4456_v11 = vsel %vm10432_vm5, %v4451_v63, %v15821_v23  ;;  %v13736_v10 = vadd.f32 %v9077_v34, %v7054_v14  ;;  %v15822_v31 = vld [vmem:[#allocation256_spill] sm:$0xff]  ;;  %v4480_v49 = vor.u32 %v13114_v24, %v13109_v29  ;;  %v15824_v32 = vld [vmem:[#allocation258_spill] sm:$0xff]  ;;  %v15825_v28 = vld [vmem:[#allocation257_spill] sm:$0xff]  ;;  %7355 = vmatmul.mubr.bf16.vlgmr.msra.gmra.mxu1 %v9850_v55 }
 0x360   : > { %v4857_v46 = vsel %vm10454_vm8, %v4849_v9, %v4856_v42  ;;  %4574 = vst [vmem:[#allocation3 + $0x398] sm:$0xf] %v4456_v11  ;;  %v15823_v58 = vor.u32 %v15822_v31, %v15821_v23  ;;  %v9859_v20 = vld [vmem:[#allocation3 + $0x5c] ss:$36 sps:$4 sm:$0xff]   ;;  %v15826_v12 = vor.u32 %v15824_v32, %v15825_v28  ;;  %v4490_v16 = vor.u32 %v13118_v8, %v13116_v2  ;;  %v15828_v4 = vld [vmem:[#allocation115_spill] sm:$0xff]  ;;  %v15832_v41 = vld [vmem:[#allocation182_spill] sm:$0xff] }
 0x361   : > { %4993 = vst [vmem:[#allocation3 + $0x330] sm:$0xf] %v4857_v46  ;;  %v4866_v52 = vsel %vm10454_vm8, %v4858_v35, %v4865_v48  ;;  %v15827_v40 = vshll.u32 %v13095_v37, 16  ;;  %v15829_v18 = vshll.u32 %v15828_v4, 16  ;;  %v4867_v26 = vrot.slane %v15818_v21, 4  ;;  %v15830_v3 = vld [vmem:[#allocation136_spill] sm:$0xff]  ;;  %7362 = vmatprep.mubr.bf16.mxu1 %v9859_v20 }
 0x362   : > { %v4461_v45 = vrot.slane %v15823_v58, 4  ;;  %4994 = vst [vmem:[#allocation3 + $0x354] sm:$0xf] %v4866_v52  ;;  %v4471_v59 = vrot.slane %v15826_v12, 4  ;;  %v4876_v9 = vrot.slane %v15830_v3, 4  ;;  %v15831_v30 = vld [vmem:[#allocation195_spill] sm:$0xff] }
 0x363   : > { %v4892_v36 = vor.u32 %v15827_v40, %v13124_v15  ;;  %v4901_v5 = vor.u32 %v15829_v18, %v13130_v27  ;;  %v4192_v60 = vmul.bf16 %v4159_v17, %v15831_v30  ;;  %v9988_v8 = vld [vmem:[#allocation9 + $0x238] sm:$0xff]   ;;  %v4481_v56 = vrot.slane %v4480_v49, 4  ;;  %v9885_v13 = vld [vmem:[#allocation9 + $0x228] sm:$0xff]   ;;  %v4613_v51 = vld [vmem:[#allocation2 + $0x94] sm:$0xf] }
 0x364   : > { %v4466_v24 = vsel %vm10432_vm5, %v4461_v45, %v15825_v28  ;;  %9477 = vmatpush3.bf16.msra.mxu1 %v9988_v8  ;;  %v4476_v37 = vsel %vm10432_vm5, %v4471_v59, %v13109_v29  ;;  %v4491_v44 = vrot.slane %v4490_v16, 4  ;;  %v4885_v42 = vrot.slane %v15832_v41, 4  ;;  %v15833_v21 = vld [vmem:[#allocation198_spill] sm:$0xff]  ;;  %v15834_v48 = vld [vmem:[#allocation120_spill] sm:$0xff]  ;;  %v15836_v29 = vld [vmem:[#allocation41_spill] sm:$0xff] }
 0x365   : > { %4575 = vst [vmem:[#allocation3 + $0x3bc] sm:$0xf] %v4466_v24  ;;  %9478 = vmatprep.subr.bf16.mxu1 %v9872_v6  ;;  %4576 = vst [vmem:[#allocation3 + $0x3e0] sm:$0xf] %v4476_v37  ;;  %v4875_v47 = vsel %vm10454_vm8, %v4867_v26, %v15833_v21  ;;  %v4884_v39 = vsel %vm10454_vm8, %v4876_v9, %v15834_v48  ;;  %v4894_v14 = vrot.slane %v13124_v15, 4  ;;  %v15835_v63 = vld [vmem:[#allocation76_spill] sm:$0xff] }
 0x366   : > { %v15837_v7 = vor.u32 %v15835_v63, %v15836_v29  ;;  %v9857_v46 = vld [vmem:[#allocation3 + $0x440] ss:$36 sps:$4 sm:$0xff]   ;;  %4995 = vst [vmem:[#allocation3 + $0x378] sm:$0xf] %v4875_v47  ;;  %4996 = vst [vmem:[#allocation3 + $0x39c] sm:$0xf] %v4884_v39  ;;  %v4486_v35 = vsel %vm10432_vm5, %v4481_v56, %v13116_v2  ;;  %v4496_v34 = vsel %vm10432_vm5, %v4491_v44, %v15836_v29 }
 0x367   : > { %v4893_v23 = vsel %vm10454_vm8, %v4885_v42, %v4892_v36  ;;  %v15838_v15 = vld [vmem:[#allocation112_spill] sm:$0xff]  ;;  %v15839_v11 = vld [vmem:[#allocation178_spill] sm:$0xff]  ;;  %4577 = vst [vmem:[#allocation3 + $0x404] sm:$0xf] %v4486_v35  ;;  %4578 = vst [vmem:[#allocation3 + $0x428] sm:$0xf] %v4496_v34  ;;  %v4902_v31 = vsel %vm10454_vm8, %v4894_v14, %v4901_v5  ;;  %7314 = vmatmul.mubr.bf16.gmra.mxu0 %v9857_v46  ;;  %v13824_v34 = vpop.f32.mrf.mxu1 }
 0x368   : > { %v4501_v57 = vrot.slane %v15837_v7, 4  ;;  %v15840_v17 = vor.u32 %v15838_v15, %v15839_v11  ;;  %v9864_v52 = vld [vmem:[#allocation3 + $0x1c] ss:$36 sps:$4 sm:$0xff]   ;;  %4997 = vst [vmem:[#allocation3 + $0x3c0] sm:$0xf] %v4893_v23  ;;  %v4513_v58 = vshll.u32 %v4192_v60, 16  ;;  %9479 = vmatpush3.bf16.msra.mxu1 %v9872_v6 }
 0x369   : > { %v4903_v45 = vrot.slane %v13130_v27, 4  ;;  %4998 = vst [vmem:[#allocation3 + $0x3e4] sm:$0xf] %v4902_v31  ;;  %v15841_v49 = vld [vmem:[#allocation166_spill] sm:$0xff]  ;;  %v15843_v12 = vld [vmem:[#allocation43_spill] sm:$0xff]  ;;  %v15844_v59 = vld [vmem:[#allocation164_spill] sm:$0xff]  ;;  %7515 = vmatprep.mubr.bf16.mxu0 %v9864_v52  ;;  %9480 = vmatprep.subr.bf16.mxu1 %v9885_v13 }
 0x36a   : > { %v4511_v55 = vrot.slane %v15840_v17, 4  ;;  %v4506_v2 = vsel %vm10432_vm5, %v4501_v57, %v15839_v11  ;;  %v4912_v20 = vrot.slane %v15841_v49, 4  ;;  %v15842_v32 = vld [vmem:[#allocation186_spill] sm:$0xff]  ;;  %v5206_v16 = vsel %vm10432_vm5, %v15844_v59, %v15843_v12  ;;  %v15845_v40 = vld [vmem:[#allocation143_spill] sm:$0xff]  ;;  %v15846_v36 = vld [vmem:[#allocation165_spill] sm:$0xff] }
 0x36b   : > { %4579 = vst [vmem:[#allocation3 + $0x44c] sm:$0xf] %v4506_v2  ;;  %v4646_v28 = vmul.bf16 %v4613_v51, %v15842_v32  ;;  %v5216_v4 = vsel %vm10432_vm5, %v15846_v36, %v15845_v40  ;;  %v9867_v27 = vld [vmem:[#allocation3 + $0x58] ss:$36 sps:$4 sm:$0xff]   ;;  %v9898_v6 = vld [vmem:[#allocation9 + $0x220] sm:$0xff]   ;;  %v4515_v18 = vrot.slane %v4513_v58, 5 }
 0x36c   : > { %v15847_v5 = vld [vmem:[#allocation113_spill] sm:$0xff]  ;;  %5495 = vst [vmem:[#allocation3 + $0xf8] sm:$0xf] %v5206_v16  ;;  %5496 = vst [vmem:[#allocation3 + $0x11c] sm:$0xf] %v5216_v4  ;;  %v15848_v26 = vld [vmem:[#allocation212_spill] sm:$0xff]  ;;  %7363 = vmatmul.mubr.bf16.gmra.mxu1 %v9867_v27 }
 0x36d   : > { %v4911_v24 = vsel %vm10454_vm8, %v4903_v45, %v15847_v5  ;;  %v15849_v3 = vld [vmem:[#allocation220_spill] sm:$0xff]  ;;  %v15851_v8 = vld [vmem:[#allocation73_spill] sm:$0xff]  ;;  %v15852_v44 = vld [vmem:[#allocation215_spill] sm:$0xff]  ;;  %v4516_v63 = vsel %vm10432_vm5, %v4511_v55, %v4515_v18  ;;  %v4932_v29 = vshrl.u32 %v4646_v28, 16  ;;  %v4935_v7 = vshll.u32 %v4646_v28, 16  ;;  %9481 = vmatpush3.bf16.msra.mxu1 %v9885_v13 }
 0x36e   : > { %v5246_v9 = vsel %vm10432_vm5, %v15849_v3, %v15848_v26  ;;  %v15850_v60 = vld [vmem:[#allocation188_spill] sm:$0xff]  ;;  %v9868_v56 = vld [vmem:[#allocation3 + $0xa4] ss:$36 sps:$4 sm:$0xff]   ;;  %v4920_v41 = vsel %vm10454_vm8, %v4912_v20, %v15852_v44  ;;  %4999 = vst [vmem:[#allocation3 + $0x408] sm:$0xf] %v4911_v24  ;;  %9482 = vmatprep.subr.bf16.mxu1 %v9898_v6  ;;  %v15871_v26 = vld [vmem:[#allocation111_spill] sm:$0xff] }
 0x36f   : > { %v5256_v37 = vsel %vm10432_vm5, %v15851_v8, %v15850_v60  ;;  %v15853_v42 = vld [vmem:[#allocation48_spill] sm:$0xff]  ;;  %v15854_v47 = vld [vmem:[#allocation193_spill] sm:$0xff]  ;;  %5499 = vst [vmem:[#allocation3 + $0x188] sm:$0xf] %v5246_v9  ;;  %5000 = vst [vmem:[#allocation3 + $0x42c] sm:$0xf] %v4920_v41  ;;  %7370 = vmatprep.mubr.bf16.mxu1 %v9868_v56 }
 0x370   : > { %v4921_v21 = vrot.slane %v15853_v42, 4  ;;  %v15855_v48 = vshrl.u32 %v15854_v47, 16  ;;  %v4926_v14 = vshll.u32 %v15854_v47, 16  ;;  %5500 = vst [vmem:[#allocation3 + $0x1ac] sm:$0xf] %v5256_v37  ;;  %v15856_v57 = vld [vmem:[#allocation69_spill] sm:$0xff] }
 0x371   : > { %v15857_v51 = vld [vmem:[#allocation68_spill] sm:$0xff]  ;;  %4580 = vst [vmem:[#allocation3 + $0x470] sm:$0xf] %v4516_v63  ;;  %v15859_v11 = vld [vmem:[#allocation114_spill] sm:$0xff]  ;;  %v15861_v55 = vld [vmem:[#allocation65_spill] sm:$0xff]  ;;  %v4934_v45 = vrot.slane %v4932_v29, 7  ;;  %9483 = vmatpush3.bf16.msra.mxu1 %v9898_v6 }
 0x372   : > { %v4925_v39 = vrot.slane %v15855_v48, 7  ;;  %v15858_v46 = vor.u32 %v15856_v57, %v15857_v51  ;;  %v15860_v17 = vld [vmem:[#allocation44_spill] sm:$0xff]  ;;  %v15862_v31 = vld [vmem:[#allocation45_spill] sm:$0xff]  ;;  %v15863_v49 = vld [vmem:[#allocation70_spill] sm:$0xff] }
 0x373   : > { %v5286_v52 = vsel %vm10432_vm5, %v15860_v17, %v15859_v11  ;;  %v5296_v2 = vsel %vm10432_vm5, %v15862_v31, %v15861_v55  ;;  %v9912_v58 = vld [vmem:[#allocation9 + $0x218] sm:$0xff]   ;;  %v15864_v20 = vld [vmem:[#allocation74_spill] sm:$0xff]  ;;  %v15868_v27 = vld [vmem:[#allocation97_spill] sm:$0xff]  ;;  %v4937_v42 = vor.u32 %v4935_v7, %v4934_v45  ;;  %v8970_v7 = vpop.f32.mrf.mxu1 }
 0x374   : > { %v5141_v35 = vrot.slane %v15858_v46, 4  ;;  %v4928_v23 = vor.u32 %v4926_v14, %v4925_v39  ;;  %v4930_v15 = vrot.slane %v4925_v39, 4  ;;  %v15865_v32 = vor.u32 %v15864_v20, %v15863_v49  ;;  %5503 = vst [vmem:[#allocation3 + $0x218] sm:$0xf] %v5286_v52  ;;  %5504 = vst [vmem:[#allocation3 + $0x23c] sm:$0xf] %v5296_v2  ;;  %9484 = vmatprep.subr.bf16.mxu1 %v9912_v58 }
 0x375   : > { %v15866_v12 = vld [vmem:[#allocation66_spill] sm:$0xff]  ;;  %v9862_v36 = vld [vmem:[#allocation3 + $0x18] ss:$36 sps:$4 sm:$0xff]   ;;  %v15875_v56 = vld [vmem:[#allocation251_spill] sm:$0xff]  ;;  %9485 = vmatpush3.bf16.msra.mxu1 %v9912_v58 }
 0x376   : > { %v5146_v13 = vsel %vm10432_vm5, %v5141_v35, %v15863_v49  ;;  %v5151_v28 = vrot.slane %v15865_v32, 4  ;;  %v15867_v59 = vld [vmem:[#allocation250_spill] sm:$0xff]  ;;  %v4929_v4 = vsel %vm10454_vm8, %v4921_v21, %v4928_v23  ;;  %v15869_v18 = vld [vmem:[#allocation96_spill] sm:$0xff]  ;;  %v15876_v47 = vld [vmem:[#allocation117_spill] sm:$0xff]  ;;  %7516 = vmatmul.mubr.bf16.vlgmr.msra.gmra.mxu0 %v9862_v36  ;;  %v4938_v49 = vsel %vm10454_vm8, %v4930_v15, %v4937_v42 }
 0x377   : > { %v5326_v16 = vsel %vm10432_vm5, %v15867_v59, %v15866_v12  ;;  %5489 = vst [vmem:[#allocation3 + $0x20] sm:$0xf] %v5146_v13  ;;  %v15870_v5 = vor.u32 %v15868_v27, %v15869_v18  ;;  %v15872_v3 = vld [vmem:[#allocation110_spill] sm:$0xff]  ;;  %v15874_v37 = vld [vmem:[#allocation100_spill] sm:$0xff]  ;;  %5001 = vst [vmem:[#allocation3 + $0x450] sm:$0xf] %v4929_v4 }
 0x378   : > { %v15873_v9 = vor.u32 %v15871_v26, %v15872_v3  ;;  %v5336_v44 = vsel %vm10432_vm5, %v15875_v56, %v15874_v37  ;;  %5507 = vst [vmem:[#allocation3 + $0x2a8] sm:$0xf] %v5326_v16  ;;  %v9870_v41 = vld [vmem:[#allocation3 + $0x64] ss:$36 sps:$4 sm:$0xff]   ;;  %v5156_v21 = vsel %vm10432_vm5, %v5151_v28, %v15876_v47  ;;  %v15877_v48 = vld [vmem:[#allocation144_spill] sm:$0xff]  ;;  %v15879_v63 = vld [vmem:[#allocation199_spill] sm:$0xff]  ;;  %v8972_v47 = vpop.f32.mrf.mxu1 }
 0x379   : > { %v5181_v24 = vrot.slane %v15870_v5, 4  ;;  %v15878_v39 = vor.u32 %v15877_v48, %v15845_v40  ;;  %5508 = vst [vmem:[#allocation3 + $0x2cc] sm:$0xf] %v5336_v44  ;;  %v15880_v29 = vld [vmem:[#allocation107_spill] sm:$0xff]  ;;  %v9873_v51 = vld [vmem:[#allocation3 + $0xa0] ss:$36 sps:$4 sm:$0xff]   ;;  %7523 = vmatprep.mubr.bf16.mxu0 %v9870_v41 }
 0x37a   : > { %v5191_v8 = vrot.slane %v15873_v9, 4  ;;  %v5366_v57 = vsel %vm10432_vm5, %v15880_v29, %v15879_v63  ;;  %v9926_v46 = vld [vmem:[#allocation9 + $0x210] sm:$0xff]   ;;  %5490 = vst [vmem:[#allocation3 + $0x44] sm:$0xf] %v5156_v21  ;;  %v15881_v23 = vld [vmem:[#allocation157_spill] sm:$0xff]  ;;  %v15883_v17 = vld [vmem:[#allocation148_spill] sm:$0xff]  ;;  %7371 = vmatmul.mubr.bf16.gmra.mxu1 %v9873_v51  ;;  %v9078_v29 = vpop.f32.mrf.mxu0  ;;  %v8973_v58 = vpop.f32.mrf.mxu1 }
 0x37b   : > { %v5221_v14 = vrot.slane %v15878_v39, 4  ;;  %v5186_v35 = vsel %vm10432_vm5, %v5181_v24, %v15872_v3  ;;  %v15882_v11 = vld [vmem:[#allocation149_spill] sm:$0xff]  ;;  %v15885_v2 = vld [vmem:[#allocation132_spill] sm:$0xff]  ;;  %5511 = vst [vmem:[#allocation3 + $0x338] sm:$0xf] %v5366_v57  ;;  %v15889_v12 = vld [vmem:[#allocation191_spill] sm:$0xff]  ;;  %9486 = vmatprep.subr.bf16.mxu1 %v9926_v46 }
 0x37c   : > { %v5196_v40 = vsel %vm10432_vm5, %v5191_v8, %v15881_v23  ;;  %v15884_v52 = vor.u32 %v15882_v11, %v15883_v17  ;;  %v15886_v45 = vld [vmem:[#allocation109_spill] sm:$0xff]  ;;  %5493 = vst [vmem:[#allocation3 + $0xb0] sm:$0xf] %v5186_v35  ;;  %v15890_v59 = vld [vmem:[#allocation190_spill] sm:$0xff]  ;;  %5002 = vst [vmem:[#allocation3 + $0x474] sm:$0xf] %v4938_v49  ;;  %9487 = vmatpush3.bf16.msra.mxu1 %v9926_v46 }
 0x37d   : > { %v5376_v6 = vsel %vm10432_vm5, %v15886_v45, %v15885_v2  ;;  %5494 = vst [vmem:[#allocation3 + $0xd4] sm:$0xf] %v5196_v40  ;;  %v5226_v13 = vsel %vm10432_vm5, %v5221_v14, %v15883_v17  ;;  %v15887_v20 = vld [vmem:[#allocation189_spill] sm:$0xff]  ;;  %v15891_v16 = vor.u32 %v15889_v12, %v15890_v59  ;;  %v9875_v4 = vld [vmem:[#allocation3 + $0xec] ss:$36 sps:$4 sm:$0xff]  }
 0x37e   : > { %v5231_v31 = vrot.slane %v15884_v52, 4  ;;  %v15888_v32 = vor.u32 %v15887_v20, %v15850_v60  ;;  %5512 = vst [vmem:[#allocation3 + $0x35c] sm:$0xf] %v5376_v6  ;;  %v15892_v27 = vld [vmem:[#allocation211_spill] sm:$0xff]  ;;  %5497 = vst [vmem:[#allocation3 + $0x140] sm:$0xf] %v5226_v13  ;;  %v5406_v60 = vsel %vm10432_vm5, %v13722_v54, %v13149_v33  ;;  %7378 = vmatprep.mubr.bf16.mxu1 %v9875_v4 }
 0x37f   : > { %v5271_v36 = vrot.slane %v15891_v16, 4  ;;  %v15893_v15 = vld [vmem:[#allocation22_spill] sm:$0xff]  ;;  %v15895_v24 = vld [vmem:[#allocation57_spill] sm:$0xff]  ;;  %v15896_v3 = vld [vmem:[#allocation79_spill] sm:$0xff]  ;;  %5515 = vst [vmem:[#allocation3 + $0x3c8] sm:$0xf] %v5406_v60  ;;  %v8971_v13 = vadd.f32 %v8970_v7, %v13824_v34  ;;  %v8974_v20 = vadd.f32 %v8973_v58, %v8972_v47  ;;  %v8975_v16 = vpop.f32.mrf.mxu1 }
 0x380   : > { %v5261_v28 = vrot.slane %v15888_v32, 4  ;;  %v5236_v43 = vsel %vm10432_vm5, %v5231_v31, %v15892_v27  ;;  %v15894_v18 = vor.u32 %v15893_v15, %v15861_v55  ;;  %v5416_v26 = vsel %vm10432_vm5, %v13727_v53, %v15895_v24  ;;  %v15897_v55 = vld [vmem:[#allocation121_spill] sm:$0xff]  ;;  %v15898_v44 = vld [vmem:[#allocation55_spill] sm:$0xff]  ;;  %v15899_v41 = vld [vmem:[#allocation54_spill] sm:$0xff]  ;;  %v9079_v32 = vpop.f32.mrf.mxu0 }
 0x381   : > { %v5423_v9 = vshll.u32 %v15896_v3, 16  ;;  %5498 = vst [vmem:[#allocation3 + $0x164] sm:$0xf] %v5236_v43  ;;  %v5276_v56 = vsel %vm10432_vm5, %v5271_v36, %v15897_v55  ;;  %v15900_v33 = vor.u32 %v15898_v44, %v15899_v41  ;;  %5516 = vst [vmem:[#allocation3 + $0x3ec] sm:$0xf] %v5416_v26  ;;  %v5427_v53 = vshrl.u32 %v15896_v3, 16  ;;  %v8976_v46 = vpop.f32.mrf.mxu1 }
 0x382   : > { %v5301_v5 = vrot.slane %v15894_v18, 4  ;;  %v5266_v8 = vsel %vm10432_vm5, %v5261_v28, %v15890_v59  ;;  %v9939_v42 = vld [vmem:[#allocation9 + $0x208] sm:$0xff]   ;;  %5502 = vst [vmem:[#allocation3 + $0x1f4] sm:$0xf] %v5276_v56  ;;  %v15901_v48 = vld [vmem:[#allocation95_spill] sm:$0xff]  ;;  %v9080_v59 = vadd.f32 %v9079_v32, %v9078_v29  ;;  %v9081_v34 = vpop.f32.mrf.mxu0  ;;  %v9952_v7 = vld [vmem:[#allocation9 + $0x200] sm:$0xff]   ;;  %v7062_v56 = vadd.f32 %v8971_v13, %v13546_v22 }
 0x383   : > { %v5311_v54 = vrot.slane %v15900_v33, 4  ;;  %5501 = vst [vmem:[#allocation3 + $0x1d0] sm:$0xf] %v5266_v8  ;;  %v15902_v39 = vld [vmem:[#allocation94_spill] sm:$0xff]  ;;  %v9874_v63 = vld [vmem:[#allocation3 + $0x60] ss:$36 sps:$4 sm:$0xff]   ;;  %9488 = vmatprep.subr.bf16.mxu1 %v9939_v42 }
 0x384   : > { %v5306_v21 = vsel %vm10432_vm5, %v5301_v5, %v15899_v41  ;;  %v5350_v14 = vor.u32 %v15902_v39, %v15901_v48  ;;  %v15903_v57 = vld [vmem:[#allocation19_spill] sm:$0xff]  ;;  %v15906_v11 = vld [vmem:[#allocation30_spill] sm:$0xff]  ;;  %v13931_v12 = vrot.slane %v5423_v9, 5  ;;  %7524 = vmatmul.mubr.bf16.gmra.mxu0 %v9874_v63  ;;  %v5429_v4 = vrot.slane %v5427_v53, 4  ;;  %v15911_v60 = vld [vmem:[#allocation37_spill] sm:$0xff]  ;;  %v9082_v3 = vpop.f32.mrf.mxu0  ;;  %9489 = vmatpush3.bf16.msra.mxu1 %v9939_v42  ;;  %v8978_v41 = vpop.f32.mrf.mxu1 }
 0x385   : > { %v5316_v51 = vsel %vm10432_vm5, %v5311_v54, %v15903_v57  ;;  %5505 = vst [vmem:[#allocation3 + $0x260] sm:$0xf] %v5306_v21  ;;  %v15904_v35 = vld [vmem:[#allocation91_spill] sm:$0xff]  ;;  %v15907_v17 = vshrl.u32 %v15906_v11, 16  ;;  %v15908_v31 = vld [vmem:[#allocation150_spill] sm:$0xff]  ;;  %v9083_v44 = vadd.f32 %v9082_v3, %v9081_v34  ;;  %v15913_v33 = vld [vmem:[#allocation196_spill] sm:$0xff]  ;;  %9490 = vmatprep.subr.bf16.mxu1 %v9952_v7  ;;  %v7067_v42 = vadd.f32 %v8974_v20, %v13546_v22 }
 0x386   : > { %5506 = vst [vmem:[#allocation3 + $0x284] sm:$0xf] %v5316_v51  ;;  %v15905_v23 = vor.u32 %v15904_v35, %v15874_v37  ;;  %v15909_v45 = vshrl.u32 %v15908_v31, 16  ;;  %v9877_v49 = vld [vmem:[#allocation3 + $0xac] ss:$36 sps:$4 sm:$0xff]   ;;  %v7059_v37 = vadd.f32 %v13709_v0, %v13546_v22  ;;  %v5351_v43 = vrot.slane %v5350_v14, 4  ;;  %v9084_v47 = vpop.f32.mrf.mxu0  ;;  %v8979_v39 = vpop.f32.mrf.mxu1 }
 0x387   : > { %v5389_v52 = vrot.slane %v15907_v17, 4  ;;  %v5097_v28 = vld [vmem:[#allocation2 + $0x90] sm:$0xf]  ;;  %7531 = vmatprep.mubr.bf16.mxu0 %v9877_v49  ;;  %v9879_v27 = vld [vmem:[#allocation3 + $0xe8] ss:$36 sps:$4 sm:$0xff]   ;;  %v15910_v0 = vld [vmem:[#allocation33_spill] sm:$0xff]  ;;  %v13952_v14 = vadd.f32 %v8979_v39, %v8978_v41  ;;  %v8977_v57 = vadd.f32 %v8976_v46, %v8975_v16 }
 0x388   : > { %v5341_v40 = vrot.slane %v15905_v23, 4  ;;  %v5419_v6 = vrot.slane %v15909_v45, 4  ;;  %v9881_v15 = vld [vmem:[#allocation3 + $0x134] ss:$36 sps:$4 sm:$0xff]   ;;  %v13938_v18 = vadd.f32 %v9080_v59, %v7059_v37  ;;  %v5380_v5 = vor.u32 %v15910_v0, %v15885_v2  ;;  %7379 = vmatmul.mubr.bf16.gmra.mxu1 %v9879_v27  ;;  %v15912_v9 = vld [vmem:[#allocation194_spill] sm:$0xff] }
 0x389   : > { %v5390_v26 = vor.u32 %v5389_v52, %v15911_v60  ;;  %v5356_v8 = vsel %vm10432_vm5, %v5351_v43, %v15912_v9  ;;  %7386 = vmatprep.mubr.bf16.mxu1 %v9881_v15  ;;  %v5130_v54 = vmul.bf16 %v5097_v28, %v15913_v33  ;;  %v5430_v2 = vor.u32 %v5429_v4, %v13931_v12  ;;  %v9880_v53 = vld [vmem:[#allocation3 + $0xa8] ss:$36 sps:$4 sm:$0xff]   ;;  %v9883_v21 = vld [vmem:[#allocation3 + $0xf4] ss:$36 sps:$4 sm:$0xff]   ;;  %v9888_v31 = vld [vmem:[#allocation3 + $0x17c] ss:$36 sps:$4 sm:$0xff]  }
 0x38a   : > { %v5346_v36 = vsel %vm10432_vm5, %v5341_v40, %v15901_v48  ;;  %v5420_v55 = vor.u32 %v5419_v6, %v15895_v24  ;;  %5510 = vst [vmem:[#allocation3 + $0x314] sm:$0xf] %v5356_v8  ;;  %v13950_v48 = vadd.f32 %v9083_v44, %v7062_v56  ;;  %v9085_v24 = vpop.f32.mrf.mxu0  ;;  %v5381_v63 = vrot.slane %v5380_v5, 4  ;;  %9491 = vmatpush3.bf16.msra.mxu1 %v9952_v7  ;;  %v9886_v35 = vld [vmem:[#allocation3 + $0x130] ss:$36 sps:$4 sm:$0xff]   ;;  %v15914_v43 = vld [vmem:[#allocation216_spill] sm:$0xff] }
 0x38b   : > { %5509 = vst [vmem:[#allocation3 + $0x2f0] sm:$0xf] %v5346_v36  ;;  %v5391_v29 = vrot.slane %v5390_v26, 4  ;;  %v9086_v51 = vadd.f32 %v9085_v24, %v9084_v47  ;;  %v5431_v17 = vrot.slane %v5430_v2, 4  ;;  %v5433_v52 = vshll.u32 %v5130_v54, 16 }
 0x38c   : > { %7532 = vmatmul.mubr.bf16.gmra.mxu0 %v9880_v53  ;;  %v5421_v58 = vrot.slane %v5420_v55, 4  ;;  %v9087_v23 = vpop.f32.mrf.mxu0  ;;  %v5386_v40 = vsel %vm10432_vm5, %v5381_v63, %v15911_v60  ;;  %v7070_v20 = vadd.f32 %v8977_v57, %v13546_v22  ;;  %v9887_v28 = vld [vmem:[#allocation3 + $0xf0] ss:$36 sps:$4 sm:$0xff]   ;;  %v9890_v59 = vld [vmem:[#allocation3 + $0x13c] ss:$36 sps:$4 sm:$0xff]   ;;  %v5437_v27 = vshrl.u32 %v5130_v54, 16 }
 0x38d   : > { %7539 = vmatprep.mubr.bf16.mxu0 %v9883_v21  ;;  %v5396_v11 = vsel %vm10432_vm5, %v5391_v29, %v13140_v50  ;;  %v13961_v45 = vadd.f32 %v9086_v51, %v7067_v42  ;;  %5513 = vst [vmem:[#allocation3 + $0x380] sm:$0xf] %v5386_v40  ;;  %v5435_v13 = vrot.slane %v5433_v52, 5  ;;  %v9892_v16 = vld [vmem:[#allocation3 + $0x178] ss:$36 sps:$4 sm:$0xff]  }
 0x38e   : > { %5514 = vst [vmem:[#allocation3 + $0x3a4] sm:$0xf] %v5396_v11  ;;  %v5426_v6 = vsel %vm10432_vm5, %v5421_v58, %v13931_v12  ;;  %v9088_v49 = vpop.f32.mrf.mxu0  ;;  %v9894_v12 = vld [vmem:[#allocation3 + $0x1c4] ss:$36 sps:$4 sm:$0xff]   ;;  %v9893_v36 = vld [vmem:[#allocation3 + $0x138] ss:$36 sps:$4 sm:$0xff]  }
 0x38f   : > { %5517 = vst [vmem:[#allocation3 + $0x410] sm:$0xf] %v5426_v6  ;;  %v9089_v32 = vadd.f32 %v9088_v49, %v9087_v23  ;;  %v5436_v50 = vsel %vm10432_vm5, %v5431_v17, %v5435_v13  ;;  %v9896_v4 = vld [vmem:[#allocation3 + $0x184] ss:$36 sps:$4 sm:$0xff]   ;;  %v5098_v34 = vld [vmem:[#allocation2 + $0x94] sm:$0xf] }
 0x390   : > { %7387 = vmatmul.mubr.bf16.gmra.mxu1 %v9886_v35  ;;  %5518 = vst [vmem:[#allocation3 + $0x434] sm:$0xf] %v5436_v50  ;;  %v9899_v22 = vld [vmem:[#allocation3 + $0x1c0] ss:$36 sps:$4 sm:$0xff]   ;;  %v9901_v7 = vld [vmem:[#allocation3 + $0x20c] ss:$36 sps:$4 sm:$0xff]   ;;  %v5131_v15 = vmul.bf16 %v5098_v34, %v15914_v43  ;;  %v8981_v35 = vpop.f32.mrf.mxu1  ;;  %v9090_v6 = vpop.f32.mrf.mxu0 }
 0x391   : > { %7394 = vmatprep.mubr.bf16.mxu1 %v9888_v31  ;;  %v13969_v37 = vadd.f32 %v9089_v32, %v7070_v20  ;;  %v5439_v46 = vrot.slane %v5437_v27, 4  ;;  %v9900_v0 = vld [vmem:[#allocation3 + $0x180] ss:$36 sps:$4 sm:$0xff]   ;;  %v9903_v5 = vld [vmem:[#allocation3 + $0x1cc] ss:$36 sps:$4 sm:$0xff]   ;;  %v9978_v20 = vld [vmem:[#allocation10 + $0x38] sm:$0xff]  }
 0x392   : > { %v5443_v60 = vshll.u32 %v5131_v15, 16  ;;  %v5447_v26 = vshrl.u32 %v5131_v15, 16  ;;  %v9905_v3 = vld [vmem:[#allocation3 + $0x208] ss:$36 sps:$4 sm:$0xff]   ;;  %v9909_v8 = vld [vmem:[#allocation3 + $0x254] ss:$36 sps:$4 sm:$0xff]   ;;  %9524 = vmatprep.subr.bf16.mxu0 %v9978_v20 }
 0x393   : > { %v5440_v9 = vor.u32 %v5439_v46, %v5435_v13  ;;  %v9906_v41 = vld [vmem:[#allocation3 + $0x1c8] ss:$36 sps:$4 sm:$0xff]   ;;  %v9910_v33 = vld [vmem:[#allocation3 + $0x214] ss:$36 sps:$4 sm:$0xff]   ;;  %v9916_v21 = vld [vmem:[#allocation3 + $0x29c] ss:$36 sps:$4 sm:$0xff]   ;;  %v9091_v13 = vpop.f32.mrf.mxu0  ;;  %9525 = vmatpush3.bf16.msra.mxu0 %v9978_v20 }
 0x394   : > { %7540 = vmatmul.mubr.bf16.gmra.mxu0 %v9887_v28  ;;  %v5445_v55 = vrot.slane %v5443_v60, 5  ;;  %v5449_v56 = vrot.slane %v5447_v26, 4  ;;  %v9907_v54 = vld [vmem:[#allocation3 + $0x250] ss:$36 sps:$4 sm:$0xff]   ;;  %v5099_v2 = vld [vmem:[#allocation2 + $0x98] sm:$0x1] }
 0x395   : > { %7547 = vmatprep.mubr.bf16.mxu0 %v9890_v59  ;;  %v5441_v44 = vrot.slane %v5440_v9, 4  ;;  %v5132_v39 = vmul.bf16 %v5099_v2, %v15831_v30  ;;  %v9913_v29 = vld [vmem:[#allocation3 + $0x210] ss:$36 sps:$4 sm:$0xff]   ;;  %v9919_v57 = vld [vmem:[#allocation3 + $0x25c] ss:$36 sps:$4 sm:$0xff]   ;;  %v8982_v30 = vpop.f32.mrf.mxu1  ;;  %v9092_v59 = vadd.f32 %v9091_v13, %v9090_v6 }
 0x396   : > { %v5450_v47 = vor.u32 %v5449_v56, %v5445_v55  ;;  %v9914_v58 = vld [vmem:[#allocation3 + $0x298] ss:$36 sps:$4 sm:$0xff]   ;;  %v9922_v23 = vld [vmem:[#allocation3 + $0x2e4] ss:$36 sps:$4 sm:$0xff]   ;;  %v9929_v31 = vld [vmem:[#allocation3 + $0x32c] ss:$36 sps:$4 sm:$0xff]   ;;  %v8983_v28 = vadd.f32 %v8982_v30, %v8981_v35 }
 0x397   : > { %v5446_v53 = vsel %vm10432_vm5, %v5441_v44, %v5445_v55  ;;  %v5453_v63 = vshll.u32 %v5132_v39, 16  ;;  %v9917_v40 = vld [vmem:[#allocation3 + $0x258] ss:$36 sps:$4 sm:$0xff]   ;;  %v9925_v11 = vld [vmem:[#allocation3 + $0x2a4] ss:$36 sps:$4 sm:$0xff]   ;;  %v8984_v52 = vpop.f32.mrf.mxu1 }
 0x398   : > { %7395 = vmatmul.mubr.bf16.gmra.mxu1 %v9892_v16  ;;  %5519 = vst [vmem:[#allocation3 + $0x458] sm:$0xf] %v5446_v53  ;;  %v5451_v24 = vrot.slane %v5450_v47, 4  ;;  %v9920_v17 = vld [vmem:[#allocation3 + $0x2e0] ss:$36 sps:$4 sm:$0xff]  }
 0x399   : > { %7402 = vmatprep.mubr.bf16.mxu1 %v9894_v12  ;;  %v5455_v42 = vrot.slane %v5453_v63, 5  ;;  %v8985_v49 = vpop.f32.mrf.mxu1  ;;  %v13980_v32 = vld [vmem:[%s14497_s5] ss:$0 sm:$0xff]  ;;  %v9927_v43 = vld [vmem:[#allocation3 + $0x328] ss:$36 sps:$4 sm:$0xff]  }
 0x39a   : > { %v8986_v1 = vadd.f32 %v8985_v49, %v8984_v52  ;;  %v7075_v50 = vadd.f32 %v13980_v32, %v13952_v14  ;;  %v9923_v12 = vld [vmem:[#allocation3 + $0x2a0] ss:$36 sps:$4 sm:$0xff]   ;;  %v7078_v15 = vadd.f32 %v13980_v32, %v8983_v28  ;;  %v9930_v44 = vld [vmem:[#allocation3 + $0x2e8] ss:$36 sps:$4 sm:$0xff]  }
 0x39b   : > { %v5456_v51 = vsel %vm10432_vm5, %v5451_v24, %v5455_v42  ;;  %v8987_v16 = vpop.f32.mrf.mxu1  ;;  %v9942_v63 = vld [vmem:[#allocation3 + $0x3bc] ss:$36 sps:$4 sm:$0xff]   ;;  %v9979_v42 = vld [vmem:[#allocation10 + $0x30] sm:$0xff]   ;;  %v9948_v35 = vld [vmem:[#allocation3 + $0x404] ss:$36 sps:$4 sm:$0xff]  }
 0x39c   : > { %7548 = vmatmul.mubr.bf16.gmra.mxu0 %v9893_v36  ;;  %5520 = vst [vmem:[#allocation3 + $0x47c] sm:$0xf] %v5456_v51  ;;  %v9093_v36 = vpop.f32.mrf.mxu0  ;;  %v13984_v27 = vadd.f32 %v9092_v59, %v7075_v50  ;;  %9526 = vmatprep.subr.bf16.mxu0 %v9979_v42  ;;  %v9945_v51 = vld [vmem:[#allocation3 + $0x37c] ss:$36 sps:$4 sm:$0xff]   ;;  %v9951_v30 = vld [vmem:[#allocation3 + $0x3c4] ss:$36 sps:$4 sm:$0xff]  }
 0x39d   : > { %7555 = vmatprep.mubr.bf16.mxu0 %v9896_v4  ;;  %v9932_v4 = vld [vmem:[#allocation3 + $0x2ec] ss:$36 sps:$4 sm:$0xff]   ;;  %9527 = vmatpush3.bf16.msra.mxu0 %v9979_v42  ;;  %v9962_v59 = vld [vmem:[#allocation3 + $0x20] ss:$36 sps:$4 sm:$0xff]  }
 0x39e   : > { %v9980_v49 = vld [vmem:[#allocation10 + $0x28] sm:$0xff]  }
 0x39f   : > { %9528 = vmatprep.subr.bf16.mxu0 %v9980_v49  ;;  %v9958_v20 = vld [vmem:[#allocation3 + $0x40c] ss:$36 sps:$4 sm:$0xff]  }
 0x3a0   : > { %7403 = vmatmul.mubr.bf16.gmra.mxu1 %v9899_v22  ;;  %v8988_v22 = vpop.f32.mrf.mxu1  ;;  %v9953_v28 = vld [vmem:[#allocation3 + $0x448] ss:$36 sps:$4 sm:$0xff]  }
 0x3a1   : > { %7410 = vmatprep.mubr.bf16.mxu1 %v9901_v7  ;;  %v8989_v34 = vadd.f32 %v8988_v22, %v8987_v16  ;;  %v9094_v7 = vpop.f32.mrf.mxu0  ;;  %9529 = vmatpush3.bf16.msra.mxu0 %v9980_v49  ;;  %v9956_v16 = vld [vmem:[#allocation3 + $0x408] ss:$36 sps:$4 sm:$0xff]   ;;  %v9981_v22 = vld [vmem:[#allocation10 + $0x20] sm:$0xff]  }
 0x3a2   : > { %v9095_v46 = vadd.f32 %v9094_v7, %v9093_v36  ;;  %v8990_v14 = vpop.f32.mrf.mxu1  ;;  %v9963_v36 = vld [vmem:[#allocation3 + $0x68] ss:$36 sps:$4 sm:$0xff]   ;;  %9530 = vmatprep.subr.bf16.mxu0 %v9981_v22 }
 0x3a3   : > { %v7086_v39 = vadd.f32 %v13980_v32, %v8989_v34  ;;  %v9959_v34 = vld [vmem:[#allocation3 + $0x450] ss:$36 sps:$4 sm:$0xff]  }
 0x3a4   : > { %7556 = vmatmul.mubr.bf16.gmra.mxu0 %v9900_v0  ;;  %v9935_v0 = vld [vmem:[#allocation3 + $0x374] ss:$36 sps:$4 sm:$0xff]   ;;  %v13987_v60 = vadd.f32 %v9095_v46, %v7078_v15  ;;  %v8991_v26 = vpop.f32.mrf.mxu1  ;;  %v9966_v46 = vld [vmem:[#allocation3 + $0x140] ss:$36 sps:$4 sm:$0xff]  }
 0x3a5   : > { %7563 = vmatprep.mubr.bf16.mxu0 %v9903_v5  ;;  %v9096_v5 = vpop.f32.mrf.mxu0  ;;  %9531 = vmatpush3.bf16.msra.mxu0 %v9981_v22 }
 0x3a6   : > { %v8993_v56 = vpop.f32.mrf.mxu1 }
 0x3a7   : > { %v9097_v9 = vpop.f32.mrf.mxu0 }
 0x3a8   : > { %7411 = vmatmul.mubr.bf16.gmra.mxu1 %v9905_v3  ;;  %v13989_v3 = vadd.f32 %v8991_v26, %v8990_v14  ;;  %v9098_v55 = vadd.f32 %v9097_v9, %v9096_v5  ;;  %v8994_v2 = vpop.f32.mrf.mxu1 }
 0x3a9   : > { %7418 = vmatprep.mubr.bf16.mxu1 %v9909_v8  ;;  %v7083_v8 = vadd.f32 %v13980_v32, %v8986_v1  ;;  %v13994_v53 = vadd.f32 %v8994_v2, %v8993_v56  ;;  %v9949_v1 = vld [vmem:[#allocation3 + $0x3c0] ss:$36 sps:$4 sm:$0xff]  }
 0x3aa   : > { %v7091_v14 = vadd.f32 %v13980_v32, %v13989_v3  ;;  %v9967_v3 = vld [vmem:[#allocation3 + $0x188] ss:$36 sps:$4 sm:$0xff]  }
 0x3ac   : > { %7564 = vmatmul.mubr.bf16.gmra.mxu0 %v9906_v41  ;;  %v9099_v41 = vpop.f32.mrf.mxu0 }
 0x3ad   : > { %7571 = vmatprep.mubr.bf16.mxu0 %v9910_v33  ;;  %v9938_v33 = vld [vmem:[#allocation3 + $0x334] ss:$36 sps:$4 sm:$0xff]  }
 0x3ae   : > { %v9100_v47 = vpop.f32.mrf.mxu0 }
 0x3af   : > { %v9101_v24 = vadd.f32 %v9100_v47, %v9099_v41 }
 0x3b0   : > { %7419 = vmatmul.mubr.bf16.gmra.mxu1 %v9907_v54  ;;  %v13992_v54 = vadd.f32 %v9098_v55, %v7083_v8 }
 0x3b1   : > { %7426 = vmatprep.mubr.bf16.mxu1 %v9916_v21  ;;  %v9933_v21 = vld [vmem:[#allocation3 + $0x370] ss:$36 sps:$4 sm:$0xff]  }
 0x3b4   : > { %7572 = vmatmul.mubr.bf16.gmra.mxu0 %v9913_v29  ;;  %v13997_v29 = vadd.f32 %v9101_v24, %v7086_v39 }
 0x3b5   : > { %7579 = vmatprep.mubr.bf16.mxu0 %v9919_v57  ;;  %v9936_v57 = vld [vmem:[#allocation3 + $0x330] ss:$36 sps:$4 sm:$0xff]  }
 0x3b8   : > { %7427 = vmatmul.mubr.bf16.gmra.mxu1 %v9914_v58  ;;  %v9940_v58 = vld [vmem:[#allocation3 + $0x3b8] ss:$36 sps:$4 sm:$0xff]  }
 0x3b9   : > { %7434 = vmatprep.mubr.bf16.mxu1 %v9922_v23  ;;  %v9943_v23 = vld [vmem:[#allocation3 + $0x378] ss:$36 sps:$4 sm:$0xff]  }
 0x3bc   : > { %7580 = vmatmul.mubr.bf16.gmra.mxu0 %v9917_v40  ;;  %v8996_v40 = vpop.f32.mrf.mxu1 }
 0x3bd   : > { %7587 = vmatprep.mubr.bf16.mxu0 %v9925_v11  ;;  %v9946_v11 = vld [vmem:[#allocation3 + $0x400] ss:$36 sps:$4 sm:$0xff]  }
 0x3be   : > { %v8997_v52 = vpop.f32.mrf.mxu1 }
 0x3c0   : > { %7435 = vmatmul.mubr.bf16.gmra.mxu1 %v9920_v17  ;;  %v9955_v17 = vld [vmem:[#allocation3 + $0x44c] ss:$36 sps:$4 sm:$0xff]   ;;  %v8999_v6 = vpop.f32.mrf.mxu1 }
 0x3c1   : > { %7442 = vmatprep.mubr.bf16.mxu1 %v9929_v31  ;;  %v8998_v31 = vadd.f32 %v8997_v52, %v8996_v40 }
 0x3c2   : > { %v9000_v13 = vpop.f32.mrf.mxu1 }
 0x3c3   : > { %v9001_v50 = vadd.f32 %v9000_v13, %v8999_v6  ;;  %v7099_v42 = vadd.f32 %v13980_v32, %v8998_v31 }
 0x3c4   : > { %7588 = vmatmul.mubr.bf16.gmra.mxu0 %v9923_v12  ;;  %v9961_v12 = vld [vmem:[#allocation3 + $0x454] ss:$36 sps:$4 sm:$0xff]  }
 0x3c5   : > { %7595 = vmatprep.mubr.bf16.mxu0 %v9932_v4  ;;  %v9964_v4 = vld [vmem:[#allocation3 + $0xb0] ss:$36 sps:$4 sm:$0xff]  }
 0x3c8   : > { %7443 = vmatmul.mubr.bf16.gmra.mxu1 %v9927_v43  ;;  %v9965_v43 = vld [vmem:[#allocation3 + $0xf8] ss:$36 sps:$4 sm:$0xff]  }
 0x3c9   : > { %7450 = vmatprep.mubr.bf16.mxu1 %v9935_v0 }
 0x3cb   : > { %v9102_v7 = vpop.f32.mrf.mxu0 }
 0x3cc   : > { %7596 = vmatmul.mubr.bf16.gmra.mxu0 %v9930_v44  ;;  %v7094_v44 = vadd.f32 %v13980_v32, %v13994_v53 }
 0x3cd   : > { %7603 = vmatprep.mubr.bf16.mxu0 %v9938_v33  ;;  %v9103_v15 = vpop.f32.mrf.mxu0 }
 0x3ce   : > { %v9104_v0 = vadd.f32 %v9103_v15, %v9102_v7 }
 0x3cf   : > { %v9002_v5 = vpop.f32.mrf.mxu1  ;;  %v9105_v26 = vpop.f32.mrf.mxu0 }
 0x3d0   : > { %7451 = vmatmul.mubr.bf16.gmra.mxu1 %v9933_v21  ;;  %v14001_v9 = vadd.f32 %v9104_v0, %v7091_v14 }
 0x3d1   : > { %7458 = vmatprep.mubr.bf16.mxu1 %v9942_v63  ;;  %v9003_v8 = vpop.f32.mrf.mxu1  ;;  %v9106_v55 = vpop.f32.mrf.mxu0  ;;  %v9968_v63 = vld [vmem:[#allocation3 + $0x1d0] ss:$36 sps:$4 sm:$0xff]  }
 0x3d2   : > { %v9004_v56 = vadd.f32 %v9003_v8, %v9002_v5  ;;  %v9107_v41 = vadd.f32 %v9106_v55, %v9105_v26  ;;  %v9971_v5 = vld [vmem:[#allocation3 + $0x2a8] ss:$36 sps:$4 sm:$0xff]   ;;  %v9972_v55 = vld [vmem:[#allocation3 + $0x2f0] ss:$36 sps:$4 sm:$0xff]  }
 0x3d3   : > { %v9005_v33 = vpop.f32.mrf.mxu1 }
 0x3d4   : > { %7604 = vmatmul.mubr.bf16.gmra.mxu0 %v9936_v57  ;;  %v14005_v47 = vadd.f32 %v9107_v41, %v7094_v44 }
 0x3d5   : > { %7611 = vmatprep.mubr.bf16.mxu0 %v9945_v51  ;;  %v9006_v21 = vpop.f32.mrf.mxu1 }
 0x3d6   : > { %v9007_v24 = vadd.f32 %v9006_v21, %v9005_v33 }
 0x3d7   : > { %v9108_v2 = vpop.f32.mrf.mxu0 }
 0x3d8   : > { %7459 = vmatmul.mubr.bf16.gmra.mxu1 %v9940_v58  ;;  %v7110_v7 = vadd.f32 %v13980_v32, %v9007_v24 }
 0x3d9   : > { %7466 = vmatprep.mubr.bf16.mxu1 %v9948_v35  ;;  %v9109_v39 = vpop.f32.mrf.mxu0  ;;  %v9982_v35 = vld [vmem:[#allocation10 + $0x18] sm:$0xff]  }
 0x3da   : > { %v9110_v57 = vadd.f32 %v9109_v39, %v9108_v2  ;;  %v9008_v51 = vpop.f32.mrf.mxu1  ;;  %9532 = vmatprep.subr.bf16.mxu0 %v9982_v35  ;;  %v9983_v2 = vld [vmem:[#allocation10 + $0x10] sm:$0xff]  }
 0x3db   : > { %v9111_v58 = vpop.f32.mrf.mxu0  ;;  %9533 = vmatpush3.bf16.msra.mxu0 %v9982_v35 }
 0x3dc   : > { %7612 = vmatmul.mubr.bf16.gmra.mxu0 %v9943_v23  ;;  %v14008_v23 = vadd.f32 %v9110_v57, %v7099_v42  ;;  %v9009_v53 = vpop.f32.mrf.mxu1  ;;  %9534 = vmatprep.subr.bf16.mxu0 %v9983_v2 }
 0x3dd   : > { %7619 = vmatprep.mubr.bf16.mxu0 %v9951_v30  ;;  %v9112_v30 = vpop.f32.mrf.mxu0  ;;  %v9010_v40 = vadd.f32 %v9009_v53, %v9008_v51  ;;  %v9973_v53 = vld [vmem:[#allocation3 + $0x338] ss:$36 sps:$4 sm:$0xff]  }
 0x3de   : > { %v9011_v52 = vpop.f32.mrf.mxu1 }
 0x3df   : > { %9535 = vmatpush3.bf16.msra.mxu0 %v9983_v2 }
 0x3e0   : > { %7467 = vmatmul.mubr.bf16.gmra.mxu1 %v9946_v11  ;;  %v7102_v11 = vadd.f32 %v13980_v32, %v9001_v50  ;;  %v9012_v31 = vpop.f32.mrf.mxu1 }
 0x3e1   : > { %7474 = vmatprep.mubr.bf16.mxu1 %v9955_v17  ;;  %v9113_v17 = vadd.f32 %v9112_v30, %v9111_v58 }
 0x3e3   : > { %v9114_v6 = vpop.f32.mrf.mxu0  ;;  %v14011_v49 = vadd.f32 %v9113_v17, %v7102_v11  ;;  %v9974_v11 = vld [vmem:[#allocation3 + $0x380] ss:$36 sps:$4 sm:$0xff]  }
 0x3e4   : > { %7620 = vmatmul.mubr.bf16.gmra.mxu0 %v9949_v1  ;;  %v9969_v1 = vld [vmem:[#allocation3 + $0x218] ss:$36 sps:$4 sm:$0xff]  }
 0x3e5   : > { %7627 = vmatprep.mubr.bf16.mxu0 %v9958_v20  ;;  %v9115_v13 = vpop.f32.mrf.mxu0  ;;  %v9013_v20 = vadd.f32 %v9012_v31, %v9011_v52 }
 0x3e8   : > { %7475 = vmatmul.mubr.bf16.gmra.mxu1 %v9953_v28  ;;  %v9970_v28 = vld [vmem:[#allocation3 + $0x260] ss:$36 sps:$4 sm:$0xff]  }
 0x3e9   : > { %9492 = vmatprep.mubr.bf16.mxu1 %v9962_v59  ;;  %v7107_v59 = vadd.f32 %v13980_v32, %v9004_v56  ;;  %v7115_v56 = vadd.f32 %v13980_v32, %v9010_v40 }
 0x3ec   : > { %7628 = vmatmul.mubr.bf16.gmra.mxu0 %v9956_v16  ;;  %v9116_v16 = vadd.f32 %v9115_v13, %v9114_v6 }
 0x3ed   : > { %7635 = vmatprep.mubr.bf16.mxu0 %v9961_v12  ;;  %v9014_v12 = vpop.f32.mrf.mxu1 }
 0x3ef   : > { %v9015_v50 = vpop.f32.mrf.mxu1 }
 0x3f0   : > { %9493 = vmatmul.mubr.bf16.vlgmr.msra.gmra.mxu1 %v9963_v36  ;;  %v9117_v36 = vpop.f32.mrf.mxu0 }
 0x3f1   : > { %9496 = vmatprep.mubr.bf16.mxu1 %v9964_v4  ;;  %v14014_v4 = vadd.f32 %v9116_v16, %v7107_v59  ;;  %v9017_v15 = vpop.f32.mrf.mxu1 }
 0x3f2   : > { %v9118_v22 = vpop.f32.mrf.mxu0 }
 0x3f3   : > { %v9018_v0 = vpop.f32.mrf.mxu1 }
 0x3f4   : > { %7636 = vmatmul.mubr.bf16.gmra.mxu0 %v9959_v34  ;;  %v9016_v34 = vadd.f32 %v9015_v50, %v9014_v12  ;;  %v9019_v8 = vadd.f32 %v9018_v0, %v9017_v15  ;;  %v9976_v15 = vld [vmem:[#allocation3 + $0x410] ss:$36 sps:$4 sm:$0xff]  }
 0x3f5   : > { %v9020_v41 = vpop.f32.mrf.mxu1 }
 0x3f6   : > { %v7123_v17 = vadd.f32 %v13980_v32, %v9016_v34  ;;  %v7126_v59 = vadd.f32 %v13980_v32, %v9019_v8 }
 0x3f8   : > { %9497 = vmatmul.mubr.bf16.gmra.mxu1 %v9965_v43  ;;  %v9119_v43 = vadd.f32 %v9118_v22, %v9117_v36 }
 0x3f9   : > { %9500 = vmatprep.mubr.bf16.mxu1 %v9966_v46  ;;  %v9120_v46 = vpop.f32.mrf.mxu0 }
 0x3fa   : > { %v14017_v14 = vadd.f32 %v9119_v43, %v7110_v7  ;;  %v9975_v7 = vld [vmem:[#allocation3 + $0x3c8] ss:$36 sps:$4 sm:$0xff]  }
 0x3fb   : > { %v9121_v26 = vpop.f32.mrf.mxu0 }
 0x3fc   : > { %v9122_v44 = vadd.f32 %v9121_v26, %v9120_v46 }
 0x3fd   : > { %v9123_v33 = vpop.f32.mrf.mxu0 }
 0x3fe   : > { %v14020_v21 = vadd.f32 %v9122_v44, %v7115_v56 }
 0x3ff   : > { %v9124_v39 = vpop.f32.mrf.mxu0 }
 0x400   : > { %9501 = vmatmul.mubr.bf16.gmra.mxu1 %v9967_v3  ;;  %v9021_v3 = vpop.f32.mrf.mxu1  ;;  %v9125_v42 = vadd.f32 %v9124_v39, %v9123_v33  ;;  %v9977_v39 = vld [vmem:[#allocation3 + $0x458] ss:$36 sps:$4 sm:$0xff]  }
 0x401   : > { %9504 = vmatprep.mubr.bf16.mxu1 %v9968_v63  ;;  %v9022_v24 = vadd.f32 %v9021_v3, %v9020_v41  ;;  %v7118_v63 = vadd.f32 %v13980_v32, %v9013_v20  ;;  %v9126_v51 = vpop.f32.mrf.mxu0 }
 0x402   : > { %v9023_v57 = vpop.f32.mrf.mxu1 }
 0x403   : > { %v14023_v58 = vadd.f32 %v9125_v42, %v7118_v63  ;;  %v9127_v30 = vpop.f32.mrf.mxu0  ;;  %v7131_v46 = vadd.f32 %v13980_v32, %v9022_v24 }
 0x404   : > { %v9024_v35 = vpop.f32.mrf.mxu1  ;;  %v9128_v52 = vadd.f32 %v9127_v30, %v9126_v51 }
 0x405   : > { %v9025_v40 = vadd.f32 %v9024_v35, %v9023_v57  ;;  %v9129_v31 = vpop.f32.mrf.mxu0 }
 0x406   : > { %v9026_v6 = vpop.f32.mrf.mxu1 }
 0x407   : > { %v9130_v20 = vpop.f32.mrf.mxu0  ;;  %v7134_v33 = vadd.f32 %v13980_v32, %v9025_v40 }
 0x408   : > { %9505 = vmatmul.mubr.bf16.gmra.mxu1 %v9969_v1  ;;  %v14026_v1 = vadd.f32 %v9128_v52, %v7123_v17  ;;  %v9027_v13 = vpop.f32.mrf.mxu1  ;;  %v9131_v16 = vadd.f32 %v9130_v20, %v9129_v31 }
 0x409   : > { %9508 = vmatprep.mubr.bf16.mxu1 %v9970_v28  ;;  %v9028_v28 = vadd.f32 %v9027_v13, %v9026_v6  ;;  %v9132_v36 = vpop.f32.mrf.mxu0 }
 0x40a   : > { %v9029_v12 = vpop.f32.mrf.mxu1  ;;  %v14029_v50 = vadd.f32 %v9131_v16, %v7126_v59 }
 0x40b   : > { %v9133_v34 = vpop.f32.mrf.mxu0  ;;  %v7139_v35 = vadd.f32 %v13980_v32, %v9028_v28 }
 0x40c   : > { %v9030_v22 = vpop.f32.mrf.mxu1  ;;  %v9134_v0 = vadd.f32 %v9133_v34, %v9132_v36 }
 0x40d   : > { %v9031_v43 = vadd.f32 %v9030_v22, %v9029_v12  ;;  %v9135_v26 = vpop.f32.mrf.mxu0 }
 0x40e   : > { %v14032_v56 = vadd.f32 %v9134_v0, %v7131_v46  ;;  %v9985_v46 = vld [vmem:[#allocation10] sm:$0xff]  }
 0x40f   : > { %v9136_v44 = vpop.f32.mrf.mxu0  ;;  %v7142_v31 = vadd.f32 %v13980_v32, %v9031_v43 }
 0x410   : > { %9509 = vmatmul.mubr.bf16.gmra.mxu1 %v9971_v5  ;;  %v9032_v5 = vpop.f32.mrf.mxu1  ;;  %v9137_v2 = vadd.f32 %v9136_v44, %v9135_v26 }
 0x411   : > { %9512 = vmatprep.mubr.bf16.mxu1 %v9972_v55  ;;  %v9984_v55 = vld [vmem:[#allocation10 + $0x8] sm:$0xff]  }
 0x412   : > { %v9033_v8 = vpop.f32.mrf.mxu1  ;;  %9536 = vmatprep.subr.bf16.mxu0 %v9984_v55  ;;  %v9138_v63 = vpop.f32.mrf.mxu0  ;;  %v14035_v24 = vadd.f32 %v9137_v2, %v7134_v33 }
 0x413   : > { %v9034_v41 = vadd.f32 %v9033_v8, %v9032_v5  ;;  %9537 = vmatpush3.bf16.msra.mxu0 %v9984_v55 }
 0x414   : > { %v9035_v3 = vpop.f32.mrf.mxu1  ;;  %v9139_v57 = vpop.f32.mrf.mxu0  ;;  %9538 = vmatprep.subr.bf16.mxu0 %v9985_v46 }
 0x415   : > { %v7147_v28 = vadd.f32 %v13980_v32, %v9034_v41 }
 0x416   : > { %v9036_v42 = vpop.f32.mrf.mxu1 }
 0x417   : > { %v9037_v51 = vadd.f32 %v9036_v42, %v9035_v3  ;;  %9539 = vmatpush3.bf16.msra.mxu0 %v9985_v46 }
 0x418   : > { %9513 = vmatmul.mubr.bf16.gmra.mxu1 %v9973_v53  ;;  %v9140_v53 = vadd.f32 %v9139_v57, %v9138_v63  ;;  %v9038_v30 = vpop.f32.mrf.mxu1 }
 0x419   : > { %9516 = vmatprep.mubr.bf16.mxu1 %v9974_v11  ;;  %v9141_v11 = vpop.f32.mrf.mxu0  ;;  %v7150_v43 = vadd.f32 %v13980_v32, %v9037_v51 }
 0x41a   : > { %v14038_v17 = vadd.f32 %v9140_v53, %v7139_v35  ;;  %v9039_v52 = vpop.f32.mrf.mxu1 }
 0x41b   : > { %v9142_v40 = vpop.f32.mrf.mxu0  ;;  %v9040_v6 = vadd.f32 %v9039_v52, %v9038_v30 }
 0x41c   : > { %v9143_v13 = vadd.f32 %v9142_v40, %v9141_v11  ;;  %v9041_v20 = vpop.f32.mrf.mxu1 }
 0x41d   : > { %v9144_v59 = vpop.f32.mrf.mxu0  ;;  %v7155_v42 = vadd.f32 %v13980_v32, %v9040_v6 }
 0x41e   : > { %v14041_v16 = vadd.f32 %v9143_v13, %v7142_v31  ;;  %v9042_v12 = vpop.f32.mrf.mxu1 }
 0x41f   : > { %v9145_v36 = vpop.f32.mrf.mxu0  ;;  %v9043_v22 = vadd.f32 %v9042_v12, %v9041_v20 }
 0x420   : > { %9517 = vmatmul.mubr.bf16.gmra.mxu1 %v9975_v7  ;;  %v9146_v7 = vadd.f32 %v9145_v36, %v9144_v59  ;;  %v9172_v34 = vpop.f32.mrf.mxu1 }
 0x421   : > { %9520 = vmatprep.mubr.bf16.mxu1 %v9976_v15  ;;  %v9147_v15 = vpop.f32.mrf.mxu0  ;;  %v7158_v31 = vadd.f32 %v13980_v32, %v9043_v22 }
 0x422   : > { %v14044_v0 = vadd.f32 %v9146_v7, %v7147_v28  ;;  %v9173_v5 = vpop.f32.mrf.mxu1 }
 0x423   : > { %v9148_v26 = vpop.f32.mrf.mxu0  ;;  %v9174_v55 = vadd.f32 %v9173_v5, %v9172_v34 }
 0x424   : > { %v9149_v8 = vadd.f32 %v9148_v26, %v9147_v15  ;;  %v9175_v44 = vpop.f32.mrf.mxu1 }
 0x425   : > { %v7357_v2 = vadd.f32 %v9174_v55, %v13663_v61 }
 0x426   : > { %v14048_v3 = vadd.f32 %v9149_v8, %v7150_v43  ;;  %v9176_v41 = vpop.f32.mrf.mxu1 }
 0x427   : > { %v9150_v33 = vpop.f32.mrf.mxu0  ;;  %v9177_v63 = vadd.f32 %v9176_v41, %v9175_v44 }
 0x428   : > { %9521 = vmatmul.mubr.bf16.gmra.mxu1 %v9977_v39 }
 0x429   : > { %v9151_v39 = vpop.f32.mrf.mxu0  ;;  %v7360_v30 = vadd.f32 %v9177_v63, %v13669_v62 }
 0x42a   : > { %v9152_v57 = vadd.f32 %v9151_v39, %v9150_v33 }
 0x42b   : > { %v9153_v53 = vpop.f32.mrf.mxu0 }
 0x42c   : > { %v9178_v35 = vpop.f32.mrf.mxu1  ;;  %v14052_v11 = vadd.f32 %v9152_v57, %v7155_v42 }
 0x42d   : > { %v9154_v52 = vpop.f32.mrf.mxu0 }
 0x42e   : > { %v9179_v51 = vpop.f32.mrf.mxu1  ;;  %v9155_v61 = vadd.f32 %v9154_v52, %v9153_v53 }
 0x42f   : > { %v9180_v40 = vadd.f32 %v9179_v51, %v9178_v35 }
 0x430   : > { %v9181_v13 = vpop.f32.mrf.mxu1  ;;  %v14058_v12 = vadd.f32 %v9155_v61, %v7158_v31 }
 0x431   : > { %v14056_v59 = vadd.f32 %v9180_v40, %v13695_v38 }
 0x432   : > { %15915 = vst [vmem:[#allocation51_spill] sm:$0xff] %v14058_v12  ;;  %v9182_v6 = vpop.f32.mrf.mxu1 }
 0x433   : > { %v9183_v28 = vadd.f32 %v9182_v6, %v9181_v13 }
 0x435   : > { %v14061_v15 = vadd.f32 %v9183_v28, %v13700_v25 }
 0x436   : > { %v9284_v20 = vpop.f32.mrf.mxu0 }
 0x438   : > { %v9285_v36 = vpop.f32.mrf.mxu0 }
 0x439   : > { %v9286_v7 = vadd.f32 %v9285_v36, %v9284_v20 }
 0x43a   : > { %v9184_v62 = vpop.f32.mrf.mxu1  ;;  %v9287_v34 = vpop.f32.mrf.mxu0 }
 0x43b   : > { %v14063_v5 = vadd.f32 %v9286_v7, %v7357_v2 }
 0x43c   : > { %v9185_v46 = vpop.f32.mrf.mxu1  ;;  %v9288_v32 = vpop.f32.mrf.mxu0 }
 0x43d   : > { %v9186_v22 = vadd.f32 %v9185_v46, %v9184_v62  ;;  %v9289_v26 = vadd.f32 %v9288_v32, %v9287_v34 }
 0x43e   : > { %v9187_v55 = vpop.f32.mrf.mxu1 }
 0x43f   : > { %v14068_v43 = vadd.f32 %v9186_v22, %v13732_v19  ;;  %v14070_v44 = vadd.f32 %v9289_v26, %v7360_v30 }
 0x440   : > { %v9188_v8 = vpop.f32.mrf.mxu1 }
 0x441   : > { %v9189_v41 = vadd.f32 %v9188_v8, %v9187_v55 }
 0x443   : > { %v14077_v2 = vadd.f32 %v9189_v41, %v13736_v10 }
 0x444   : > { %v14065_v38 = vpop.f32.mrf.mxu0 }
 0x446   : > { %v14072_v33 = vpop.f32.mrf.mxu0 }
 0x448   : > { %v9190_v25 = vpop.f32.mrf.mxu1  ;;  %v14074_v39 = vpop.f32.mrf.mxu0 }
 0x44a   : > { %v9191_v63 = vpop.f32.mrf.mxu1  ;;  %v14079_v42 = vpop.f32.mrf.mxu0 }
 0x44b   : > { %v9192_v57 = vadd.f32 %v9191_v63, %v9190_v25 }
 0x44c   : > { %v9193_v35 = vpop.f32.mrf.mxu1  ;;  %v14081_v53 = vpop.f32.mrf.mxu0 }
 0x44d   : > { %v14084_v19 = vadd.f32 %v9192_v57, %v13938_v18 }
 0x44e   : > { %v9194_v30 = vpop.f32.mrf.mxu1  ;;  %v14086_v51 = vpop.f32.mrf.mxu0 }
 0x44f   : > { %v9195_v52 = vadd.f32 %v9194_v30, %v9193_v35 }
 0x450   : > { %v9196_v40 = vpop.f32.mrf.mxu1  ;;  %v14088_v31 = vpop.f32.mrf.mxu0 }
 0x451   : > { %v14091_v10 = vadd.f32 %v9195_v52, %v13950_v48 }
 0x452   : > { %v9197_v61 = vpop.f32.mrf.mxu1  ;;  %v14093_v13 = vpop.f32.mrf.mxu0 }
 0x453   : > { %v9198_v20 = vadd.f32 %v9197_v61, %v9196_v40 }
 0x454   : > { %v9199_v6 = vpop.f32.mrf.mxu1  ;;  %v14095_v36 = vpop.f32.mrf.mxu0 }
 0x455   : > { %v14098_v18 = vadd.f32 %v9198_v20, %v13961_v45 }
 0x456   : > { %v9200_v28 = vpop.f32.mrf.mxu1  ;;  %v14100_v7 = vpop.f32.mrf.mxu0 }
 0x457   : > { %v9201_v62 = vadd.f32 %v9200_v28, %v9199_v6 }
 0x458   : > { %v9202_v34 = vpop.f32.mrf.mxu1  ;;  %v14102_v46 = vpop.f32.mrf.mxu0 }
 0x459   : > { %v14105_v48 = vadd.f32 %v9201_v62, %v13969_v37 }
 0x45a   : > { %v9203_v32 = vpop.f32.mrf.mxu1  ;;  %v14107_v22 = vpop.f32.mrf.mxu0 }
 0x45b   : > { %v9204_v26 = vadd.f32 %v9203_v32, %v9202_v34 }
 0x45c   : > { %v9205_v55 = vpop.f32.mrf.mxu1  ;;  %v14109_v8 = vpop.f32.mrf.mxu0 }
 0x45d   : > { %v14112_v45 = vadd.f32 %v9204_v26, %v13984_v27 }
 0x45e   : > { %v9206_v41 = vpop.f32.mrf.mxu1  ;;  %v14114_v25 = vpop.f32.mrf.mxu0 }
 0x45f   : > { %v9207_v63 = vadd.f32 %v9206_v41, %v9205_v55 }
 0x460   : > { %v9208_v57 = vpop.f32.mrf.mxu1  ;;  %v14116_v35 = vpop.f32.mrf.mxu0 }
 0x461   : > { %v14119_v37 = vadd.f32 %v9207_v63, %v13987_v60 }
 0x462   : > { %v9209_v30 = vpop.f32.mrf.mxu1  ;;  %v14121_v52 = vpop.f32.mrf.mxu0 }
 0x463   : > { %v9210_v40 = vadd.f32 %v9209_v30, %v9208_v57 }
 0x464   : > { %v9211_v61 = vpop.f32.mrf.mxu1  ;;  %v14123_v20 = vpop.f32.mrf.mxu0 }
 0x465   : > { %v14126_v27 = vadd.f32 %v9210_v40, %v13992_v54 }
 0x466   : > { %v9212_v6 = vpop.f32.mrf.mxu1  ;;  %v14128_v28 = vpop.f32.mrf.mxu0 }
 0x467   : > { %15916 = vst [vmem:[#allocation80_spill] sm:$0xff] %v14126_v27  ;;  %v9213_v62 = vadd.f32 %v9212_v6, %v9211_v61 }
 0x468   : > { %v9214_v34 = vpop.f32.mrf.mxu1  ;;  %v14130_v32 = vpop.f32.mrf.mxu0 }
 0x469   : > { %v14133_v60 = vadd.f32 %v9213_v62, %v13997_v29 }
 0x46a   : > { %v9215_v26 = vpop.f32.mrf.mxu1  ;;  %v14135_v55 = vpop.f32.mrf.mxu0 }
 0x46b   : > { %15917 = vst [vmem:[#allocation98_spill] sm:$0xff] %v14133_v60  ;;  %v9216_v41 = vadd.f32 %v9215_v26, %v9214_v34 }
 0x46c   : > { %v9217_v63 = vpop.f32.mrf.mxu1  ;;  %v14137_v57 = vpop.f32.mrf.mxu0 }
 0x46d   : > { %v14140_v54 = vadd.f32 %v9216_v41, %v14001_v9 }
 0x46e   : > { %v9218_v30 = vpop.f32.mrf.mxu1  ;;  %v14142_v40 = vpop.f32.mrf.mxu0 }
 0x46f   : > { %15918 = vst [vmem:[#allocation63_spill] sm:$0xff] %v14140_v54  ;;  %15919 = vst [vmem:[#allocation56_spill] sm:$0xff] %v14142_v40  ;;  %v9219_v61 = vadd.f32 %v9218_v30, %v9217_v63 }
 0x470   : > { %v9220_v6 = vpop.f32.mrf.mxu1  ;;  %v14144_v12 = vpop.f32.mrf.mxu0 }
 0x471   : > { %15920 = vst [vmem:[#allocation50_spill] sm:$0xff] %v14144_v12  ;;  %v14147_v29 = vadd.f32 %v9219_v61, %v14005_v47 }
 0x472   : > { %v9221_v62 = vpop.f32.mrf.mxu1  ;;  %v14149_v60 = vpop.f32.mrf.mxu0 }
 0x473   : > { %15921 = vst [vmem:[#allocation246_spill] sm:$0xff] %v14147_v29  ;;  %15922 = vst [vmem:[#allocation170_spill] sm:$0xff] %v14149_v60  ;;  %v9222_v34 = vadd.f32 %v9221_v62, %v9220_v6 }
 0x474   : > { %v9223_v26 = vpop.f32.mrf.mxu1  ;;  %v14151_v27 = vpop.f32.mrf.mxu0 }
 0x475   : > { %v14154_v9 = vadd.f32 %v9222_v34, %v14008_v23 }
 0x476   : > { %v9224_v41 = vpop.f32.mrf.mxu1  ;;  %v14156_v54 = vpop.f32.mrf.mxu0 }
 0x477   : > { %15923 = vst [vmem:[#allocation183_spill] sm:$0xff] %v14154_v9  ;;  %v9225_v63 = vadd.f32 %v9224_v41, %v9223_v26 }
 0x478   : > { %v9226_v30 = vpop.f32.mrf.mxu1  ;;  %v14158_v40 = vpop.f32.mrf.mxu0 }
 0x479   : > { %v14161_v47 = vadd.f32 %v9225_v63, %v14011_v49 }
 0x47a   : > { %v9227_v61 = vpop.f32.mrf.mxu1  ;;  %v14163_v29 = vpop.f32.mrf.mxu0 }
 0x47b   : > { %15924 = vst [vmem:[#allocation163_spill] sm:$0xff] %v14161_v47  ;;  %15925 = vst [vmem:[#allocation167_spill] sm:$0xff] %v14163_v29  ;;  %v9228_v6 = vadd.f32 %v9227_v61, %v9226_v30 }
 0x47c   : > { %v9229_v62 = vpop.f32.mrf.mxu1  ;;  %v14165_v60 = vpop.f32.mrf.mxu0 }
 0x47d   : > { %v14168_v23 = vadd.f32 %v9228_v6, %v14014_v4 }
 0x47e   : > { %v9230_v34 = vpop.f32.mrf.mxu1  ;;  %v14170_v9 = vpop.f32.mrf.mxu0 }
 0x47f   : > { %15926 = vst [vmem:[#allocation169_spill] sm:$0xff] %v14168_v23  ;;  %15927 = vst [vmem:[#allocation168_spill] sm:$0xff] %v14170_v9  ;;  %v9231_v26 = vadd.f32 %v9230_v34, %v9229_v62 }
 0x480   : > { %v9232_v41 = vpop.f32.mrf.mxu1  ;;  %v14172_v12 = vpop.f32.mrf.mxu0 }
 0x481   : > { %15928 = vst [vmem:[#allocation173_spill] sm:$0xff] %v14172_v12  ;;  %v14175_v49 = vadd.f32 %v9231_v26, %v14017_v14 }
 0x482   : > { %v9233_v63 = vpop.f32.mrf.mxu1  ;;  %v14177_v47 = vpop.f32.mrf.mxu0 }
 0x483   : > { %15929 = vst [vmem:[#allocation221_spill] sm:$0xff] %v14175_v49  ;;  %15930 = vst [vmem:[#allocation21_spill] sm:$0xff] %v14177_v47  ;;  %v9234_v30 = vadd.f32 %v9233_v63, %v9232_v41 }
 0x484   : > { %v9235_v61 = vpop.f32.mrf.mxu1  ;;  %v14179_v29 = vpop.f32.mrf.mxu0 }
 0x485   : > { %v14182_v4 = vadd.f32 %v9234_v30, %v14020_v21 }
 0x486   : > { %v9236_v6 = vpop.f32.mrf.mxu1  ;;  %v14184_v23 = vpop.f32.mrf.mxu0 }
 0x487   : > { %15931 = vst [vmem:[#allocation81_spill] sm:$0xff] %v14182_v4  ;;  %v9237_v62 = vadd.f32 %v9236_v6, %v9235_v61 }
 0x488   : > { %v9238_v34 = vpop.f32.mrf.mxu1  ;;  %v14186_v9 = vpop.f32.mrf.mxu0 }
 0x489   : > { %v14189_v14 = vadd.f32 %v9237_v62, %v14023_v58 }
 0x48a   : > { %v9239_v26 = vpop.f32.mrf.mxu1  ;;  %v14191_v49 = vpop.f32.mrf.mxu0 }
 0x48b   : > { %15932 = vst [vmem:[#allocation225_spill] sm:$0xff] %v14189_v14  ;;  %15933 = vst [vmem:[#allocation223_spill] sm:$0xff] %v14191_v49  ;;  %v9240_v41 = vadd.f32 %v9239_v26, %v9238_v34 }
 0x48c   : > { %v9241_v63 = vpop.f32.mrf.mxu1  ;;  %v14193_v47 = vpop.f32.mrf.mxu0 }
 0x48d   : > { %v14196_v21 = vadd.f32 %v9240_v41, %v14026_v1 }
 0x48e   : > { %v9242_v30 = vpop.f32.mrf.mxu1  ;;  %v14198_v4 = vpop.f32.mrf.mxu0 }
 0x48f   : > { %15934 = vst [vmem:[#allocation222_spill] sm:$0xff] %v14196_v21  ;;  %15935 = vst [vmem:[#allocation237_spill] sm:$0xff] %v14198_v4  ;;  %v9243_v61 = vadd.f32 %v9242_v30, %v9241_v63 }
 0x490   : > { %v9244_v6 = vpop.f32.mrf.mxu1  ;;  %v14200_v12 = vpop.f32.mrf.mxu0 }
 0x491   : > { %15936 = vst [vmem:[#allocation93_spill] sm:$0xff] %v14200_v12  ;;  %v14203_v58 = vadd.f32 %v9243_v61, %v14029_v50 }
 0x492   : > { %v9245_v62 = vpop.f32.mrf.mxu1  ;;  %v14205_v49 = vpop.f32.mrf.mxu0 }
 0x493   : > { %15937 = vst [vmem:[#allocation213_spill] sm:$0xff] %v14203_v58  ;;  %v9246_v14 = vadd.f32 %v9245_v62, %v9244_v6 }
 0x494   : > { %v9247_v34 = vpop.f32.mrf.mxu1  ;;  %v14210_v21 = vpop.f32.mrf.mxu0 }
 0x495   : > { %v14208_v26 = vadd.f32 %v9246_v14, %v14032_v56 }
 0x496   : > { %v9248_v1 = vpop.f32.mrf.mxu1  ;;  %v14215_v50 = vpop.f32.mrf.mxu0 }
 0x497   : > { %15938 = vst [vmem:[#allocation101_spill] sm:$0xff] %v14208_v26  ;;  %v9249_v41 = vadd.f32 %v9248_v1, %v9247_v34 }
 0x498   : > { %v9250_v4 = vpop.f32.mrf.mxu1  ;;  %v14220_v56 = vpop.f32.mrf.mxu0 }
 0x499   : > { %v14213_v63 = vadd.f32 %v9249_v41, %v14035_v24 }
 0x49a   : > { %v9251_v30 = vpop.f32.mrf.mxu1  ;;  %v14225_v24 = vpop.f32.mrf.mxu0 }
 0x49b   : > { %15939 = vst [vmem:[#allocation71_spill] sm:$0xff] %v14213_v63  ;;  %v9252_v12 = vadd.f32 %v9251_v30, %v9250_v4 }
 0x49c   : > { %v9253_v61 = vpop.f32.mrf.mxu1 }
 0x49d   : > { %v14218_v6 = vadd.f32 %v9252_v12, %v14038_v17  ;;  %v14230_v17 = vpop.f32.mrf.mxu0 }
 0x49e   : > { %v9254_v62 = vpop.f32.mrf.mxu1 }
 0x49f   : > { %15940 = vst [vmem:[#allocation82_spill] sm:$0xff] %v14218_v6  ;;  %v9255_v58 = vadd.f32 %v9254_v62, %v9253_v61 }
 0x4a0   : > { %v9256_v14 = vpop.f32.mrf.mxu1 }
 0x4a1   : > { %v14223_v34 = vadd.f32 %v9255_v58, %v14041_v16  ;;  %v14235_v16 = vpop.f32.mrf.mxu0 }
 0x4a2   : > { %v9257_v1 = vpop.f32.mrf.mxu1 }
 0x4a3   : > { %v9258_v26 = vadd.f32 %v9257_v1, %v9256_v14  ;;  %v9292_v14 = vadd.f32 %v14072_v33, %v14065_v38  ;;  %v9295_v1 = vadd.f32 %v14079_v42, %v14074_v39  ;;  %v9298_v39 = vadd.f32 %v14086_v51, %v14081_v53 }
 0x4a4   : > { %v9259_v41 = vpop.f32.mrf.mxu1 }
 0x4a5   : > { %v14228_v4 = vadd.f32 %v9258_v26, %v14044_v0 }
 0x4a6   : > { %v9260_v30 = vpop.f32.mrf.mxu1 }
 0x4a7   : > { %v9261_v63 = vadd.f32 %v9260_v30, %v9259_v41  ;;  %v14248_v41 = vpop.f32.mrf.mxu0 }
 0x4a8   : > { %v9262_v12 = vpop.f32.mrf.mxu1 }
 0x4a9   : > { %v14233_v61 = vadd.f32 %v9261_v63, %v14048_v3  ;;  %v7526_v63 = vadd.f32 %v9292_v14, %v14056_v59  ;;  %v9307_v59 = vadd.f32 %v14107_v22, %v14102_v46  ;;  %v7534_v46 = vadd.f32 %v9298_v39, %v14068_v43 }
 0x4aa   : > { %v9263_v62 = vpop.f32.mrf.mxu1  ;;  %v9319_v43 = vadd.f32 %v14135_v55, %v14130_v32 }
 0x4ab   : > { %15941 = vst [vmem:[#allocation224_spill] sm:$0xff] %v14233_v61  ;;  %v9264_v6 = vadd.f32 %v9263_v62, %v9262_v12  ;;  %v7529_v62 = vadd.f32 %v9295_v1, %v14061_v15  ;;  %v14252_v61 = vpop.f32.mrf.mxu0  ;;  %v9301_v1 = vadd.f32 %v14093_v13, %v14088_v31  ;;  %v7545_v22 = vadd.f32 %v9307_v59, %v14091_v10 }
 0x4ac   : > { %v14237_v58 = vpop.f32.mrf.mxu1  ;;  %v9316_v31 = vadd.f32 %v14128_v28, %v14123_v20  ;;  %v9313_v59 = vadd.f32 %v14121_v52, %v14116_v35  ;;  %v7561_v32 = vadd.f32 %v9319_v43, %v14119_v37  ;;  %v9328_v35 = vadd.f32 %v14156_v54, %v14151_v27 }
 0x4ad   : > { %v14242_v0 = vadd.f32 %v9264_v6, %v14052_v11  ;;  %v9304_v11 = vadd.f32 %v14100_v7, %v14095_v36 }
 0x4ae   : > { %v14244_v26 = vpop.f32.mrf.mxu1 }
 0x4b0   : > { %v9494_v3 = vpop.f32.mrf.mxu1 }
 0x4b1   : > { %v7687_v12 = vadd.f32 %v9494_v3, %v7526_v63  ;;  %v14264_v63 = vpop.f32.mrf.mxu0 }
 0x4b2   : > { %v7678_v30 = vpop.f32.mrf.mxu1 }
 0x4b3   : > { %v7679_v33 = vadd.f32 %v7678_v30, %v14063_v5  ;;  %v7807_v14 = vmax.f32 %v7687_v12, 0.0  ;;  %v14269_v12 = vpop.f32.mrf.mxu0 }
 0x4b4   : > { %v9495_v38 = vpop.f32.mrf.mxu1 }
 0x4b5   : > { %v7690_v6 = vadd.f32 %v9495_v38, %v7529_v62  ;;  %v7805_v7 = vmax.f32 %v7679_v33, 0.0  ;;  %v7542_v62 = vadd.f32 %v9304_v11, %v14084_v19  ;;  %v7537_v33 = vadd.f32 %v9301_v1, %v14077_v2  ;;  %v14280_v20 = vpop.f32.mrf.mxu0 }
 0x4b6   : > { %v7681_v42 = vpop.f32.mrf.mxu1  ;;  %v9310_v19 = vadd.f32 %v14114_v25, %v14109_v8 }
 0x4b7   : > { %v7808_v3 = vmax.f32 %v7690_v6, 0.0  ;;  %v7682_v15 = vadd.f32 %v7681_v42, %v14070_v44  ;;  %v14285_v55 = vpop.f32.mrf.mxu0 }
 0x4b8   : > { %v9498_v36 = vpop.f32.mrf.mxu1 }
 0x4b9   : > { %v7838_v5 = vpack.c.bf16 %v7808_v3, %v7807_v14  ;;  %v7806_v30 = vmax.f32 %v7682_v15, 0.0  ;;  %v7703_v38 = vadd.f32 %v9498_v36, %v7542_v62  ;;  %v7558_v15 = vadd.f32 %v9316_v31, %v14112_v45  ;;  %v15942_v45 = vld [vmem:[#allocation56_spill] sm:$0xff]  ;;  %v14296_v27 = vpop.f32.mrf.mxu0 }
 0x4ba   : > { %v7694_v53 = vpop.f32.mrf.mxu1  ;;  %v7550_v36 = vadd.f32 %v9310_v19, %v14098_v18  ;;  %v9322_v62 = vadd.f32 %v15942_v45, %v14137_v57  ;;  %v15943_v18 = vld [vmem:[#allocation167_spill] sm:$0xff]  ;;  %v15953_v45 = vld [vmem:[#allocation21_spill] sm:$0xff] }
 0x4bb   : > { %v7837_v51 = vpack.c.bf16 %v7806_v30, %v7805_v7  ;;  %v7695_v13 = vadd.f32 %v7694_v53, %v7534_v46  ;;  %v7811_v10 = vmax.f32 %v7703_v38, 0.0  ;;  %v7553_v30 = vadd.f32 %v9313_v59, %v14105_v48  ;;  %v14301_v59 = vpop.f32.mrf.mxu0 }
 0x4bc   : > { %v9499_v44 = vpop.f32.mrf.mxu1 }
 0x4bd   : > { %v7706_v6 = vadd.f32 %v9499_v44, %v7545_v22  ;;  %9540 = vmatprep.mubr.bf16.mxu0 %v7837_v51  ;;  %v7809_v14 = vmax.f32 %v7695_v13, 0.0  ;;  %v9331_v51 = vadd.f32 %v15943_v18, %v14158_v40  ;;  %v15944_v22 = vld [vmem:[#allocation50_spill] sm:$0xff] }
 0x4be   : > { %v7697_v11 = vpop.f32.mrf.mxu1  ;;  %9541 = vmatmul.mubr.bf16.vlgmr.msra.gmra.mxu0 %v7838_v5  ;;  %v15945_v44 = vld [vmem:[#allocation170_spill] sm:$0xff] }
 0x4bf   : > { %v7812_v39 = vmax.f32 %v7706_v6, 0.0  ;;  %v7698_v42 = vadd.f32 %v7697_v11, %v7537_v33  ;;  %v9325_v31 = vadd.f32 %v15945_v44, %v15944_v22  ;;  %v15946_v33 = vld [vmem:[#allocation63_spill] sm:$0xff]  ;;  %v15948_v40 = vld [vmem:[#allocation246_spill] sm:$0xff] }
 0x4c0   : > { %v9502_v28 = vpop.f32.mrf.mxu1  ;;  %v7574_v19 = vadd.f32 %v9328_v35, %v15946_v33  ;;  %v15955_v44 = vld [vmem:[#allocation183_spill] sm:$0xff] }
 0x4c1   : > { %v7840_v3 = vpack.c.bf16 %v7812_v39, %v7811_v10  ;;  %v7810_v2 = vmax.f32 %v7698_v42, 0.0  ;;  %v7719_v1 = vadd.f32 %v9502_v28, %v7558_v15  ;;  %v15947_v10 = vld [vmem:[#allocation80_spill] sm:$0xff]  ;;  %v7577_v42 = vadd.f32 %v9331_v51, %v15948_v40  ;;  %v15949_v15 = vld [vmem:[#allocation98_spill] sm:$0xff] }
 0x4c2   : > { %v7710_v8 = vpop.f32.mrf.mxu1  ;;  %v7566_v39 = vadd.f32 %v9322_v62, %v15947_v10  ;;  %v9355_v40 = vadd.f32 %v14225_v24, %v14220_v56 }
 0x4c3   : > { %v7839_v25 = vpack.c.bf16 %v7810_v2, %v7809_v14  ;;  %v7711_v52 = vadd.f32 %v7710_v8, %v7550_v36  ;;  %v7815_v37 = vmax.f32 %v7719_v1, 0.0  ;;  %v9340_v14 = vadd.f32 %v14184_v23, %v14179_v29  ;;  %v14312_v29 = vpop.f32.mrf.mxu0 }
 0x4c4   : > { %v9503_v7 = vpop.f32.mrf.mxu1  ;;  %v7569_v8 = vadd.f32 %v9325_v31, %v15949_v15 }
 0x4c5   : > { %v7722_v5 = vadd.f32 %v9503_v7, %v7561_v32  ;;  %9544 = vmatprep.mubr.bf16.mxu0 %v7839_v25  ;;  %v7813_v13 = vmax.f32 %v7711_v52, 0.0  ;;  %v15950_v25 = vld [vmem:[#allocation168_spill] sm:$0xff]  ;;  %v15951_v32 = vld [vmem:[#allocation223_spill] sm:$0xff] }
 0x4c6   : > { %v7713_v53 = vpop.f32.mrf.mxu1  ;;  %9545 = vmatmul.mubr.bf16.gmra.mxu0 %v7840_v3  ;;  %v9334_v1 = vadd.f32 %v15950_v25, %v14165_v60  ;;  %v9343_v7 = vadd.f32 %v15951_v32, %v14186_v9  ;;  %v15956_v9 = vld [vmem:[#allocation221_spill] sm:$0xff] }
 0x4c7   : > { %v7816_v38 = vmax.f32 %v7722_v5, 0.0  ;;  %v7714_v46 = vadd.f32 %v7713_v53, %v7553_v30  ;;  %v15952_v30 = vld [vmem:[#allocation173_spill] sm:$0xff] }
 0x4c8   : > { %v9506_v54 = vpop.f32.mrf.mxu1  ;;  %v9337_v62 = vadd.f32 %v15953_v45, %v15952_v30  ;;  %v7582_v31 = vadd.f32 %v9334_v1, %v15955_v44  ;;  %v15960_v1 = vld [vmem:[#allocation222_spill] sm:$0xff]  ;;  %v9364_v45 = vadd.f32 %v14269_v12, %v14264_v63 }
 0x4c9   : > { %v7842_v6 = vpack.c.bf16 %v7816_v38, %v7815_v37  ;;  %v7814_v48 = vmax.f32 %v7714_v46, 0.0  ;;  %v7735_v43 = vadd.f32 %v9506_v54, %v7574_v19  ;;  %v15954_v37 = vld [vmem:[#allocation169_spill] sm:$0xff]  ;;  %v7593_v54 = vadd.f32 %v9343_v7, %v15956_v9 }
 0x4ca   : > { %v7726_v57 = vpop.f32.mrf.mxu1  ;;  %v7590_v38 = vadd.f32 %v9340_v14, %v15954_v37  ;;  %v9367_v37 = vadd.f32 %v14285_v55, %v14280_v20  ;;  %v9267_v55 = vadd.f32 %v14244_v26, %v14237_v58 }
 0x4cb   : > { %v7841_v11 = vpack.c.bf16 %v7814_v48, %v7813_v13  ;;  %v7727_v3 = vadd.f32 %v7726_v57, %v7566_v39  ;;  %v7819_v35 = vmax.f32 %v7735_v43, 0.0  ;;  %v14317_v13 = vpop.f32.mrf.mxu0  ;;  %v9352_v48 = vadd.f32 %v14215_v50, %v14210_v21  ;;  %v15957_v57 = vld [vmem:[#allocation163_spill] sm:$0xff]  ;;  %v15958_v43 = vld [vmem:[#allocation237_spill] sm:$0xff] }
 0x4cc   : > { %v9507_v28 = vpop.f32.mrf.mxu1  ;;  %v9346_v10 = vadd.f32 %v15958_v43, %v14193_v47  ;;  %v7625_v20 = vadd.f32 %v9367_v37, %v14223_v34  ;;  %v9373_v58 = vadd.f32 %v14317_v13, %v14312_v29 }
 0x4cd   : > { %v7738_v2 = vadd.f32 %v9507_v28, %v7577_v42  ;;  %9548 = vmatprep.mubr.bf16.mxu0 %v7841_v11  ;;  %v7817_v53 = vmax.f32 %v7727_v3, 0.0  ;;  %v7585_v11 = vadd.f32 %v9337_v62, %v15957_v57  ;;  %v15959_v3 = vld [vmem:[#allocation93_spill] sm:$0xff]  ;;  %v9374_v21 = vpop.f32.mrf.mxu0 }
 0x4ce   : > { %v7729_v36 = vpop.f32.mrf.mxu1  ;;  %9549 = vmatmul.mubr.bf16.gmra.mxu0 %v7842_v6 }
 0x4cf   : > { %v7820_v52 = vmax.f32 %v7738_v2, 0.0  ;;  %v7730_v5 = vadd.f32 %v7729_v36, %v7569_v8  ;;  %v9349_v2 = vadd.f32 %v14205_v49, %v15959_v3  ;;  %v7606_v36 = vadd.f32 %v9352_v48, %v15960_v1  ;;  %v9375_v24 = vpop.f32.mrf.mxu0 }
 0x4d0   : > { %v9510_v23 = vpop.f32.mrf.mxu1 }
 0x4d1   : > { %v7844_v18 = vpack.c.bf16 %v7820_v52, %v7819_v35  ;;  %v7818_v51 = vmax.f32 %v7730_v5, 0.0  ;;  %v7751_v22 = vadd.f32 %v9510_v23, %v7590_v38  ;;  %v15961_v35 = vld [vmem:[#allocation81_spill] sm:$0xff]  ;;  %v9377_v63 = vpop.f32.mrf.mxu0 }
 0x4d2   : > { %v7742_v60 = vpop.f32.mrf.mxu1  ;;  %v7598_v52 = vadd.f32 %v9346_v10, %v15961_v35  ;;  %v15962_v5 = vld [vmem:[#allocation213_spill] sm:$0xff]  ;;  %v15966_v10 = vld [vmem:[#allocation71_spill] sm:$0xff] }
 0x4d3   : > { %v7843_v46 = vpack.c.bf16 %v7818_v51, %v7817_v53  ;;  %v7743_v33 = vadd.f32 %v7742_v60, %v7582_v31  ;;  %v7823_v42 = vmax.f32 %v7751_v22, 0.0  ;;  %v7609_v56 = vadd.f32 %v9355_v40, %v15962_v5  ;;  %v15963_v23 = vld [vmem:[#allocation225_spill] sm:$0xff]  ;;  %v9378_v57 = vpop.f32.mrf.mxu0 }
 0x4d4   : > { %v9511_v6 = vpop.f32.mrf.mxu1  ;;  %v7601_v53 = vadd.f32 %v9349_v2, %v15963_v23  ;;  %v9361_v22 = vadd.f32 %v14252_v61, %v14248_v41  ;;  %v9376_v61 = vadd.f32 %v9375_v24, %v9374_v21  ;;  %v9370_v40 = vadd.f32 %v14301_v59, %v14296_v27  ;;  %v15967_v2 = vld [vmem:[#allocation51_spill] sm:$0xff]  ;;  %v8814_v23 = vld [vmem:[%s10375_s29] sm:$0xff]  }
 0x4d5   : > { %v7754_v19 = vadd.f32 %v9511_v6, %v7593_v54  ;;  %9552 = vmatprep.mubr.bf16.mxu0 %v7843_v46  ;;  %v7821_v15 = vmax.f32 %v7743_v33, 0.0  ;;  %v15964_v54 = vld [vmem:[#allocation82_spill] sm:$0xff]  ;;  %v15965_v33 = vld [vmem:[#allocation101_spill] sm:$0xff]  ;;  %v8815_v37 = vunpack.c.l.bf16 %v8814_v23 }
 0x4d6   : > { %v7745_v39 = vpop.f32.mrf.mxu1  ;;  %9553 = vmatmul.mubr.bf16.gmra.mxu0 %v7844_v18  ;;  %v9358_v18 = vadd.f32 %v14235_v16, %v14230_v17  ;;  %v7622_v6 = vadd.f32 %v9364_v45, %v15964_v54  ;;  %v7630_v59 = vadd.f32 %v9370_v40, %v14228_v4  ;;  %v8893_v4 = vld [vmem:[%s10375_s29 + $0x8] sm:$0xff]   ;;  %v8816_v54 = vunpack.c.h.bf16 %v8814_v23 }
 0x4d7   : > { %v7824_v28 = vmax.f32 %v7754_v19, 0.0  ;;  %v7746_v14 = vadd.f32 %v7745_v39, %v7585_v11  ;;  %v7617_v39 = vadd.f32 %v9361_v22, %v15966_v10  ;;  %v8820_v22 = vunpack.c.h.bf16 %v8893_v4 }
 0x4d8   : > { %v9514_v50 = vpop.f32.mrf.mxu1  ;;  %v7614_v19 = vadd.f32 %v9358_v18, %v15965_v33 }
 0x4d9   : > { %v7846_v8 = vpack.c.bf16 %v7824_v28, %v7823_v42  ;;  %v7822_v25 = vmax.f32 %v7746_v14, 0.0  ;;  %v7767_v7 = vadd.f32 %v9514_v50, %v7606_v36  ;;  %v9379_v28 = vadd.f32 %v9378_v57, %v9377_v63 }
 0x4da   : > { %v7758_v32 = vpop.f32.mrf.mxu1  ;;  %v7480_v50 = vadd.f32 %v9267_v55, %v15967_v2 }
 0x4db   : > { %v7845_v47 = vpack.c.bf16 %v7822_v25, %v7821_v15  ;;  %v7759_v49 = vadd.f32 %v7758_v32, %v7598_v52  ;;  %v7827_v38 = vmax.f32 %v7767_v7, 0.0  ;;  %v7638_v25 = vadd.f32 %v9376_v61, %v14242_v0  ;;  %v15968_v52 = vld [vmem:[#allocation224_spill] sm:$0xff] }
 0x4dc   : > { %v9515_v30 = vpop.f32.mrf.mxu1  ;;  %v7641_v32 = vadd.f32 %v9379_v28, %v7480_v50  ;;  %v7633_v29 = vadd.f32 %v9373_v58, %v15968_v52  ;;  %v8897_v28 = vld [vmem:[%s10375_s29 + $0x28] sm:$0xff]   ;;  %v8896_v58 = vld [vmem:[%s10375_s29 + $0x20] sm:$0xff]  }
 0x4dd   : > { %v7770_v62 = vadd.f32 %v9515_v30, %v7609_v56  ;;  %9556 = vmatprep.mubr.bf16.mxu0 %v7845_v47  ;;  %v7825_v44 = vmax.f32 %v7759_v49, 0.0  ;;  %v8836_v52 = vunpack.c.h.bf16 %v8897_v28 }
 0x4de   : > { %v7761_v51 = vpop.f32.mrf.mxu1  ;;  %9557 = vmatmul.mubr.bf16.gmra.mxu0 %v7846_v8 }
 0x4df   : > { %v7828_v60 = vmax.f32 %v7770_v62, 0.0  ;;  %v7762_v46 = vadd.f32 %v7761_v51, %v7601_v53  ;;  %v14358_v62 = vld [vmem:[%s14498_s6] ss:$0 sm:$0xff]  ;;  %v8819_v53 = vunpack.c.l.bf16 %v8893_v4 }
 0x4e0   : > { %v9518_v12 = vpop.f32.mrf.mxu1 }
 0x4e1   : > { %v7848_v31 = vpack.c.bf16 %v7828_v60, %v7827_v38  ;;  %v7826_v9 = vmax.f32 %v7762_v46, 0.0  ;;  %v7783_v16 = vadd.f32 %v9518_v12, %v7622_v6  ;;  %v8895_v12 = vld [vmem:[%s10375_s29 + $0x18] sm:$0xff]  }
 0x4e2   : > { %v7774_v48 = vpop.f32.mrf.mxu1  ;;  %v8828_v40 = vunpack.c.h.bf16 %v8895_v12 }
 0x4e3   : > { %v7847_v17 = vpack.c.bf16 %v7826_v9, %v7825_v44  ;;  %v7775_v41 = vadd.f32 %v7774_v48, %v7614_v19  ;;  %v7831_v14 = vmax.f32 %v7783_v16, 0.0  ;;  %v8894_v48 = vld [vmem:[%s10375_s29 + $0x10] sm:$0xff]   ;;  %v8827_v19 = vunpack.c.l.bf16 %v8895_v12 }
 0x4e4   : > { %v9519_v11 = vpop.f32.mrf.mxu1  ;;  %v8823_v61 = vunpack.c.l.bf16 %v8894_v48  ;;  %v8824_v2 = vunpack.c.h.bf16 %v8894_v48 }
 0x4e5   : > { %v7786_v43 = vadd.f32 %v9519_v11, %v7625_v20  ;;  %9560 = vmatprep.mubr.bf16.mxu0 %v7847_v17  ;;  %v7829_v21 = vmax.f32 %v7775_v41, 0.0 }
 0x4e6   : > { %v7777_v42 = vpop.f32.mrf.mxu1  ;;  %9561 = vmatmul.mubr.bf16.gmra.mxu0 %v7848_v31 }
 0x4e7   : > { %v7832_v3 = vmax.f32 %v7786_v43, 0.0  ;;  %v7778_v34 = vadd.f32 %v7777_v42, %v7617_v39 }
 0x4e8   : > { %v9522_v26 = vpop.f32.mrf.mxu1 }
 0x4e9   : > { %v7850_v15 = vpack.c.bf16 %v7832_v3, %v7831_v14  ;;  %v7830_v8 = vmax.f32 %v7778_v34, 0.0  ;;  %v7799_v27 = vadd.f32 %v9522_v26, %v7638_v25 }
 0x4ea   : > { %v7790_v1 = vpop.f32.mrf.mxu1 }
 0x4eb   : > { %v7849_v36 = vpack.c.bf16 %v7830_v8, %v7829_v21  ;;  %v7791_v7 = vadd.f32 %v7790_v1, %v7630_v59  ;;  %v7835_v5 = vmax.f32 %v7799_v27, 0.0  ;;  %v8835_v8 = vunpack.c.l.bf16 %v8897_v28 }
 0x4ec   : > { %v9523_v47 = vpop.f32.mrf.mxu1  ;;  %v8831_v59 = vunpack.c.l.bf16 %v8896_v58 }
 0x4ed   : > { %v7802_v35 = vadd.f32 %v9523_v47, %v7641_v32  ;;  %9564 = vmatprep.mubr.bf16.mxu0 %v7849_v36  ;;  %v7833_v24 = vmax.f32 %v7791_v7, 0.0 }
 0x4ee   : > { %v7793_v13 = vpop.f32.mrf.mxu1  ;;  %9565 = vmatmul.mubr.bf16.gmra.mxu0 %v7850_v15 }
 0x4ef   : > { %v7836_v56 = vmax.f32 %v7802_v35, 0.0  ;;  %v7794_v0 = vadd.f32 %v7793_v13, %v7633_v29  ;;  %v8899_v13 = vld [vmem:[%s10375_s29 + $0x38] sm:$0xff]  }
 0x4f1   : > { %v7852_v30 = vpack.c.bf16 %v7836_v56, %v7835_v5  ;;  %v7834_v45 = vmax.f32 %v7794_v0, 0.0 }
 0x4f3   : > { %v7851_v49 = vpack.c.bf16 %v7834_v45, %v7833_v24  ;;  %v8832_v24 = vunpack.c.h.bf16 %v8896_v58  ;;  %v8898_v45 = vld [vmem:[%s10375_s29 + $0x30] sm:$0xff]  }
 0x4f5   : > { %9568 = vmatprep.mubr.bf16.mxu0 %v7851_v49 }
 0x4f6   : > { %9569 = vmatmul.mubr.bf16.gmra.mxu0 %v7852_v30 }
 0x57e   : > { %v9542_v18 = vpop.f32.mrf.mxu0 }
 0x57f   : > { %v7967_v51 = vadd.f32 %v9542_v18, %v14358_v62 }
 0x580   : > { %v7958_v38 = vpop.f32.mrf.mxu0 }
 0x581   : > { %v8151_v60 = vadd.f32 %v8819_v53, %v7967_v51  ;;  %v7959_v46 = vadd.f32 %v14358_v62, %v7958_v38  ;;  %v8843_v53 = vunpack.c.l.bf16 %v8899_v13 }
 0x582   : > { %v9543_v63 = vpop.f32.mrf.mxu0 }
 0x583   : > { %v8183_v44 = vmax.f32 %v8151_v60, 0.0  ;;  %v8149_v31 = vadd.f32 %v8815_v37, %v7959_v46  ;;  %v7970_v9 = vadd.f32 %v9543_v63, %v14358_v62  ;;  %v8839_v60 = vunpack.c.l.bf16 %v8898_v45 }
 0x584   : > { %v7961_v6 = vpop.f32.mrf.mxu0 }
 0x585   : > { %8215 = vst [vmem:[%s14367_s30 + $0x10] sm:$0xff] %v8183_v44  ;;  %v8181_v17 = vmax.f32 %v8149_v31, 0.0  ;;  %v8152_v16 = vadd.f32 %v8820_v22, %v7970_v9  ;;  %v7962_v33 = vadd.f32 %v14358_v62, %v7961_v6  ;;  %v8844_v44 = vunpack.c.h.bf16 %v8899_v13  ;;  %v8901_v9 = vld [vmem:[%s10375_s29 + $0x48] sm:$0xff]  }
 0x586   : > { %v9546_v20 = vpop.f32.mrf.mxu0 }
 0x587   : > { %8213 = vst [vmem:[%s14367_s30] sm:$0xff] %v8181_v17  ;;  %v8184_v55 = vmax.f32 %v8152_v16, 0.0  ;;  %v8150_v57 = vadd.f32 %v8816_v54, %v7962_v33  ;;  %v7983_v11 = vadd.f32 %v9546_v20, %v14358_v62  ;;  %v8840_v17 = vunpack.c.h.bf16 %v8898_v45  ;;  %v8900_v33 = vld [vmem:[%s10375_s29 + $0x40] sm:$0xff]  }
 0x588   : > { %v7974_v41 = vpop.f32.mrf.mxu0 }
 0x589   : > { %8216 = vst [vmem:[%s14367_s30 + $0x18] sm:$0xff] %v8184_v55  ;;  %v8182_v43 = vmax.f32 %v8150_v57, 0.0  ;;  %v8155_v10 = vadd.f32 %v8827_v19, %v7983_v11  ;;  %v7975_v39 = vadd.f32 %v14358_v62, %v7974_v41  ;;  %v8851_v57 = vunpack.c.l.bf16 %v8901_v9 }
 0x58a   : > { %v9547_v42 = vpop.f32.mrf.mxu0 }
 0x58b   : > { %8214 = vst [vmem:[%s14367_s30 + $0x8] sm:$0xff] %v8182_v43  ;;  %v8187_v14 = vmax.f32 %v8155_v10, 0.0  ;;  %v8153_v3 = vadd.f32 %v8823_v61, %v7975_v39  ;;  %v7986_v34 = vadd.f32 %v9547_v42, %v14358_v62  ;;  %v8847_v10 = vunpack.c.l.bf16 %v8900_v33 }
 0x58c   : > { %v7977_v50 = vpop.f32.mrf.mxu0 }
 0x58d   : > { %8219 = vst [vmem:[%s14367_s30 + $0x30] sm:$0xff] %v8187_v14  ;;  %v8185_v26 = vmax.f32 %v8153_v3, 0.0  ;;  %v8156_v21 = vadd.f32 %v8828_v40, %v7986_v34  ;;  %v7978_v15 = vadd.f32 %v14358_v62, %v7977_v50  ;;  %v8852_v14 = vunpack.c.h.bf16 %v8901_v9  ;;  %v8903_v34 = vld [vmem:[%s10375_s29 + $0x58] sm:$0xff]  }
 0x58e   : > { %v9550_v25 = vpop.f32.mrf.mxu0 }
 0x58f   : > { %8217 = vst [vmem:[%s14367_s30 + $0x20] sm:$0xff] %v8185_v26  ;;  %v8188_v1 = vmax.f32 %v8156_v21, 0.0  ;;  %v8154_v36 = vadd.f32 %v8824_v2, %v7978_v15  ;;  %v7999_v27 = vadd.f32 %v9550_v25, %v14358_v62  ;;  %v8848_v26 = vunpack.c.h.bf16 %v8900_v33  ;;  %v8902_v15 = vld [vmem:[%s10375_s29 + $0x50] sm:$0xff]  }
 0x590   : > { %v7990_v32 = vpop.f32.mrf.mxu0 }
 0x591   : > { %8220 = vst [vmem:[%s14367_s30 + $0x38] sm:$0xff] %v8188_v1  ;;  %v8186_v47 = vmax.f32 %v8154_v36, 0.0  ;;  %v8159_v7 = vadd.f32 %v8835_v8, %v7999_v27  ;;  %v7991_v35 = vadd.f32 %v14358_v62, %v7990_v32  ;;  %v8859_v36 = vunpack.c.l.bf16 %v8903_v34 }
 0x592   : > { %v9551_v29 = vpop.f32.mrf.mxu0 }
 0x593   : > { %8218 = vst [vmem:[%s14367_s30 + $0x28] sm:$0xff] %v8186_v47  ;;  %v8191_v5 = vmax.f32 %v8159_v7, 0.0  ;;  %v8157_v56 = vadd.f32 %v8831_v59, %v7991_v35  ;;  %v8002_v0 = vadd.f32 %v9551_v29, %v14358_v62  ;;  %v8855_v7 = vunpack.c.l.bf16 %v8902_v15 }
 0x594   : > { %v7993_v30 = vpop.f32.mrf.mxu0 }
 0x595   : > { %8223 = vst [vmem:[%s14367_s30 + $0x50] sm:$0xff] %v8191_v5  ;;  %v8189_v49 = vmax.f32 %v8157_v56, 0.0  ;;  %v8160_v4 = vadd.f32 %v8836_v52, %v8002_v0  ;;  %v7994_v23 = vadd.f32 %v14358_v62, %v7993_v30  ;;  %v8860_v5 = vunpack.c.h.bf16 %v8903_v34  ;;  %v8905_v0 = vld [vmem:[%s10375_s29 + $0x68] sm:$0xff]  }
 0x596   : > { %v9554_v18 = vpop.f32.mrf.mxu0 }
 0x597   : > { %8221 = vst [vmem:[%s14367_s30 + $0x40] sm:$0xff] %v8189_v49  ;;  %v8192_v51 = vmax.f32 %v8160_v4, 0.0  ;;  %v8158_v37 = vadd.f32 %v8832_v24, %v7994_v23  ;;  %v8015_v38 = vadd.f32 %v9554_v18, %v14358_v62  ;;  %v8856_v49 = vunpack.c.h.bf16 %v8902_v15  ;;  %v8904_v23 = vld [vmem:[%s10375_s29 + $0x60] sm:$0xff]  }
 0x598   : > { %v8006_v46 = vpop.f32.mrf.mxu0 }
 0x599   : > { %8224 = vst [vmem:[%s14367_s30 + $0x58] sm:$0xff] %v8192_v51  ;;  %v8190_v22 = vmax.f32 %v8158_v37, 0.0  ;;  %v8163_v63 = vadd.f32 %v8843_v53, %v8015_v38  ;;  %v8007_v12 = vadd.f32 %v14358_v62, %v8006_v46  ;;  %v8867_v37 = vunpack.c.l.bf16 %v8905_v0 }
 0x59a   : > { %v9555_v31 = vpop.f32.mrf.mxu0 }
 0x59b   : > { %8222 = vst [vmem:[%s14367_s30 + $0x48] sm:$0xff] %v8190_v22  ;;  %v8195_v54 = vmax.f32 %v8163_v63, 0.0  ;;  %v8161_v6 = vadd.f32 %v8839_v60, %v8007_v12  ;;  %v8018_v48 = vadd.f32 %v9555_v31, %v14358_v62  ;;  %v8863_v63 = vunpack.c.l.bf16 %v8904_v23 }
 0x59c   : > { %v8009_v16 = vpop.f32.mrf.mxu0 }
 0x59d   : > { %8227 = vst [vmem:[%s14367_s30 + $0x70] sm:$0xff] %v8195_v54  ;;  %v8193_v19 = vmax.f32 %v8161_v6, 0.0  ;;  %v8164_v20 = vadd.f32 %v8844_v44, %v8018_v48  ;;  %v8010_v55 = vadd.f32 %v14358_v62, %v8009_v16  ;;  %v8868_v54 = vunpack.c.h.bf16 %v8905_v0  ;;  %v8907_v48 = vld [vmem:[%s10375_s29 + $0x78] sm:$0xff]  }
 0x59e   : > { %v9558_v11 = vpop.f32.mrf.mxu0 }
 0x59f   : > { %8225 = vst [vmem:[%s14367_s30 + $0x60] sm:$0xff] %v8193_v19  ;;  %v8196_v61 = vmax.f32 %v8164_v20, 0.0  ;;  %v8162_v41 = vadd.f32 %v8840_v17, %v8010_v55  ;;  %v8031_v43 = vadd.f32 %v9558_v11, %v14358_v62  ;;  %v8864_v19 = vunpack.c.h.bf16 %v8904_v23  ;;  %v8906_v55 = vld [vmem:[%s10375_s29 + $0x70] sm:$0xff]   ;;  %s8732_s29 = sshll.u32 %s10245_s28, 12  ;;  %s10181_s28 = smov [#allocation12]  }
 0x5a0   : > { %v8022_v39 = vpop.f32.mrf.mxu0  ;;  %v8872_v15 = vunpack.c.h.bf16 %v8906_v55  ;;  %s14445_s12 = scalar_lea.hbm %s14499_s7, %s8732_s29  ;;  %s10100_s21 = sshll.u32 %s10181_s28, 4  ;;  %s10101_s21 = int_to_ptr.vmem [resolvable:$false] %s10100_s21 }
 0x5a1   : > { %8228 = vst [vmem:[%s14367_s30 + $0x78] sm:$0xff] %v8196_v61  ;;  %v8194_v40 = vmax.f32 %v8162_v41, 0.0  ;;  %v8167_v42 = vadd.f32 %v8851_v57, %v8031_v43  ;;  %v8023_v28 = vadd.f32 %v14358_v62, %v8022_v39  ;;  %v8875_v41 = vunpack.c.l.bf16 %v8907_v48  ;;  %s10102_s22 = scalar_lea.vmem %s10101_s21, 8192  ;;  %p10103_p13 = scmp.lt.s32.totalorder %s14447_s9, %s10101_s21 }
 0x5a2   : > { %v9559_v3 = vpop.f32.mrf.mxu0  ;;  %p10104_p0 = scmp.lt.s32.totalorder %s10102_s22, %s10096_s11 }
 0x5a3   : > { %8226 = vst [vmem:[%s14367_s30 + $0x68] sm:$0xff] %v8194_v40  ;;  %v8199_v2 = vmax.f32 %v8167_v42, 0.0  ;;  %v8165_v50 = vadd.f32 %v8847_v10, %v8023_v28  ;;  %v8034_v58 = vadd.f32 %v9559_v3, %v14358_v62  ;;  %v8871_v42 = vunpack.c.l.bf16 %v8906_v55 }
 0x5a4   : > { %v8025_v21 = vpop.f32.mrf.mxu0  ;;  %p10105_p2 = por %p10104_p0, %p10103_p13 }
 0x5a5   : > { %8231 = vst [vmem:[%s14367_s30 + $0x90] sm:$0xff] %v8199_v2  ;;  %v8197_v8 = vmax.f32 %v8165_v50, 0.0  ;;  %v8168_v25 = vadd.f32 %v8852_v14, %v8034_v58  ;;  %v8026_v1 = vadd.f32 %v14358_v62, %v8025_v21  ;;  %v8876_v2 = vunpack.c.h.bf16 %v8907_v48 }
 0x5a6   : > { %v9562_v27 = vpop.f32.mrf.mxu0  ;;  %p10106_p10 = pnand %p10105_p2, %p10099_p9 }
 0x5a7   : > { %8229 = vst [vmem:[%s14367_s30 + $0x80] sm:$0xff] %v8197_v8  ;;  %v8200_v59 = vmax.f32 %v8168_v25, 0.0  ;;  %v8166_v32 = vadd.f32 %v8848_v26, %v8026_v1  ;;  %v8047_v47 = vadd.f32 %v9562_v27, %v14358_v62 }
 0x5a8   : > { %v8038_v35 = vpop.f32.mrf.mxu0 }
 0x5a9   : > { %8232 = vst [vmem:[%s14367_s30 + $0x98] sm:$0xff] %v8200_v59  ;;  %v8198_v52 = vmax.f32 %v8166_v32, 0.0  ;;  %v8171_v29 = vadd.f32 %v8859_v36, %v8047_v47  ;;  %v8039_v13 = vadd.f32 %v14358_v62, %v8038_v35 }
 0x5aa   : > { %v9563_v56 = vpop.f32.mrf.mxu0 }
 0x5ab   : > { %8230 = vst [vmem:[%s14367_s30 + $0x88] sm:$0xff] %v8198_v52  ;;  %v8203_v24 = vmax.f32 %v8171_v29, 0.0  ;;  %v8169_v30 = vadd.f32 %v8855_v7, %v8039_v13  ;;  %v8050_v45 = vadd.f32 %v9563_v56, %v14358_v62 }
 0x5ac   : > { %v8041_v4 = vpop.f32.mrf.mxu0 }
 0x5ad   : > { %8235 = vst [vmem:[%s14367_s30 + $0xb0] sm:$0xff] %v8203_v24  ;;  %v8201_v53 = vmax.f32 %v8169_v30, 0.0  ;;  %v8172_v18 = vadd.f32 %v8860_v5, %v8050_v45  ;;  %v8042_v51 = vadd.f32 %v14358_v62, %v8041_v4 }
 0x5ae   : > { %v9566_v38 = vpop.f32.mrf.mxu0 }
 0x5af   : > { %8233 = vst [vmem:[%s14367_s30 + $0xa0] sm:$0xff] %v8201_v53  ;;  %v8204_v60 = vmax.f32 %v8172_v18, 0.0  ;;  %v8170_v46 = vadd.f32 %v8856_v49, %v8042_v51  ;;  %v8063_v22 = vadd.f32 %v9566_v38, %v14358_v62 }
 0x5b0   : > { %v8054_v12 = vpop.f32.mrf.mxu0 }
 0x5b1   : > { %8236 = vst [vmem:[%s14367_s30 + $0xb8] sm:$0xff] %v8204_v60  ;;  %v8202_v44 = vmax.f32 %v8170_v46, 0.0  ;;  %v8175_v31 = vadd.f32 %v8867_v37, %v8063_v22  ;;  %v8055_v9 = vadd.f32 %v14358_v62, %v8054_v12 }
 0x5b2   : > { %v9567_v6 = vpop.f32.mrf.mxu0 }
 0x5b3   : > { %8234 = vst [vmem:[%s14367_s30 + $0xa8] sm:$0xff] %v8202_v44  ;;  %v8207_v17 = vmax.f32 %v8175_v31, 0.0  ;;  %v8173_v16 = vadd.f32 %v8863_v63, %v8055_v9  ;;  %v8066_v33 = vadd.f32 %v9567_v6, %v14358_v62 }
 0x5b4   : > { %v8057_v20 = vpop.f32.mrf.mxu0 }
 0x5b5   : > { %8239 = vst [vmem:[%s14367_s30 + $0xd0] sm:$0xff] %v8207_v17  ;;  %v8205_v57 = vmax.f32 %v8173_v16, 0.0  ;;  %v8176_v11 = vadd.f32 %v8868_v54, %v8066_v33  ;;  %v8058_v61 = vadd.f32 %v14358_v62, %v8057_v20 }
 0x5b6   : > { %v9570_v43 = vpop.f32.mrf.mxu0 }
 0x5b7   : > { %8237 = vst [vmem:[%s14367_s30 + $0xc0] sm:$0xff] %v8205_v57  ;;  %v8208_v10 = vmax.f32 %v8176_v11, 0.0  ;;  %v8174_v39 = vadd.f32 %v8864_v19, %v8058_v61  ;;  %v8079_v40 = vadd.f32 %v9570_v43, %v14358_v62 }
 0x5b8   : > { %v8070_v28 = vpop.f32.mrf.mxu0 }
 0x5b9   : > { %8240 = vst [vmem:[%s14367_s30 + $0xd8] sm:$0xff] %v8208_v10  ;;  %v8206_v14 = vmax.f32 %v8174_v39, 0.0  ;;  %v8179_v3 = vadd.f32 %v8875_v41, %v8079_v40  ;;  %v8071_v34 = vadd.f32 %v14358_v62, %v8070_v28 }
 0x5ba   : > { %v9571_v50 = vpop.f32.mrf.mxu0 }
 0x5bb   : > { %8238 = vst [vmem:[%s14367_s30 + $0xc8] sm:$0xff] %v8206_v14  ;;  %v8211_v58 = vmax.f32 %v8179_v3, 0.0  ;;  %v8177_v26 = vadd.f32 %v8871_v42, %v8071_v34  ;;  %v8082_v21 = vadd.f32 %v9571_v50, %v14358_v62 }
 0x5bc   : > { %v8073_v8 = vpop.f32.mrf.mxu0 }
 0x5bd   : > { %8243 = vst [vmem:[%s14367_s30 + $0xf0] sm:$0xff] %v8211_v58  ;;  %v8209_v25 = vmax.f32 %v8177_v26, 0.0  ;;  %v8180_v1 = vadd.f32 %v8876_v2, %v8082_v21  ;;  %v8074_v36 = vadd.f32 %v14358_v62, %v8073_v8 }
 0x5bf   : > { %8241 = vst [vmem:[%s14367_s30 + $0xe0] sm:$0xff] %v8209_v25  ;;  %v8212_v27 = vmax.f32 %v8180_v1, 0.0  ;;  %v8178_v59 = vadd.f32 %v8872_v15, %v8074_v36 }
 0x5c1   : > { %8244 = vst [vmem:[%s14367_s30 + $0xf8] sm:$0xff] %v8212_v27  ;;  %v8210_v32 = vmax.f32 %v8178_v59, 0.0 }
 0x5c3   : > { %8242 = vst [vmem:[%s14367_s30 + $0xe8] sm:$0xff] %v8210_v32 }
 0x5c4   : > { %10109 = shalt.err (!%p10106_p10)
}
 0x5c5   : > { %s10110_s18 = scalar_lea.hbm %s14445_s12, 4096  ;;  %s10114_s16 = scalar_lea.hbm %s14499_s7, 8192 }
 0x5c6   : > { %p10111_p6 = scmp.ne.s32.totalorder %s14445_s12, %s10110_s18  ;;  %p10115_p3 = scmp.lt.s32.totalorder %s14445_s12, %s14499_s7 }
 0x5c7   : > { %p10116_p11 = scmp.lt.s32.totalorder %s10114_s16, %s10110_s18 }
 0x5c8   : > { %p10112_p4 = pnand %p10111_p6, %p15969_p1 }
 0x5c9   : > { %p10117_p5 = por %p10116_p11, %p10115_p3 }
 0x5ca   : > { %p10113_p8 = pneg %p10112_p4 }
 0x5cc   : > { %p10118_p7 = pnand %p10117_p5, %p10113_p8 }
 0x5ce   : > { %10121 = shalt.err (!%p10118_p7)
}
 0x5cf   : > { %s10182_s10 = smov 128   ;;  %s10183_s13 = smov 8  }
 0x5d0   : > { %9602 = dma.vmem_to_hbm [thread:$0]  (%p15969_p1), %s14447_s9, 4096, %s14445_s12, %s8246_s15, %s10182_s10, %s10182_s10, %s10183_s13  }
 0x5d1 PF: > { %s8274_s11 = sand.u32 1, %s10156_s24   ;;  %p15970_p12 = scmp.ne.s32.totalorder %s14908_s8, 0 }
 0x5d2   : > { %p15971_p9 = scmp.ge.s32.totalorder %s10168_s27, 2  ;;  %s8275_s28 = scalar_lea.sflag [#allocation6], %s8274_s11 }
 0x5d4   : > { %p9619_p13 = pnand %p15971_p9, %p15970_p12 }
 0x5d6   : > { %p9620_p0 = pneg %p9619_p13 }
 0x5d8   : > { %10151 = dma.done.wait (%p9620_p0), %s8275_s28, 4096  }
 0x5d9   : > { %10153 = vsyncadd (%p9620_p0), %s8275_s28, 4294963200  ;;  %p22_p2 = scmp.ge.s32.totalorder %s10313_s14, 4   ;;  %s15972_s24 = smov %s10160_s25 }
 0x5da   : > { %s15973_s25 = smov %s10164_s26  ;;  %s15974_s26 = smov %s10323_s17 }
 0x5db   : > { %s15975_s27 = smov %s10313_s14  ;;  %24 = sbr.rel (!%p22_p2) target bundleno = 9 (0x9), region = 105 }
 0x5e0   :  { %8280 = vsyncpa [#allocation5], 1 }
 0x5e1   :  { %8282 = vsyncpa [#allocation5 + $0x1], 1 }
 0x5e2   :  { %8283 = vsyncpa [#allocation8], 1 }
 0x5e3   :  { %8284 = vsyncpa [#allocation11], 1 }
 0x5e4   :  { %8285 = vsyncpa [#allocation6], 1 }
 0x5e5   :  { %8287 = vsyncpa [#allocation6 + $0x1], 1 }

</bundles_post_ra>
